<compile_context>
chip_gen: v7x
topology: tpu7x:2x2x1
jax: 0.10.0
libtpu: 0.0.40
codegen_flags: <defaults>
</compile_context>

<pallas_src>
import functools

import numpy as np
import jax
import jax.numpy as jnp
from jax.experimental import pallas as pl
from jax.experimental.pallas import tpu as pltpu


COUT_PAD = 8                    # final conv channels padded 3 -> 8 (one sublane)
MATMUL_DTYPE = jnp.float32      # set to jnp.bfloat16 on v6e/v7x for 2x MXU rate
                                # (f32 accumulation kept; accuracy loosens to ~1e-2)


# ---------------------------------------------------------------------------
# Fused whole-Net kernel: one batch block per grid step, everything in VMEM.
# ---------------------------------------------------------------------------
def _net_kernel(x_ref, mask_ref, w_in_ref, b_in_ref, w_rb_ref, b_rb_ref,
                w_out_ref, b_out_ref, o_ref, imcol_ref,
                *, K, C, CIN, num_resblocks, roll_amts):
    KK = K * K
    pad = (K - 1) // 2
    center = pad * K + pad if K % 2 == 1 else -1   # identity tap (no roll, no mask)

    def build_imcol(act, cin):
        # act: (cin, L) f32, L = NB*H*W (lane-dense).
        # Per tap: lane roll (XLU) + 0/1 mask multiply (VPU) implements the shifted,
        # zero-padded patch; store at sublane offset t*cin (aligned, unmasked vst).
        for t in range(KK):
            if t == center:
                tap = act
            else:
                tap = pltpu.roll(act, roll_amts[t], axis=1) * mask_ref[t:t + 1, :]
            imcol_ref[t * cin:(t + 1) * cin, :] = tap.astype(imcol_ref.dtype)

    def conv(act, cin, w_ref, b_ref, relu):
        build_imcol(act, cin)
        patches = imcol_ref[0:KK * cin, :]                    # (K*K*cin, L)
        out = jnp.dot(w_ref[...], patches,                    # one deep MXU matmul
                      preferred_element_type=jnp.float32)     # (cout, L) f32
        out = out + b_ref[...]                                # (cout, 1) lane-bcast
        if relu:
            out = jnp.maximum(out, 0.0)
        return out

    # ---- conv_in_L1 : 48 -> C ----------------------------------------------
    s = conv(x_ref[0], CIN, w_in_ref, b_in_ref, relu=False)   # (C, L)

    # ---- residual blocks: s = s + conv_RB(relu(conv_RB(s))) -----------------
    for _ in range(num_resblocks):
        t1 = conv(s, C, w_rb_ref, b_rb_ref, relu=True)
        t2 = conv(t1, C, w_rb_ref, b_rb_ref, relu=False)
        s = s + t2                                            # residual, in VMEM

    # ---- conv_out_L1 : C -> 3 (padded to COUT_PAD) ---------------------------
    out = conv(s, C, w_out_ref, b_out_ref, relu=False)        # (COUT_PAD, L)
    o_ref[0] = out.astype(o_ref.dtype)


# ---------------------------------------------------------------------------
# Wrapper: parameter re-layout + single fused pallas_call.
# ---------------------------------------------------------------------------
def _to_t_kkc(w_oikk):
    """(Cout, Cin, K, K) -> (Cout, K*K*Cin), tap-major (matches im2col rows)."""
    Cout, Cin, K, _ = w_oikk.shape
    return jnp.transpose(w_oikk, (0, 2, 3, 1)).reshape(Cout, K * K * Cin)


def net_forward(x_nchw, params, *, batch_block=1):
    K = int(params["filter_size_L1"])
    nrb = int(params["num_resblocks"])
    pad = (K - 1) // 2

    N, CIN, H, W = x_nchw.shape
    HW = H * W

    w_in = _to_t_kkc(params["conv_in_w"]).astype(MATMUL_DTYPE)     # (C, K*K*48)
    w_rb = _to_t_kkc(params["conv_rb_w"]).astype(MATMUL_DTYPE)     # (C, K*K*C)
    w_out = _to_t_kkc(params["conv_out_w"])                        # (3, K*K*C)
    C = w_in.shape[0]
    COUT = w_out.shape[0]
    w_out = jnp.pad(w_out, ((0, COUT_PAD - COUT), (0, 0))).astype(MATMUL_DTYPE)

    b_in = params["conv_in_b"].reshape(C, 1).astype(jnp.float32)
    b_rb = params["conv_rb_b"].reshape(C, 1).astype(jnp.float32)
    b_out = jnp.pad(params["conv_out_b"],
                    (0, COUT_PAD - COUT)).reshape(COUT_PAD, 1).astype(jnp.float32)

    # --- batch folding: NB images per grid step extend the lane dim -----------
    NB = batch_block
    assert N % NB == 0, "batch_block must divide the batch size"
    NG = N // NB
    HW_L = NB * HW

    x_f = (x_nchw.reshape(NG, NB, CIN, HW)
           .transpose(0, 2, 1, 3)
           .reshape(NG, CIN, HW_L)
           .astype(jnp.float32))

    # --- static per-tap lane-roll amounts and zero-padding masks --------------
    ys, xs = np.meshgrid(np.arange(H), np.arange(W), indexing="ij")
    masks, roll_amts = [], []
    for ky in range(K):
        for kx in range(K):
            valid = ((ys + ky - pad >= 0) & (ys + ky - pad < H) &
                     (xs + kx - pad >= 0) & (xs + kx - pad < W))
            masks.append(valid.reshape(-1))
            shift = (ky - pad) * W + (kx - pad)
            roll_amts.append(int((-shift) % HW_L))
    mask = jnp.asarray(np.tile(np.stack(masks).astype(np.float32), (1, NB)))
    roll_amts = tuple(roll_amts)

    kernel = functools.partial(_net_kernel, K=K, C=C, CIN=CIN,
                               num_resblocks=nrb, roll_amts=roll_amts)

    imcol_rows = K * K * max(CIN, C)

    out = pl.pallas_call(
        kernel,
        out_shape=jax.ShapeDtypeStruct((NG, COUT_PAD, HW_L), jnp.float32),
        grid_spec=pltpu.PrefetchScalarGridSpec(
            num_scalar_prefetch=0,
            grid=(NG,),                                    # one batch block per step
            in_specs=[
                pl.BlockSpec((1, CIN, HW_L), lambda n: (n, 0, 0)),     # x
                pl.BlockSpec((K * K, HW_L), lambda n: (0, 0)),         # masks
                pl.BlockSpec((C, K * K * CIN), lambda n: (0, 0)),      # w_in
                pl.BlockSpec((C, 1), lambda n: (0, 0)),                # b_in
                pl.BlockSpec((C, K * K * C), lambda n: (0, 0)),        # w_rb
                pl.BlockSpec((C, 1), lambda n: (0, 0)),                # b_rb
                pl.BlockSpec((COUT_PAD, K * K * C), lambda n: (0, 0)), # w_out
                pl.BlockSpec((COUT_PAD, 1), lambda n: (0, 0)),         # b_out
            ],
            out_specs=pl.BlockSpec((1, COUT_PAD, HW_L), lambda n: (n, 0, 0)),
            scratch_shapes=[
                pltpu.VMEM((imcol_rows, HW_L), MATMUL_DTYPE),   # im2col slab
            ],
        ),
        compiler_params=pltpu.CompilerParams(
            dimension_semantics=("parallel",),             # batch axis -> 2 TCs (v7x)
            vmem_limit_bytes=32 * 1024 * 1024,
        ),
    )(x_f, mask, w_in, b_in, w_rb, b_rb, w_out, b_out)

    out = (out.reshape(NG, COUT_PAD, NB, HW)
           .transpose(0, 2, 1, 3)
           .reshape(N, COUT_PAD, H, W)[:, :COUT])
    return out                                              # (N, 3, H, W)


# ---------------------------------------------------------------------------
# Pure-JAX reference (lax conv) for correctness check.
# ---------------------------------------------------------------------------
def _conv_ref(x_nchw, w_oikk, b, pad):
    y = jax.lax.conv_general_dilated(
        x_nchw, w_oikk, window_strides=(1, 1),
        padding=((pad, pad), (pad, pad)),
        dimension_numbers=("NCHW", "OIHW", "NCHW"))
    return y + b[None, :, None, None]


def net_forward_ref(x_nchw, params):
    K = params["filter_size_L1"]
    pad = (K - 1) // 2
    s = _conv_ref(x_nchw, params["conv_in_w"], params["conv_in_b"], pad)
    for _ in range(params["num_resblocks"]):
        t = _conv_ref(s, params["conv_rb_w"], params["conv_rb_b"], pad)
        t = jnp.maximum(t, 0.0)
        t = _conv_ref(t, params["conv_rb_w"], params["conv_rb_b"], pad)
        s = s + t
    return _conv_ref(s, params["conv_out_w"], params["conv_out_b"], pad)


if __name__ == "__main__":
    # Hyperparameters (params.num_channels_L1, params.filter_size_L1, params.num_resblocks)
    NUM_CHANNELS_L1 = 32
    FILTER_SIZE_L1 = 3
    NUM_RESBLOCKS = 2
    CIN = 48          # conv_in_L1 input channels (fixed by the module)
    COUT_FINAL = 3    # conv_out_L1 output channels (fixed by the module)

    # Small deterministic problem size; batch_block=2 folds pairs of images into one
    # grid step (deeper MXU N-dim on v5e/v6e) while keeping 2 grid steps for v7x.
    N, H, W = 4, 16, 16
    BATCH_BLOCK = 2

    key = jax.random.PRNGKey(0)
    ks = jax.random.split(key, 8)
    scale = 0.05
    params = {
        "filter_size_L1": FILTER_SIZE_L1,
        "num_resblocks": NUM_RESBLOCKS,
        "conv_in_w": scale * jax.random.normal(
            ks[0], (NUM_CHANNELS_L1, CIN, FILTER_SIZE_L1, FILTER_SIZE_L1), jnp.float32),
        "conv_in_b": scale * jax.random.normal(ks[1], (NUM_CHANNELS_L1,), jnp.float32),
        "conv_rb_w": scale * jax.random.normal(
            ks[2], (NUM_CHANNELS_L1, NUM_CHANNELS_L1, FILTER_SIZE_L1, FILTER_SIZE_L1),
            jnp.float32),
        "conv_rb_b": scale * jax.random.normal(ks[3], (NUM_CHANNELS_L1,), jnp.float32),
        "conv_out_w": scale * jax.random.normal(
            ks[4], (COUT_FINAL, NUM_CHANNELS_L1, FILTER_SIZE_L1, FILTER_SIZE_L1),
            jnp.float32),
        "conv_out_b": scale * jax.random.normal(ks[5], (COUT_FINAL,), jnp.float32),
    }

    x = jax.random.normal(ks[6], (N, CIN, H, W), jnp.float32)

    out = jax.jit(lambda a: net_forward(a, params, batch_block=BATCH_BLOCK))(x)
    out = jax.block_until_ready(out)

    ref = net_forward_ref(x, params)
    assert out.shape == (N, COUT_FINAL, H, W), out.shape
    assert jnp.allclose(out, ref, rtol=1e-3, atol=1e-3), float(jnp.max(jnp.abs(out - ref)))

    print("KERNEL_OK")
</pallas_src>

<mosaic_0001>
module attributes {stable_mosaic.version = 11 : i64} {
  func.func @_net_kernel(%arg0: i32, %arg1: memref<1x48x512xf32, #tpu.memory_space<vmem>>, %arg2: memref<9x512xf32, #tpu.memory_space<vmem>>, %arg3: memref<32x432xf32, #tpu.memory_space<vmem>>, %arg4: memref<32x1xf32, #tpu.memory_space<vmem>>, %arg5: memref<32x288xf32, #tpu.memory_space<vmem>>, %arg6: memref<32x1xf32, #tpu.memory_space<vmem>>, %arg7: memref<8x288xf32, #tpu.memory_space<vmem>>, %arg8: memref<8x1xf32, #tpu.memory_space<vmem>>, %arg9: memref<1x8x512xf32, #tpu.memory_space<vmem>>, %arg10: memref<432x512xf32, #tpu.memory_space<vmem>>) attributes {dimension_semantics = [#tpu.dimension_semantics<parallel>], iteration_bounds = array<i64: 2>, scalar_prefetch = 0 : i64, scratch_operands = 1 : i64, tpu.core_type = #tpu.core_type<tc>, window_params = [{transform_indices = @transform_0, window_bounds = array<i64: 1, 48, 512>}, {pipeline_mode = #tpu.pipeline_mode<synchronous>, transform_indices = @transform_1, window_bounds = array<i64: 9, 512>}, {pipeline_mode = #tpu.pipeline_mode<synchronous>, transform_indices = @transform_2, window_bounds = array<i64: 32, 432>}, {pipeline_mode = #tpu.pipeline_mode<synchronous>, transform_indices = @transform_3, window_bounds = array<i64: 32, 1>}, {pipeline_mode = #tpu.pipeline_mode<synchronous>, transform_indices = @transform_4, window_bounds = array<i64: 32, 288>}, {pipeline_mode = #tpu.pipeline_mode<synchronous>, transform_indices = @transform_5, window_bounds = array<i64: 32, 1>}, {pipeline_mode = #tpu.pipeline_mode<synchronous>, transform_indices = @transform_6, window_bounds = array<i64: 8, 288>}, {pipeline_mode = #tpu.pipeline_mode<synchronous>, transform_indices = @transform_7, window_bounds = array<i64: 8, 1>}, {transform_indices = @transform_8, window_bounds = array<i64: 1, 8, 512>}]} {
    %c0 = arith.constant 0 : index
    %c0_0 = arith.constant 0 : index
    %c0_1 = arith.constant 0 : index
    %0 = vector.load %arg1[%c0, %c0_0, %c0_1] : memref<1x48x512xf32, #tpu.memory_space<vmem>>, vector<1x48x512xf32>
    %1 = vector.shape_cast %0 : vector<1x48x512xf32> to vector<48x512xf32>
    %c17_i32 = arith.constant 17 : i32
    %2 = tpu.dynamic_rotate %1 by %c17_i32 dim 1 : vector<48x512xf32>, i32 -> vector<48x512xf32>
    %c0_2 = arith.constant 0 : index
    %c0_3 = arith.constant 0 : index
    %3 = vector.load %arg2[%c0_2, %c0_3] : memref<9x512xf32, #tpu.memory_space<vmem>>, vector<1x512xf32>
    %4 = vector.broadcast %3 : vector<1x512xf32> to vector<48x512xf32>
    %5 = arith.mulf %2, %4 : vector<48x512xf32>
    %c0_4 = arith.constant 0 : index
    %c0_5 = arith.constant 0 : index
    %6 = vector.load %arg10[%c0_4, %c0_5] : memref<432x512xf32, #tpu.memory_space<vmem>>, vector<48x512xf32>
    tpu.vector_store %arg10[%c0_4, %c0_5], %5 {strides = array<i32>} : memref<432x512xf32, #tpu.memory_space<vmem>>, vector<48x512xf32>,
    %c16_i32 = arith.constant 16 : i32
    %7 = tpu.dynamic_rotate %1 by %c16_i32 dim 1 : vector<48x512xf32>, i32 -> vector<48x512xf32>
    %c1 = arith.constant 1 : index
    %c0_6 = arith.constant 0 : index
    %8 = vector.load %arg2[%c1, %c0_6] : memref<9x512xf32, #tpu.memory_space<vmem>>, vector<1x512xf32>
    %9 = vector.broadcast %8 : vector<1x512xf32> to vector<48x512xf32>
    %10 = arith.mulf %7, %9 : vector<48x512xf32>
    %c48 = arith.constant 48 : index
    %c0_7 = arith.constant 0 : index
    %11 = vector.load %arg10[%c48, %c0_7] : memref<432x512xf32, #tpu.memory_space<vmem>>, vector<48x512xf32>
    tpu.vector_store %arg10[%c48, %c0_7], %10 {strides = array<i32>} : memref<432x512xf32, #tpu.memory_space<vmem>>, vector<48x512xf32>,
    %c15_i32 = arith.constant 15 : i32
    %12 = tpu.dynamic_rotate %1 by %c15_i32 dim 1 : vector<48x512xf32>, i32 -> vector<48x512xf32>
    %c2 = arith.constant 2 : index
    %c0_8 = arith.constant 0 : index
    %13 = vector.load %arg2[%c2, %c0_8] : memref<9x512xf32, #tpu.memory_space<vmem>>, vector<1x512xf32>
    %14 = vector.broadcast %13 : vector<1x512xf32> to vector<48x512xf32>
    %15 = arith.mulf %12, %14 : vector<48x512xf32>
    %c96 = arith.constant 96 : index
    %c0_9 = arith.constant 0 : index
    %16 = vector.load %arg10[%c96, %c0_9] : memref<432x512xf32, #tpu.memory_space<vmem>>, vector<48x512xf32>
    tpu.vector_store %arg10[%c96, %c0_9], %15 {strides = array<i32>} : memref<432x512xf32, #tpu.memory_space<vmem>>, vector<48x512xf32>,
    %c1_i32 = arith.constant 1 : i32
    %17 = tpu.dynamic_rotate %1 by %c1_i32 dim 1 : vector<48x512xf32>, i32 -> vector<48x512xf32>
    %c3 = arith.constant 3 : index
    %c0_10 = arith.constant 0 : index
    %18 = vector.load %arg2[%c3, %c0_10] : memref<9x512xf32, #tpu.memory_space<vmem>>, vector<1x512xf32>
    %19 = vector.broadcast %18 : vector<1x512xf32> to vector<48x512xf32>
    %20 = arith.mulf %17, %19 : vector<48x512xf32>
    %c144 = arith.constant 144 : index
    %c0_11 = arith.constant 0 : index
    %21 = vector.load %arg10[%c144, %c0_11] : memref<432x512xf32, #tpu.memory_space<vmem>>, vector<48x512xf32>
    tpu.vector_store %arg10[%c144, %c0_11], %20 {strides = array<i32>} : memref<432x512xf32, #tpu.memory_space<vmem>>, vector<48x512xf32>,
    %c192 = arith.constant 192 : index
    %c0_12 = arith.constant 0 : index
    %22 = vector.load %arg10[%c192, %c0_12] : memref<432x512xf32, #tpu.memory_space<vmem>>, vector<48x512xf32>
    tpu.vector_store %arg10[%c192, %c0_12], %1 {strides = array<i32>} : memref<432x512xf32, #tpu.memory_space<vmem>>, vector<48x512xf32>,
    %c511_i32 = arith.constant 511 : i32
    %23 = tpu.dynamic_rotate %1 by %c511_i32 dim 1 : vector<48x512xf32>, i32 -> vector<48x512xf32>
    %c5 = arith.constant 5 : index
    %c0_13 = arith.constant 0 : index
    %24 = vector.load %arg2[%c5, %c0_13] : memref<9x512xf32, #tpu.memory_space<vmem>>, vector<1x512xf32>
    %25 = vector.broadcast %24 : vector<1x512xf32> to vector<48x512xf32>
    %26 = arith.mulf %23, %25 : vector<48x512xf32>
    %c240 = arith.constant 240 : index
    %c0_14 = arith.constant 0 : index
    %27 = vector.load %arg10[%c240, %c0_14] : memref<432x512xf32, #tpu.memory_space<vmem>>, vector<48x512xf32>
    tpu.vector_store %arg10[%c240, %c0_14], %26 {strides = array<i32>} : memref<432x512xf32, #tpu.memory_space<vmem>>, vector<48x512xf32>,
    %c497_i32 = arith.constant 497 : i32
    %28 = tpu.dynamic_rotate %1 by %c497_i32 dim 1 : vector<48x512xf32>, i32 -> vector<48x512xf32>
    %c6 = arith.constant 6 : index
    %c0_15 = arith.constant 0 : index
    %29 = vector.load %arg2[%c6, %c0_15] : memref<9x512xf32, #tpu.memory_space<vmem>>, vector<1x512xf32>
    %30 = vector.broadcast %29 : vector<1x512xf32> to vector<48x512xf32>
    %31 = arith.mulf %28, %30 : vector<48x512xf32>
    %c288 = arith.constant 288 : index
    %c0_16 = arith.constant 0 : index
    %32 = vector.load %arg10[%c288, %c0_16] : memref<432x512xf32, #tpu.memory_space<vmem>>, vector<48x512xf32>
    tpu.vector_store %arg10[%c288, %c0_16], %31 {strides = array<i32>} : memref<432x512xf32, #tpu.memory_space<vmem>>, vector<48x512xf32>,
    %c496_i32 = arith.constant 496 : i32
    %33 = tpu.dynamic_rotate %1 by %c496_i32 dim 1 : vector<48x512xf32>, i32 -> vector<48x512xf32>
    %c7 = arith.constant 7 : index
    %c0_17 = arith.constant 0 : index
    %34 = vector.load %arg2[%c7, %c0_17] : memref<9x512xf32, #tpu.memory_space<vmem>>, vector<1x512xf32>
    %35 = vector.broadcast %34 : vector<1x512xf32> to vector<48x512xf32>
    %36 = arith.mulf %33, %35 : vector<48x512xf32>
    %c336 = arith.constant 336 : index
    %c0_18 = arith.constant 0 : index
    %37 = vector.load %arg10[%c336, %c0_18] : memref<432x512xf32, #tpu.memory_space<vmem>>, vector<48x512xf32>
    tpu.vector_store %arg10[%c336, %c0_18], %36 {strides = array<i32>} : memref<432x512xf32, #tpu.memory_space<vmem>>, vector<48x512xf32>,
    %c495_i32 = arith.constant 495 : i32
    %38 = tpu.dynamic_rotate %1 by %c495_i32 dim 1 : vector<48x512xf32>, i32 -> vector<48x512xf32>
    %c8 = arith.constant 8 : index
    %c0_19 = arith.constant 0 : index
    %39 = vector.load %arg2[%c8, %c0_19] : memref<9x512xf32, #tpu.memory_space<vmem>>, vector<1x512xf32>
    %40 = vector.broadcast %39 : vector<1x512xf32> to vector<48x512xf32>
    %41 = arith.mulf %38, %40 : vector<48x512xf32>
    %c384 = arith.constant 384 : index
    %c0_20 = arith.constant 0 : index
    %42 = vector.load %arg10[%c384, %c0_20] : memref<432x512xf32, #tpu.memory_space<vmem>>, vector<48x512xf32>
    tpu.vector_store %arg10[%c384, %c0_20], %41 {strides = array<i32>} : memref<432x512xf32, #tpu.memory_space<vmem>>, vector<48x512xf32>,
    %c0_21 = arith.constant 0 : index
    %c0_22 = arith.constant 0 : index
    %43 = vector.load %arg10[%c0_21, %c0_22] : memref<432x512xf32, #tpu.memory_space<vmem>>, vector<432x512xf32>
    %c0_23 = arith.constant 0 : index
    %c0_24 = arith.constant 0 : index
    %44 = vector.load %arg3[%c0_23, %c0_24] : memref<32x432xf32, #tpu.memory_space<vmem>>, vector<32x432xf32>
    %cst = arith.constant dense<0.000000e+00> : vector<32x512xf32>
    %45 = tpu.matmul %44, %43, %cst {dimension_numbers = #tpu.dot_dimension_numbers<[1], [0], [0], [1], [0, 0, 1, 1], [], []>} : vector<32x432xf32>, vector<432x512xf32>, vector<32x512xf32> -> vector<32x512xf32>
    %c0_25 = arith.constant 0 : index
    %c0_26 = arith.constant 0 : index
    %46 = vector.load %arg4[%c0_25, %c0_26] : memref<32x1xf32, #tpu.memory_space<vmem>>, vector<32x1xf32>
    %47 = vector.broadcast %46 : vector<32x1xf32> to vector<32x512xf32>
    %48 = arith.addf %45, %47 : vector<32x512xf32>
    %c17_i32_27 = arith.constant 17 : i32
    %49 = tpu.dynamic_rotate %48 by %c17_i32_27 dim 1 : vector<32x512xf32>, i32 -> vector<32x512xf32>
    %c0_28 = arith.constant 0 : index
    %c0_29 = arith.constant 0 : index
    %50 = vector.load %arg2[%c0_28, %c0_29] : memref<9x512xf32, #tpu.memory_space<vmem>>, vector<1x512xf32>
    %51 = vector.broadcast %50 : vector<1x512xf32> to vector<32x512xf32>
    %52 = arith.mulf %49, %51 : vector<32x512xf32>
    %c0_30 = arith.constant 0 : index
    %c0_31 = arith.constant 0 : index
    %53 = vector.load %arg10[%c0_30, %c0_31] : memref<432x512xf32, #tpu.memory_space<vmem>>, vector<32x512xf32>
    tpu.vector_store %arg10[%c0_30, %c0_31], %52 {strides = array<i32>} : memref<432x512xf32, #tpu.memory_space<vmem>>, vector<32x512xf32>,
    %c16_i32_32 = arith.constant 16 : i32
    %54 = tpu.dynamic_rotate %48 by %c16_i32_32 dim 1 : vector<32x512xf32>, i32 -> vector<32x512xf32>
    %c1_33 = arith.constant 1 : index
    %c0_34 = arith.constant 0 : index
    %55 = vector.load %arg2[%c1_33, %c0_34] : memref<9x512xf32, #tpu.memory_space<vmem>>, vector<1x512xf32>
    %56 = vector.broadcast %55 : vector<1x512xf32> to vector<32x512xf32>
    %57 = arith.mulf %54, %56 : vector<32x512xf32>
    %c32 = arith.constant 32 : index
    %c0_35 = arith.constant 0 : index
    %58 = vector.load %arg10[%c32, %c0_35] : memref<432x512xf32, #tpu.memory_space<vmem>>, vector<32x512xf32>
    tpu.vector_store %arg10[%c32, %c0_35], %57 {strides = array<i32>} : memref<432x512xf32, #tpu.memory_space<vmem>>, vector<32x512xf32>,
    %c15_i32_36 = arith.constant 15 : i32
    %59 = tpu.dynamic_rotate %48 by %c15_i32_36 dim 1 : vector<32x512xf32>, i32 -> vector<32x512xf32>
    %c2_37 = arith.constant 2 : index
    %c0_38 = arith.constant 0 : index
    %60 = vector.load %arg2[%c2_37, %c0_38] : memref<9x512xf32, #tpu.memory_space<vmem>>, vector<1x512xf32>
    %61 = vector.broadcast %60 : vector<1x512xf32> to vector<32x512xf32>
    %62 = arith.mulf %59, %61 : vector<32x512xf32>
    %c64 = arith.constant 64 : index
    %c0_39 = arith.constant 0 : index
    %63 = vector.load %arg10[%c64, %c0_39] : memref<432x512xf32, #tpu.memory_space<vmem>>, vector<32x512xf32>
    tpu.vector_store %arg10[%c64, %c0_39], %62 {strides = array<i32>} : memref<432x512xf32, #tpu.memory_space<vmem>>, vector<32x512xf32>,
    %c1_i32_40 = arith.constant 1 : i32
    %64 = tpu.dynamic_rotate %48 by %c1_i32_40 dim 1 : vector<32x512xf32>, i32 -> vector<32x512xf32>
    %c3_41 = arith.constant 3 : index
    %c0_42 = arith.constant 0 : index
    %65 = vector.load %arg2[%c3_41, %c0_42] : memref<9x512xf32, #tpu.memory_space<vmem>>, vector<1x512xf32>
    %66 = vector.broadcast %65 : vector<1x512xf32> to vector<32x512xf32>
    %67 = arith.mulf %64, %66 : vector<32x512xf32>
    %c96_43 = arith.constant 96 : index
    %c0_44 = arith.constant 0 : index
    %68 = vector.load %arg10[%c96_43, %c0_44] : memref<432x512xf32, #tpu.memory_space<vmem>>, vector<32x512xf32>
    tpu.vector_store %arg10[%c96_43, %c0_44], %67 {strides = array<i32>} : memref<432x512xf32, #tpu.memory_space<vmem>>, vector<32x512xf32>,
    %c128 = arith.constant 128 : index
    %c0_45 = arith.constant 0 : index
    %69 = vector.load %arg10[%c128, %c0_45] : memref<432x512xf32, #tpu.memory_space<vmem>>, vector<32x512xf32>
    tpu.vector_store %arg10[%c128, %c0_45], %48 {strides = array<i32>} : memref<432x512xf32, #tpu.memory_space<vmem>>, vector<32x512xf32>,
    %c511_i32_46 = arith.constant 511 : i32
    %70 = tpu.dynamic_rotate %48 by %c511_i32_46 dim 1 : vector<32x512xf32>, i32 -> vector<32x512xf32>
    %c5_47 = arith.constant 5 : index
    %c0_48 = arith.constant 0 : index
    %71 = vector.load %arg2[%c5_47, %c0_48] : memref<9x512xf32, #tpu.memory_space<vmem>>, vector<1x512xf32>
    %72 = vector.broadcast %71 : vector<1x512xf32> to vector<32x512xf32>
    %73 = arith.mulf %70, %72 : vector<32x512xf32>
    %c160 = arith.constant 160 : index
    %c0_49 = arith.constant 0 : index
    %74 = vector.load %arg10[%c160, %c0_49] : memref<432x512xf32, #tpu.memory_space<vmem>>, vector<32x512xf32>
    tpu.vector_store %arg10[%c160, %c0_49], %73 {strides = array<i32>} : memref<432x512xf32, #tpu.memory_space<vmem>>, vector<32x512xf32>,
    %c497_i32_50 = arith.constant 497 : i32
    %75 = tpu.dynamic_rotate %48 by %c497_i32_50 dim 1 : vector<32x512xf32>, i32 -> vector<32x512xf32>
    %c6_51 = arith.constant 6 : index
    %c0_52 = arith.constant 0 : index
    %76 = vector.load %arg2[%c6_51, %c0_52] : memref<9x512xf32, #tpu.memory_space<vmem>>, vector<1x512xf32>
    %77 = vector.broadcast %76 : vector<1x512xf32> to vector<32x512xf32>
    %78 = arith.mulf %75, %77 : vector<32x512xf32>
    %c192_53 = arith.constant 192 : index
    %c0_54 = arith.constant 0 : index
    %79 = vector.load %arg10[%c192_53, %c0_54] : memref<432x512xf32, #tpu.memory_space<vmem>>, vector<32x512xf32>
    tpu.vector_store %arg10[%c192_53, %c0_54], %78 {strides = array<i32>} : memref<432x512xf32, #tpu.memory_space<vmem>>, vector<32x512xf32>,
    %c496_i32_55 = arith.constant 496 : i32
    %80 = tpu.dynamic_rotate %48 by %c496_i32_55 dim 1 : vector<32x512xf32>, i32 -> vector<32x512xf32>
    %c7_56 = arith.constant 7 : index
    %c0_57 = arith.constant 0 : index
    %81 = vector.load %arg2[%c7_56, %c0_57] : memref<9x512xf32, #tpu.memory_space<vmem>>, vector<1x512xf32>
    %82 = vector.broadcast %81 : vector<1x512xf32> to vector<32x512xf32>
    %83 = arith.mulf %80, %82 : vector<32x512xf32>
    %c224 = arith.constant 224 : index
    %c0_58 = arith.constant 0 : index
    %84 = vector.load %arg10[%c224, %c0_58] : memref<432x512xf32, #tpu.memory_space<vmem>>, vector<32x512xf32>
    tpu.vector_store %arg10[%c224, %c0_58], %83 {strides = array<i32>} : memref<432x512xf32, #tpu.memory_space<vmem>>, vector<32x512xf32>,
    %c495_i32_59 = arith.constant 495 : i32
    %85 = tpu.dynamic_rotate %48 by %c495_i32_59 dim 1 : vector<32x512xf32>, i32 -> vector<32x512xf32>
    %c8_60 = arith.constant 8 : index
    %c0_61 = arith.constant 0 : index
    %86 = vector.load %arg2[%c8_60, %c0_61] : memref<9x512xf32, #tpu.memory_space<vmem>>, vector<1x512xf32>
    %87 = vector.broadcast %86 : vector<1x512xf32> to vector<32x512xf32>
    %88 = arith.mulf %85, %87 : vector<32x512xf32>
    %c256 = arith.constant 256 : index
    %c0_62 = arith.constant 0 : index
    %89 = vector.load %arg10[%c256, %c0_62] : memref<432x512xf32, #tpu.memory_space<vmem>>, vector<32x512xf32>
    tpu.vector_store %arg10[%c256, %c0_62], %88 {strides = array<i32>} : memref<432x512xf32, #tpu.memory_space<vmem>>, vector<32x512xf32>,
    %c0_63 = arith.constant 0 : index
    %c0_64 = arith.constant 0 : index
    %90 = vector.load %arg10[%c0_63, %c0_64] : memref<432x512xf32, #tpu.memory_space<vmem>>, vector<288x512xf32>
    %c0_65 = arith.constant 0 : index
    %c0_66 = arith.constant 0 : index
    %91 = vector.load %arg5[%c0_65, %c0_66] : memref<32x288xf32, #tpu.memory_space<vmem>>, vector<32x288xf32>
    %cst_67 = arith.constant dense<0.000000e+00> : vector<32x512xf32>
    %92 = tpu.matmul %91, %90, %cst_67 {dimension_numbers = #tpu.dot_dimension_numbers<[1], [0], [0], [1], [0, 0, 1, 1], [], []>} : vector<32x288xf32>, vector<288x512xf32>, vector<32x512xf32> -> vector<32x512xf32>
    %c0_68 = arith.constant 0 : index
    %c0_69 = arith.constant 0 : index
    %93 = vector.load %arg6[%c0_68, %c0_69] : memref<32x1xf32, #tpu.memory_space<vmem>>, vector<32x1xf32>
    %94 = vector.broadcast %93 : vector<32x1xf32> to vector<32x512xf32>
    %95 = arith.addf %92, %94 : vector<32x512xf32>
    %cst_70 = arith.constant 0.000000e+00 : f32
    %96 = vector.broadcast %cst_70 : f32 to vector<32x512xf32>
    %97 = arith.maximumf %95, %96 : vector<32x512xf32>
    %c17_i32_71 = arith.constant 17 : i32
    %98 = tpu.dynamic_rotate %97 by %c17_i32_71 dim 1 : vector<32x512xf32>, i32 -> vector<32x512xf32>
    %c0_72 = arith.constant 0 : index
    %c0_73 = arith.constant 0 : index
    %99 = vector.load %arg2[%c0_72, %c0_73] : memref<9x512xf32, #tpu.memory_space<vmem>>, vector<1x512xf32>
    %100 = vector.broadcast %99 : vector<1x512xf32> to vector<32x512xf32>
    %101 = arith.mulf %98, %100 : vector<32x512xf32>
    %c0_74 = arith.constant 0 : index
    %c0_75 = arith.constant 0 : index
    %102 = vector.load %arg10[%c0_74, %c0_75] : memref<432x512xf32, #tpu.memory_space<vmem>>, vector<32x512xf32>
    tpu.vector_store %arg10[%c0_74, %c0_75], %101 {strides = array<i32>} : memref<432x512xf32, #tpu.memory_space<vmem>>, vector<32x512xf32>,
    %c16_i32_76 = arith.constant 16 : i32
    %103 = tpu.dynamic_rotate %97 by %c16_i32_76 dim 1 : vector<32x512xf32>, i32 -> vector<32x512xf32>
    %c1_77 = arith.constant 1 : index
    %c0_78 = arith.constant 0 : index
    %104 = vector.load %arg2[%c1_77, %c0_78] : memref<9x512xf32, #tpu.memory_space<vmem>>, vector<1x512xf32>
    %105 = vector.broadcast %104 : vector<1x512xf32> to vector<32x512xf32>
    %106 = arith.mulf %103, %105 : vector<32x512xf32>
    %c32_79 = arith.constant 32 : index
    %c0_80 = arith.constant 0 : index
    %107 = vector.load %arg10[%c32_79, %c0_80] : memref<432x512xf32, #tpu.memory_space<vmem>>, vector<32x512xf32>
    tpu.vector_store %arg10[%c32_79, %c0_80], %106 {strides = array<i32>} : memref<432x512xf32, #tpu.memory_space<vmem>>, vector<32x512xf32>,
    %c15_i32_81 = arith.constant 15 : i32
    %108 = tpu.dynamic_rotate %97 by %c15_i32_81 dim 1 : vector<32x512xf32>, i32 -> vector<32x512xf32>
    %c2_82 = arith.constant 2 : index
    %c0_83 = arith.constant 0 : index
    %109 = vector.load %arg2[%c2_82, %c0_83] : memref<9x512xf32, #tpu.memory_space<vmem>>, vector<1x512xf32>
    %110 = vector.broadcast %109 : vector<1x512xf32> to vector<32x512xf32>
    %111 = arith.mulf %108, %110 : vector<32x512xf32>
    %c64_84 = arith.constant 64 : index
    %c0_85 = arith.constant 0 : index
    %112 = vector.load %arg10[%c64_84, %c0_85] : memref<432x512xf32, #tpu.memory_space<vmem>>, vector<32x512xf32>
    tpu.vector_store %arg10[%c64_84, %c0_85], %111 {strides = array<i32>} : memref<432x512xf32, #tpu.memory_space<vmem>>, vector<32x512xf32>,
    %c1_i32_86 = arith.constant 1 : i32
    %113 = tpu.dynamic_rotate %97 by %c1_i32_86 dim 1 : vector<32x512xf32>, i32 -> vector<32x512xf32>
    %c3_87 = arith.constant 3 : index
    %c0_88 = arith.constant 0 : index
    %114 = vector.load %arg2[%c3_87, %c0_88] : memref<9x512xf32, #tpu.memory_space<vmem>>, vector<1x512xf32>
    %115 = vector.broadcast %114 : vector<1x512xf32> to vector<32x512xf32>
    %116 = arith.mulf %113, %115 : vector<32x512xf32>
    %c96_89 = arith.constant 96 : index
    %c0_90 = arith.constant 0 : index
    %117 = vector.load %arg10[%c96_89, %c0_90] : memref<432x512xf32, #tpu.memory_space<vmem>>, vector<32x512xf32>
    tpu.vector_store %arg10[%c96_89, %c0_90], %116 {strides = array<i32>} : memref<432x512xf32, #tpu.memory_space<vmem>>, vector<32x512xf32>,
    %c128_91 = arith.constant 128 : index
    %c0_92 = arith.constant 0 : index
    %118 = vector.load %arg10[%c128_91, %c0_92] : memref<432x512xf32, #tpu.memory_space<vmem>>, vector<32x512xf32>
    tpu.vector_store %arg10[%c128_91, %c0_92], %97 {strides = array<i32>} : memref<432x512xf32, #tpu.memory_space<vmem>>, vector<32x512xf32>,
    %c511_i32_93 = arith.constant 511 : i32
    %119 = tpu.dynamic_rotate %97 by %c511_i32_93 dim 1 : vector<32x512xf32>, i32 -> vector<32x512xf32>
    %c5_94 = arith.constant 5 : index
    %c0_95 = arith.constant 0 : index
    %120 = vector.load %arg2[%c5_94, %c0_95] : memref<9x512xf32, #tpu.memory_space<vmem>>, vector<1x512xf32>
    %121 = vector.broadcast %120 : vector<1x512xf32> to vector<32x512xf32>
    %122 = arith.mulf %119, %121 : vector<32x512xf32>
    %c160_96 = arith.constant 160 : index
    %c0_97 = arith.constant 0 : index
    %123 = vector.load %arg10[%c160_96, %c0_97] : memref<432x512xf32, #tpu.memory_space<vmem>>, vector<32x512xf32>
    tpu.vector_store %arg10[%c160_96, %c0_97], %122 {strides = array<i32>} : memref<432x512xf32, #tpu.memory_space<vmem>>, vector<32x512xf32>,
    %c497_i32_98 = arith.constant 497 : i32
    %124 = tpu.dynamic_rotate %97 by %c497_i32_98 dim 1 : vector<32x512xf32>, i32 -> vector<32x512xf32>
    %c6_99 = arith.constant 6 : index
    %c0_100 = arith.constant 0 : index
    %125 = vector.load %arg2[%c6_99, %c0_100] : memref<9x512xf32, #tpu.memory_space<vmem>>, vector<1x512xf32>
    %126 = vector.broadcast %125 : vector<1x512xf32> to vector<32x512xf32>
    %127 = arith.mulf %124, %126 : vector<32x512xf32>
    %c192_101 = arith.constant 192 : index
    %c0_102 = arith.constant 0 : index
    %128 = vector.load %arg10[%c192_101, %c0_102] : memref<432x512xf32, #tpu.memory_space<vmem>>, vector<32x512xf32>
    tpu.vector_store %arg10[%c192_101, %c0_102], %127 {strides = array<i32>} : memref<432x512xf32, #tpu.memory_space<vmem>>, vector<32x512xf32>,
    %c496_i32_103 = arith.constant 496 : i32
    %129 = tpu.dynamic_rotate %97 by %c496_i32_103 dim 1 : vector<32x512xf32>, i32 -> vector<32x512xf32>
    %c7_104 = arith.constant 7 : index
    %c0_105 = arith.constant 0 : index
    %130 = vector.load %arg2[%c7_104, %c0_105] : memref<9x512xf32, #tpu.memory_space<vmem>>, vector<1x512xf32>
    %131 = vector.broadcast %130 : vector<1x512xf32> to vector<32x512xf32>
    %132 = arith.mulf %129, %131 : vector<32x512xf32>
    %c224_106 = arith.constant 224 : index
    %c0_107 = arith.constant 0 : index
    %133 = vector.load %arg10[%c224_106, %c0_107] : memref<432x512xf32, #tpu.memory_space<vmem>>, vector<32x512xf32>
    tpu.vector_store %arg10[%c224_106, %c0_107], %132 {strides = array<i32>} : memref<432x512xf32, #tpu.memory_space<vmem>>, vector<32x512xf32>,
    %c495_i32_108 = arith.constant 495 : i32
    %134 = tpu.dynamic_rotate %97 by %c495_i32_108 dim 1 : vector<32x512xf32>, i32 -> vector<32x512xf32>
    %c8_109 = arith.constant 8 : index
    %c0_110 = arith.constant 0 : index
    %135 = vector.load %arg2[%c8_109, %c0_110] : memref<9x512xf32, #tpu.memory_space<vmem>>, vector<1x512xf32>
    %136 = vector.broadcast %135 : vector<1x512xf32> to vector<32x512xf32>
    %137 = arith.mulf %134, %136 : vector<32x512xf32>
    %c256_111 = arith.constant 256 : index
    %c0_112 = arith.constant 0 : index
    %138 = vector.load %arg10[%c256_111, %c0_112] : memref<432x512xf32, #tpu.memory_space<vmem>>, vector<32x512xf32>
    tpu.vector_store %arg10[%c256_111, %c0_112], %137 {strides = array<i32>} : memref<432x512xf32, #tpu.memory_space<vmem>>, vector<32x512xf32>,
    %c0_113 = arith.constant 0 : index
    %c0_114 = arith.constant 0 : index
    %139 = vector.load %arg10[%c0_113, %c0_114] : memref<432x512xf32, #tpu.memory_space<vmem>>, vector<288x512xf32>
    %c0_115 = arith.constant 0 : index
    %c0_116 = arith.constant 0 : index
    %140 = vector.load %arg5[%c0_115, %c0_116] : memref<32x288xf32, #tpu.memory_space<vmem>>, vector<32x288xf32>
    %cst_117 = arith.constant dense<0.000000e+00> : vector<32x512xf32>
    %141 = tpu.matmul %140, %139, %cst_117 {dimension_numbers = #tpu.dot_dimension_numbers<[1], [0], [0], [1], [0, 0, 1, 1], [], []>} : vector<32x288xf32>, vector<288x512xf32>, vector<32x512xf32> -> vector<32x512xf32>
    %c0_118 = arith.constant 0 : index
    %c0_119 = arith.constant 0 : index
    %142 = vector.load %arg6[%c0_118, %c0_119] : memref<32x1xf32, #tpu.memory_space<vmem>>, vector<32x1xf32>
    %143 = vector.broadcast %142 : vector<32x1xf32> to vector<32x512xf32>
    %144 = arith.addf %141, %143 : vector<32x512xf32>
    %145 = arith.addf %48, %144 : vector<32x512xf32>
    %c17_i32_120 = arith.constant 17 : i32
    %146 = tpu.dynamic_rotate %145 by %c17_i32_120 dim 1 : vector<32x512xf32>, i32 -> vector<32x512xf32>
    %c0_121 = arith.constant 0 : index
    %c0_122 = arith.constant 0 : index
    %147 = vector.load %arg2[%c0_121, %c0_122] : memref<9x512xf32, #tpu.memory_space<vmem>>, vector<1x512xf32>
    %148 = vector.broadcast %147 : vector<1x512xf32> to vector<32x512xf32>
    %149 = arith.mulf %146, %148 : vector<32x512xf32>
    %c0_123 = arith.constant 0 : index
    %c0_124 = arith.constant 0 : index
    %150 = vector.load %arg10[%c0_123, %c0_124] : memref<432x512xf32, #tpu.memory_space<vmem>>, vector<32x512xf32>
    tpu.vector_store %arg10[%c0_123, %c0_124], %149 {strides = array<i32>} : memref<432x512xf32, #tpu.memory_space<vmem>>, vector<32x512xf32>,
    %c16_i32_125 = arith.constant 16 : i32
    %151 = tpu.dynamic_rotate %145 by %c16_i32_125 dim 1 : vector<32x512xf32>, i32 -> vector<32x512xf32>
    %c1_126 = arith.constant 1 : index
    %c0_127 = arith.constant 0 : index
    %152 = vector.load %arg2[%c1_126, %c0_127] : memref<9x512xf32, #tpu.memory_space<vmem>>, vector<1x512xf32>
    %153 = vector.broadcast %152 : vector<1x512xf32> to vector<32x512xf32>
    %154 = arith.mulf %151, %153 : vector<32x512xf32>
    %c32_128 = arith.constant 32 : index
    %c0_129 = arith.constant 0 : index
    %155 = vector.load %arg10[%c32_128, %c0_129] : memref<432x512xf32, #tpu.memory_space<vmem>>, vector<32x512xf32>
    tpu.vector_store %arg10[%c32_128, %c0_129], %154 {strides = array<i32>} : memref<432x512xf32, #tpu.memory_space<vmem>>, vector<32x512xf32>,
    %c15_i32_130 = arith.constant 15 : i32
    %156 = tpu.dynamic_rotate %145 by %c15_i32_130 dim 1 : vector<32x512xf32>, i32 -> vector<32x512xf32>
    %c2_131 = arith.constant 2 : index
    %c0_132 = arith.constant 0 : index
    %157 = vector.load %arg2[%c2_131, %c0_132] : memref<9x512xf32, #tpu.memory_space<vmem>>, vector<1x512xf32>
    %158 = vector.broadcast %157 : vector<1x512xf32> to vector<32x512xf32>
    %159 = arith.mulf %156, %158 : vector<32x512xf32>
    %c64_133 = arith.constant 64 : index
    %c0_134 = arith.constant 0 : index
    %160 = vector.load %arg10[%c64_133, %c0_134] : memref<432x512xf32, #tpu.memory_space<vmem>>, vector<32x512xf32>
    tpu.vector_store %arg10[%c64_133, %c0_134], %159 {strides = array<i32>} : memref<432x512xf32, #tpu.memory_space<vmem>>, vector<32x512xf32>,
    %c1_i32_135 = arith.constant 1 : i32
    %161 = tpu.dynamic_rotate %145 by %c1_i32_135 dim 1 : vector<32x512xf32>, i32 -> vector<32x512xf32>
    %c3_136 = arith.constant 3 : index
    %c0_137 = arith.constant 0 : index
    %162 = vector.load %arg2[%c3_136, %c0_137] : memref<9x512xf32, #tpu.memory_space<vmem>>, vector<1x512xf32>
    %163 = vector.broadcast %162 : vector<1x512xf32> to vector<32x512xf32>
    %164 = arith.mulf %161, %163 : vector<32x512xf32>
    %c96_138 = arith.constant 96 : index
    %c0_139 = arith.constant 0 : index
    %165 = vector.load %arg10[%c96_138, %c0_139] : memref<432x512xf32, #tpu.memory_space<vmem>>, vector<32x512xf32>
    tpu.vector_store %arg10[%c96_138, %c0_139], %164 {strides = array<i32>} : memref<432x512xf32, #tpu.memory_space<vmem>>, vector<32x512xf32>,
    %c128_140 = arith.constant 128 : index
    %c0_141 = arith.constant 0 : index
    %166 = vector.load %arg10[%c128_140, %c0_141] : memref<432x512xf32, #tpu.memory_space<vmem>>, vector<32x512xf32>
    tpu.vector_store %arg10[%c128_140, %c0_141], %145 {strides = array<i32>} : memref<432x512xf32, #tpu.memory_space<vmem>>, vector<32x512xf32>,
    %c511_i32_142 = arith.constant 511 : i32
    %167 = tpu.dynamic_rotate %145 by %c511_i32_142 dim 1 : vector<32x512xf32>, i32 -> vector<32x512xf32>
    %c5_143 = arith.constant 5 : index
    %c0_144 = arith.constant 0 : index
    %168 = vector.load %arg2[%c5_143, %c0_144] : memref<9x512xf32, #tpu.memory_space<vmem>>, vector<1x512xf32>
    %169 = vector.broadcast %168 : vector<1x512xf32> to vector<32x512xf32>
    %170 = arith.mulf %167, %169 : vector<32x512xf32>
    %c160_145 = arith.constant 160 : index
    %c0_146 = arith.constant 0 : index
    %171 = vector.load %arg10[%c160_145, %c0_146] : memref<432x512xf32, #tpu.memory_space<vmem>>, vector<32x512xf32>
    tpu.vector_store %arg10[%c160_145, %c0_146], %170 {strides = array<i32>} : memref<432x512xf32, #tpu.memory_space<vmem>>, vector<32x512xf32>,
    %c497_i32_147 = arith.constant 497 : i32
    %172 = tpu.dynamic_rotate %145 by %c497_i32_147 dim 1 : vector<32x512xf32>, i32 -> vector<32x512xf32>
    %c6_148 = arith.constant 6 : index
    %c0_149 = arith.constant 0 : index
    %173 = vector.load %arg2[%c6_148, %c0_149] : memref<9x512xf32, #tpu.memory_space<vmem>>, vector<1x512xf32>
    %174 = vector.broadcast %173 : vector<1x512xf32> to vector<32x512xf32>
    %175 = arith.mulf %172, %174 : vector<32x512xf32>
    %c192_150 = arith.constant 192 : index
    %c0_151 = arith.constant 0 : index
    %176 = vector.load %arg10[%c192_150, %c0_151] : memref<432x512xf32, #tpu.memory_space<vmem>>, vector<32x512xf32>
    tpu.vector_store %arg10[%c192_150, %c0_151], %175 {strides = array<i32>} : memref<432x512xf32, #tpu.memory_space<vmem>>, vector<32x512xf32>,
    %c496_i32_152 = arith.constant 496 : i32
    %177 = tpu.dynamic_rotate %145 by %c496_i32_152 dim 1 : vector<32x512xf32>, i32 -> vector<32x512xf32>
    %c7_153 = arith.constant 7 : index
    %c0_154 = arith.constant 0 : index
    %178 = vector.load %arg2[%c7_153, %c0_154] : memref<9x512xf32, #tpu.memory_space<vmem>>, vector<1x512xf32>
    %179 = vector.broadcast %178 : vector<1x512xf32> to vector<32x512xf32>
    %180 = arith.mulf %177, %179 : vector<32x512xf32>
    %c224_155 = arith.constant 224 : index
    %c0_156 = arith.constant 0 : index
    %181 = vector.load %arg10[%c224_155, %c0_156] : memref<432x512xf32, #tpu.memory_space<vmem>>, vector<32x512xf32>
    tpu.vector_store %arg10[%c224_155, %c0_156], %180 {strides = array<i32>} : memref<432x512xf32, #tpu.memory_space<vmem>>, vector<32x512xf32>,
    %c495_i32_157 = arith.constant 495 : i32
    %182 = tpu.dynamic_rotate %145 by %c495_i32_157 dim 1 : vector<32x512xf32>, i32 -> vector<32x512xf32>
    %c8_158 = arith.constant 8 : index
    %c0_159 = arith.constant 0 : index
    %183 = vector.load %arg2[%c8_158, %c0_159] : memref<9x512xf32, #tpu.memory_space<vmem>>, vector<1x512xf32>
    %184 = vector.broadcast %183 : vector<1x512xf32> to vector<32x512xf32>
    %185 = arith.mulf %182, %184 : vector<32x512xf32>
    %c256_160 = arith.constant 256 : index
    %c0_161 = arith.constant 0 : index
    %186 = vector.load %arg10[%c256_160, %c0_161] : memref<432x512xf32, #tpu.memory_space<vmem>>, vector<32x512xf32>
    tpu.vector_store %arg10[%c256_160, %c0_161], %185 {strides = array<i32>} : memref<432x512xf32, #tpu.memory_space<vmem>>, vector<32x512xf32>,
    %c0_162 = arith.constant 0 : index
    %c0_163 = arith.constant 0 : index
    %187 = vector.load %arg10[%c0_162, %c0_163] : memref<432x512xf32, #tpu.memory_space<vmem>>, vector<288x512xf32>
    %c0_164 = arith.constant 0 : index
    %c0_165 = arith.constant 0 : index
    %188 = vector.load %arg5[%c0_164, %c0_165] : memref<32x288xf32, #tpu.memory_space<vmem>>, vector<32x288xf32>
    %cst_166 = arith.constant dense<0.000000e+00> : vector<32x512xf32>
    %189 = tpu.matmul %188, %187, %cst_166 {dimension_numbers = #tpu.dot_dimension_numbers<[1], [0], [0], [1], [0, 0, 1, 1], [], []>} : vector<32x288xf32>, vector<288x512xf32>, vector<32x512xf32> -> vector<32x512xf32>
    %c0_167 = arith.constant 0 : index
    %c0_168 = arith.constant 0 : index
    %190 = vector.load %arg6[%c0_167, %c0_168] : memref<32x1xf32, #tpu.memory_space<vmem>>, vector<32x1xf32>
    %191 = vector.broadcast %190 : vector<32x1xf32> to vector<32x512xf32>
    %192 = arith.addf %189, %191 : vector<32x512xf32>
    %cst_169 = arith.constant 0.000000e+00 : f32
    %193 = vector.broadcast %cst_169 : f32 to vector<32x512xf32>
    %194 = arith.maximumf %192, %193 : vector<32x512xf32>
    %c17_i32_170 = arith.constant 17 : i32
    %195 = tpu.dynamic_rotate %194 by %c17_i32_170 dim 1 : vector<32x512xf32>, i32 -> vector<32x512xf32>
    %c0_171 = arith.constant 0 : index
    %c0_172 = arith.constant 0 : index
    %196 = vector.load %arg2[%c0_171, %c0_172] : memref<9x512xf32, #tpu.memory_space<vmem>>, vector<1x512xf32>
    %197 = vector.broadcast %196 : vector<1x512xf32> to vector<32x512xf32>
    %198 = arith.mulf %195, %197 : vector<32x512xf32>
    %c0_173 = arith.constant 0 : index
    %c0_174 = arith.constant 0 : index
    %199 = vector.load %arg10[%c0_173, %c0_174] : memref<432x512xf32, #tpu.memory_space<vmem>>, vector<32x512xf32>
    tpu.vector_store %arg10[%c0_173, %c0_174], %198 {strides = array<i32>} : memref<432x512xf32, #tpu.memory_space<vmem>>, vector<32x512xf32>,
    %c16_i32_175 = arith.constant 16 : i32
    %200 = tpu.dynamic_rotate %194 by %c16_i32_175 dim 1 : vector<32x512xf32>, i32 -> vector<32x512xf32>
    %c1_176 = arith.constant 1 : index
    %c0_177 = arith.constant 0 : index
    %201 = vector.load %arg2[%c1_176, %c0_177] : memref<9x512xf32, #tpu.memory_space<vmem>>, vector<1x512xf32>
    %202 = vector.broadcast %201 : vector<1x512xf32> to vector<32x512xf32>
    %203 = arith.mulf %200, %202 : vector<32x512xf32>
    %c32_178 = arith.constant 32 : index
    %c0_179 = arith.constant 0 : index
    %204 = vector.load %arg10[%c32_178, %c0_179] : memref<432x512xf32, #tpu.memory_space<vmem>>, vector<32x512xf32>
    tpu.vector_store %arg10[%c32_178, %c0_179], %203 {strides = array<i32>} : memref<432x512xf32, #tpu.memory_space<vmem>>, vector<32x512xf32>,
    %c15_i32_180 = arith.constant 15 : i32
    %205 = tpu.dynamic_rotate %194 by %c15_i32_180 dim 1 : vector<32x512xf32>, i32 -> vector<32x512xf32>
    %c2_181 = arith.constant 2 : index
    %c0_182 = arith.constant 0 : index
    %206 = vector.load %arg2[%c2_181, %c0_182] : memref<9x512xf32, #tpu.memory_space<vmem>>, vector<1x512xf32>
    %207 = vector.broadcast %206 : vector<1x512xf32> to vector<32x512xf32>
    %208 = arith.mulf %205, %207 : vector<32x512xf32>
    %c64_183 = arith.constant 64 : index
    %c0_184 = arith.constant 0 : index
    %209 = vector.load %arg10[%c64_183, %c0_184] : memref<432x512xf32, #tpu.memory_space<vmem>>, vector<32x512xf32>
    tpu.vector_store %arg10[%c64_183, %c0_184], %208 {strides = array<i32>} : memref<432x512xf32, #tpu.memory_space<vmem>>, vector<32x512xf32>,
    %c1_i32_185 = arith.constant 1 : i32
    %210 = tpu.dynamic_rotate %194 by %c1_i32_185 dim 1 : vector<32x512xf32>, i32 -> vector<32x512xf32>
    %c3_186 = arith.constant 3 : index
    %c0_187 = arith.constant 0 : index
    %211 = vector.load %arg2[%c3_186, %c0_187] : memref<9x512xf32, #tpu.memory_space<vmem>>, vector<1x512xf32>
    %212 = vector.broadcast %211 : vector<1x512xf32> to vector<32x512xf32>
    %213 = arith.mulf %210, %212 : vector<32x512xf32>
    %c96_188 = arith.constant 96 : index
    %c0_189 = arith.constant 0 : index
    %214 = vector.load %arg10[%c96_188, %c0_189] : memref<432x512xf32, #tpu.memory_space<vmem>>, vector<32x512xf32>
    tpu.vector_store %arg10[%c96_188, %c0_189], %213 {strides = array<i32>} : memref<432x512xf32, #tpu.memory_space<vmem>>, vector<32x512xf32>,
    %c128_190 = arith.constant 128 : index
    %c0_191 = arith.constant 0 : index
    %215 = vector.load %arg10[%c128_190, %c0_191] : memref<432x512xf32, #tpu.memory_space<vmem>>, vector<32x512xf32>
    tpu.vector_store %arg10[%c128_190, %c0_191], %194 {strides = array<i32>} : memref<432x512xf32, #tpu.memory_space<vmem>>, vector<32x512xf32>,
    %c511_i32_192 = arith.constant 511 : i32
    %216 = tpu.dynamic_rotate %194 by %c511_i32_192 dim 1 : vector<32x512xf32>, i32 -> vector<32x512xf32>
    %c5_193 = arith.constant 5 : index
    %c0_194 = arith.constant 0 : index
    %217 = vector.load %arg2[%c5_193, %c0_194] : memref<9x512xf32, #tpu.memory_space<vmem>>, vector<1x512xf32>
    %218 = vector.broadcast %217 : vector<1x512xf32> to vector<32x512xf32>
    %219 = arith.mulf %216, %218 : vector<32x512xf32>
    %c160_195 = arith.constant 160 : index
    %c0_196 = arith.constant 0 : index
    %220 = vector.load %arg10[%c160_195, %c0_196] : memref<432x512xf32, #tpu.memory_space<vmem>>, vector<32x512xf32>
    tpu.vector_store %arg10[%c160_195, %c0_196], %219 {strides = array<i32>} : memref<432x512xf32, #tpu.memory_space<vmem>>, vector<32x512xf32>,
    %c497_i32_197 = arith.constant 497 : i32
    %221 = tpu.dynamic_rotate %194 by %c497_i32_197 dim 1 : vector<32x512xf32>, i32 -> vector<32x512xf32>
    %c6_198 = arith.constant 6 : index
    %c0_199 = arith.constant 0 : index
    %222 = vector.load %arg2[%c6_198, %c0_199] : memref<9x512xf32, #tpu.memory_space<vmem>>, vector<1x512xf32>
    %223 = vector.broadcast %222 : vector<1x512xf32> to vector<32x512xf32>
    %224 = arith.mulf %221, %223 : vector<32x512xf32>
    %c192_200 = arith.constant 192 : index
    %c0_201 = arith.constant 0 : index
    %225 = vector.load %arg10[%c192_200, %c0_201] : memref<432x512xf32, #tpu.memory_space<vmem>>, vector<32x512xf32>
    tpu.vector_store %arg10[%c192_200, %c0_201], %224 {strides = array<i32>} : memref<432x512xf32, #tpu.memory_space<vmem>>, vector<32x512xf32>,
    %c496_i32_202 = arith.constant 496 : i32
    %226 = tpu.dynamic_rotate %194 by %c496_i32_202 dim 1 : vector<32x512xf32>, i32 -> vector<32x512xf32>
    %c7_203 = arith.constant 7 : index
    %c0_204 = arith.constant 0 : index
    %227 = vector.load %arg2[%c7_203, %c0_204] : memref<9x512xf32, #tpu.memory_space<vmem>>, vector<1x512xf32>
    %228 = vector.broadcast %227 : vector<1x512xf32> to vector<32x512xf32>
    %229 = arith.mulf %226, %228 : vector<32x512xf32>
    %c224_205 = arith.constant 224 : index
    %c0_206 = arith.constant 0 : index
    %230 = vector.load %arg10[%c224_205, %c0_206] : memref<432x512xf32, #tpu.memory_space<vmem>>, vector<32x512xf32>
    tpu.vector_store %arg10[%c224_205, %c0_206], %229 {strides = array<i32>} : memref<432x512xf32, #tpu.memory_space<vmem>>, vector<32x512xf32>,
    %c495_i32_207 = arith.constant 495 : i32
    %231 = tpu.dynamic_rotate %194 by %c495_i32_207 dim 1 : vector<32x512xf32>, i32 -> vector<32x512xf32>
    %c8_208 = arith.constant 8 : index
    %c0_209 = arith.constant 0 : index
    %232 = vector.load %arg2[%c8_208, %c0_209] : memref<9x512xf32, #tpu.memory_space<vmem>>, vector<1x512xf32>
    %233 = vector.broadcast %232 : vector<1x512xf32> to vector<32x512xf32>
    %234 = arith.mulf %231, %233 : vector<32x512xf32>
    %c256_210 = arith.constant 256 : index
    %c0_211 = arith.constant 0 : index
    %235 = vector.load %arg10[%c256_210, %c0_211] : memref<432x512xf32, #tpu.memory_space<vmem>>, vector<32x512xf32>
    tpu.vector_store %arg10[%c256_210, %c0_211], %234 {strides = array<i32>} : memref<432x512xf32, #tpu.memory_space<vmem>>, vector<32x512xf32>,
    %c0_212 = arith.constant 0 : index
    %c0_213 = arith.constant 0 : index
    %236 = vector.load %arg10[%c0_212, %c0_213] : memref<432x512xf32, #tpu.memory_space<vmem>>, vector<288x512xf32>
    %c0_214 = arith.constant 0 : index
    %c0_215 = arith.constant 0 : index
    %237 = vector.load %arg5[%c0_214, %c0_215] : memref<32x288xf32, #tpu.memory_space<vmem>>, vector<32x288xf32>
    %cst_216 = arith.constant dense<0.000000e+00> : vector<32x512xf32>
    %238 = tpu.matmul %237, %236, %cst_216 {dimension_numbers = #tpu.dot_dimension_numbers<[1], [0], [0], [1], [0, 0, 1, 1], [], []>} : vector<32x288xf32>, vector<288x512xf32>, vector<32x512xf32> -> vector<32x512xf32>
    %c0_217 = arith.constant 0 : index
    %c0_218 = arith.constant 0 : index
    %239 = vector.load %arg6[%c0_217, %c0_218] : memref<32x1xf32, #tpu.memory_space<vmem>>, vector<32x1xf32>
    %240 = vector.broadcast %239 : vector<32x1xf32> to vector<32x512xf32>
    %241 = arith.addf %238, %240 : vector<32x512xf32>
    %242 = arith.addf %145, %241 : vector<32x512xf32>
    %c17_i32_219 = arith.constant 17 : i32
    %243 = tpu.dynamic_rotate %242 by %c17_i32_219 dim 1 : vector<32x512xf32>, i32 -> vector<32x512xf32>
    %c0_220 = arith.constant 0 : index
    %c0_221 = arith.constant 0 : index
    %244 = vector.load %arg2[%c0_220, %c0_221] : memref<9x512xf32, #tpu.memory_space<vmem>>, vector<1x512xf32>
    %245 = vector.broadcast %244 : vector<1x512xf32> to vector<32x512xf32>
    %246 = arith.mulf %243, %245 : vector<32x512xf32>
    %c0_222 = arith.constant 0 : index
    %c0_223 = arith.constant 0 : index
    %247 = vector.load %arg10[%c0_222, %c0_223] : memref<432x512xf32, #tpu.memory_space<vmem>>, vector<32x512xf32>
    tpu.vector_store %arg10[%c0_222, %c0_223], %246 {strides = array<i32>} : memref<432x512xf32, #tpu.memory_space<vmem>>, vector<32x512xf32>,
    %c16_i32_224 = arith.constant 16 : i32
    %248 = tpu.dynamic_rotate %242 by %c16_i32_224 dim 1 : vector<32x512xf32>, i32 -> vector<32x512xf32>
    %c1_225 = arith.constant 1 : index
    %c0_226 = arith.constant 0 : index
    %249 = vector.load %arg2[%c1_225, %c0_226] : memref<9x512xf32, #tpu.memory_space<vmem>>, vector<1x512xf32>
    %250 = vector.broadcast %249 : vector<1x512xf32> to vector<32x512xf32>
    %251 = arith.mulf %248, %250 : vector<32x512xf32>
    %c32_227 = arith.constant 32 : index
    %c0_228 = arith.constant 0 : index
    %252 = vector.load %arg10[%c32_227, %c0_228] : memref<432x512xf32, #tpu.memory_space<vmem>>, vector<32x512xf32>
    tpu.vector_store %arg10[%c32_227, %c0_228], %251 {strides = array<i32>} : memref<432x512xf32, #tpu.memory_space<vmem>>, vector<32x512xf32>,
    %c15_i32_229 = arith.constant 15 : i32
    %253 = tpu.dynamic_rotate %242 by %c15_i32_229 dim 1 : vector<32x512xf32>, i32 -> vector<32x512xf32>
    %c2_230 = arith.constant 2 : index
    %c0_231 = arith.constant 0 : index
    %254 = vector.load %arg2[%c2_230, %c0_231] : memref<9x512xf32, #tpu.memory_space<vmem>>, vector<1x512xf32>
    %255 = vector.broadcast %254 : vector<1x512xf32> to vector<32x512xf32>
    %256 = arith.mulf %253, %255 : vector<32x512xf32>
    %c64_232 = arith.constant 64 : index
    %c0_233 = arith.constant 0 : index
    %257 = vector.load %arg10[%c64_232, %c0_233] : memref<432x512xf32, #tpu.memory_space<vmem>>, vector<32x512xf32>
    tpu.vector_store %arg10[%c64_232, %c0_233], %256 {strides = array<i32>} : memref<432x512xf32, #tpu.memory_space<vmem>>, vector<32x512xf32>,
    %c1_i32_234 = arith.constant 1 : i32
    %258 = tpu.dynamic_rotate %242 by %c1_i32_234 dim 1 : vector<32x512xf32>, i32 -> vector<32x512xf32>
    %c3_235 = arith.constant 3 : index
    %c0_236 = arith.constant 0 : index
    %259 = vector.load %arg2[%c3_235, %c0_236] : memref<9x512xf32, #tpu.memory_space<vmem>>, vector<1x512xf32>
    %260 = vector.broadcast %259 : vector<1x512xf32> to vector<32x512xf32>
    %261 = arith.mulf %258, %260 : vector<32x512xf32>
    %c96_237 = arith.constant 96 : index
    %c0_238 = arith.constant 0 : index
    %262 = vector.load %arg10[%c96_237, %c0_238] : memref<432x512xf32, #tpu.memory_space<vmem>>, vector<32x512xf32>
    tpu.vector_store %arg10[%c96_237, %c0_238], %261 {strides = array<i32>} : memref<432x512xf32, #tpu.memory_space<vmem>>, vector<32x512xf32>,
    %c128_239 = arith.constant 128 : index
    %c0_240 = arith.constant 0 : index
    %263 = vector.load %arg10[%c128_239, %c0_240] : memref<432x512xf32, #tpu.memory_space<vmem>>, vector<32x512xf32>
    tpu.vector_store %arg10[%c128_239, %c0_240], %242 {strides = array<i32>} : memref<432x512xf32, #tpu.memory_space<vmem>>, vector<32x512xf32>,
    %c511_i32_241 = arith.constant 511 : i32
    %264 = tpu.dynamic_rotate %242 by %c511_i32_241 dim 1 : vector<32x512xf32>, i32 -> vector<32x512xf32>
    %c5_242 = arith.constant 5 : index
    %c0_243 = arith.constant 0 : index
    %265 = vector.load %arg2[%c5_242, %c0_243] : memref<9x512xf32, #tpu.memory_space<vmem>>, vector<1x512xf32>
    %266 = vector.broadcast %265 : vector<1x512xf32> to vector<32x512xf32>
    %267 = arith.mulf %264, %266 : vector<32x512xf32>
    %c160_244 = arith.constant 160 : index
    %c0_245 = arith.constant 0 : index
    %268 = vector.load %arg10[%c160_244, %c0_245] : memref<432x512xf32, #tpu.memory_space<vmem>>, vector<32x512xf32>
    tpu.vector_store %arg10[%c160_244, %c0_245], %267 {strides = array<i32>} : memref<432x512xf32, #tpu.memory_space<vmem>>, vector<32x512xf32>,
    %c497_i32_246 = arith.constant 497 : i32
    %269 = tpu.dynamic_rotate %242 by %c497_i32_246 dim 1 : vector<32x512xf32>, i32 -> vector<32x512xf32>
    %c6_247 = arith.constant 6 : index
    %c0_248 = arith.constant 0 : index
    %270 = vector.load %arg2[%c6_247, %c0_248] : memref<9x512xf32, #tpu.memory_space<vmem>>, vector<1x512xf32>
    %271 = vector.broadcast %270 : vector<1x512xf32> to vector<32x512xf32>
    %272 = arith.mulf %269, %271 : vector<32x512xf32>
    %c192_249 = arith.constant 192 : index
    %c0_250 = arith.constant 0 : index
    %273 = vector.load %arg10[%c192_249, %c0_250] : memref<432x512xf32, #tpu.memory_space<vmem>>, vector<32x512xf32>
    tpu.vector_store %arg10[%c192_249, %c0_250], %272 {strides = array<i32>} : memref<432x512xf32, #tpu.memory_space<vmem>>, vector<32x512xf32>,
    %c496_i32_251 = arith.constant 496 : i32
    %274 = tpu.dynamic_rotate %242 by %c496_i32_251 dim 1 : vector<32x512xf32>, i32 -> vector<32x512xf32>
    %c7_252 = arith.constant 7 : index
    %c0_253 = arith.constant 0 : index
    %275 = vector.load %arg2[%c7_252, %c0_253] : memref<9x512xf32, #tpu.memory_space<vmem>>, vector<1x512xf32>
    %276 = vector.broadcast %275 : vector<1x512xf32> to vector<32x512xf32>
    %277 = arith.mulf %274, %276 : vector<32x512xf32>
    %c224_254 = arith.constant 224 : index
    %c0_255 = arith.constant 0 : index
    %278 = vector.load %arg10[%c224_254, %c0_255] : memref<432x512xf32, #tpu.memory_space<vmem>>, vector<32x512xf32>
    tpu.vector_store %arg10[%c224_254, %c0_255], %277 {strides = array<i32>} : memref<432x512xf32, #tpu.memory_space<vmem>>, vector<32x512xf32>,
    %c495_i32_256 = arith.constant 495 : i32
    %279 = tpu.dynamic_rotate %242 by %c495_i32_256 dim 1 : vector<32x512xf32>, i32 -> vector<32x512xf32>
    %c8_257 = arith.constant 8 : index
    %c0_258 = arith.constant 0 : index
    %280 = vector.load %arg2[%c8_257, %c0_258] : memref<9x512xf32, #tpu.memory_space<vmem>>, vector<1x512xf32>
    %281 = vector.broadcast %280 : vector<1x512xf32> to vector<32x512xf32>
    %282 = arith.mulf %279, %281 : vector<32x512xf32>
    %c256_259 = arith.constant 256 : index
    %c0_260 = arith.constant 0 : index
    %283 = vector.load %arg10[%c256_259, %c0_260] : memref<432x512xf32, #tpu.memory_space<vmem>>, vector<32x512xf32>
    tpu.vector_store %arg10[%c256_259, %c0_260], %282 {strides = array<i32>} : memref<432x512xf32, #tpu.memory_space<vmem>>, vector<32x512xf32>,
    %c0_261 = arith.constant 0 : index
    %c0_262 = arith.constant 0 : index
    %284 = vector.load %arg10[%c0_261, %c0_262] : memref<432x512xf32, #tpu.memory_space<vmem>>, vector<288x512xf32>
    %c0_263 = arith.constant 0 : index
    %c0_264 = arith.constant 0 : index
    %285 = vector.load %arg7[%c0_263, %c0_264] : memref<8x288xf32, #tpu.memory_space<vmem>>, vector<8x288xf32>
    %cst_265 = arith.constant dense<0.000000e+00> : vector<8x512xf32>
    %286 = tpu.matmul %285, %284, %cst_265 {dimension_numbers = #tpu.dot_dimension_numbers<[1], [0], [0], [1], [0, 0, 1, 1], [], []>} : vector<8x288xf32>, vector<288x512xf32>, vector<8x512xf32> -> vector<8x512xf32>
    %c0_266 = arith.constant 0 : index
    %c0_267 = arith.constant 0 : index
    %287 = vector.load %arg8[%c0_266, %c0_267] : memref<8x1xf32, #tpu.memory_space<vmem>>, vector<8x1xf32>
    %288 = vector.broadcast %287 : vector<8x1xf32> to vector<8x512xf32>
    %289 = arith.addf %286, %288 : vector<8x512xf32>
    %c0_268 = arith.constant 0 : index
    %c0_269 = arith.constant 0 : index
    %c0_270 = arith.constant 0 : index
    %290 = vector.load %arg9[%c0_268, %c0_269, %c0_270] : memref<1x8x512xf32, #tpu.memory_space<vmem>>, vector<1x8x512xf32>
    %291 = vector.shape_cast %290 : vector<1x8x512xf32> to vector<8x512xf32>
    %292 = vector.shape_cast %289 : vector<8x512xf32> to vector<1x8x512xf32>
    tpu.vector_store %arg9[%c0_268, %c0_269, %c0_270], %292 {strides = array<i32>} : memref<1x8x512xf32, #tpu.memory_space<vmem>>, vector<1x8x512xf32>,
    return
  }
  func.func @transform_0(%arg0: i32) -> (i32, i32, i32) {
    %c0_i32 = arith.constant 0 : i32
    %c0_i32_0 = arith.constant 0 : i32
    %c0_i32_1 = arith.constant 0 : i32
    return %arg0, %c0_i32, %c0_i32_0 : i32, i32, i32
  }
  func.func @transform_1(%arg0: i32) -> (i32, i32) {
    %c0_i32 = arith.constant 0 : i32
    %c0_i32_0 = arith.constant 0 : i32
    %c0_i32_1 = arith.constant 0 : i32
    return %c0_i32, %c0_i32_0 : i32, i32
  }
  func.func @transform_2(%arg0: i32) -> (i32, i32) {
    %c0_i32 = arith.constant 0 : i32
    %c0_i32_0 = arith.constant 0 : i32
    %c0_i32_1 = arith.constant 0 : i32
    return %c0_i32, %c0_i32_0 : i32, i32
  }
  func.func @transform_3(%arg0: i32) -> (i32, i32) {
    %c0_i32 = arith.constant 0 : i32
    %c0_i32_0 = arith.constant 0 : i32
    %c0_i32_1 = arith.constant 0 : i32
    return %c0_i32, %c0_i32_0 : i32, i32
  }
  func.func @transform_4(%arg0: i32) -> (i32, i32) {
    %c0_i32 = arith.constant 0 : i32
    %c0_i32_0 = arith.constant 0 : i32
    %c0_i32_1 = arith.constant 0 : i32
    return %c0_i32, %c0_i32_0 : i32, i32
  }
  func.func @transform_5(%arg0: i32) -> (i32, i32) {
    %c0_i32 = arith.constant 0 : i32
    %c0_i32_0 = arith.constant 0 : i32
    %c0_i32_1 = arith.constant 0 : i32
    return %c0_i32, %c0_i32_0 : i32, i32
  }
  func.func @transform_6(%arg0: i32) -> (i32, i32) {
    %c0_i32 = arith.constant 0 : i32
    %c0_i32_0 = arith.constant 0 : i32
    %c0_i32_1 = arith.constant 0 : i32
    return %c0_i32, %c0_i32_0 : i32, i32
  }
  func.func @transform_7(%arg0: i32) -> (i32, i32) {
    %c0_i32 = arith.constant 0 : i32
    %c0_i32_0 = arith.constant 0 : i32
    %c0_i32_1 = arith.constant 0 : i32
    return %c0_i32, %c0_i32_0 : i32, i32
  }
  func.func @transform_8(%arg0: i32) -> (i32, i32, i32) {
    %c0_i32 = arith.constant 0 : i32
    %c0_i32_0 = arith.constant 0 : i32
    %c0_i32_1 = arith.constant 0 : i32
    return %arg0, %c0_i32, %c0_i32_0 : i32, i32, i32
  }
}

</mosaic_0001>

<bundles_post_ra>
// kernel: _lambda_.1
= control target key start
LH: loop header
LB: loop body
LE: loop exit
PB: predicated region body
PF: predicated region fallthrough
CT: control target
= control target key end

     0   :  { %s10355_s27 = smov 0   ;;  %s18098_s0 = inlined_call_operand.vmem [shape: f32[2,48,512], index: 0, kind: input, shape index: {}]   ;;  %s18099_s1 = inlined_call_operand.vmem [shape: f32[9,512], index: 1, kind: input, shape index: {}]   ;;  %s18100_s2 = inlined_call_operand.vmem [shape: f32[32,432], index: 2, kind: input, shape index: {}]   ;;  %s18101_s3 = inlined_call_operand.vmem [shape: f32[32,1], index: 3, kind: input, shape index: {}]   ;;  %s18102_s4 = inlined_call_operand.vmem [shape: f32[32,288], index: 4, kind: input, shape index: {}]   ;;  %s18103_s5 = inlined_call_operand.vmem [shape: f32[32,1], index: 5, kind: input, shape index: {}]   ;;  %s18104_s6 = inlined_call_operand.vmem [shape: f32[8,288], index: 6, kind: input, shape index: {}]   ;;  %s18105_s7 = inlined_call_operand.vmem [shape: f32[8,1], index: 7, kind: input, shape index: {}]   ;;  %s18106_s8 = inlined_call_operand.vmem [shape: f32[2,8,512], index: 8, kind: output, shape index: {}]  }
   0x1 LB: > { %s9048_s28 = sadd.s32 4294967295, %s10298_s27   ;;  %p9052_p0 = scmp.ge.s32.totalorder %s10298_s27, 1  ;;  %s10298_s27 = sphi %s10355_s27, %s18_s27  }
   0x2   : > { %p262_p1 = scmp.lt.s32.totalorder %s10298_s27, 3 }
   0x4   : > { %p263_p2 = pnand %p9052_p0, %p262_p1 }
   0x6   : > { %266 = sbr.rel (%p263_p2) target bundleno = 3722 (0xe8a), region = 52 }
   0xd   : > { %p296_p3 = scmp.lt.s32.totalorder %s9048_s28, 1  ;;  %s10300_s11 = smov 17   ;;  %v378_v24 = vlaneseq  ;;  %v405_v28 = vld [vmem:[%s18099_s1] ss:$8 sm:$0xf]  ;;  %vm1763_vm6 = vcmask 392192  }
   0xe   : > { %s10301_s12 = smov 16   ;;  %s10302_s13 = smov 15   ;;  %vm3144_vm9 = vcmask 261120  }
   0xf   : > { %s19250_s28 = smov (!%p296_p3, %s9048_s28), 1  ;;  %v408_v25 = vshrl.u32 %v378_v24, 7  ;;  %v10555_v26 = vand.u32 127, %v378_v24  ;;  %s10303_s16 = smov 1  }
  0x10   : > { %s10247_s29 = smul.u32 192, %s19250_s28  ;;  %s10304_s19 = smov 127  }
  0x11   : > { %v10561_v27 = vsub.s32 1, %v408_v25  ;;  %vm380_vm0 = vcmp.lt.s32.totalorder %v10555_v26, 17  ;;  %v10576_v35 = vsub.s32 2, %v408_v25  ;;  %v10586_v39 = vsub.s32 0, %v408_v25  ;;  %s10305_s24 = smov 113   ;;  %s10307_s15 = smov 111  }
  0x12   : > { %s10369_s10 = scalar_lea.vmem %s18098_s0, %s10247_s29  ;;  %v10588_v40 = vsub.s32 3, %v408_v25  ;;  %vm523_vm1 = vcmp.lt.s32.totalorder %v10555_v26, 16  ;;  %vm667_vm2 = vcmp.lt.s32.totalorder %v10555_v26, 15  ;;  %vm811_vm3 = vcmp.lt.s32.totalorder %v10555_v26, 1  ;;  %s10306_s29 = smov 112  }
  0x13   : > { %v10372_v0 = vld [vmem:[%s10369_s10 + $0x8] sm:$0xff]  ;;  %v10375_v1 = vld [vmem:[%s10369_s10] sm:$0xff]  ;;  %v10392_v4 = vld [vmem:[%s10369_s10 + $0x30] sm:$0xff]  ;;  %v10572_v31 = vrot.slane %v405_v28, %v10561_v27  ;;  %18494 = vst [vmem:[#allocation3_spill] sm:$0xff] %v10576_v35  ;;  %v10591_v44 = vrot.slane %v405_v28, %v10576_v35  ;;  %v10602_v47 = vrot.slane %v405_v28, %v10586_v39  ;;  %vm979_vm4 = vcmp.lt.s32.totalorder %v10555_v26, 127 }
  0x14   : > { %342 = vrot.lane.b32.xlu1 %v10372_v0, %s10300_s11  ;;  %330 = vrot.lane.b32.xlu0 %v10375_v1, %s10300_s11  ;;  %v10382_v2 = vld [vmem:[%s10369_s10 + $0x28] sm:$0xff]  ;;  %v10385_v3 = vld [vmem:[%s10369_s10 + $0x20] sm:$0xff]  ;;  %18495 = vst [vmem:[#allocation4_spill] sm:$0xff] %v10586_v39  ;;  %18496 = vst [vmem:[#allocation5_spill] sm:$0xff] %v10588_v40  ;;  %v10605_v48 = vrot.slane %v405_v28, %v10588_v40  ;;  %vm1123_vm5 = vcmp.lt.s32.totalorder %v10555_v26, 113  ;;  %vm1267_vm7 = vcmp.lt.s32.totalorder %v10555_v26, 112 }
  0x15   : > { %v10395_v5 = vld [vmem:[%s10369_s10 + $0x10] sm:$0xff]  ;;  %v10402_v6 = vld [vmem:[%s10369_s10 + $0x38] sm:$0xff]  ;;  %v10412_v8 = vld [vmem:[%s10369_s10 + $0x60] sm:$0xff]  ;;  %vm1411_vm8 = vcmp.lt.s32.totalorder %v10555_v26, 111 }
  0x16   : > { %v10405_v7 = vld [vmem:[%s10369_s10 + $0x18] sm:$0xff]  ;;  %v10415_v9 = vld [vmem:[%s10369_s10 + $0x40] sm:$0xff]  ;;  %v10422_v10 = vld [vmem:[%s10369_s10 + $0x68] sm:$0xff] }
  0x17   : > { %v10425_v11 = vld [vmem:[%s10369_s10 + $0x48] sm:$0xff]  ;;  %v10432_v12 = vld [vmem:[%s10369_s10 + $0x70] sm:$0xff]  ;;  %v10442_v14 = vld [vmem:[%s10369_s10 + $0x78] sm:$0xff] }
  0x18   : > { %344 = vrot.lane.b32.xlu1 %v10382_v2, %s10300_s11  ;;  %332 = vrot.lane.b32.xlu0 %v10385_v3, %s10300_s11  ;;  %v10435_v13 = vld [vmem:[%s10369_s10 + $0x50] sm:$0xff]  ;;  %v10445_v15 = vld [vmem:[%s10369_s10 + $0x58] sm:$0xff] }
  0x19   : > { %v10452_v16 = vld [vmem:[%s10369_s10 + $0xa0] sm:$0xff]  ;;  %v10462_v18 = vld [vmem:[%s10369_s10 + $0xa8] sm:$0xff]  ;;  %v10472_v20 = vld [vmem:[%s10369_s10 + $0xb0] sm:$0xff] }
  0x1a   : > { %v10455_v17 = vld [vmem:[%s10369_s10 + $0x80] sm:$0xff]  ;;  %v10465_v19 = vld [vmem:[%s10369_s10 + $0x88] sm:$0xff]  ;;  %v10475_v21 = vld [vmem:[%s10369_s10 + $0x90] sm:$0xff] }
  0x1b   : > { %v10482_v22 = vld [vmem:[%s10369_s10 + $0xb8] sm:$0xff] }
  0x1c   : > { %356 = vrot.lane.b32.xlu1 %v10392_v4, %s10300_s11  ;;  %354 = vrot.lane.b32.xlu0 %v10395_v5, %s10300_s11  ;;  %v10485_v23 = vld [vmem:[%s10369_s10 + $0x98] sm:$0xff] }
  0x20   : > { %368 = vrot.lane.b32.xlu1 %v10402_v6, %s10300_s11  ;;  %366 = vrot.lane.b32.xlu0 %v10405_v7, %s10300_s11 }
  0x24   : > { %336 = vrot.lane.b32.xlu1 %v10412_v8, %s10300_s11  ;;  %334 = vrot.lane.b32.xlu0 %v10415_v9, %s10300_s11 }
  0x28   : > { %348 = vrot.lane.b32.xlu1 %v10422_v10, %s10300_s11  ;;  %346 = vrot.lane.b32.xlu0 %v10425_v11, %s10300_s11 }
  0x2c   : > { %360 = vrot.lane.b32.xlu1 %v10432_v12, %s10300_s11  ;;  %358 = vrot.lane.b32.xlu0 %v10435_v13, %s10300_s11 }
  0x30   : > { %372 = vrot.lane.b32.xlu1 %v10442_v14, %s10300_s11  ;;  %370 = vrot.lane.b32.xlu0 %v10445_v15, %s10300_s11 }
  0x34   : > { %340 = vrot.lane.b32.xlu1 %v10452_v16, %s10300_s11  ;;  %338 = vrot.lane.b32.xlu0 %v10455_v17, %s10300_s11 }
  0x38   : > { %352 = vrot.lane.b32.xlu1 %v10462_v18, %s10300_s11  ;;  %350 = vrot.lane.b32.xlu0 %v10465_v19, %s10300_s11 }
  0x3c   : > { %364 = vrot.lane.b32.xlu1 %v10472_v20, %s10300_s11  ;;  %362 = vrot.lane.b32.xlu0 %v10475_v21, %s10300_s11 }
  0x40   : > { %376 = vrot.lane.b32.xlu1 %v10482_v22, %s10300_s11  ;;  %374 = vrot.lane.b32.xlu0 %v10485_v23, %s10300_s11 }
  0x44   : > { %477 = vrot.lane.b32.xlu1 %v10385_v3, %s10301_s12  ;;  %475 = vrot.lane.b32.xlu0 %v10375_v1, %s10301_s12 }
  0x48   : > { %489 = vrot.lane.b32.xlu1 %v10382_v2, %s10301_s12  ;;  %487 = vrot.lane.b32.xlu0 %v10372_v0, %s10301_s12 }
  0x4c   : > { %501 = vrot.lane.b32.xlu1 %v10392_v4, %s10301_s12  ;;  %499 = vrot.lane.b32.xlu0 %v10395_v5, %s10301_s12 }
  0x50   : > { %513 = vrot.lane.b32.xlu1 %v10402_v6, %s10301_s12  ;;  %511 = vrot.lane.b32.xlu0 %v10405_v7, %s10301_s12 }
  0x54   : > { %481 = vrot.lane.b32.xlu1 %v10412_v8, %s10301_s12  ;;  %479 = vrot.lane.b32.xlu0 %v10415_v9, %s10301_s12 }
  0x58   : > { %493 = vrot.lane.b32.xlu1 %v10422_v10, %s10301_s12  ;;  %491 = vrot.lane.b32.xlu0 %v10425_v11, %s10301_s12 }
  0x5c   : > { %505 = vrot.lane.b32.xlu1 %v10432_v12, %s10301_s12  ;;  %503 = vrot.lane.b32.xlu0 %v10435_v13, %s10301_s12 }
  0x60   : > { %517 = vrot.lane.b32.xlu1 %v10442_v14, %s10301_s12  ;;  %515 = vrot.lane.b32.xlu0 %v10445_v15, %s10301_s12 }
  0x64   : > { %485 = vrot.lane.b32.xlu1 %v10452_v16, %s10301_s12  ;;  %483 = vrot.lane.b32.xlu0 %v10455_v17, %s10301_s12 }
  0x68   : > { %497 = vrot.lane.b32.xlu1 %v10462_v18, %s10301_s12  ;;  %495 = vrot.lane.b32.xlu0 %v10465_v19, %s10301_s12 }
  0x6c   : > { %509 = vrot.lane.b32.xlu1 %v10472_v20, %s10301_s12  ;;  %507 = vrot.lane.b32.xlu0 %v10475_v21, %s10301_s12 }
  0x70   : > { %521 = vrot.lane.b32.xlu1 %v10482_v22, %s10301_s12  ;;  %519 = vrot.lane.b32.xlu0 %v10485_v23, %s10301_s12 }
  0x74   : > { %621 = vrot.lane.b32.xlu1 %v10385_v3, %s10302_s13  ;;  %619 = vrot.lane.b32.xlu0 %v10375_v1, %s10302_s13 }
  0x78   : > { %633 = vrot.lane.b32.xlu1 %v10382_v2, %s10302_s13  ;;  %631 = vrot.lane.b32.xlu0 %v10372_v0, %s10302_s13 }
  0x7c   : > { %645 = vrot.lane.b32.xlu1 %v10392_v4, %s10302_s13  ;;  %643 = vrot.lane.b32.xlu0 %v10395_v5, %s10302_s13 }
  0x80   : > { %657 = vrot.lane.b32.xlu1 %v10402_v6, %s10302_s13  ;;  %655 = vrot.lane.b32.xlu0 %v10405_v7, %s10302_s13 }
  0x84   : > { %625 = vrot.lane.b32.xlu1 %v10412_v8, %s10302_s13  ;;  %623 = vrot.lane.b32.xlu0 %v10415_v9, %s10302_s13 }
  0x86   : > { %v343_v29 = vpop.permute.xlu1 %342  ;;  %v331_v30 = vpop.permute.xlu0 %330 }
  0x87   : > { %v393_v32 = vsel %vm380_vm0, %v331_v30, %v343_v29 }
  0x88   : > { %637 = vrot.lane.b32.xlu1 %v10422_v10, %s10302_s13  ;;  %635 = vrot.lane.b32.xlu0 %v10425_v11, %s10302_s13  ;;  %v428_v37 = vmul.f32 %v10572_v31, %v393_v32 }
  0x8a   : > { %v345_v33 = vpop.permute.xlu1 %344  ;;  %v333_v34 = vpop.permute.xlu0 %332 }
  0x8b   : > { %v394_v36 = vsel %vm380_vm0, %v333_v34, %v345_v33 }
  0x8c   : > { %649 = vrot.lane.b32.xlu1 %v10432_v12, %s10302_s13  ;;  %647 = vrot.lane.b32.xlu0 %v10435_v13, %s10302_s13  ;;  %v432_v38 = vmul.f32 %v10572_v31, %v394_v36 }
  0x8e   : > { %v357_v41 = vpop.permute.xlu1 %356  ;;  %v355_v42 = vpop.permute.xlu0 %354  ;;  %v9143_v43 = vpack.c.bf16 %v432_v38, %v428_v37 }
  0x8f   : > { %v388_v45 = vsel %vm380_vm0, %v345_v33, %v357_v41  ;;  %v387_v46 = vsel %vm380_vm0, %v343_v29, %v355_v42 }
  0x90   : > { %661 = vrot.lane.b32.xlu1 %v10442_v14, %s10302_s13  ;;  %659 = vrot.lane.b32.xlu0 %v10445_v15, %s10302_s13  ;;  %v429_v51 = vmul.f32 %v10591_v44, %v387_v46  ;;  %v433_v52 = vmul.f32 %v10591_v44, %v388_v45 }
  0x91   : > { %9144 = vmatprep.subr.bf16.mxu0 %v9143_v43 }
  0x92   : > { %v369_v49 = vpop.permute.xlu1 %368  ;;  %v367_v50 = vpop.permute.xlu0 %366  ;;  %v9253_v25 = vpack.c.bf16 %v433_v52, %v429_v51 }
  0x93   : > { %v400_v53 = vsel %vm380_vm0, %v369_v49, %v333_v34  ;;  %v399_v54 = vsel %vm380_vm0, %v367_v50, %v331_v30  ;;  %v381_v55 = vsel %vm380_vm0, %v355_v42, %v367_v50  ;;  %v382_v56 = vsel %vm380_vm0, %v357_v41, %v369_v49 }
  0x94   : > { %629 = vrot.lane.b32.xlu1 %v10452_v16, %s10302_s13  ;;  %627 = vrot.lane.b32.xlu0 %v10455_v17, %s10302_s13  ;;  %v427_v57 = vmul.f32 %v10602_v47, %v399_v54  ;;  %v431_v58 = vmul.f32 %v10602_v47, %v400_v53  ;;  %v430_v59 = vmul.f32 %v10605_v48, %v381_v55 }
  0x95   : > { %v434_v60 = vmul.f32 %v10605_v48, %v382_v56 }
  0x96   : > { %v337_v61 = vpop.permute.xlu1 %336  ;;  %v335_v62 = vpop.permute.xlu0 %334  ;;  %v9145_v63 = vpack.c.bf16 %v431_v58, %v427_v57 }
  0x97   : > { %v9251_v24 = vpack.c.bf16 %v434_v60, %v430_v59 }
  0x98   : > { %641 = vrot.lane.b32.xlu1 %v10462_v18, %s10302_s13  ;;  %639 = vrot.lane.b32.xlu0 %v10465_v19, %s10302_s13 }
  0x99   : > { %9146 = vmatpush1.bf16.msra.mxu0 %v9145_v63  ;;  %9252 = vmatprep.subr.bf16.mxu1 %v9251_v24 }
  0x9a   : > { %9254 = vmatpush1.bf16.msra.mxu1 %v9253_v25  ;;  %v349_v28 = vpop.permute.xlu1 %348  ;;  %v347_v29 = vpop.permute.xlu0 %346 }
  0x9b   : > { %v396_v30 = vsel %vm380_vm0, %v337_v61, %v349_v28  ;;  %v395_v32 = vsel %vm380_vm0, %v335_v62, %v347_v29 }
  0x9c   : > { %v440_v33 = vmul.f32 %v10572_v31, %v396_v30  ;;  %v436_v34 = vmul.f32 %v10572_v31, %v395_v32  ;;  %653 = vrot.lane.b32.xlu1 %v10472_v20, %s10302_s13  ;;  %651 = vrot.lane.b32.xlu0 %v10475_v21, %s10302_s13 }
  0x9e   : > { %v361_v36 = vpop.permute.xlu1 %360  ;;  %v359_v37 = vpop.permute.xlu0 %358  ;;  %v9147_v38 = vpack.c.bf16 %v440_v33, %v436_v34 }
  0x9f   : > { %v390_v41 = vsel %vm380_vm0, %v349_v28, %v361_v36  ;;  %v389_v42 = vsel %vm380_vm0, %v347_v29, %v359_v37 }
  0xa0   : > { %665 = vrot.lane.b32.xlu1 %v10482_v22, %s10302_s13  ;;  %663 = vrot.lane.b32.xlu0 %v10485_v23, %s10302_s13  ;;  %v441_v43 = vmul.f32 %v10591_v44, %v390_v41  ;;  %v437_v45 = vmul.f32 %v10591_v44, %v389_v42 }
  0xa1   : > { %9148 = vmatprep.subr.bf16.mxu0 %v9147_v38 }
  0xa2   : > { %v373_v46 = vpop.permute.xlu1 %372  ;;  %v371_v49 = vpop.permute.xlu0 %370 }
  0xa3   : > { %v384_v50 = vsel %vm380_vm0, %v361_v36, %v373_v46  ;;  %v402_v51 = vsel %vm380_vm0, %v373_v46, %v337_v61  ;;  %v383_v52 = vsel %vm380_vm0, %v359_v37, %v371_v49  ;;  %v401_v53 = vsel %vm380_vm0, %v371_v49, %v335_v62 }
  0xa4   : > { %v439_v54 = vmul.f32 %v10602_v47, %v402_v51  ;;  %v442_v55 = vmul.f32 %v10605_v48, %v384_v50  ;;  %v435_v56 = vmul.f32 %v10602_v47, %v401_v53  ;;  %v438_v57 = vmul.f32 %v10605_v48, %v383_v52  ;;  %765 = vrot.lane.b32.xlu1 %v10385_v3, %s10303_s16  ;;  %v9056_v53 = vld [vmem:[%s18099_s1 + $0x1] ss:$8 sm:$0xf] }
  0xa5   : > { %763 = vrot.lane.b32.xlu0 %v10375_v1, %s10303_s16  ;;  %v9257_v62 = vpack.c.bf16 %v441_v43, %v437_v45 }
  0xa6   : > { %v341_v58 = vpop.permute.xlu1 %340  ;;  %v339_v59 = vpop.permute.xlu0 %338  ;;  %v9149_v60 = vpack.c.bf16 %v439_v54, %v435_v56  ;;  %v9255_v61 = vpack.c.bf16 %v442_v55, %v438_v57 }
  0xa8   : > { %777 = vrot.lane.b32.xlu1 %v10382_v2, %s10303_s16  ;;  %9150 = vmatpush1.bf16.msra.mxu0 %v9149_v60 }
  0xa9   : > { %775 = vrot.lane.b32.xlu0 %v10372_v0, %s10303_s16  ;;  %9256 = vmatprep.subr.bf16.mxu1 %v9255_v61 }
  0xaa   : > { %9258 = vmatpush1.bf16.msra.mxu1 %v9257_v62  ;;  %v353_v63 = vpop.permute.xlu1 %352  ;;  %v351_v24 = vpop.permute.xlu0 %350 }
  0xab   : > { %v398_v25 = vsel %vm380_vm0, %v341_v58, %v353_v63  ;;  %v397_v28 = vsel %vm380_vm0, %v339_v59, %v351_v24 }
  0xac   : > { %v448_v29 = vmul.f32 %v10572_v31, %v398_v25  ;;  %v444_v30 = vmul.f32 %v10572_v31, %v397_v28  ;;  %789 = vrot.lane.b32.xlu1 %v10392_v4, %s10303_s16 }
  0xad   : > { %787 = vrot.lane.b32.xlu0 %v10395_v5, %s10303_s16 }
  0xae   : > { %v365_v32 = vpop.permute.xlu1 %364  ;;  %v363_v33 = vpop.permute.xlu0 %362  ;;  %v9151_v34 = vpack.c.bf16 %v448_v29, %v444_v30 }
  0xaf   : > { %v392_v36 = vsel %vm380_vm0, %v353_v63, %v365_v32  ;;  %v391_v37 = vsel %vm380_vm0, %v351_v24, %v363_v33  ;;  %v10727_v24 = vrot.slane %v9056_v53, %v10576_v35 }
  0xb0   : > { %801 = vrot.lane.b32.xlu1 %v10402_v6, %s10303_s16  ;;  %9152 = vmatprep.subr.bf16.mxu0 %v9151_v34  ;;  %v449_v31 = vmul.f32 %v10591_v44, %v392_v36  ;;  %v445_v38 = vmul.f32 %v10591_v44, %v391_v37  ;;  %v10739_v34 = vrot.slane %v9056_v53, %v10588_v40 }
  0xb1   : > { %799 = vrot.lane.b32.xlu0 %v10405_v7, %s10303_s16 }
  0xb2   : > { %v377_v41 = vpop.permute.xlu1 %376  ;;  %v375_v42 = vpop.permute.xlu0 %374 }
  0xb3   : > { %v386_v43 = vsel %vm380_vm0, %v365_v32, %v377_v41  ;;  %v404_v45 = vsel %vm380_vm0, %v377_v41, %v341_v58  ;;  %v385_v46 = vsel %vm380_vm0, %v363_v33, %v375_v42  ;;  %v403_v49 = vsel %vm380_vm0, %v375_v42, %v339_v59 }
  0xb4   : > { %v447_v50 = vmul.f32 %v10602_v47, %v404_v45  ;;  %v450_v51 = vmul.f32 %v10605_v48, %v386_v43  ;;  %v443_v44 = vmul.f32 %v10602_v47, %v403_v49  ;;  %v446_v52 = vmul.f32 %v10605_v48, %v385_v46  ;;  %769 = vrot.lane.b32.xlu1 %v10412_v8, %s10303_s16 }
  0xb5   : > { %767 = vrot.lane.b32.xlu0 %v10415_v9, %s10303_s16  ;;  %v9261_v47 = vpack.c.bf16 %v449_v31, %v445_v38  ;;  %v10712_v48 = vrot.slane %v9056_v53, %v10561_v27  ;;  %v10736_v33 = vrot.slane %v9056_v53, %v10586_v39 }
  0xb6   : > { %v478_v54 = vpop.permute.xlu1 %477  ;;  %v476_v55 = vpop.permute.xlu0 %475  ;;  %v9153_v56 = vpack.c.bf16 %v447_v50, %v443_v44  ;;  %v9259_v57 = vpack.c.bf16 %v450_v51, %v446_v52 }
  0xb8   : > { %781 = vrot.lane.b32.xlu1 %v10422_v10, %s10303_s16  ;;  %9154 = vmatpush1.bf16.msra.mxu0 %v9153_v56 }
  0xb9   : > { %779 = vrot.lane.b32.xlu0 %v10425_v11, %s10303_s16  ;;  %9260 = vmatprep.subr.bf16.mxu1 %v9259_v57 }
  0xba   : > { %9262 = vmatpush1.bf16.msra.mxu1 %v9261_v47  ;;  %v490_v58 = vpop.permute.xlu1 %489  ;;  %v488_v59 = vpop.permute.xlu0 %487 }
  0xbb   : > { %v537_v60 = vsel %vm523_vm1, %v478_v54, %v490_v58  ;;  %v536_v61 = vsel %vm523_vm1, %v476_v55, %v488_v59 }
  0xbc   : > { %v576_v62 = vmul.f32 %v10712_v48, %v537_v60  ;;  %v572_v63 = vmul.f32 %v10712_v48, %v536_v61  ;;  %793 = vrot.lane.b32.xlu1 %v10432_v12, %s10303_s16 }
  0xbd   : > { %791 = vrot.lane.b32.xlu0 %v10435_v13, %s10303_s16 }
  0xbe   : > { %v502_v25 = vpop.permute.xlu1 %501  ;;  %v500_v28 = vpop.permute.xlu0 %499  ;;  %v9155_v29 = vpack.c.bf16 %v576_v62, %v572_v63 }
  0xbf   : > { %v531_v30 = vsel %vm523_vm1, %v490_v58, %v502_v25  ;;  %v530_v32 = vsel %vm523_vm1, %v488_v59, %v500_v28 }
  0xc0   : > { %805 = vrot.lane.b32.xlu1 %v10442_v14, %s10303_s16  ;;  %9156 = vmatprep.subr.bf16.mxu0 %v9155_v29  ;;  %v577_v36 = vmul.f32 %v10727_v24, %v531_v30  ;;  %v573_v37 = vmul.f32 %v10727_v24, %v530_v32 }
  0xc1   : > { %803 = vrot.lane.b32.xlu0 %v10445_v15, %s10303_s16 }
  0xc2   : > { %v514_v31 = vpop.permute.xlu1 %513  ;;  %v512_v38 = vpop.permute.xlu0 %511 }
  0xc3   : > { %v525_v41 = vsel %vm523_vm1, %v502_v25, %v514_v31  ;;  %v543_v42 = vsel %vm523_vm1, %v514_v31, %v478_v54  ;;  %v524_v43 = vsel %vm523_vm1, %v500_v28, %v512_v38  ;;  %v542_v45 = vsel %vm523_vm1, %v512_v38, %v476_v55 }
  0xc4   : > { %v575_v46 = vmul.f32 %v10736_v33, %v543_v42  ;;  %v578_v49 = vmul.f32 %v10739_v34, %v525_v41  ;;  %v571_v50 = vmul.f32 %v10736_v33, %v542_v45  ;;  %v574_v51 = vmul.f32 %v10739_v34, %v524_v43  ;;  %773 = vrot.lane.b32.xlu1 %v10452_v16, %s10303_s16 }
  0xc5   : > { %771 = vrot.lane.b32.xlu0 %v10455_v17, %s10303_s16  ;;  %v9265_v55 = vpack.c.bf16 %v577_v36, %v573_v37 }
  0xc6   : > { %v482_v44 = vpop.permute.xlu1 %481  ;;  %v480_v52 = vpop.permute.xlu0 %479  ;;  %v9157_v53 = vpack.c.bf16 %v575_v46, %v571_v50  ;;  %v9263_v54 = vpack.c.bf16 %v578_v49, %v574_v51 }
  0xc8   : > { %785 = vrot.lane.b32.xlu1 %v10462_v18, %s10303_s16  ;;  %9158 = vmatpush1.bf16.msra.mxu0 %v9157_v53 }
  0xc9   : > { %783 = vrot.lane.b32.xlu0 %v10465_v19, %s10303_s16  ;;  %9264 = vmatprep.subr.bf16.mxu1 %v9263_v54 }
  0xca   : > { %9266 = vmatpush1.bf16.msra.mxu1 %v9265_v55  ;;  %v494_v56 = vpop.permute.xlu1 %493  ;;  %v492_v57 = vpop.permute.xlu0 %491 }
  0xcb   : > { %v539_v47 = vsel %vm523_vm1, %v482_v44, %v494_v56  ;;  %v538_v58 = vsel %vm523_vm1, %v480_v52, %v492_v57 }
  0xcc   : > { %v584_v59 = vmul.f32 %v10712_v48, %v539_v47  ;;  %v580_v60 = vmul.f32 %v10712_v48, %v538_v58  ;;  %797 = vrot.lane.b32.xlu1 %v10472_v20, %s10303_s16 }
  0xcd   : > { %795 = vrot.lane.b32.xlu0 %v10475_v21, %s10303_s16 }
  0xce   : > { %v506_v61 = vpop.permute.xlu1 %505  ;;  %v504_v62 = vpop.permute.xlu0 %503  ;;  %v9159_v63 = vpack.c.bf16 %v584_v59, %v580_v60 }
  0xcf   : > { %v533_v25 = vsel %vm523_vm1, %v494_v56, %v506_v61  ;;  %v532_v28 = vsel %vm523_vm1, %v492_v57, %v504_v62 }
  0xd0   : > { %809 = vrot.lane.b32.xlu1 %v10482_v22, %s10303_s16  ;;  %9160 = vmatprep.subr.bf16.mxu0 %v9159_v63  ;;  %v585_v29 = vmul.f32 %v10727_v24, %v533_v25  ;;  %v581_v30 = vmul.f32 %v10727_v24, %v532_v28 }
  0xd1   : > { %807 = vrot.lane.b32.xlu0 %v10485_v23, %s10303_s16 }
  0xd2   : > { %v518_v32 = vpop.permute.xlu1 %517  ;;  %v516_v36 = vpop.permute.xlu0 %515 }
  0xd3   : > { %v527_v37 = vsel %vm523_vm1, %v506_v61, %v518_v32  ;;  %v545_v31 = vsel %vm523_vm1, %v518_v32, %v482_v44  ;;  %v526_v38 = vsel %vm523_vm1, %v504_v62, %v516_v36  ;;  %v544_v41 = vsel %vm523_vm1, %v516_v36, %v480_v52 }
  0xd4   : > { %v583_v42 = vmul.f32 %v10736_v33, %v545_v31  ;;  %v586_v43 = vmul.f32 %v10739_v34, %v527_v37  ;;  %v579_v45 = vmul.f32 %v10736_v33, %v544_v41  ;;  %v582_v46 = vmul.f32 %v10739_v34, %v526_v38  ;;  %933 = vrot.lane.b32.xlu1 %v10385_v3, %s10304_s19  ;;  %v9057_v41 = vld [vmem:[%s18099_s1 + $0x2] ss:$8 sm:$0xf] }
  0xd5   : > { %931 = vrot.lane.b32.xlu0 %v10375_v1, %s10304_s19  ;;  %v9269_v52 = vpack.c.bf16 %v585_v29, %v581_v30 }
  0xd6   : > { %v486_v49 = vpop.permute.xlu1 %485  ;;  %v484_v50 = vpop.permute.xlu0 %483  ;;  %v9161_v51 = vpack.c.bf16 %v583_v42, %v579_v45  ;;  %v9267_v44 = vpack.c.bf16 %v586_v43, %v582_v46  ;;  %v1724_v42 = vld [vmem:[%s18100_s2 + $0x8] sm:$0xff] }
  0xd7   : > { %1840 = vmatprep.mubr.f32.mxu0 %v1724_v42  ;;  %2018 = vmatprep.mubr.f32.mxu1 %v1724_v42 }
  0xd8   : > { %945 = vrot.lane.b32.xlu1 %v10382_v2, %s10304_s19  ;;  %9162 = vmatpush1.bf16.msra.mxu0 %v9161_v51 }
  0xd9   : > { %943 = vrot.lane.b32.xlu0 %v10372_v0, %s10304_s19  ;;  %9268 = vmatprep.subr.bf16.mxu1 %v9267_v44 }
  0xda   : > { %9270 = vmatpush1.bf16.msra.mxu1 %v9269_v52  ;;  %v498_v53 = vpop.permute.xlu1 %497  ;;  %v496_v54 = vpop.permute.xlu0 %495 }
  0xdb   : > { %v541_v55 = vsel %vm523_vm1, %v486_v49, %v498_v53  ;;  %v540_v56 = vsel %vm523_vm1, %v484_v50, %v496_v54 }
  0xdc   : > { %v592_v57 = vmul.f32 %v10712_v48, %v541_v55  ;;  %v588_v47 = vmul.f32 %v10712_v48, %v540_v56  ;;  %957 = vrot.lane.b32.xlu1 %v10392_v4, %s10304_s19  ;;  %v10866_v55 = vrot.slane %v9057_v41, %v10576_v35 }
  0xdd   : > { %955 = vrot.lane.b32.xlu0 %v10395_v5, %s10304_s19 }
  0xde   : > { %v510_v58 = vpop.permute.xlu1 %509  ;;  %v508_v59 = vpop.permute.xlu0 %507  ;;  %v9163_v60 = vpack.c.bf16 %v592_v57, %v588_v47 }
  0xdf   : > { %v535_v61 = vsel %vm523_vm1, %v498_v53, %v510_v58  ;;  %v534_v62 = vsel %vm523_vm1, %v496_v54, %v508_v59 }
  0xe0   : > { %969 = vrot.lane.b32.xlu1 %v10402_v6, %s10304_s19  ;;  %9164 = vmatprep.subr.bf16.mxu0 %v9163_v60  ;;  %v593_v48 = vmul.f32 %v10727_v24, %v535_v61  ;;  %v589_v63 = vmul.f32 %v10727_v24, %v534_v62  ;;  %v10875_v60 = vrot.slane %v9057_v41, %v10586_v39 }
  0xe1   : > { %967 = vrot.lane.b32.xlu0 %v10405_v7, %s10304_s19  ;;  %v10878_v61 = vrot.slane %v9057_v41, %v10588_v40 }
  0xe2   : > { %v522_v25 = vpop.permute.xlu1 %521  ;;  %v520_v28 = vpop.permute.xlu0 %519 }
  0xe3   : > { %v529_v29 = vsel %vm523_vm1, %v510_v58, %v522_v25  ;;  %v547_v30 = vsel %vm523_vm1, %v522_v25, %v486_v49  ;;  %v528_v32 = vsel %vm523_vm1, %v508_v59, %v520_v28  ;;  %v546_v36 = vsel %vm523_vm1, %v520_v28, %v484_v50 }
  0xe4   : > { %v591_v37 = vmul.f32 %v10736_v33, %v547_v30  ;;  %v594_v31 = vmul.f32 %v10739_v34, %v529_v29  ;;  %v587_v24 = vmul.f32 %v10736_v33, %v546_v36  ;;  %v590_v38 = vmul.f32 %v10739_v34, %v528_v32  ;;  %937 = vrot.lane.b32.xlu1 %v10412_v8, %s10304_s19 }
  0xe5   : > { %935 = vrot.lane.b32.xlu0 %v10415_v9, %s10304_s19  ;;  %v9273_v34 = vpack.c.bf16 %v593_v48, %v589_v63  ;;  %v10851_v49 = vrot.slane %v9057_v41, %v10561_v27 }
  0xe6   : > { %v622_v43 = vpop.permute.xlu1 %621  ;;  %v620_v45 = vpop.permute.xlu0 %619  ;;  %v9165_v46 = vpack.c.bf16 %v591_v37, %v587_v24  ;;  %v9271_v33 = vpack.c.bf16 %v594_v31, %v590_v38 }
  0xe8   : > { %949 = vrot.lane.b32.xlu1 %v10422_v10, %s10304_s19  ;;  %9166 = vmatpush1.bf16.msra.mxu0 %v9165_v46 }
  0xe9   : > { %947 = vrot.lane.b32.xlu0 %v10425_v11, %s10304_s19  ;;  %9272 = vmatprep.subr.bf16.mxu1 %v9271_v33 }
  0xea   : > { %9274 = vmatpush1.bf16.msra.mxu1 %v9273_v34  ;;  %v634_v50 = vpop.permute.xlu1 %633  ;;  %v632_v51 = vpop.permute.xlu0 %631 }
  0xeb   : > { %v681_v44 = vsel %vm667_vm2, %v622_v43, %v634_v50  ;;  %v680_v52 = vsel %vm667_vm2, %v620_v45, %v632_v51 }
  0xec   : > { %v720_v53 = vmul.f32 %v10851_v49, %v681_v44  ;;  %v716_v54 = vmul.f32 %v10851_v49, %v680_v52  ;;  %961 = vrot.lane.b32.xlu1 %v10432_v12, %s10304_s19 }
  0xed   : > { %959 = vrot.lane.b32.xlu0 %v10435_v13, %s10304_s19 }
  0xee   : > { %v646_v56 = vpop.permute.xlu1 %645  ;;  %v644_v57 = vpop.permute.xlu0 %643  ;;  %v9167_v47 = vpack.c.bf16 %v720_v53, %v716_v54 }
  0xef   : > { %v675_v58 = vsel %vm667_vm2, %v634_v50, %v646_v56  ;;  %v674_v59 = vsel %vm667_vm2, %v632_v51, %v644_v57 }
  0xf0   : > { %973 = vrot.lane.b32.xlu1 %v10442_v14, %s10304_s19  ;;  %9168 = vmatprep.subr.bf16.mxu0 %v9167_v47  ;;  %v721_v62 = vmul.f32 %v10866_v55, %v675_v58  ;;  %v717_v48 = vmul.f32 %v10866_v55, %v674_v59 }
  0xf1   : > { %971 = vrot.lane.b32.xlu0 %v10445_v15, %s10304_s19 }
  0xf2   : > { %v658_v63 = vpop.permute.xlu1 %657  ;;  %v656_v25 = vpop.permute.xlu0 %655 }
  0xf3   : > { %v669_v28 = vsel %vm667_vm2, %v646_v56, %v658_v63  ;;  %v687_v29 = vsel %vm667_vm2, %v658_v63, %v622_v43  ;;  %v668_v30 = vsel %vm667_vm2, %v644_v57, %v656_v25  ;;  %v686_v32 = vsel %vm667_vm2, %v656_v25, %v620_v45 }
  0xf4   : > { %v719_v36 = vmul.f32 %v10875_v60, %v687_v29  ;;  %v722_v37 = vmul.f32 %v10878_v61, %v669_v28  ;;  %v715_v31 = vmul.f32 %v10875_v60, %v686_v32  ;;  %v718_v24 = vmul.f32 %v10878_v61, %v668_v30  ;;  %941 = vrot.lane.b32.xlu1 %v10452_v16, %s10304_s19 }
  0xf5   : > { %939 = vrot.lane.b32.xlu0 %v10455_v17, %s10304_s19  ;;  %v9277_v45 = vpack.c.bf16 %v721_v62, %v717_v48 }
  0xf6   : > { %v626_v38 = vpop.permute.xlu1 %625  ;;  %v624_v41 = vpop.permute.xlu0 %623  ;;  %v9169_v42 = vpack.c.bf16 %v719_v36, %v715_v31  ;;  %v9275_v43 = vpack.c.bf16 %v722_v37, %v718_v24 }
  0xf8   : > { %953 = vrot.lane.b32.xlu1 %v10462_v18, %s10304_s19  ;;  %9170 = vmatpush1.bf16.msra.mxu0 %v9169_v42 }
  0xf9   : > { %951 = vrot.lane.b32.xlu0 %v10465_v19, %s10304_s19  ;;  %9276 = vmatprep.subr.bf16.mxu1 %v9275_v43 }
  0xfa   : > { %9278 = vmatpush1.bf16.msra.mxu1 %v9277_v45  ;;  %v638_v46 = vpop.permute.xlu1 %637  ;;  %v636_v33 = vpop.permute.xlu0 %635 }
  0xfb   : > { %v683_v34 = vsel %vm667_vm2, %v626_v38, %v638_v46  ;;  %v682_v50 = vsel %vm667_vm2, %v624_v41, %v636_v33 }
  0xfc   : > { %v728_v51 = vmul.f32 %v10851_v49, %v683_v34  ;;  %v724_v44 = vmul.f32 %v10851_v49, %v682_v50  ;;  %965 = vrot.lane.b32.xlu1 %v10472_v20, %s10304_s19 }
  0xfd   : > { %963 = vrot.lane.b32.xlu0 %v10475_v21, %s10304_s19 }
  0xfe   : > { %v650_v52 = vpop.permute.xlu1 %649  ;;  %v648_v53 = vpop.permute.xlu0 %647  ;;  %v9171_v54 = vpack.c.bf16 %v728_v51, %v724_v44 }
  0xff   : > { %v677_v56 = vsel %vm667_vm2, %v638_v46, %v650_v52  ;;  %v676_v57 = vsel %vm667_vm2, %v636_v33, %v648_v53 }
 0x100   : > { %977 = vrot.lane.b32.xlu1 %v10482_v22, %s10304_s19  ;;  %9172 = vmatprep.subr.bf16.mxu0 %v9171_v54  ;;  %v729_v47 = vmul.f32 %v10866_v55, %v677_v56  ;;  %v725_v58 = vmul.f32 %v10866_v55, %v676_v57  ;;  %v9058_v57 = vld [vmem:[%s18099_s1 + $0x3] ss:$8 sm:$0xf] }
 0x101   : > { %975 = vrot.lane.b32.xlu0 %v10485_v23, %s10304_s19 }
 0x102   : > { %v662_v59 = vpop.permute.xlu1 %661  ;;  %v660_v62 = vpop.permute.xlu0 %659 }
 0x103   : > { %v671_v48 = vsel %vm667_vm2, %v650_v52, %v662_v59  ;;  %v689_v63 = vsel %vm667_vm2, %v662_v59, %v626_v38  ;;  %v670_v25 = vsel %vm667_vm2, %v648_v53, %v660_v62  ;;  %v688_v28 = vsel %vm667_vm2, %v660_v62, %v624_v41 }
 0x104   : > { %v727_v29 = vmul.f32 %v10875_v60, %v689_v63  ;;  %v730_v30 = vmul.f32 %v10878_v61, %v671_v48  ;;  %v723_v32 = vmul.f32 %v10875_v60, %v688_v28  ;;  %v726_v36 = vmul.f32 %v10878_v61, %v670_v25  ;;  %1077 = vrot.lane.b32.xlu1 %v10385_v3, %s10305_s24 }
 0x105   : > { %1075 = vrot.lane.b32.xlu0 %v10375_v1, %s10305_s24  ;;  %v9281_v41 = vpack.c.bf16 %v729_v47, %v725_v58 }
 0x106   : > { %v630_v37 = vpop.permute.xlu1 %629  ;;  %v628_v31 = vpop.permute.xlu0 %627  ;;  %v9173_v24 = vpack.c.bf16 %v727_v29, %v723_v32  ;;  %v9279_v38 = vpack.c.bf16 %v730_v30, %v726_v36  ;;  %v11004_v30 = vrot.slane %v9058_v57, %v10586_v39  ;;  %v11007_v32 = vrot.slane %v9058_v57, %v10588_v40 }
 0x107   : > { %v11010_v36 = vrot.slane %v9058_v57, %v10576_v35 }
 0x108   : > { %1089 = vrot.lane.b32.xlu1 %v10382_v2, %s10305_s24  ;;  %9174 = vmatpush1.bf16.msra.mxu0 %v9173_v24 }
 0x109   : > { %1087 = vrot.lane.b32.xlu0 %v10372_v0, %s10305_s24  ;;  %9280 = vmatprep.subr.bf16.mxu1 %v9279_v38 }
 0x10a   : > { %9282 = vmatpush1.bf16.msra.mxu1 %v9281_v41  ;;  %v642_v42 = vpop.permute.xlu1 %641  ;;  %v640_v43 = vpop.permute.xlu0 %639 }
 0x10b   : > { %v685_v3 = vsel %vm667_vm2, %v630_v37, %v642_v42  ;;  %v684_v1 = vsel %vm667_vm2, %v628_v31, %v640_v43 }
 0x10c   : > { %v736_v45 = vmul.f32 %v10851_v49, %v685_v3  ;;  %v732_v46 = vmul.f32 %v10851_v49, %v684_v1  ;;  %1101 = vrot.lane.b32.xlu1 %v10392_v4, %s10305_s24 }
 0x10d   : > { %1099 = vrot.lane.b32.xlu0 %v10395_v5, %s10305_s24 }
 0x10e   : > { %v654_v0 = vpop.permute.xlu1 %653  ;;  %v652_v2 = vpop.permute.xlu0 %651  ;;  %v9175_v33 = vpack.c.bf16 %v736_v45, %v732_v46 }
 0x10f   : > { %v679_v34 = vsel %vm667_vm2, %v642_v42, %v654_v0  ;;  %v678_v50 = vsel %vm667_vm2, %v640_v43, %v652_v2 }
 0x110   : > { %1113 = vrot.lane.b32.xlu1 %v10402_v6, %s10305_s24  ;;  %9176 = vmatprep.subr.bf16.mxu0 %v9175_v33  ;;  %v737_v4 = vmul.f32 %v10866_v55, %v679_v34  ;;  %v733_v5 = vmul.f32 %v10866_v55, %v678_v50 }
 0x111   : > { %1111 = vrot.lane.b32.xlu0 %v10405_v7, %s10305_s24 }
 0x112   : > { %v666_v49 = vpop.permute.xlu1 %665  ;;  %v664_v51 = vpop.permute.xlu0 %663 }
 0x113   : > { %v673_v44 = vsel %vm667_vm2, %v654_v0, %v666_v49  ;;  %v691_v52 = vsel %vm667_vm2, %v666_v49, %v630_v37  ;;  %v672_v53 = vsel %vm667_vm2, %v652_v2, %v664_v51  ;;  %v690_v6 = vsel %vm667_vm2, %v664_v51, %v628_v31 }
 0x114   : > { %v735_v7 = vmul.f32 %v10875_v60, %v691_v52  ;;  %v738_v54 = vmul.f32 %v10878_v61, %v673_v44  ;;  %v731_v55 = vmul.f32 %v10875_v60, %v690_v6  ;;  %v734_v56 = vmul.f32 %v10878_v61, %v672_v53  ;;  %1081 = vrot.lane.b32.xlu1 %v10412_v8, %s10305_s24 }
 0x115   : > { %1079 = vrot.lane.b32.xlu0 %v10415_v9, %s10305_s24  ;;  %v9285_v60 = vpack.c.bf16 %v737_v4, %v733_v5  ;;  %v10987_v8 = vrot.slane %v9058_v57, %v10561_v27 }
 0x116   : > { %v766_v47 = vpop.permute.xlu1 %765  ;;  %v9177_v58 = vpack.c.bf16 %v735_v7, %v731_v55  ;;  %v9283_v59 = vpack.c.bf16 %v738_v54, %v734_v56  ;;  %v11069_v55 = vld [vmem:[%s10369_s10 + $0x20] sm:$0xff] }
 0x117   : > { %v764_v62 = vpop.permute.xlu0 %763 }
 0x118   : > { %1093 = vrot.lane.b32.xlu1 %v10422_v10, %s10305_s24  ;;  %9178 = vmatpush1.bf16.msra.mxu0 %v9177_v58 }
 0x119   : > { %1091 = vrot.lane.b32.xlu0 %v10425_v11, %s10305_s24  ;;  %9284 = vmatprep.subr.bf16.mxu1 %v9283_v59  ;;  %v11078_v59 = vld [vmem:[%s10369_s10] sm:$0xff] }
 0x11a   : > { %9286 = vmatpush1.bf16.msra.mxu1 %v9285_v60  ;;  %v778_v9 = vpop.permute.xlu1 %777 }
 0x11b   : > { %v825_v61 = vsel %vm811_vm3, %v766_v47, %v778_v9  ;;  %v776_v48 = vpop.permute.xlu0 %775 }
 0x11c   : > { %v864_v63 = vmul.f32 %v10987_v8, %v825_v61  ;;  %v824_v10 = vsel %vm811_vm3, %v764_v62, %v776_v48  ;;  %1105 = vrot.lane.b32.xlu1 %v10432_v12, %s10305_s24 }
 0x11d   : > { %v860_v25 = vmul.f32 %v10987_v8, %v824_v10  ;;  %1103 = vrot.lane.b32.xlu0 %v10435_v13, %s10305_s24 }
 0x11e   : > { %v790_v11 = vpop.permute.xlu1 %789 }
 0x11f   : > { %v788_v28 = vpop.permute.xlu0 %787  ;;  %v9179_v29 = vpack.c.bf16 %v864_v63, %v860_v25  ;;  %v819_v12 = vsel %vm811_vm3, %v778_v9, %v790_v11  ;;  %v11088_v63 = vld [vmem:[%s10369_s10 + $0x8] sm:$0xff] }
 0x120   : > { %1117 = vrot.lane.b32.xlu1 %v10442_v14, %s10305_s24  ;;  %v818_v13 = vsel %vm811_vm3, %v776_v48, %v788_v28  ;;  %v865_v43 = vmul.f32 %v11010_v36, %v819_v12  ;;  %v11083_v48 = vld [vmem:[%s10369_s10 + $0x28] sm:$0xff] }
 0x121   : > { %1115 = vrot.lane.b32.xlu0 %v10445_v15, %s10305_s24  ;;  %9180 = vmatprep.subr.bf16.mxu0 %v9179_v29  ;;  %v861_v3 = vmul.f32 %v11010_v36, %v818_v13  ;;  %v11098_v13 = vld [vmem:[%s10369_s10 + $0x30] sm:$0xff] }
 0x122   : > { %v802_v14 = vpop.permute.xlu1 %801 }
 0x123   : > { %v813_v37 = vsel %vm811_vm3, %v790_v11, %v802_v14  ;;  %v831_v31 = vsel %vm811_vm3, %v802_v14, %v766_v47  ;;  %v800_v24 = vpop.permute.xlu0 %799 }
 0x124   : > { %v863_v38 = vmul.f32 %v11004_v30, %v831_v31  ;;  %v866_v41 = vmul.f32 %v11007_v32, %v813_v37  ;;  %v812_v15 = vsel %vm811_vm3, %v788_v28, %v800_v24  ;;  %v830_v42 = vsel %vm811_vm3, %v800_v24, %v764_v62  ;;  %1085 = vrot.lane.b32.xlu1 %v10452_v16, %s10305_s24  ;;  %v11104_v37 = vld [vmem:[%s10369_s10 + $0x10] sm:$0xff] }
 0x125   : > { %v859_v1 = vmul.f32 %v11004_v30, %v830_v42  ;;  %v862_v45 = vmul.f32 %v11007_v32, %v812_v15  ;;  %1083 = vrot.lane.b32.xlu0 %v10455_v17, %s10305_s24  ;;  %v9289_v16 = vpack.c.bf16 %v865_v43, %v861_v3  ;;  %v11114_v15 = vld [vmem:[%s10369_s10 + $0x18] sm:$0xff] }
 0x126   : > { %v770_v46 = vpop.permute.xlu1 %769 }
 0x127   : > { %v768_v0 = vpop.permute.xlu0 %767  ;;  %v9181_v2 = vpack.c.bf16 %v863_v38, %v859_v1  ;;  %v9287_v33 = vpack.c.bf16 %v866_v41, %v862_v45  ;;  %v11109_v41 = vld [vmem:[%s10369_s10 + $0x38] sm:$0xff] }
 0x128   : > { %1097 = vrot.lane.b32.xlu1 %v10462_v18, %s10305_s24 }
 0x129   : > { %1095 = vrot.lane.b32.xlu0 %v10465_v19, %s10305_s24  ;;  %9182 = vmatpush1.bf16.msra.mxu0 %v9181_v2 }
 0x12a   : > { %9288 = vmatprep.subr.bf16.mxu1 %v9287_v33  ;;  %v782_v34 = vpop.permute.xlu1 %781 }
 0x12b   : > { %9290 = vmatpush1.bf16.msra.mxu1 %v9289_v16  ;;  %v827_v50 = vsel %vm811_vm3, %v770_v46, %v782_v34  ;;  %v780_v4 = vpop.permute.xlu0 %779  ;;  %v11133_v16 = vld [vmem:[%s10369_s10 + $0x60] sm:$0xff] }
 0x12c   : > { %v872_v17 = vmul.f32 %v10987_v8, %v827_v50  ;;  %v826_v5 = vsel %vm811_vm3, %v768_v0, %v780_v4  ;;  %1109 = vrot.lane.b32.xlu1 %v10472_v20, %s10305_s24 }
 0x12d   : > { %v868_v18 = vmul.f32 %v10987_v8, %v826_v5  ;;  %1107 = vrot.lane.b32.xlu0 %v10475_v21, %s10305_s24  ;;  %v11142_v5 = vld [vmem:[%s10369_s10 + $0x40] sm:$0xff] }
 0x12e   : > { %v794_v19 = vpop.permute.xlu1 %793 }
 0x12f   : > { %v792_v49 = vpop.permute.xlu0 %791  ;;  %v9183_v51 = vpack.c.bf16 %v872_v17, %v868_v18  ;;  %v821_v44 = vsel %vm811_vm3, %v782_v34, %v794_v19 }
 0x130   : > { %1121 = vrot.lane.b32.xlu1 %v10482_v22, %s10305_s24  ;;  %v820_v20 = vsel %vm811_vm3, %v780_v4, %v792_v49  ;;  %v873_v56 = vmul.f32 %v11010_v36, %v821_v44 }
 0x131   : > { %1119 = vrot.lane.b32.xlu0 %v10485_v23, %s10305_s24  ;;  %9184 = vmatprep.subr.bf16.mxu0 %v9183_v51  ;;  %v869_v57 = vmul.f32 %v11010_v36, %v820_v20  ;;  %v11153_v20 = vld [vmem:[%s10369_s10 + $0x68] sm:$0xff] }
 0x132   : > { %v806_v52 = vpop.permute.xlu1 %805 }
 0x133   : > { %v815_v21 = vsel %vm811_vm3, %v794_v19, %v806_v52  ;;  %v833_v53 = vsel %vm811_vm3, %v806_v52, %v770_v46  ;;  %v804_v6 = vpop.permute.xlu0 %803  ;;  %v9293_v10 = vpack.c.bf16 %v873_v56, %v869_v57  ;;  %v9191_v19 = vpack.c.bf16 %v11083_v48, %v11088_v63  ;;  %v11183_v56 = vld [vmem:[%s10369_s10 + $0x78] sm:$0xff] }
 0x134   : > { %v871_v22 = vmul.f32 %v11004_v30, %v833_v53  ;;  %v874_v23 = vmul.f32 %v11007_v32, %v815_v21  ;;  %v814_v7 = vsel %vm811_vm3, %v792_v49, %v804_v6  ;;  %v832_v54 = vsel %vm811_vm3, %v804_v6, %v768_v0  ;;  %1221 = vrot.lane.b32.xlu1 %v11069_v55, %s10306_s29  ;;  %v9059_v6 = vld [vmem:[%s18099_s1 + $0x5] ss:$8 sm:$0xf] }
 0x135   : > { %v867_v47 = vmul.f32 %v11004_v30, %v832_v54  ;;  %v870_v58 = vmul.f32 %v11007_v32, %v814_v7  ;;  %1219 = vrot.lane.b32.xlu0 %v11078_v59, %s10306_s29  ;;  %v9193_v52 = vpack.c.bf16 %v11069_v55, %v11078_v59  ;;  %v11175_v7 = vld [vmem:[%s10369_s10 + $0x70] sm:$0xff]  ;;  %v11180_v54 = vrot.slane %v9059_v6, %v10561_v27  ;;  %v11186_v57 = vld [vmem:[%s10369_s10 + $0x58] sm:$0xff] }
 0x136   : > { %v774_v62 = vpop.permute.xlu1 %773 }
 0x137   : > { %v772_v60 = vpop.permute.xlu0 %771  ;;  %v9185_v9 = vpack.c.bf16 %v871_v22, %v867_v47  ;;  %v9291_v61 = vpack.c.bf16 %v874_v23, %v870_v58  ;;  %v9301_v23 = vpack.c.bf16 %v11098_v13, %v11104_v37  ;;  %v9303_v47 = vpack.c.bf16 %v11183_v56, %v11186_v57  ;;  %v11191_v58 = vld [vmem:[%s10369_s10 + $0x50] sm:$0xff] }
 0x138   : > { %1233 = vrot.lane.b32.xlu1 %v11083_v48, %s10306_s29 }
 0x139   : > { %1231 = vrot.lane.b32.xlu0 %v11088_v63, %s10306_s29  ;;  %9186 = vmatpush1.bf16.msra.mxu0 %v9185_v9 }
 0x13a   : > { %9292 = vmatprep.subr.bf16.mxu1 %v9291_v61  ;;  %v786_v25 = vpop.permute.xlu1 %785  ;;  %v9305_v61 = vpack.c.bf16 %v11175_v7, %v11191_v58 }
 0x13b   : > { %9294 = vmatpush1.bf16.msra.mxu1 %v9293_v10  ;;  %v829_v11 = vsel %vm811_vm3, %v774_v62, %v786_v25  ;;  %v784_v28 = vpop.permute.xlu0 %783  ;;  %v11203_v10 = vld [vmem:[%s10369_s10 + $0xa8] sm:$0xff] }
 0x13c   : > { %v880_v29 = vmul.f32 %v10987_v8, %v829_v11  ;;  %v828_v12 = vsel %vm811_vm3, %v772_v60, %v784_v28  ;;  %1245 = vrot.lane.b32.xlu1 %v11098_v13, %s10306_s29 }
 0x13d   : > { %v876_v14 = vmul.f32 %v10987_v8, %v828_v12  ;;  %1243 = vrot.lane.b32.xlu0 %v11104_v37, %s10306_s29 }
 0x13e   : > { %v798_v31 = vpop.permute.xlu1 %797 }
 0x13f   : > { %v796_v24 = vpop.permute.xlu0 %795  ;;  %v9187_v38 = vpack.c.bf16 %v880_v29, %v876_v14  ;;  %v823_v8 = vsel %vm811_vm3, %v786_v25, %v798_v31  ;;  %v11206_v25 = vld [vmem:[%s10369_s10 + $0x88] sm:$0xff]  ;;  %v11216_v14 = vrot.slane %v9059_v6, %v10576_v35 }
 0x140   : > { %1257 = vrot.lane.b32.xlu1 %v11109_v41, %s10306_s29  ;;  %v822_v42 = vsel %vm811_vm3, %v784_v28, %v796_v24  ;;  %v881_v34 = vmul.f32 %v11010_v36, %v823_v8  ;;  %v9199_v11 = vpack.c.bf16 %v11203_v10, %v11206_v25 }
 0x141   : > { %1255 = vrot.lane.b32.xlu0 %v11114_v15, %s10306_s29  ;;  %9188 = vmatprep.subr.bf16.mxu0 %v9187_v38  ;;  %v877_v50 = vmul.f32 %v11010_v36, %v822_v42 }
 0x142   : > { %v810_v43 = vpop.permute.xlu1 %809 }
 0x143   : > { %v817_v3 = vsel %vm811_vm3, %v798_v31, %v810_v43  ;;  %v835_v1 = vsel %vm811_vm3, %v810_v43, %v774_v62  ;;  %v808_v45 = vpop.permute.xlu0 %807  ;;  %v9297_v36 = vpack.c.bf16 %v881_v34, %v877_v50  ;;  %v9197_v62 = vpack.c.bf16 %v11133_v16, %v11142_v5  ;;  %v11233_v43 = vld [vmem:[%s10369_s10 + $0xa0] sm:$0xff]  ;;  %v11250_v34 = vld [vmem:[%s10369_s10 + $0xb0] sm:$0xff] }
 0x144   : > { %v879_v46 = vmul.f32 %v11004_v30, %v835_v1  ;;  %v882_v0 = vmul.f32 %v11007_v32, %v817_v3  ;;  %v816_v2 = vsel %vm811_vm3, %v796_v24, %v808_v45  ;;  %v834_v33 = vsel %vm811_vm3, %v808_v45, %v772_v60  ;;  %1225 = vrot.lane.b32.xlu1 %v11133_v16, %s10306_s29  ;;  %v11236_v3 = vld [vmem:[%s10369_s10 + $0x80] sm:$0xff]  ;;  %v11253_v50 = vld [vmem:[%s10369_s10 + $0x90] sm:$0xff] }
 0x145   : > { %v875_v4 = vmul.f32 %v11004_v30, %v834_v33  ;;  %v878_v17 = vmul.f32 %v11007_v32, %v816_v2  ;;  %1223 = vrot.lane.b32.xlu0 %v11142_v5, %s10306_s29  ;;  %v9299_v30 = vpack.c.bf16 %v11109_v41, %v11114_v15  ;;  %v11160_v32 = vld [vmem:[%s10369_s10 + $0x48] sm:$0xff]  ;;  %v11198_v60 = vrot.slane %v9059_v6, %v10586_v39  ;;  %v11245_v2 = vld [vmem:[%s10369_s10 + $0x98] sm:$0xff] }
 0x146   : > { %v11146_v18 = vpop.permute.xlu1 %933  ;;  %v9195_v53 = vpack.c.bf16 %v11153_v20, %v11160_v32  ;;  %v11219_v31 = vrot.slane %v9059_v6, %v10588_v40  ;;  %v9201_v1 = vpack.c.bf16 %v11233_v43, %v11236_v3 }
 0x147   : > { %v11150_v49 = vpop.permute.xlu0 %931  ;;  %v9189_v51 = vpack.c.bf16 %v879_v46, %v875_v4  ;;  %v9295_v44 = vpack.c.bf16 %v882_v0, %v878_v17  ;;  %v11242_v0 = vld [vmem:[%s10369_s10 + $0xb8] sm:$0xff]  ;;  %v9309_v4 = vpack.c.bf16 %v11250_v34, %v11253_v50  ;;  %s9142_s10 = sshll.u32 %s19250_s28, 5 }
 0x148   : > { %1237 = vrot.lane.b32.xlu1 %v11153_v20, %s10306_s29  ;;  %v9307_v33 = vpack.c.bf16 %v11242_v0, %v11245_v2  ;;  %s305_s17 = scalar_lea.vmem %s18106_s8, %s9142_s10 }
 0x149   : > { %1235 = vrot.lane.b32.xlu0 %v11160_v32, %s10306_s29  ;;  %9190 = vmatpush1.bf16.msra.mxu0 %v9189_v51 }
 0x14a   : > { %9296 = vmatprep.subr.bf16.mxu1 %v9295_v44  ;;  %v946_v21 = vpop.permute.xlu1 %945  ;;  %9192 = vmatprep.subr.bf16.mxu0 %v9191_v19 }
 0x14b   : > { %9298 = vmatpush1.bf16.msra.mxu1 %v9297_v36  ;;  %v944_v22 = vpop.permute.xlu0 %943  ;;  %v993_v28 = vsel %vm979_vm4, %v11146_v18, %v946_v21 }
 0x14c   : > { %1249 = vrot.lane.b32.xlu1 %v11175_v7, %s10306_s29  ;;  %9300 = vmatprep.subr.bf16.mxu1 %v9299_v30  ;;  %v992_v24 = vsel %vm979_vm4, %v11150_v49, %v944_v22  ;;  %v1031_v45 = vmul.f32 %v11198_v60, %v993_v28 }
 0x14d   : > { %1247 = vrot.lane.b32.xlu0 %v11191_v58, %s10306_s29  ;;  %9194 = vmatpush1.bf16.msra.mxu0 %v9193_v52  ;;  %v1027_v17 = vmul.f32 %v11198_v60, %v992_v24 }
 0x14e   : > { %v958_v9 = vpop.permute.xlu1 %957  ;;  %9196 = vmatprep.subr.bf16.mxu0 %v9195_v53 }
 0x14f   : > { %9302 = vmatpush1.bf16.msra.mxu1 %v9301_v23  ;;  %v987_v29 = vsel %vm979_vm4, %v946_v21, %v958_v9  ;;  %v956_v12 = vpop.permute.xlu0 %955 }
 0x150   : > { %v1032_v38 = vmul.f32 %v11180_v54, %v987_v29  ;;  %v986_v8 = vsel %vm979_vm4, %v944_v22, %v956_v12  ;;  %1261 = vrot.lane.b32.xlu1 %v11183_v56, %s10306_s29  ;;  %9304 = vmatprep.subr.bf16.mxu1 %v9303_v47  ;;  %v9205_v47 = vpack.c.bf16 %v1031_v45, %v1027_v17 }
 0x151   : > { %v1028_v42 = vmul.f32 %v11180_v54, %v986_v8  ;;  %1259 = vrot.lane.b32.xlu0 %v11186_v57, %s10306_s29  ;;  %9198 = vmatpush1.bf16.msra.mxu0 %v9197_v62 }
 0x152   : > { %v970_v46 = vpop.permute.xlu1 %969  ;;  %9200 = vmatprep.subr.bf16.mxu0 %v9199_v11 }
 0x153   : > { %9306 = vmatpush1.bf16.msra.mxu1 %v9305_v61  ;;  %v981_v19 = vsel %vm979_vm4, %v958_v9, %v970_v46  ;;  %v999_v51 = vsel %vm979_vm4, %v970_v46, %v11146_v18  ;;  %v968_v44 = vpop.permute.xlu0 %967  ;;  %v9203_v30 = vpack.c.bf16 %v1032_v38, %v1028_v42 }
 0x154   : > { %v1033_v36 = vmul.f32 %v11216_v14, %v981_v19  ;;  %v1034_v52 = vmul.f32 %v11219_v31, %v999_v51  ;;  %v980_v21 = vsel %vm979_vm4, %v956_v12, %v968_v44  ;;  %v998_v53 = vsel %vm979_vm4, %v968_v44, %v11150_v49  ;;  %1229 = vrot.lane.b32.xlu1 %v11233_v43, %s10306_s29  ;;  %v1723_v49 = vld [vmem:[%s18100_s2] sm:$0xff] }
 0x155   : > { %v1029_v6 = vmul.f32 %v11216_v14, %v980_v21  ;;  %v1030_v18 = vmul.f32 %v11219_v31, %v998_v53  ;;  %1227 = vrot.lane.b32.xlu0 %v11236_v3, %s10306_s29  ;;  %9202 = vmatpush1.bf16.msra.mxu0 %v9201_v1 }
 0x156   : > { %9308 = vmatprep.subr.bf16.mxu1 %v9307_v33  ;;  %9204 = vmatprep.subr.bf16.mxu0 %v9203_v30  ;;  %v938_v22 = vpop.permute.xlu1 %937 }
 0x157   : > { %9310 = vmatpush1.bf16.msra.mxu1 %v9309_v4  ;;  %v936_v23 = vpop.permute.xlu0 %935  ;;  %v9311_v62 = vpack.c.bf16 %v1034_v52, %v1030_v18  ;;  %v9313_v9 = vpack.c.bf16 %v1033_v36, %v1029_v6 }
 0x158   : > { %1241 = vrot.lane.b32.xlu1 %v11203_v10, %s10306_s29 }
 0x159   : > { %1239 = vrot.lane.b32.xlu0 %v11206_v25, %s10306_s29  ;;  %9206 = vmatpush1.bf16.msra.mxu0 %v9205_v47 }
 0x15a   : > { %9312 = vmatprep.subr.bf16.mxu1 %v9311_v62  ;;  %v950_v61 = vpop.permute.xlu1 %949 }
 0x15b   : > { %9314 = vmatpush1.bf16.msra.mxu1 %v9313_v9  ;;  %v948_v11 = vpop.permute.xlu0 %947  ;;  %v995_v28 = vsel %vm979_vm4, %v938_v22, %v950_v61 }
 0x15c   : > { %v994_v29 = vsel %vm979_vm4, %v936_v23, %v948_v11  ;;  %1253 = vrot.lane.b32.xlu1 %v11250_v34, %s10306_s29  ;;  %1841 = vmatmul.mubr.f32.vlgmr.msra.gmra.mrb[0].mxu0 %v1723_v49  ;;  %v1039_v24 = vmul.f32 %v11198_v60, %v995_v28 }
 0x15d   : > { %1251 = vrot.lane.b32.xlu0 %v11253_v50, %s10306_s29  ;;  %v1035_v38 = vmul.f32 %v11198_v60, %v994_v29 }
 0x15e   : > { %v962_v12 = vpop.permute.xlu1 %961  ;;  %2019 = vmatmul.mubr.f32.vlgmr.msra.gmra.mrb[0].mxu1 %v1723_v49 }
 0x15f   : > { %v989_v8 = vsel %vm979_vm4, %v950_v61, %v962_v12  ;;  %v960_v42 = vpop.permute.xlu0 %959  ;;  %v9209_v4 = vpack.c.bf16 %v1039_v24, %v1035_v38 }
 0x160   : > { %v1040_v1 = vmul.f32 %v11180_v54, %v989_v8  ;;  %v988_v45 = vsel %vm979_vm4, %v948_v11, %v960_v42  ;;  %1265 = vrot.lane.b32.xlu1 %v11242_v0, %s10306_s29 }
 0x161   : > { %v1036_v46 = vmul.f32 %v11180_v54, %v988_v45  ;;  %1263 = vrot.lane.b32.xlu0 %v11245_v2, %s10306_s29 }
 0x162   : > { %v974_v33 = vpop.permute.xlu1 %973 }
 0x163   : > { %v983_v17 = vsel %vm979_vm4, %v962_v12, %v974_v33  ;;  %v1001_v19 = vsel %vm979_vm4, %v974_v33, %v938_v22  ;;  %v972_v51 = vpop.permute.xlu0 %971  ;;  %v9207_v44 = vpack.c.bf16 %v1040_v1, %v1036_v46 }
 0x164   : > { %v1041_v30 = vmul.f32 %v11216_v14, %v983_v17  ;;  %v1042_v36 = vmul.f32 %v11219_v31, %v1001_v19  ;;  %v982_v52 = vsel %vm979_vm4, %v960_v42, %v972_v51  ;;  %v1000_v21 = vsel %vm979_vm4, %v972_v51, %v936_v23  ;;  %1365 = vrot.lane.b32.xlu1 %v11069_v55, %s10307_s15 }
 0x165   : > { %v1037_v53 = vmul.f32 %v11216_v14, %v982_v52  ;;  %v1038_v6 = vmul.f32 %v11219_v31, %v1000_v21  ;;  %1363 = vrot.lane.b32.xlu0 %v11078_v59, %s10307_s15  ;;  %9208 = vmatprep.subr.bf16.mxu0 %v9207_v44  ;;  %v1727_v44 = vld [vmem:[%s18100_s2 + $0x20] sm:$0xff] }
 0x166   : > { %9210 = vmatpush1.bf16.msra.mxu0 %v9209_v4  ;;  %v942_v18 = vpop.permute.xlu1 %941 }
 0x167   : > { %v9317_v22 = vpack.c.bf16 %v1041_v30, %v1037_v53  ;;  %v940_v47 = vpop.permute.xlu0 %939  ;;  %v9315_v62 = vpack.c.bf16 %v1042_v36, %v1038_v6 }
 0x168   : > { %1377 = vrot.lane.b32.xlu1 %v11083_v48, %s10307_s15 }
 0x169   : > { %1375 = vrot.lane.b32.xlu0 %v11088_v63, %s10307_s15  ;;  %9316 = vmatprep.subr.bf16.mxu1 %v9315_v62 }
 0x16a   : > { %9318 = vmatpush1.bf16.msra.mxu1 %v9317_v22  ;;  %v954_v55 = vpop.permute.xlu1 %953  ;;  %v1732_v22 = vld [vmem:[%s18100_s2 + $0x48] sm:$0xff] }
 0x16b   : > { %v952_v23 = vpop.permute.xlu0 %951  ;;  %v997_v9 = vsel %vm979_vm4, %v942_v18, %v954_v55 }
 0x16c   : > { %v996_v59 = vsel %vm979_vm4, %v940_v47, %v952_v23  ;;  %1389 = vrot.lane.b32.xlu1 %v11098_v13, %s10307_s15  ;;  %v1047_v49 = vmul.f32 %v11198_v60, %v997_v9 }
 0x16d   : > { %1387 = vrot.lane.b32.xlu0 %v11104_v37, %s10307_s15  ;;  %v1043_v63 = vmul.f32 %v11198_v60, %v996_v59 }
 0x16e   : > { %v966_v48 = vpop.permute.xlu1 %965 }
 0x16f   : > { %v991_v61 = vsel %vm979_vm4, %v954_v55, %v966_v48  ;;  %v964_v11 = vpop.permute.xlu0 %963  ;;  %v9213_v12 = vpack.c.bf16 %v1047_v49, %v1043_v63 }
 0x170   : > { %v1048_v28 = vmul.f32 %v11180_v54, %v991_v61  ;;  %v990_v29 = vsel %vm979_vm4, %v952_v23, %v964_v11  ;;  %1401 = vrot.lane.b32.xlu1 %v11109_v41, %s10307_s15 }
 0x171   : > { %v1044_v13 = vmul.f32 %v11180_v54, %v990_v29  ;;  %1399 = vrot.lane.b32.xlu0 %v11114_v15, %s10307_s15 }
 0x172   : > { %v978_v37 = vpop.permute.xlu1 %977 }
 0x173   : > { %v985_v60 = vsel %vm979_vm4, %v966_v48, %v978_v37  ;;  %v1003_v24 = vsel %vm979_vm4, %v978_v37, %v942_v18  ;;  %v976_v38 = vpop.permute.xlu0 %975  ;;  %v9211_v8 = vpack.c.bf16 %v1048_v28, %v1044_v13  ;;  %v1735_v13 = vld [vmem:[%s18100_s2 + $0x60] sm:$0xff] }
 0x174   : > { %v1049_v42 = vmul.f32 %v11216_v14, %v985_v60  ;;  %v1050_v1 = vmul.f32 %v11219_v31, %v1003_v24  ;;  %v984_v41 = vsel %vm979_vm4, %v964_v11, %v976_v38  ;;  %v1002_v15 = vsel %vm979_vm4, %v976_v38, %v940_v47  ;;  %1369 = vrot.lane.b32.xlu1 %v11133_v16, %s10307_s15  ;;  %v9060_v16 = vld [vmem:[%s18099_s1 + $0x6] ss:$8 sm:$0xf] }
 0x175   : > { %v1045_v54 = vmul.f32 %v11216_v14, %v984_v41  ;;  %v1046_v45 = vmul.f32 %v11219_v31, %v1002_v15  ;;  %1367 = vrot.lane.b32.xlu0 %v11142_v5, %s10307_s15  ;;  %9212 = vmatprep.subr.bf16.mxu0 %v9211_v8  ;;  %v11368_v14 = vrot.slane %v9060_v16, %v10586_v39  ;;  %v1736_v11 = vld [vmem:[%s18100_s2 + $0x68] sm:$0xff]  ;;  %v1726_v24 = vld [vmem:[%s18100_s2 + $0x18] sm:$0xff] }
 0x176   : > { %9214 = vmatpush1.bf16.msra.mxu0 %v9213_v12  ;;  %v1078_v46 = vpop.permute.xlu1 %1077  ;;  %v11377_v51 = vrot.slane %v9060_v16, %v10561_v27  ;;  %v11397_v6 = vrot.slane %v9060_v16, %v10576_v35  ;;  %v11400_v18 = vrot.slane %v9060_v16, %v10588_v40 }
 0x177   : > { %v9321_v33 = vpack.c.bf16 %v1049_v42, %v1045_v54  ;;  %v1076_v4 = vpop.permute.xlu0 %1075  ;;  %v9319_v17 = vpack.c.bf16 %v1050_v1, %v1046_v45 }
 0x178   : > { %1381 = vrot.lane.b32.xlu1 %v11153_v20, %s10307_s15 }
 0x179   : > { %1379 = vrot.lane.b32.xlu0 %v11160_v32, %s10307_s15  ;;  %9320 = vmatprep.subr.bf16.mxu1 %v9319_v17  ;;  %v1728_v32 = vld [vmem:[%s18100_s2 + $0x28] sm:$0xff] }
 0x17a   : > { %9322 = vmatpush1.bf16.msra.mxu1 %v9321_v33  ;;  %v1090_v5 = vpop.permute.xlu1 %1089  ;;  %1846 = vmatprep.mubr.f32.mxu0 %v1728_v32 }
 0x17b   : > { %v1088_v31 = vpop.permute.xlu0 %1087  ;;  %v1137_v19 = vsel %vm1123_vm5, %v1078_v46, %v1090_v5  ;;  %1847 = vmatmul.mubr.f32.gmra.mrb[2].mxu0 %v1727_v44  ;;  %2024 = vmatprep.mubr.f32.mxu1 %v1728_v32 }
 0x17c   : > { %v1136_v20 = vsel %vm1123_vm5, %v1076_v4, %v1088_v31  ;;  %1393 = vrot.lane.b32.xlu1 %v11175_v7, %s10307_s15  ;;  %v1175_v7 = vmul.f32 %v11368_v14, %v1137_v19  ;;  %2025 = vmatmul.mubr.f32.gmra.mrb[2].mxu1 %v1727_v44 }
 0x17d   : > { %1391 = vrot.lane.b32.xlu0 %v11191_v58, %s10307_s15  ;;  %v1171_v36 = vmul.f32 %v11368_v14, %v1136_v20  ;;  %1852 = vmatprep.mubr.f32.mxu0 %v1732_v22 }
 0x17e   : > { %v1102_v30 = vpop.permute.xlu1 %1101  ;;  %2030 = vmatprep.mubr.f32.mxu1 %v1732_v22 }
 0x17f   : > { %v1131_v52 = vsel %vm1123_vm5, %v1090_v5, %v1102_v30  ;;  %v1100_v21 = vpop.permute.xlu0 %1099  ;;  %v9217_v55 = vpack.c.bf16 %v1175_v7, %v1171_v36  ;;  %v1740_v36 = vld [vmem:[%s18101_s3 + $0x8] sm:$0xff] }
 0x180   : > { %v1176_v53 = vmul.f32 %v11377_v51, %v1131_v52  ;;  %v1130_v58 = vsel %vm1123_vm5, %v1088_v31, %v1100_v21  ;;  %1405 = vrot.lane.b32.xlu1 %v11183_v56, %s10307_s15  ;;  %v1731_v56 = vld [vmem:[%s18100_s2 + $0x40] sm:$0xff] }
 0x181   : > { %v1172_v47 = vmul.f32 %v11377_v51, %v1130_v58  ;;  %1403 = vrot.lane.b32.xlu0 %v11186_v57, %s10307_s15  ;;  %1853 = vmatmul.mubr.f32.gmra.mrb[4].mxu0 %v1731_v56  ;;  %v1739_v52 = vld [vmem:[%s18101_s3] sm:$0xff] }
 0x182   : > { %v1114_v62 = vpop.permute.xlu1 %1113  ;;  %2031 = vmatmul.mubr.f32.gmra.mrb[4].mxu1 %v1731_v56  ;;  %1858 = vmatprep.mubr.f32.mxu0 %v1736_v11  ;;  %v1741_v56 = vld [vmem:[%s18101_s3 + $0x10] sm:$0xff] }
 0x183   : > { %v1125_v23 = vsel %vm1123_vm5, %v1102_v30, %v1114_v62  ;;  %v1143_v9 = vsel %vm1123_vm5, %v1114_v62, %v1078_v46  ;;  %v1112_v59 = vpop.permute.xlu0 %1111  ;;  %v9215_v48 = vpack.c.bf16 %v1176_v53, %v1172_v47  ;;  %2036 = vmatprep.mubr.f32.mxu1 %v1736_v11  ;;  %v10308_v53 = vmov 0   ;;  %v1742_v62 = vld [vmem:[%s18101_s3 + $0x18] sm:$0xff] }
 0x184   : > { %v1177_v57 = vmul.f32 %v11397_v6, %v1125_v23  ;;  %v1178_v49 = vmul.f32 %v11400_v18, %v1143_v9  ;;  %v1124_v63 = vsel %vm1123_vm5, %v1100_v21, %v1112_v59  ;;  %v1142_v61 = vsel %vm1123_vm5, %v1112_v59, %v1076_v4  ;;  %1373 = vrot.lane.b32.xlu1 %v11233_v43, %s10307_s15 }
 0x185   : > { %v1173_v28 = vmul.f32 %v11397_v6, %v1124_v63  ;;  %v1174_v29 = vmul.f32 %v11400_v18, %v1142_v61  ;;  %1371 = vrot.lane.b32.xlu0 %v11236_v3, %s10307_s15  ;;  %9216 = vmatprep.subr.bf16.mxu0 %v9215_v48 }
 0x186   : > { %9218 = vmatpush1.bf16.msra.mxu0 %v9217_v55  ;;  %v1082_v37 = vpop.permute.xlu1 %1081  ;;  %2037 = vmatmul.mubr.f32.gmra.mrb[6].mxu1 %v1735_v13 }
 0x187   : > { %v9325_v43 = vpack.c.bf16 %v1177_v57, %v1173_v28  ;;  %v1080_v12 = vpop.permute.xlu0 %1079  ;;  %v9323_v60 = vpack.c.bf16 %v1178_v49, %v1174_v29  ;;  %1859 = vmatmul.mubr.f32.gmra.mrb[6].mxu0 %v1735_v13  ;;  %9067 = vmatprep.mubr.msk.f32.mxu1 %vm1763_vm6, %v1726_v24 }
 0x188   : > { %1385 = vrot.lane.b32.xlu1 %v11203_v10, %s10307_s15  ;;  %9063 = vmatprep.mubr.msk.f32.mxu0 %vm1763_vm6, %v1726_v24 }
 0x189   : > { %1383 = vrot.lane.b32.xlu0 %v11206_v25, %s10307_s15  ;;  %9324 = vmatprep.subr.bf16.mxu1 %v9323_v60 }
 0x18a   : > { %9326 = vmatpush1.bf16.msra.mxu1 %v9325_v43  ;;  %v1094_v3 = vpop.permute.xlu1 %1093  ;;  %10267 = vset.pattern.permute.xlu1 %v10308_v53 }
 0x18b   : > { %v1092_v38 = vpop.permute.xlu0 %1091  ;;  %v1139_v8 = vsel %vm1123_vm5, %v1082_v37, %v1094_v3  ;;  %10266 = vset.pattern.permute.xlu0 %v10308_v53 }
 0x18c   : > { %v1138_v42 = vsel %vm1123_vm5, %v1080_v12, %v1092_v38  ;;  %1397 = vrot.lane.b32.xlu1 %v11250_v34, %s10307_s15  ;;  %v1183_v25 = vmul.f32 %v11368_v14, %v1139_v8 }
 0x18d   : > { %1395 = vrot.lane.b32.xlu0 %v11253_v50, %s10307_s15  ;;  %v1179_v1 = vmul.f32 %v11368_v14, %v1138_v42 }
 0x18e   : > { %v1106_v10 = vpop.permute.xlu1 %1105 }
 0x18f   : > { %v1133_v41 = vsel %vm1123_vm5, %v1094_v3, %v1106_v10  ;;  %v1104_v15 = vpop.permute.xlu0 %1103  ;;  %v9221_v46 = vpack.c.bf16 %v1183_v25, %v1179_v1 }
 0x190   : > { %v1184_v54 = vmul.f32 %v11377_v51, %v1133_v41  ;;  %v1132_v45 = vsel %vm1123_vm5, %v1092_v38, %v1104_v15  ;;  %1409 = vrot.lane.b32.xlu1 %v11242_v0, %s10307_s15 }
 0x191   : > { %v1180_v34 = vmul.f32 %v11377_v51, %v1132_v45  ;;  %1407 = vrot.lane.b32.xlu0 %v11245_v2, %s10307_s15 }
 0x192   : > { %v1118_v50 = vpop.permute.xlu1 %1117 }
 0x193   : > { %v1127_v33 = vsel %vm1123_vm5, %v1106_v10, %v1118_v50  ;;  %v1145_v4 = vsel %vm1123_vm5, %v1118_v50, %v1082_v37  ;;  %v1116_v17 = vpop.permute.xlu0 %1115  ;;  %v9219_v16 = vpack.c.bf16 %v1184_v54, %v1180_v34  ;;  %v9061_v10 = vld [vmem:[%s18099_s1 + $0x7] ss:$8 sm:$0xf] }
 0x194   : > { %v1185_v5 = vmul.f32 %v11397_v6, %v1127_v33  ;;  %v1186_v31 = vmul.f32 %v11400_v18, %v1145_v4  ;;  %v1126_v0 = vsel %vm1123_vm5, %v1104_v15, %v1116_v17  ;;  %v1144_v2 = vsel %vm1123_vm5, %v1116_v17, %v1080_v12  ;;  %1750 = vperm.xlu1 %10267, %v1740_v36  }
 0x195   : > { %v1181_v19 = vmul.f32 %v11397_v6, %v1126_v0  ;;  %v1182_v20 = vmul.f32 %v11400_v18, %v1144_v2  ;;  %9220 = vmatprep.subr.bf16.mxu0 %v9219_v16  ;;  %1745 = vperm.xlu0 %10266, %v1739_v52   ;;  %v11515_v1 = vrot.slane %v9061_v10, %v10586_v39 }
 0x196   : > { %9222 = vmatpush1.bf16.msra.mxu0 %v9221_v46  ;;  %v1086_v32 = vpop.permute.xlu1 %1085  ;;  %v11522_v15 = vrot.slane %v9061_v10, %v10561_v27  ;;  %v11532_v17 = vrot.slane %v9061_v10, %v10576_v35  ;;  %v11535_v16 = vrot.slane %v9061_v10, %v10588_v40 }
 0x197   : > { %v9329_v44 = vpack.c.bf16 %v1185_v5, %v1181_v19  ;;  %v1084_v30 = vpop.permute.xlu0 %1083  ;;  %v9327_v7 = vpack.c.bf16 %v1186_v31, %v1182_v20 }
 0x198   : > { %1755 = vperm.xlu1 %10267, %v1741_v56  }
 0x199   : > { %9328 = vmatprep.subr.bf16.mxu1 %v9327_v7  ;;  %1760 = vperm.xlu0 %10266, %v1742_v62  }
 0x19a   : > { %9330 = vmatpush1.bf16.msra.mxu1 %v9329_v44  ;;  %v1098_v21 = vpop.permute.xlu1 %1097 }
 0x19b   : > { %v1096_v58 = vpop.permute.xlu0 %1095  ;;  %v1141_v22 = vsel %vm1123_vm5, %v1086_v32, %v1098_v21 }
 0x19c   : > { %v1140_v47 = vsel %vm1123_vm5, %v1084_v30, %v1096_v58  ;;  %v1191_v23 = vmul.f32 %v11368_v14, %v1141_v22 }
 0x19d   : > { %v1187_v9 = vmul.f32 %v11368_v14, %v1140_v47 }
 0x19e   : > { %v1110_v55 = vpop.permute.xlu1 %1109 }
 0x19f   : > { %v1135_v59 = vsel %vm1123_vm5, %v1098_v21, %v1110_v55  ;;  %v1108_v48 = vpop.permute.xlu0 %1107  ;;  %v9225_v11 = vpack.c.bf16 %v1191_v23, %v1187_v9 }
 0x1a0   : > { %v1192_v57 = vmul.f32 %v11377_v51, %v1135_v59  ;;  %v1134_v49 = vsel %vm1123_vm5, %v1096_v58, %v1108_v48 }
 0x1a1   : > { %v1188_v63 = vmul.f32 %v11377_v51, %v1134_v49 }
 0x1a2   : > { %v1122_v61 = vpop.permute.xlu1 %1121 }
 0x1a3   : > { %v1129_v28 = vsel %vm1123_vm5, %v1110_v55, %v1122_v61  ;;  %v1147_v14 = vsel %vm1123_vm5, %v1122_v61, %v1086_v32  ;;  %v1120_v29 = vpop.permute.xlu0 %1119  ;;  %v9223_v13 = vpack.c.bf16 %v1192_v57, %v1188_v63 }
 0x1a4   : > { %v1193_v37 = vmul.f32 %v11397_v6, %v1129_v28  ;;  %v1194_v43 = vmul.f32 %v11400_v18, %v1147_v14  ;;  %v1128_v12 = vsel %vm1123_vm5, %v1108_v48, %v1120_v29  ;;  %v1146_v51 = vsel %vm1123_vm5, %v1120_v29, %v1084_v30 }
 0x1a5   : > { %v1189_v60 = vmul.f32 %v11397_v6, %v1128_v12  ;;  %v1190_v24 = vmul.f32 %v11400_v18, %v1146_v51  ;;  %9224 = vmatprep.subr.bf16.mxu0 %v9223_v13 }
 0x1a6   : > { %9226 = vmatpush1.bf16.msra.mxu0 %v9225_v11  ;;  %v1222_v3 = vpop.permute.xlu1 %1221 }
 0x1a7   : > { %v9333_v38 = vpack.c.bf16 %v1193_v37, %v1189_v60  ;;  %v1220_v8 = vpop.permute.xlu0 %1219  ;;  %v9331_v42 = vpack.c.bf16 %v1194_v43, %v1190_v24 }
 0x1a9   : > { %9332 = vmatprep.subr.bf16.mxu1 %v9331_v42 }
 0x1aa   : > { %9334 = vmatpush1.bf16.msra.mxu1 %v9333_v38  ;;  %v1234_v25 = vpop.permute.xlu1 %1233 }
 0x1ab   : > { %v1232_v6 = vpop.permute.xlu0 %1231  ;;  %v1281_v18 = vsel %vm1267_vm7, %v1222_v3, %v1234_v25 }
 0x1ac   : > { %v1280_v41 = vsel %vm1267_vm7, %v1220_v8, %v1232_v6  ;;  %v1319_v45 = vmul.f32 %v11515_v1, %v1281_v18 }
 0x1ad   : > { %v1315_v34 = vmul.f32 %v11515_v1, %v1280_v41 }
 0x1ae   : > { %v1246_v54 = vpop.permute.xlu1 %1245 }
 0x1af   : > { %v1275_v50 = vsel %vm1267_vm7, %v1234_v25, %v1246_v54  ;;  %v1244_v46 = vpop.permute.xlu0 %1243  ;;  %v9229_v0 = vpack.c.bf16 %v1319_v45, %v1315_v34 }
 0x1b0   : > { %v1320_v33 = vmul.f32 %v11522_v15, %v1275_v50  ;;  %v1274_v4 = vsel %vm1267_vm7, %v1232_v6, %v1244_v46 }
 0x1b1   : > { %v1316_v5 = vmul.f32 %v11522_v15, %v1274_v4 }
 0x1b2   : > { %v1258_v31 = vpop.permute.xlu1 %1257 }
 0x1b3   : > { %v1269_v2 = vsel %vm1267_vm7, %v1246_v54, %v1258_v31  ;;  %v1287_v19 = vsel %vm1267_vm7, %v1258_v31, %v1222_v3  ;;  %v1256_v20 = vpop.permute.xlu0 %1255  ;;  %v9227_v32 = vpack.c.bf16 %v1320_v33, %v1316_v5 }
 0x1b4   : > { %v1321_v44 = vmul.f32 %v11532_v17, %v1269_v2  ;;  %v1322_v30 = vmul.f32 %v11535_v16, %v1287_v19  ;;  %v1268_v7 = vsel %vm1267_vm7, %v1244_v46, %v1256_v20  ;;  %v1286_v36 = vsel %vm1267_vm7, %v1256_v20, %v1220_v8 }
 0x1b5   : > { %v1317_v52 = vmul.f32 %v11532_v17, %v1268_v7  ;;  %v1318_v21 = vmul.f32 %v11535_v16, %v1286_v36  ;;  %9228 = vmatprep.subr.bf16.mxu0 %v9227_v32 }
 0x1b6   : > { %9230 = vmatpush1.bf16.msra.mxu0 %v9229_v0  ;;  %v1226_v53 = vpop.permute.xlu1 %1225 }
 0x1b7   : > { %v9337_v58 = vpack.c.bf16 %v1321_v44, %v1317_v52  ;;  %v1224_v22 = vpop.permute.xlu0 %1223  ;;  %v9335_v47 = vpack.c.bf16 %v1322_v30, %v1318_v21 }
 0x1b9   : > { %9336 = vmatprep.subr.bf16.mxu1 %v9335_v47  ;;  %v9062_v47 = vld [vmem:[%s18099_s1 + $0x20] ss:$8 sm:$0xf] }
 0x1ba   : > { %9338 = vmatpush1.bf16.msra.mxu1 %v9337_v58  ;;  %v1238_v56 = vpop.permute.xlu1 %1237 }
 0x1bb   : > { %v1236_v62 = vpop.permute.xlu0 %1235  ;;  %v1283_v55 = vsel %vm1267_vm7, %v1226_v53, %v1238_v56 }
 0x1bc   : > { %v1282_v23 = vsel %vm1267_vm7, %v1224_v22, %v1236_v62  ;;  %v1327_v59 = vmul.f32 %v11515_v1, %v1283_v55 }
 0x1bd   : > { %v1323_v48 = vmul.f32 %v11515_v1, %v1282_v23  ;;  %v11610_v23 = vrot.slane %v9062_v47, %v10561_v27 }
 0x1be   : > { %v1250_v9 = vpop.permute.xlu1 %1249 }
 0x1bf   : > { %v1277_v57 = vsel %vm1267_vm7, %v1238_v56, %v1250_v9  ;;  %v1248_v49 = vpop.permute.xlu0 %1247  ;;  %v9233_v14 = vpack.c.bf16 %v1327_v59, %v1323_v48 }
 0x1c0   : > { %v1328_v63 = vmul.f32 %v11522_v15, %v1277_v57  ;;  %v1276_v61 = vsel %vm1267_vm7, %v1236_v62, %v1248_v49  ;;  %v11603_v62 = vrot.slane %v9062_v47, %v10586_v39 }
 0x1c1   : > { %v1324_v11 = vmul.f32 %v11522_v15, %v1276_v61 }
 0x1c2   : > { %v1262_v28 = vpop.permute.xlu1 %1261 }
 0x1c3   : > { %v1271_v29 = vsel %vm1267_vm7, %v1250_v9, %v1262_v28  ;;  %v1289_v13 = vsel %vm1267_vm7, %v1262_v28, %v1226_v53  ;;  %v1260_v37 = vpop.permute.xlu0 %1259  ;;  %v9231_v43 = vpack.c.bf16 %v1328_v63, %v1324_v11  ;;  %v11620_v11 = vrot.slane %v9062_v47, %v10576_v35 }
 0x1c4   : > { %v1329_v12 = vmul.f32 %v11532_v17, %v1271_v29  ;;  %v1330_v51 = vmul.f32 %v11535_v16, %v1289_v13  ;;  %v1270_v60 = vsel %vm1267_vm7, %v1248_v49, %v1260_v37  ;;  %v1288_v24 = vsel %vm1267_vm7, %v1260_v37, %v1224_v22 }
 0x1c5   : > { %v1325_v3 = vmul.f32 %v11532_v17, %v1270_v60  ;;  %v1326_v38 = vmul.f32 %v11535_v16, %v1288_v24  ;;  %9232 = vmatprep.subr.bf16.mxu0 %v9231_v43  ;;  %v11623_v28 = vrot.slane %v9062_v47, %v10588_v40 }
 0x1c6   : > { %9234 = vmatpush1.bf16.msra.mxu0 %v9233_v14  ;;  %v1230_v8 = vpop.permute.xlu1 %1229 }
 0x1c7   : > { %v9341_v42 = vpack.c.bf16 %v1329_v12, %v1325_v3  ;;  %v1228_v10 = vpop.permute.xlu0 %1227  ;;  %v9339_v25 = vpack.c.bf16 %v1330_v51, %v1326_v38 }
 0x1c9   : > { %9340 = vmatprep.subr.bf16.mxu1 %v9339_v25 }
 0x1ca   : > { %9342 = vmatpush1.bf16.msra.mxu1 %v9341_v42  ;;  %v1242_v6 = vpop.permute.xlu1 %1241 }
 0x1cb   : > { %v1240_v18 = vpop.permute.xlu0 %1239  ;;  %v1285_v41 = vsel %vm1267_vm7, %v1230_v8, %v1242_v6 }
 0x1cc   : > { %v1284_v54 = vsel %vm1267_vm7, %v1228_v10, %v1240_v18  ;;  %v1335_v34 = vmul.f32 %v11515_v1, %v1285_v41 }
 0x1cd   : > { %v1331_v50 = vmul.f32 %v11515_v1, %v1284_v54 }
 0x1ce   : > { %v1254_v45 = vpop.permute.xlu1 %1253 }
 0x1cf   : > { %v1279_v46 = vsel %vm1267_vm7, %v1242_v6, %v1254_v45  ;;  %v1252_v33 = vpop.permute.xlu0 %1251  ;;  %v9237_v2 = vpack.c.bf16 %v1335_v34, %v1331_v50 }
 0x1d0   : > { %v1336_v4 = vmul.f32 %v11522_v15, %v1279_v46  ;;  %v1278_v5 = vsel %vm1267_vm7, %v1240_v18, %v1252_v33 }
 0x1d1   : > { %v1332_v31 = vmul.f32 %v11522_v15, %v1278_v5 }
 0x1d2   : > { %v1266_v0 = vpop.permute.xlu1 %1265 }
 0x1d3   : > { %v1273_v19 = vsel %vm1267_vm7, %v1254_v45, %v1266_v0  ;;  %v1291_v20 = vsel %vm1267_vm7, %v1266_v0, %v1230_v8  ;;  %v1264_v1 = vpop.permute.xlu0 %1263  ;;  %v9235_v32 = vpack.c.bf16 %v1336_v4, %v1332_v31 }
 0x1d4   : > { %v1337_v44 = vmul.f32 %v11532_v17, %v1273_v19  ;;  %v1338_v30 = vmul.f32 %v11535_v16, %v1291_v20  ;;  %v1272_v7 = vsel %vm1267_vm7, %v1252_v33, %v1264_v1  ;;  %v1290_v15 = vsel %vm1267_vm7, %v1264_v1, %v1228_v10 }
 0x1d5   : > { %v1333_v36 = vmul.f32 %v11532_v17, %v1272_v7  ;;  %v1334_v52 = vmul.f32 %v11535_v16, %v1290_v15  ;;  %9236 = vmatprep.subr.bf16.mxu0 %v9235_v32 }
 0x1d6   : > { %9238 = vmatpush1.bf16.msra.mxu0 %v9237_v2  ;;  %v1366_v21 = vpop.permute.xlu1 %1365 }
 0x1d7   : > { %v9345_v53 = vpack.c.bf16 %v1337_v44, %v1333_v36  ;;  %v1364_v58 = vpop.permute.xlu0 %1363  ;;  %v9343_v22 = vpack.c.bf16 %v1338_v30, %v1334_v52 }
 0x1d9   : > { %9344 = vmatprep.subr.bf16.mxu1 %v9343_v22 }
 0x1da   : > { %9346 = vmatpush1.bf16.msra.mxu1 %v9345_v53  ;;  %v1378_v56 = vpop.permute.xlu1 %1377 }
 0x1db   : > { %v1376_v17 = vpop.permute.xlu0 %1375  ;;  %v1425_v16 = vsel %vm1411_vm8, %v1366_v21, %v1378_v56 }
 0x1dc   : > { %v1424_v55 = vsel %vm1411_vm8, %v1364_v58, %v1376_v17  ;;  %v1463_v59 = vmul.f32 %v11603_v62, %v1425_v16 }
 0x1dd   : > { %v1459_v48 = vmul.f32 %v11603_v62, %v1424_v55 }
 0x1de   : > { %v1390_v9 = vpop.permute.xlu1 %1389 }
 0x1df   : > { %v1419_v57 = vsel %vm1411_vm8, %v1378_v56, %v1390_v9  ;;  %v1388_v49 = vpop.permute.xlu0 %1387  ;;  %v9241_v13 = vpack.c.bf16 %v1463_v59, %v1459_v48 }
 0x1e0   : > { %v1464_v63 = vmul.f32 %v11610_v23, %v1419_v57  ;;  %v1418_v61 = vsel %vm1411_vm8, %v1376_v17, %v1388_v49 }
 0x1e1   : > { %v1460_v14 = vmul.f32 %v11610_v23, %v1418_v61 }
 0x1e2   : > { %v1402_v29 = vpop.permute.xlu1 %1401 }
 0x1e3   : > { %v1413_v37 = vsel %vm1411_vm8, %v1390_v9, %v1402_v29  ;;  %v1431_v43 = vsel %vm1411_vm8, %v1402_v29, %v1366_v21  ;;  %v1400_v12 = vpop.permute.xlu0 %1399  ;;  %v9239_v51 = vpack.c.bf16 %v1464_v63, %v1460_v14 }
 0x1e4   : > { %v1465_v60 = vmul.f32 %v11620_v11, %v1413_v37  ;;  %v1466_v24 = vmul.f32 %v11623_v28, %v1431_v43  ;;  %v1412_v3 = vsel %vm1411_vm8, %v1388_v49, %v1400_v12  ;;  %v1430_v38 = vsel %vm1411_vm8, %v1400_v12, %v1364_v58 }
 0x1e5   : > { %v1461_v8 = vmul.f32 %v11620_v11, %v1412_v3  ;;  %v1462_v42 = vmul.f32 %v11623_v28, %v1430_v38  ;;  %9240 = vmatprep.subr.bf16.mxu0 %v9239_v51 }
 0x1e6   : > { %9242 = vmatpush1.bf16.msra.mxu0 %v9241_v13  ;;  %v1370_v10 = vpop.permute.xlu1 %1369 }
 0x1e7   : > { %v9349_v25 = vpack.c.bf16 %v1465_v60, %v1461_v8  ;;  %v1368_v6 = vpop.permute.xlu0 %1367  ;;  %v9347_v18 = vpack.c.bf16 %v1466_v24, %v1462_v42  ;;  %v1725_v42 = vld [vmem:[%s18100_s2 + $0x10] sm:$0xff] }
 0x1e9   : > { %9348 = vmatprep.subr.bf16.mxu1 %v9347_v18  ;;  %v1733_v18 = vld [vmem:[%s18100_s2 + $0x50] sm:$0xff] }
 0x1ea   : > { %9350 = vmatpush1.bf16.msra.mxu1 %v9349_v25  ;;  %v1382_v41 = vpop.permute.xlu1 %1381 }
 0x1eb   : > { %v1380_v54 = vpop.permute.xlu0 %1379  ;;  %v1427_v45 = vsel %vm1411_vm8, %v1370_v10, %v1382_v41 }
 0x1ec   : > { %v1426_v34 = vsel %vm1411_vm8, %v1368_v6, %v1380_v54  ;;  %v1471_v46 = vmul.f32 %v11603_v62, %v1427_v45 }
 0x1ed   : > { %v1467_v33 = vmul.f32 %v11603_v62, %v1426_v34 }
 0x1ee   : > { %v1394_v50 = vpop.permute.xlu1 %1393 }
 0x1ef   : > { %v1421_v4 = vsel %vm1411_vm8, %v1382_v41, %v1394_v50  ;;  %v1392_v5 = vpop.permute.xlu0 %1391  ;;  %v9245_v20 = vpack.c.bf16 %v1471_v46, %v1467_v33  ;;  %v1738_v41 = vld [vmem:[%s18100_s2 + $0x78] sm:$0xff] }
 0x1f0   : > { %v1472_v31 = vmul.f32 %v11610_v23, %v1421_v4  ;;  %v1420_v0 = vsel %vm1411_vm8, %v1380_v54, %v1392_v5  ;;  %v1737_v54 = vld [vmem:[%s18100_s2 + $0x70] sm:$0xff] }
 0x1f1   : > { %v1468_v2 = vmul.f32 %v11610_v23, %v1420_v0 }
 0x1f2   : > { %v1406_v19 = vpop.permute.xlu1 %1405 }
 0x1f3   : > { %v1415_v1 = vsel %vm1411_vm8, %v1394_v50, %v1406_v19  ;;  %v1433_v32 = vsel %vm1411_vm8, %v1406_v19, %v1370_v10  ;;  %v1404_v44 = vpop.permute.xlu0 %1403  ;;  %v9243_v30 = vpack.c.bf16 %v1472_v31, %v1468_v2 }
 0x1f4   : > { %v1473_v7 = vmul.f32 %v11620_v11, %v1415_v1  ;;  %v1474_v15 = vmul.f32 %v11623_v28, %v1433_v32  ;;  %v1414_v36 = vsel %vm1411_vm8, %v1392_v5, %v1404_v44  ;;  %v1432_v52 = vsel %vm1411_vm8, %v1404_v44, %v1368_v6  ;;  %v1730_v6 = vld [vmem:[%s18100_s2 + $0x38] sm:$0xff] }
 0x1f5   : > { %v1469_v21 = vmul.f32 %v11620_v11, %v1414_v36  ;;  %v1470_v53 = vmul.f32 %v11623_v28, %v1432_v52  ;;  %9244 = vmatprep.subr.bf16.mxu0 %v9243_v30 }
 0x1f6   : > { %9246 = vmatpush1.bf16.msra.mxu0 %v9245_v20  ;;  %v1374_v58 = vpop.permute.xlu1 %1373 }
 0x1f7   : > { %v9353_v22 = vpack.c.bf16 %v1473_v7, %v1469_v21  ;;  %v1372_v47 = vpop.permute.xlu0 %1371  ;;  %v9351_v56 = vpack.c.bf16 %v1474_v15, %v1470_v53 }
 0x1f9   : > { %9352 = vmatprep.subr.bf16.mxu1 %v9351_v56 }
 0x1fa   : > { %9354 = vmatpush1.bf16.msra.mxu1 %v9353_v22  ;;  %v1386_v17 = vpop.permute.xlu1 %1385 }
 0x1fb   : > { %v1384_v16 = vpop.permute.xlu0 %1383  ;;  %v1429_v55 = vsel %vm1411_vm8, %v1374_v58, %v1386_v17 }
 0x1fc   : > { %v1428_v9 = vsel %vm1411_vm8, %v1372_v47, %v1384_v16  ;;  %v1479_v48 = vmul.f32 %v11603_v62, %v1429_v55 }
 0x1fd   : > { %v1475_v57 = vmul.f32 %v11603_v62, %v1428_v9 }
 0x1fe   : > { %v1398_v59 = vpop.permute.xlu1 %1397 }
 0x1ff   : > { %v1423_v49 = vsel %vm1411_vm8, %v1386_v17, %v1398_v59  ;;  %v1396_v63 = vpop.permute.xlu0 %1395  ;;  %v9249_v37 = vpack.c.bf16 %v1479_v48, %v1475_v57 }
 0x200   : > { %v1480_v61 = vmul.f32 %v11610_v23, %v1423_v49  ;;  %v1422_v14 = vsel %vm1411_vm8, %v1384_v16, %v1396_v63 }
 0x201   : > { %v1476_v29 = vmul.f32 %v11610_v23, %v1422_v14 }
 0x202   : > { %v1410_v13 = vpop.permute.xlu1 %1409 }
 0x203   : > { %v1417_v43 = vsel %vm1411_vm8, %v1398_v59, %v1410_v13  ;;  %v1435_v12 = vsel %vm1411_vm8, %v1410_v13, %v1374_v58  ;;  %v1408_v62 = vpop.permute.xlu0 %1407  ;;  %v9247_v51 = vpack.c.bf16 %v1480_v61, %v1476_v29 }
 0x204   : > { %v1481_v60 = vmul.f32 %v11620_v11, %v1417_v43  ;;  %v1482_v24 = vmul.f32 %v11623_v28, %v1435_v12  ;;  %v1416_v3 = vsel %vm1411_vm8, %v1396_v63, %v1408_v62  ;;  %v1434_v23 = vsel %vm1411_vm8, %v1408_v62, %v1372_v47 }
 0x205   : > { %v1477_v38 = vmul.f32 %v11620_v11, %v1416_v3  ;;  %v1478_v8 = vmul.f32 %v11623_v28, %v1434_v23  ;;  %9248 = vmatprep.subr.bf16.mxu0 %v9247_v51  ;;  %v1729_v11 = vld [vmem:[%s18100_s2 + $0x30] sm:$0xff]  ;;  %v1734_v28 = vld [vmem:[%s18100_s2 + $0x58] sm:$0xff] }
 0x206   : > { %9250 = vmatpush1.bf16.msra.mxu0 %v9249_v37 }
 0x207   : > { %v9357_v10 = vpack.c.bf16 %v1481_v60, %v1477_v38  ;;  %v9355_v25 = vpack.c.bf16 %v1482_v24, %v1478_v8  ;;  %v2180_v24 = vld [vmem:[%s18099_s1] ss:$8 sm:$0xf] }
 0x208   : > { %v11895_v38 = vrot.slane %v2180_v24, %v10561_v27 }
 0x209   : > { %1930 = vmatmul.mubr.f32.vlgmr.msra.gmra.mrb[0].mxu0 %v1725_v42  ;;  %9356 = vmatprep.subr.bf16.mxu1 %v9355_v25 }
 0x20a   : > { %9358 = vmatpush1.bf16.msra.mxu1 %v9357_v10  ;;  %9064 = vmatprep.mubr.msk.f32.mxu0 %vm1763_vm6, %v1730_v6 }
 0x20d   : > { %1936 = vmatmul.mubr.f32.gmra.mrb[2].mxu0 %v1729_v11  ;;  %2108 = vmatmul.mubr.f32.vlgmr.msra.gmra.mrb[0].mxu1 %v1725_v42 }
 0x20e   : > { %9065 = vmatprep.mubr.msk.f32.mxu0 %vm1763_vm6, %v1734_v28  ;;  %9068 = vmatprep.mubr.msk.f32.mxu1 %vm1763_vm6, %v1730_v6 }
 0x211   : > { %1942 = vmatmul.mubr.f32.gmra.mrb[4].mxu0 %v1733_v18  ;;  %2114 = vmatmul.mubr.f32.gmra.mrb[2].mxu1 %v1729_v11 }
 0x212   : > { %9066 = vmatprep.mubr.msk.f32.mxu0 %vm1763_vm6, %v1738_v41  ;;  %9069 = vmatprep.mubr.msk.f32.mxu1 %vm1763_vm6, %v1734_v28  ;;  %v11908_v28 = vrot.slane %v2180_v24, %v10586_v39 }
 0x213   : > { %v1751_v33 = vpop.permute.xlu1 %1750 }
 0x214   : > { %v1746_v45 = vpop.permute.xlu0 %1745 }
 0x215   : > { %1948 = vmatmul.mubr.f32.gmra.mrb[6].mxu0 %v1737_v54  ;;  %2120 = vmatmul.mubr.f32.gmra.mrb[4].mxu1 %v1733_v18  ;;  %v11911_v18 = vrot.slane %v2180_v24, %v10588_v40 }
 0x216   : > { %9070 = vmatprep.mubr.msk.f32.mxu1 %vm1763_vm6, %v1738_v41 }
 0x217   : > { %v1756_v17 = vpop.permute.xlu1 %1755 }
 0x218   : > { %v1761_v55 = vpop.permute.xlu0 %1760 }
 0x219   : > { %2126 = vmatmul.mubr.f32.gmra.mrb[6].mxu1 %v1737_v54 }
 0x2dc   : > { %v1931_v34 = vpop.f32.mrb[0].mxu0 }
 0x2dd   : > { %v11713_v50 = vadd.f32 %v1931_v34, %v1746_v45  ;;  %v1933_v46 = vpop.f32.mrb[1].mxu0 }
 0x2de   : > { %v11739_v58 = vadd.f32 %v1933_v46, %v1746_v45 }
 0x2df   : > { %18497 = vst [vmem:[#allocation6_spill] sm:$0xff] %v11713_v50  ;;  %2132 = vrot.lane.b32.xlu1 %v11713_v50, %s10300_s11 }
 0x2e0   : > { %v2109_v4 = vpop.f32.mrb[0].mxu1  ;;  %v1937_v5 = vpop.f32.mrb[2].mxu0  ;;  %18501 = vst [vmem:[#allocation10_spill] sm:$0xff] %v11739_v58 }
 0x2e1   : > { %v11717_v31 = vadd.f32 %v2109_v4, %v1746_v45  ;;  %v11719_v0 = vadd.f32 %v1937_v5, %v1751_v33  ;;  %v1939_v2 = vpop.f32.mrb[3].mxu0  ;;  %v2111_v19 = vpop.f32.mrb[1].mxu1  ;;  %v11924_v4 = vrot.slane %v2180_v24, %v10576_v35 }
 0x2e2   : > { %v11745_v22 = vadd.f32 %v1939_v2, %v1751_v33  ;;  %v11747_v47 = vadd.f32 %v2111_v19, %v1746_v45 }
 0x2e3   : > { %18498 = vst [vmem:[#allocation7_spill] sm:$0xff] %v11717_v31  ;;  %18499 = vst [vmem:[#allocation8_spill] sm:$0xff] %v11719_v0  ;;  %2134 = vrot.lane.b32.xlu0 %v11719_v0, %s10300_s11  ;;  %2148 = vrot.lane.b32.xlu1 %v11717_v31, %s10300_s11 }
 0x2e4   : > { %v1943_v20 = vpop.f32.mrb[4].mxu0  ;;  %v2115_v1 = vpop.f32.mrb[2].mxu1  ;;  %18502 = vst [vmem:[#allocation11_spill] sm:$0xff] %v11745_v22  ;;  %18503 = vst [vmem:[#allocation12_spill] sm:$0xff] %v11747_v47 }
 0x2e5   : > { %v11725_v32 = vadd.f32 %v2115_v1, %v1751_v33  ;;  %v1945_v44 = vpop.f32.mrb[5].mxu0  ;;  %v2117_v30 = vpop.f32.mrb[3].mxu1  ;;  %v11763_v16 = vadd.f32 %v1943_v20, %v1756_v17 }
 0x2e6   : > { %v11753_v56 = vadd.f32 %v2117_v30, %v1751_v33  ;;  %v11787_v57 = vadd.f32 %v1945_v44, %v1756_v17 }
 0x2e7   : > { %18500 = vst [vmem:[#allocation9_spill] sm:$0xff] %v11725_v32  ;;  %2150 = vrot.lane.b32.xlu0 %v11725_v32, %s10300_s11  ;;  %2234 = vrot.lane.b32.xlu1 %v11713_v50, %s10301_s12  ;;  %18505 = vst [vmem:[#allocation14_spill] sm:$0xff] %v11763_v16 }
 0x2e8   : > { %v1949_v7 = vpop.f32.mrb[6].mxu0  ;;  %v2121_v15 = vpop.f32.mrb[4].mxu1  ;;  %18504 = vst [vmem:[#allocation13_spill] sm:$0xff] %v11753_v56  ;;  %18509 = vst [vmem:[#allocation18_spill] sm:$0xff] %v11787_v57 }
 0x2e9   : > { %v1951_v36 = vpop.f32.mrb[7].mxu0  ;;  %v2123_v52 = vpop.f32.mrb[5].mxu1  ;;  %v11769_v9 = vadd.f32 %v1949_v7, %v1761_v55  ;;  %v11771_v59 = vadd.f32 %v2121_v15, %v1756_v17 }
 0x2ea   : > { %v11793_v49 = vadd.f32 %v1951_v36, %v1761_v55  ;;  %v11795_v63 = vadd.f32 %v2123_v52, %v1756_v17 }
 0x2eb   : > { %2236 = vrot.lane.b32.xlu0 %v11719_v0, %s10301_s12  ;;  %2250 = vrot.lane.b32.xlu1 %v11717_v31, %s10301_s12  ;;  %18506 = vst [vmem:[#allocation15_spill] sm:$0xff] %v11769_v9  ;;  %18507 = vst [vmem:[#allocation16_spill] sm:$0xff] %v11771_v59 }
 0x2ec   : > { %v2127_v21 = vpop.f32.mrb[6].mxu1  ;;  %18510 = vst [vmem:[#allocation19_spill] sm:$0xff] %v11793_v49  ;;  %18511 = vst [vmem:[#allocation20_spill] sm:$0xff] %v11795_v63 }
 0x2ed   : > { %v2129_v53 = vpop.f32.mrb[7].mxu1  ;;  %v11777_v48 = vadd.f32 %v2127_v21, %v1761_v55 }
 0x2ee   : > { %v11801_v61 = vadd.f32 %v2129_v53, %v1761_v55 }
 0x2ef   : > { %2252 = vrot.lane.b32.xlu0 %v11725_v32, %s10301_s12  ;;  %2336 = vrot.lane.b32.xlu1 %v11713_v50, %s10302_s13  ;;  %18508 = vst [vmem:[#allocation17_spill] sm:$0xff] %v11777_v48 }
 0x2f0   : > { %18512 = vst [vmem:[#allocation21_spill] sm:$0xff] %v11801_v61 }
 0x2f3   : > { %2338 = vrot.lane.b32.xlu0 %v11719_v0, %s10302_s13  ;;  %2140 = vrot.lane.b32.xlu1 %v11739_v58, %s10300_s11 }
 0x2f7   : > { %2142 = vrot.lane.b32.xlu0 %v11745_v22, %s10300_s11  ;;  %2156 = vrot.lane.b32.xlu1 %v11747_v47, %s10300_s11 }
 0x2fb   : > { %2158 = vrot.lane.b32.xlu0 %v11753_v56, %s10300_s11  ;;  %2242 = vrot.lane.b32.xlu1 %v11739_v58, %s10301_s12 }
 0x2ff   : > { %2244 = vrot.lane.b32.xlu0 %v11745_v22, %s10301_s12  ;;  %2258 = vrot.lane.b32.xlu1 %v11747_v47, %s10301_s12 }
 0x303   : > { %2260 = vrot.lane.b32.xlu0 %v11753_v56, %s10301_s12  ;;  %2136 = vrot.lane.b32.xlu1 %v11763_v16, %s10300_s11 }
 0x307   : > { %2138 = vrot.lane.b32.xlu0 %v11769_v9, %s10300_s11  ;;  %2152 = vrot.lane.b32.xlu1 %v11771_v59, %s10300_s11 }
 0x30b   : > { %2154 = vrot.lane.b32.xlu0 %v11777_v48, %s10300_s11  ;;  %2238 = vrot.lane.b32.xlu1 %v11763_v16, %s10301_s12 }
 0x30f   : > { %2240 = vrot.lane.b32.xlu0 %v11769_v9, %s10301_s12  ;;  %2254 = vrot.lane.b32.xlu1 %v11771_v59, %s10301_s12 }
 0x313   : > { %2256 = vrot.lane.b32.xlu0 %v11777_v48, %s10301_s12  ;;  %2144 = vrot.lane.b32.xlu1 %v11787_v57, %s10300_s11 }
 0x317   : > { %2146 = vrot.lane.b32.xlu0 %v11793_v49, %s10300_s11  ;;  %2160 = vrot.lane.b32.xlu1 %v11795_v63, %s10300_s11 }
 0x31b   : > { %2162 = vrot.lane.b32.xlu0 %v11801_v61, %s10300_s11  ;;  %2246 = vrot.lane.b32.xlu1 %v11787_v57, %s10301_s12 }
 0x31f   : > { %2248 = vrot.lane.b32.xlu0 %v11793_v49, %s10301_s12  ;;  %2262 = vrot.lane.b32.xlu1 %v11795_v63, %s10301_s12 }
 0x323   : > { %2264 = vrot.lane.b32.xlu0 %v11801_v61, %s10301_s12  ;;  %2344 = vrot.lane.b32.xlu1 %v11739_v58, %s10302_s13 }
 0x327   : > { %2346 = vrot.lane.b32.xlu0 %v11745_v22, %s10302_s13  ;;  %2352 = vrot.lane.b32.xlu1 %v11717_v31, %s10302_s13 }
 0x32b   : > { %2354 = vrot.lane.b32.xlu0 %v11725_v32, %s10302_s13  ;;  %2360 = vrot.lane.b32.xlu1 %v11747_v47, %s10302_s13 }
 0x32f   : > { %2362 = vrot.lane.b32.xlu0 %v11753_v56, %s10302_s13  ;;  %2340 = vrot.lane.b32.xlu1 %v11763_v16, %s10302_s13 }
 0x333   : > { %2342 = vrot.lane.b32.xlu0 %v11769_v9, %s10302_s13  ;;  %2348 = vrot.lane.b32.xlu1 %v11787_v57, %s10302_s13 }
 0x337   : > { %2350 = vrot.lane.b32.xlu0 %v11793_v49, %s10302_s13  ;;  %2356 = vrot.lane.b32.xlu1 %v11771_v59, %s10302_s13 }
 0x33b   : > { %2358 = vrot.lane.b32.xlu0 %v11777_v48, %s10302_s13  ;;  %2364 = vrot.lane.b32.xlu1 %v11795_v63, %s10302_s13 }
 0x33f   : > { %2366 = vrot.lane.b32.xlu0 %v11801_v61, %s10302_s13  ;;  %2438 = vrot.lane.b32.xlu1 %v11713_v50, %s10303_s16 }
 0x343   : > { %2440 = vrot.lane.b32.xlu0 %v11719_v0, %s10303_s16  ;;  %2446 = vrot.lane.b32.xlu1 %v11739_v58, %s10303_s16 }
 0x347   : > { %2448 = vrot.lane.b32.xlu0 %v11745_v22, %s10303_s16  ;;  %2454 = vrot.lane.b32.xlu1 %v11717_v31, %s10303_s16 }
 0x34b   : > { %2456 = vrot.lane.b32.xlu0 %v11725_v32, %s10303_s16  ;;  %2462 = vrot.lane.b32.xlu1 %v11747_v47, %s10303_s16 }
 0x34f   : > { %2464 = vrot.lane.b32.xlu0 %v11753_v56, %s10303_s16  ;;  %2442 = vrot.lane.b32.xlu1 %v11763_v16, %s10303_s16 }
 0x351   : > { %v2133_v14 = vpop.permute.xlu1 %2132 }
 0x353   : > { %2444 = vrot.lane.b32.xlu0 %v11769_v9, %s10303_s16  ;;  %2450 = vrot.lane.b32.xlu1 %v11787_v57, %s10303_s16 }
 0x355   : > { %v2135_v29 = vpop.permute.xlu0 %2134  ;;  %v2149_v13 = vpop.permute.xlu1 %2148 }
 0x357   : > { %2452 = vrot.lane.b32.xlu0 %v11793_v49, %s10303_s16  ;;  %2458 = vrot.lane.b32.xlu1 %v11771_v59, %s10303_s16 }
 0x359   : > { %v2151_v37 = vpop.permute.xlu0 %2150  ;;  %v11867_v43 = vpop.permute.xlu1 %2234 }
 0x35b   : > { %2460 = vrot.lane.b32.xlu0 %v11777_v48, %s10303_s16  ;;  %2466 = vrot.lane.b32.xlu1 %v11795_v63, %s10303_s16 }
 0x35d   : > { %v11873_v12 = vpop.permute.xlu0 %2236  ;;  %v11875_v62 = vpop.permute.xlu1 %2250 }
 0x35f   : > { %2468 = vrot.lane.b32.xlu0 %v11801_v61, %s10303_s16  ;;  %2556 = vrot.lane.b32.xlu1 %v11713_v50, %s10304_s19 }
 0x361   : > { %v11881_v51 = vpop.permute.xlu0 %2252  ;;  %v11883_v60 = vpop.permute.xlu1 %2336 }
 0x363   : > { %2558 = vrot.lane.b32.xlu0 %v11719_v0, %s10304_s19  ;;  %2564 = vrot.lane.b32.xlu1 %v11739_v58, %s10304_s19 }
 0x365   : > { %v11892_v3 = vpop.permute.xlu0 %2338  ;;  %v2141_v23 = vpop.permute.xlu1 %2140 }
 0x366   : > { %v2172_v8 = vsel %vm380_vm0, %v2133_v14, %v2141_v23  ;;  %v2168_v5 = vsel %vm380_vm0, %v2141_v23, %v2149_v13 }
 0x367   : > { %2566 = vrot.lane.b32.xlu0 %v11745_v22, %s10304_s19  ;;  %2572 = vrot.lane.b32.xlu1 %v11717_v31, %s10304_s19  ;;  %v2203_v6 = vmul.f32 %v11895_v38, %v2172_v8  ;;  %v2204_v53 = vmul.f32 %v11924_v4, %v2168_v5 }
 0x369   : > { %v2143_v42 = vpop.permute.xlu0 %2142  ;;  %v2157_v10 = vpop.permute.xlu1 %2156 }
 0x36a   : > { %v2173_v25 = vsel %vm380_vm0, %v2135_v29, %v2143_v42  ;;  %v2164_v41 = vsel %vm380_vm0, %v2149_v13, %v2157_v10  ;;  %v2176_v54 = vsel %vm380_vm0, %v2157_v10, %v2133_v14  ;;  %v2169_v45 = vsel %vm380_vm0, %v2143_v42, %v2151_v37  ;;  %v9071_v42 = vld [vmem:[%s18099_s1 + $0x1] ss:$8 sm:$0xf] }
 0x36b   : > { %v2207_v11 = vmul.f32 %v11895_v38, %v2173_v25  ;;  %2574 = vrot.lane.b32.xlu0 %v11725_v32, %s10304_s19  ;;  %2580 = vrot.lane.b32.xlu1 %v11747_v47, %s10304_s19  ;;  %v2202_v20 = vmul.f32 %v11908_v28, %v2176_v54  ;;  %v2205_v1 = vmul.f32 %v11911_v18, %v2164_v41  ;;  %v11985_v54 = vld [vmem:[%s18099_s1 + $0x2] ss:$8 sm:$0xf] }
 0x36c   : > { %v2208_v7 = vmul.f32 %v11924_v4, %v2169_v45  ;;  %v11998_v5 = vrot.slane %v9071_v42, %v10588_v40 }
 0x36d   : > { %v2159_v34 = vpop.permute.xlu0 %2158  ;;  %v2243_v46 = vpop.permute.xlu1 %2242  ;;  %v9359_v33 = vpack.c.bf16 %v2207_v11, %v2203_v6  ;;  %v2291_v6 = vrot.slane %v9071_v42, %v10561_v27  ;;  %v11975_v11 = vrot.slane %v9071_v42, %v10576_v35 }
 0x36e   : > { %v2165_v2 = vsel %vm380_vm0, %v2151_v37, %v2159_v34  ;;  %v2177_v19 = vsel %vm380_vm0, %v2159_v34, %v2135_v29  ;;  %v9433_v17 = vpack.c.bf16 %v2208_v7, %v2204_v53  ;;  %v2274_v41 = vsel %vm523_vm1, %v11867_v43, %v2243_v46 }
 0x36f   : > { %v2206_v44 = vmul.f32 %v11908_v28, %v2177_v19  ;;  %v2209_v30 = vmul.f32 %v11911_v18, %v2165_v2  ;;  %2582 = vrot.lane.b32.xlu0 %v11753_v56, %s10304_s19  ;;  %2560 = vrot.lane.b32.xlu1 %v11763_v16, %s10304_s19  ;;  %v2270_v45 = vsel %vm523_vm1, %v2243_v46, %v11875_v62 }
 0x370   : > { %9360 = vmatprep.subr.bf16.mxu0 %v9359_v33  ;;  %v11995_v33 = vrot.slane %v9071_v42, %v10586_v39 }
 0x371   : > { %v9361_v15 = vpack.c.bf16 %v2206_v44, %v2202_v20  ;;  %v2245_v36 = vpop.permute.xlu0 %2244  ;;  %v2259_v52 = vpop.permute.xlu1 %2258  ;;  %v9431_v21 = vpack.c.bf16 %v2209_v30, %v2205_v1  ;;  %v2305_v20 = vmul.f32 %v2291_v6, %v2274_v41  ;;  %v12007_v44 = vrot.slane %v11985_v54, %v10561_v27 }
 0x372   : > { %v2275_v1 = vsel %vm523_vm1, %v11873_v12, %v2245_v36  ;;  %v12010_v30 = vmul.f32 %v11975_v11, %v2270_v45  ;;  %v2271_v7 = vsel %vm523_vm1, %v2245_v36, %v11881_v51  ;;  %v2266_v53 = vsel %vm523_vm1, %v11875_v62, %v2259_v52 }
 0x373   : > { %2562 = vrot.lane.b32.xlu0 %v11769_v9, %s10304_s19  ;;  %2568 = vrot.lane.b32.xlu1 %v11787_v57, %s10304_s19 }
 0x374   : > { %9362 = vmatpush1.bf16.msra.mxu0 %v9361_v15  ;;  %9432 = vmatprep.subr.bf16.mxu1 %v9431_v21 }
 0x375   : > { %v2261_v55 = vpop.permute.xlu0 %2260  ;;  %v2137_v14 = vpop.permute.xlu1 %2136  ;;  %9434 = vmatpush1.bf16.msra.mxu1 %v9433_v17  ;;  %v2278_v17 = vsel %vm523_vm1, %v2259_v52, %v11867_v43 }
 0x376   : > { %v2279_v41 = vsel %vm523_vm1, %v2261_v55, %v11873_v12  ;;  %v2267_v52 = vsel %vm523_vm1, %v11881_v51, %v2261_v55 }
 0x377   : > { %2570 = vrot.lane.b32.xlu0 %v11793_v49, %s10304_s19  ;;  %2576 = vrot.lane.b32.xlu1 %v11771_v59, %s10304_s19  ;;  %v2308_v51 = vmul.f32 %v11995_v33, %v2279_v41 }
 0x379   : > { %v2139_v29 = vpop.permute.xlu0 %2138  ;;  %v2153_v13 = vpop.permute.xlu1 %2152 }
 0x37b   : > { %2578 = vrot.lane.b32.xlu0 %v11777_v48, %s10304_s19  ;;  %2584 = vrot.lane.b32.xlu1 %v11795_v63, %s10304_s19 }
 0x37d   : > { %v2155_v37 = vpop.permute.xlu0 %2154  ;;  %v11954_v24 = vpop.permute.xlu1 %2238 }
 0x37f   : > { %2586 = vrot.lane.b32.xlu0 %v11801_v61, %s10304_s19  ;;  %2658 = vrot.lane.b32.xlu1 %v11713_v50, %s10305_s24 }
 0x381   : > { %v11960_v23 = vpop.permute.xlu0 %2240  ;;  %v11962_v8 = vpop.permute.xlu1 %2254 }
 0x383   : > { %2660 = vrot.lane.b32.xlu0 %v11719_v0, %s10305_s24  ;;  %2666 = vrot.lane.b32.xlu1 %v11739_v58, %s10305_s24 }
 0x385   : > { %v11971_v10 = vpop.permute.xlu0 %2256  ;;  %v2145_v25 = vpop.permute.xlu1 %2144 }
 0x386   : > { %v2174_v34 = vsel %vm380_vm0, %v2137_v14, %v2145_v25 }
 0x387   : > { %2668 = vrot.lane.b32.xlu0 %v11745_v22, %s10305_s24  ;;  %2674 = vrot.lane.b32.xlu1 %v11717_v31, %s10305_s24  ;;  %v2211_v15 = vmul.f32 %v11895_v38, %v2174_v34 }
 0x389   : > { %v2147_v2 = vpop.permute.xlu0 %2146  ;;  %v2161_v19 = vpop.permute.xlu1 %2160 }
 0x38a   : > { %v2175_v46 = vsel %vm380_vm0, %v2139_v29, %v2147_v2  ;;  %v2166_v42 = vsel %vm380_vm0, %v2153_v13, %v2161_v19  ;;  %v2178_v36 = vsel %vm380_vm0, %v2161_v19, %v2137_v14  ;;  %v2171_v62 = vsel %vm380_vm0, %v2147_v2, %v2155_v37 }
 0x38b   : > { %v2215_v21 = vmul.f32 %v11895_v38, %v2175_v46  ;;  %2676 = vrot.lane.b32.xlu0 %v11725_v32, %s10305_s24  ;;  %2682 = vrot.lane.b32.xlu1 %v11747_v47, %s10305_s24  ;;  %v2309_v38 = vmul.f32 %v2291_v6, %v2275_v1  ;;  %v2170_v14 = vsel %vm380_vm0, %v2145_v25, %v2153_v13 }
 0x38c   : > { %v2210_v12 = vmul.f32 %v11908_v28, %v2178_v36  ;;  %v2213_v2 = vmul.f32 %v11911_v18, %v2166_v42  ;;  %v2216_v55 = vmul.f32 %v11924_v4, %v2171_v62  ;;  %v2304_v42 = vmul.f32 %v11995_v33, %v2278_v17 }
 0x38d   : > { %v2163_v45 = vpop.permute.xlu0 %2162  ;;  %v2247_v34 = vpop.permute.xlu1 %2246  ;;  %v9363_v43 = vpack.c.bf16 %v2215_v21, %v2211_v15  ;;  %v2307_v36 = vmul.f32 %v11998_v5, %v2266_v53  ;;  %v2212_v41 = vmul.f32 %v11924_v4, %v2170_v14 }
 0x38e   : > { %v2167_v19 = vsel %vm380_vm0, %v2155_v37, %v2163_v45  ;;  %v2179_v1 = vsel %vm380_vm0, %v2163_v45, %v2139_v29  ;;  %v2276_v13 = vsel %vm523_vm1, %v11954_v24, %v2247_v34  ;;  %v2310_v29 = vmul.f32 %v11975_v11, %v2271_v7 }
 0x38f   : > { %v2214_v46 = vmul.f32 %v11908_v28, %v2179_v1  ;;  %v2217_v15 = vmul.f32 %v11911_v18, %v2167_v19  ;;  %2684 = vrot.lane.b32.xlu0 %v11753_v56, %s10305_s24  ;;  %2662 = vrot.lane.b32.xlu1 %v11763_v16, %s10305_s24  ;;  %v2311_v28 = vmul.f32 %v11998_v5, %v2267_v52 }
 0x390   : > { %9364 = vmatprep.subr.bf16.mxu0 %v9363_v43  ;;  %v2313_v45 = vmul.f32 %v2291_v6, %v2276_v13  ;;  %v9367_v52 = vpack.c.bf16 %v2309_v38, %v2305_v20  ;;  %v9369_v19 = vpack.c.bf16 %v2308_v51, %v2304_v42  ;;  %v9437_v17 = vpack.c.bf16 %v2216_v55, %v2212_v41 }
 0x391   : > { %v9365_v18 = vpack.c.bf16 %v2214_v46, %v2210_v12  ;;  %v2249_v37 = vpop.permute.xlu0 %2248  ;;  %v2263_v25 = vpop.permute.xlu1 %2262  ;;  %v9435_v21 = vpack.c.bf16 %v2217_v15, %v2213_v2  ;;  %v9439_v53 = vpack.c.bf16 %v2311_v28, %v2307_v36  ;;  %v2272_v38 = vsel %vm523_vm1, %v2247_v34, %v11962_v8 }
 0x392   : > { %v2277_v62 = vsel %vm523_vm1, %v11960_v23, %v2249_v37  ;;  %v2280_v7 = vsel %vm523_vm1, %v2263_v25, %v11954_v24  ;;  %v2268_v4 = vsel %vm523_vm1, %v11962_v8, %v2263_v25  ;;  %v9441_v8 = vpack.c.bf16 %v2310_v29, %v12010_v30 }
 0x393   : > { %v2317_v43 = vmul.f32 %v2291_v6, %v2277_v62  ;;  %2664 = vrot.lane.b32.xlu0 %v11769_v9, %s10305_s24  ;;  %2670 = vrot.lane.b32.xlu1 %v11787_v57, %s10305_s24  ;;  %v2273_v6 = vsel %vm523_vm1, %v2249_v37, %v11971_v10  ;;  %v2312_v1 = vmul.f32 %v11995_v33, %v2280_v7 }
 0x394   : > { %9366 = vmatpush1.bf16.msra.mxu0 %v9365_v18  ;;  %9436 = vmatprep.subr.bf16.mxu1 %v9435_v21  ;;  %v2315_v46 = vmul.f32 %v11998_v5, %v2268_v4  ;;  %v2318_v34 = vmul.f32 %v11975_v11, %v2273_v6  ;;  %v2314_v13 = vmul.f32 %v11975_v11, %v2272_v38 }
 0x395   : > { %9368 = vmatprep.subr.bf16.mxu0 %v9367_v52  ;;  %v2265_v24 = vpop.permute.xlu0 %2264  ;;  %v2345_v14 = vpop.permute.xlu1 %2344  ;;  %v9371_v20 = vpack.c.bf16 %v2317_v43, %v2313_v45  ;;  %9438 = vmatpush1.bf16.msra.mxu1 %v9437_v17  ;;  %v2389_v42 = vrot.slane %v11985_v54, %v10586_v39  ;;  %v2401_v36 = vrot.slane %v11985_v54, %v10588_v40 }
 0x396   : > { %v2269_v12 = vsel %vm523_vm1, %v11971_v10, %v2265_v24  ;;  %v2281_v2 = vsel %vm523_vm1, %v2265_v24, %v11960_v23  ;;  %9440 = vmatprep.subr.bf16.mxu1 %v9439_v53  ;;  %v2376_v10 = vsel %vm667_vm2, %v11883_v60, %v2345_v14  ;;  %v9445_v18 = vpack.c.bf16 %v2318_v34, %v2314_v13 }
 0x397   : > { %v2316_v15 = vmul.f32 %v11995_v33, %v2281_v2  ;;  %v2319_v51 = vmul.f32 %v11998_v5, %v2269_v12  ;;  %2672 = vrot.lane.b32.xlu0 %v11793_v49, %s10305_s24  ;;  %2678 = vrot.lane.b32.xlu1 %v11771_v59, %s10305_s24  ;;  %v2407_v29 = vmul.f32 %v12007_v44, %v2376_v10 }
 0x398   : > { %9370 = vmatpush1.bf16.msra.mxu0 %v9369_v19  ;;  %v2397_v41 = vrot.slane %v11985_v54, %v10576_v35 }
 0x399   : > { %v9373_v23 = vpack.c.bf16 %v2316_v15, %v2312_v1  ;;  %9372 = vmatprep.subr.bf16.mxu0 %v9371_v20  ;;  %v2347_v33 = vpop.permute.xlu0 %2346  ;;  %v2353_v5 = vpop.permute.xlu1 %2352  ;;  %v9443_v55 = vpack.c.bf16 %v2319_v51, %v2315_v46  ;;  %9442 = vmatpush1.bf16.msra.mxu1 %v9441_v8 }
 0x39a   : > { %v2377_v30 = vsel %vm667_vm2, %v11892_v3, %v2347_v33  ;;  %v2372_v52 = vsel %vm667_vm2, %v2345_v14, %v2353_v5 }
 0x39b   : > { %v2411_v28 = vmul.f32 %v12007_v44, %v2377_v30  ;;  %2680 = vrot.lane.b32.xlu0 %v11777_v48, %s10305_s24  ;;  %9444 = vmatprep.subr.bf16.mxu1 %v9443_v55  ;;  %v2408_v53 = vmul.f32 %v2397_v41, %v2372_v52 }
 0x39c   : > { %2686 = vrot.lane.b32.xlu1 %v11795_v63, %s10305_s24  ;;  %9374 = vmatpush1.bf16.msra.mxu0 %v9373_v23 }
 0x39d   : > { %v2355_v37 = vpop.permute.xlu0 %2354  ;;  %v2361_v11 = vpop.permute.xlu1 %2360  ;;  %v9375_v25 = vpack.c.bf16 %v2411_v28, %v2407_v29  ;;  %9446 = vmatpush1.bf16.msra.mxu1 %v9445_v18 }
 0x39e   : > { %v2373_v21 = vsel %vm667_vm2, %v2347_v33, %v2355_v37  ;;  %v2368_v62 = vsel %vm667_vm2, %v2353_v5, %v2361_v11  ;;  %v2380_v45 = vsel %vm667_vm2, %v2361_v11, %v11883_v60 }
 0x39f   : > { %2688 = vrot.lane.b32.xlu0 %v11801_v61, %s10305_s24  ;;  %9376 = vmatprep.subr.bf16.mxu0 %v9375_v25  ;;  %v2412_v19 = vmul.f32 %v2397_v41, %v2373_v21  ;;  %v2406_v4 = vmul.f32 %v2389_v42, %v2380_v45  ;;  %v2409_v6 = vmul.f32 %v2401_v36, %v2368_v62  ;;  %v9073_v62 = vld [vmem:[%s18099_s1 + $0x3] ss:$8 sm:$0xf] }
 0x3a0   : > { %2760 = vrot.lane.b32.xlu1 %v11713_v50, %s10306_s29 }
 0x3a1   : > { %v2363_v43 = vpop.permute.xlu0 %2362  ;;  %v2341_v7 = vpop.permute.xlu1 %2340  ;;  %v9449_v12 = vpack.c.bf16 %v2412_v19, %v2408_v53 }
 0x3a2   : > { %v2369_v17 = vsel %vm667_vm2, %v2355_v37, %v2363_v43  ;;  %v2381_v54 = vsel %vm667_vm2, %v2363_v43, %v11892_v3 }
 0x3a3   : > { %v2410_v24 = vmul.f32 %v2389_v42, %v2381_v54  ;;  %v2413_v60 = vmul.f32 %v2401_v36, %v2369_v17  ;;  %2762 = vrot.lane.b32.xlu0 %v11719_v0, %s10306_s29  ;;  %v2495_v54 = vrot.slane %v9073_v62, %v10561_v27 }
 0x3a4   : > { %2768 = vrot.lane.b32.xlu1 %v11739_v58, %s10306_s29 }
 0x3a5   : > { %v9377_v14 = vpack.c.bf16 %v2410_v24, %v2406_v4  ;;  %v2343_v20 = vpop.permute.xlu0 %2342  ;;  %v2349_v38 = vpop.permute.xlu1 %2348  ;;  %v9447_v1 = vpack.c.bf16 %v2413_v60, %v2409_v6 }
 0x3a6   : > { %v2378_v3 = vsel %vm667_vm2, %v2341_v7, %v2349_v38 }
 0x3a7   : > { %2770 = vrot.lane.b32.xlu0 %v11745_v22, %s10306_s29  ;;  %9378 = vmatpush1.bf16.msra.mxu0 %v9377_v14  ;;  %v2415_v51 = vmul.f32 %v12007_v44, %v2378_v3 }
 0x3a8   : > { %2776 = vrot.lane.b32.xlu1 %v11717_v31, %s10306_s29  ;;  %9448 = vmatprep.subr.bf16.mxu1 %v9447_v1  ;;  %v2503_v1 = vrot.slane %v9073_v62, %v10588_v40 }
 0x3a9   : > { %9450 = vmatpush1.bf16.msra.mxu1 %v9449_v12  ;;  %v2351_v2 = vpop.permute.xlu0 %2350  ;;  %v2357_v46 = vpop.permute.xlu1 %2356  ;;  %v2499_v12 = vrot.slane %v9073_v62, %v10576_v35 }
 0x3aa   : > { %v2379_v15 = vsel %vm667_vm2, %v2343_v20, %v2351_v2  ;;  %v2374_v30 = vsel %vm667_vm2, %v2349_v38, %v2357_v46  ;;  %v2491_v38 = vrot.slane %v9073_v62, %v10586_v39 }
 0x3ab   : > { %v2419_v8 = vmul.f32 %v12007_v44, %v2379_v15  ;;  %2778 = vrot.lane.b32.xlu0 %v11725_v32, %s10306_s29  ;;  %v2416_v45 = vmul.f32 %v2397_v41, %v2374_v30 }
 0x3ac   : > { %2784 = vrot.lane.b32.xlu1 %v11747_v47, %s10306_s29 }
 0x3ad   : > { %v2359_v34 = vpop.permute.xlu0 %2358  ;;  %v2365_v10 = vpop.permute.xlu1 %2364  ;;  %v9379_v23 = vpack.c.bf16 %v2419_v8, %v2415_v51 }
 0x3ae   : > { %v2375_v33 = vsel %vm667_vm2, %v2351_v2, %v2359_v34  ;;  %v2370_v5 = vsel %vm667_vm2, %v2357_v46, %v2365_v10  ;;  %v2382_v44 = vsel %vm667_vm2, %v2365_v10, %v2341_v7 }
 0x3af   : > { %2786 = vrot.lane.b32.xlu0 %v11753_v56, %s10306_s29  ;;  %9380 = vmatprep.subr.bf16.mxu0 %v9379_v23  ;;  %v2420_v29 = vmul.f32 %v2397_v41, %v2375_v33  ;;  %v2414_v37 = vmul.f32 %v2389_v42, %v2382_v44  ;;  %v2417_v11 = vmul.f32 %v2401_v36, %v2370_v5 }
 0x3b0   : > { %2764 = vrot.lane.b32.xlu1 %v11763_v16, %s10306_s29 }
 0x3b1   : > { %v2367_v55 = vpop.permute.xlu0 %2366  ;;  %v2439_v13 = vpop.permute.xlu1 %2438  ;;  %v9453_v17 = vpack.c.bf16 %v2420_v29, %v2416_v45 }
 0x3b2   : > { %v2371_v28 = vsel %vm667_vm2, %v2359_v34, %v2367_v55  ;;  %v2383_v18 = vsel %vm667_vm2, %v2367_v55, %v2343_v20  ;;  %v3109_v55 = vld [vmem:[%s18102_s4 + $0x8] sm:$0xff] }
 0x3b3   : > { %v2418_v25 = vmul.f32 %v2389_v42, %v2383_v18  ;;  %v2421_v21 = vmul.f32 %v2401_v36, %v2371_v28  ;;  %2766 = vrot.lane.b32.xlu0 %v11769_v9, %s10306_s29  ;;  %3221 = vmatprep.mubr.f32.mxu0 %v3109_v55 }
 0x3b4   : > { %2772 = vrot.lane.b32.xlu1 %v11787_v57, %s10306_s29  ;;  %3399 = vmatprep.mubr.f32.mxu1 %v3109_v55 }
 0x3b5   : > { %v9381_v43 = vpack.c.bf16 %v2418_v25, %v2414_v37  ;;  %v2441_v7 = vpop.permute.xlu0 %2440  ;;  %v2447_v52 = vpop.permute.xlu1 %2446  ;;  %v9451_v19 = vpack.c.bf16 %v2421_v21, %v2417_v11 }
 0x3b6   : > { %v2478_v42 = vsel %vm811_vm3, %v2439_v13, %v2447_v52 }
 0x3b7   : > { %2774 = vrot.lane.b32.xlu0 %v11793_v49, %s10306_s29  ;;  %9382 = vmatpush1.bf16.msra.mxu0 %v9381_v43  ;;  %v2509_v6 = vmul.f32 %v2495_v54, %v2478_v42 }
 0x3b8   : > { %2780 = vrot.lane.b32.xlu1 %v11771_v59, %s10306_s29  ;;  %9452 = vmatprep.subr.bf16.mxu1 %v9451_v19 }
 0x3b9   : > { %9454 = vmatpush1.bf16.msra.mxu1 %v9453_v17  ;;  %v2449_v36 = vpop.permute.xlu0 %2448  ;;  %v2455_v41 = vpop.permute.xlu1 %2454 }
 0x3ba   : > { %v2479_v4 = vsel %vm811_vm3, %v2441_v7, %v2449_v36  ;;  %v2474_v51 = vsel %vm811_vm3, %v2447_v52, %v2455_v41 }
 0x3bb   : > { %v2513_v24 = vmul.f32 %v2495_v54, %v2479_v4  ;;  %2782 = vrot.lane.b32.xlu0 %v11777_v48, %s10306_s29 }
 0x3bc   : > { %2788 = vrot.lane.b32.xlu1 %v11795_v63, %s10306_s29 }
 0x3bd   : > { %v2457_v60 = vpop.permute.xlu0 %2456  ;;  %v2463_v53 = vpop.permute.xlu1 %2462  ;;  %v9383_v14 = vpack.c.bf16 %v2513_v24, %v2509_v6 }
 0x3be   : > { %v2475_v20 = vsel %vm811_vm3, %v2449_v36, %v2457_v60  ;;  %v2470_v3 = vsel %vm811_vm3, %v2455_v41, %v2463_v53  ;;  %v2482_v2 = vsel %vm811_vm3, %v2463_v53, %v2439_v13  ;;  %v2510_v13 = vmul.f32 %v2499_v12, %v2474_v51 }
 0x3bf   : > { %2790 = vrot.lane.b32.xlu0 %v11801_v61, %s10306_s29  ;;  %9384 = vmatprep.subr.bf16.mxu0 %v9383_v14  ;;  %v2514_v8 = vmul.f32 %v2499_v12, %v2475_v20  ;;  %v2508_v23 = vmul.f32 %v2491_v38, %v2482_v2  ;;  %v2511_v33 = vmul.f32 %v2503_v1, %v2470_v3 }
 0x3c0   : > { %2862 = vrot.lane.b32.xlu1 %v11713_v50, %s10307_s15 }
 0x3c1   : > { %v2465_v46 = vpop.permute.xlu0 %2464  ;;  %v2443_v15 = vpop.permute.xlu1 %2442  ;;  %v9457_v37 = vpack.c.bf16 %v2514_v8, %v2510_v13  ;;  %v9465_v13 = vpack.c.bf16 %v11725_v32, %v11717_v31 }
 0x3c2   : > { %v2471_v34 = vsel %vm811_vm3, %v2457_v60, %v2465_v46  ;;  %v2483_v10 = vsel %vm811_vm3, %v2465_v46, %v2441_v7 }
 0x3c3   : > { %v2512_v5 = vmul.f32 %v2491_v38, %v2483_v10  ;;  %v2515_v44 = vmul.f32 %v2503_v1, %v2471_v34  ;;  %2864 = vrot.lane.b32.xlu0 %v11719_v0, %s10307_s15 }
 0x3c4   : > { %2870 = vrot.lane.b32.xlu1 %v11739_v58, %s10307_s15 }
 0x3c5   : > { %v9385_v30 = vpack.c.bf16 %v2512_v5, %v2508_v23  ;;  %v2445_v29 = vpop.permute.xlu0 %2444  ;;  %v2451_v28 = vpop.permute.xlu1 %2450  ;;  %v9455_v18 = vpack.c.bf16 %v2515_v44, %v2511_v33  ;;  %v9393_v33 = vpack.c.bf16 %v11719_v0, %v11713_v50  ;;  %v9395_v5 = vpack.c.bf16 %v11793_v49, %v11787_v57 }
 0x3c6   : > { %v2480_v11 = vsel %vm811_vm3, %v2443_v15, %v2451_v28 }
 0x3c7   : > { %2872 = vrot.lane.b32.xlu0 %v11745_v22, %s10307_s15  ;;  %9386 = vmatpush1.bf16.msra.mxu0 %v9385_v30  ;;  %v2517_v45 = vmul.f32 %v2495_v54, %v2480_v11  ;;  %v3120_v11 = vld [vmem:[%s18103_s5] sm:$0xff] }
 0x3c8   : > { %2878 = vrot.lane.b32.xlu1 %v11717_v31, %s10307_s15  ;;  %9456 = vmatprep.subr.bf16.mxu1 %v9455_v18 }
 0x3c9   : > { %9458 = vmatpush1.bf16.msra.mxu1 %v9457_v37  ;;  %v2453_v25 = vpop.permute.xlu0 %2452  ;;  %v2459_v21 = vpop.permute.xlu1 %2458 }
 0x3ca   : > { %v2481_v62 = vsel %vm811_vm3, %v2445_v29, %v2453_v25  ;;  %v2476_v4 = vsel %vm811_vm3, %v2451_v28, %v2459_v21  ;;  %v9467_v28 = vpack.c.bf16 %v11801_v61, %v11795_v63 }
 0x3cb   : > { %v2521_v43 = vmul.f32 %v2495_v54, %v2481_v62  ;;  %2880 = vrot.lane.b32.xlu0 %v11725_v32, %s10307_s15  ;;  %v2518_v2 = vmul.f32 %v2499_v12, %v2476_v4  ;;  %v3121_v4 = vld [vmem:[%s18103_s5 + $0x8] sm:$0xff] }
 0x3cc   : > { %2886 = vrot.lane.b32.xlu1 %v11747_v47, %s10307_s15 }
 0x3cd   : > { %v2461_v7 = vpop.permute.xlu0 %2460  ;;  %v2467_v52 = vpop.permute.xlu1 %2466  ;;  %v9387_v19 = vpack.c.bf16 %v2521_v43, %v2517_v45 }
 0x3ce   : > { %v2477_v17 = vsel %vm811_vm3, %v2453_v25, %v2461_v7  ;;  %v2472_v42 = vsel %vm811_vm3, %v2459_v21, %v2467_v52  ;;  %v2484_v54 = vsel %vm811_vm3, %v2467_v52, %v2443_v15  ;;  %v9397_v25 = vpack.c.bf16 %v11769_v9, %v11763_v16 }
 0x3cf   : > { %2888 = vrot.lane.b32.xlu0 %v11753_v56, %s10307_s15  ;;  %9388 = vmatprep.subr.bf16.mxu0 %v9387_v19  ;;  %v2522_v6 = vmul.f32 %v2499_v12, %v2477_v17  ;;  %v2516_v53 = vmul.f32 %v2491_v38, %v2484_v54  ;;  %v2519_v14 = vmul.f32 %v2503_v1, %v2472_v42  ;;  %v9074_v12 = vld [vmem:[%s18099_s1 + $0x5] ss:$8 sm:$0xf] }
 0x3d0   : > { %2866 = vrot.lane.b32.xlu1 %v11763_v16, %s10307_s15  ;;  %v12265_v55 = vrot.slane %v9074_v12, %v10561_v27  ;;  %v2609_v30 = vrot.slane %v9074_v12, %v10586_v39  ;;  %v9469_v21 = vpack.c.bf16 %v11777_v48, %v11771_v59  ;;  %v2617_v43 = vrot.slane %v9074_v12, %v10576_v35 }
 0x3d1   : > { %v2469_v36 = vpop.permute.xlu0 %2468  ;;  %v2557_v41 = vpop.permute.xlu1 %2556  ;;  %v9461_v34 = vpack.c.bf16 %v2522_v6, %v2518_v2 }
 0x3d2   : > { %v2473_v24 = vsel %vm811_vm3, %v2461_v7, %v2469_v36  ;;  %v2485_v60 = vsel %vm811_vm3, %v2469_v36, %v2445_v29  ;;  %v2621_v7 = vrot.slane %v9074_v12, %v10588_v40 }
 0x3d3   : > { %v2520_v20 = vmul.f32 %v2491_v38, %v2485_v60  ;;  %v2523_v3 = vmul.f32 %v2503_v1, %v2473_v24  ;;  %2868 = vrot.lane.b32.xlu0 %v11769_v9, %s10307_s15  ;;  %v9391_v38 = vpack.c.bf16 %v11745_v22, %v11739_v58  ;;  %v9463_v1 = vpack.c.bf16 %v11753_v56, %v11747_v47  ;;  %v3122_v24 = vld [vmem:[%s18103_s5 + $0x10] sm:$0xff] }
 0x3d4   : > { %2874 = vrot.lane.b32.xlu1 %v11787_v57, %s10307_s15  ;;  %v3577_v9 = vld [vmem:[%s18099_s1] ss:$8 sm:$0xf] }
 0x3d5   : > { %v9389_v46 = vpack.c.bf16 %v2520_v20, %v2516_v53  ;;  %v2559_v15 = vpop.permute.xlu0 %2558  ;;  %v2565_v51 = vpop.permute.xlu1 %2564  ;;  %v9459_v8 = vpack.c.bf16 %v2523_v3, %v2519_v14  ;;  %v12796_v47 = vrot.slane %v3577_v9, %v10561_v27 }
 0x3d6   : > { %v2596_v18 = vsel %vm979_vm4, %v2557_v41, %v2565_v51 }
 0x3d7   : > { %2876 = vrot.lane.b32.xlu0 %v11793_v49, %s10307_s15  ;;  %9390 = vmatpush1.bf16.msra.mxu0 %v9389_v46  ;;  %v2626_v54 = vmul.f32 %v2609_v30, %v2596_v18 }
 0x3d8   : > { %2882 = vrot.lane.b32.xlu1 %v11771_v59, %s10307_s15  ;;  %9460 = vmatprep.subr.bf16.mxu1 %v9459_v8  ;;  %v3123_v8 = vld [vmem:[%s18103_s5 + $0x18] sm:$0xff] }
 0x3d9   : > { %9392 = vmatprep.subr.bf16.mxu0 %v9391_v38  ;;  %9462 = vmatpush1.bf16.msra.mxu1 %v9461_v34  ;;  %v2567_v10 = vpop.permute.xlu0 %2566  ;;  %v2573_v23 = vpop.permute.xlu1 %2572 }
 0x3da   : > { %9464 = vmatprep.subr.bf16.mxu1 %v9463_v1  ;;  %v2597_v44 = vsel %vm979_vm4, %v2559_v15, %v2567_v10  ;;  %v2592_v29 = vsel %vm979_vm4, %v2565_v51, %v2573_v23 }
 0x3db   : > { %2884 = vrot.lane.b32.xlu0 %v11777_v48, %s10307_s15  ;;  %9394 = vmatpush1.bf16.msra.mxu0 %v9393_v33  ;;  %v2630_v62 = vmul.f32 %v2609_v30, %v2597_v44  ;;  %v2627_v19 = vmul.f32 %v12265_v55, %v2592_v29 }
 0x3dc   : > { %2890 = vrot.lane.b32.xlu1 %v11795_v63, %s10307_s15  ;;  %9396 = vmatprep.subr.bf16.mxu0 %v9395_v5 }
 0x3dd   : > { %9466 = vmatpush1.bf16.msra.mxu1 %v9465_v13  ;;  %v2575_v37 = vpop.permute.xlu0 %2574  ;;  %v2581_v52 = vpop.permute.xlu1 %2580  ;;  %v9401_v53 = vpack.c.bf16 %v2630_v62, %v2626_v54 }
 0x3de   : > { %v2593_v45 = vsel %vm979_vm4, %v2567_v10, %v2575_v37  ;;  %9468 = vmatprep.subr.bf16.mxu1 %v9467_v28  ;;  %v2588_v42 = vsel %vm979_vm4, %v2573_v23, %v2581_v52  ;;  %v2600_v36 = vsel %vm979_vm4, %v2581_v52, %v2557_v41 }
 0x3df   : > { %v2631_v17 = vmul.f32 %v12265_v55, %v2593_v45  ;;  %2892 = vrot.lane.b32.xlu0 %v11801_v61, %s10307_s15  ;;  %9398 = vmatpush1.bf16.msra.mxu0 %v9397_v25  ;;  %v2628_v14 = vmul.f32 %v2617_v43, %v2588_v42  ;;  %v2629_v2 = vmul.f32 %v2621_v7, %v2600_v36 }
 0x3e0   : > { %3126 = vperm.xlu1 %10267, %v3120_v11  }
 0x3e1   : > { %9470 = vmatpush1.bf16.msra.mxu1 %v9469_v21  ;;  %v2583_v6 = vpop.permute.xlu0 %2582  ;;  %v9399_v60 = vpack.c.bf16 %v2631_v17, %v2627_v19  ;;  %v2561_v3 = vpop.permute.xlu1 %2560 }
 0x3e2   : > { %v2589_v20 = vsel %vm979_vm4, %v2575_v37, %v2583_v6  ;;  %v2601_v41 = vsel %vm979_vm4, %v2583_v6, %v2559_v15 }
 0x3e3   : > { %v2632_v46 = vmul.f32 %v2617_v43, %v2589_v20  ;;  %v2633_v51 = vmul.f32 %v2621_v7, %v2601_v41  ;;  %3131 = vperm.xlu0 %10266, %v3121_v4   ;;  %9400 = vmatprep.subr.bf16.mxu0 %v9399_v60 }
 0x3e4   : > { %3136 = vperm.xlu1 %10267, %v3122_v24   ;;  %9402 = vmatpush1.bf16.msra.mxu0 %v9401_v53  ;;  %v9075_v53 = vld [vmem:[%s18099_s1 + $0x6] ss:$8 sm:$0xf] }
 0x3e5   : > { %v9473_v34 = vpack.c.bf16 %v2632_v46, %v2628_v14  ;;  %v2563_v38 = vpop.permute.xlu0 %2562  ;;  %v9471_v1 = vpack.c.bf16 %v2633_v51, %v2629_v2  ;;  %v2569_v12 = vpop.permute.xlu1 %2568 }
 0x3e6   : > { %v2598_v5 = vsel %vm979_vm4, %v2561_v3, %v2569_v12 }
 0x3e7   : > { %3141 = vperm.xlu0 %10266, %v3123_v8   ;;  %9472 = vmatprep.subr.bf16.mxu1 %v9471_v1  ;;  %v2634_v11 = vmul.f32 %v2609_v30, %v2598_v5 }
 0x3e8   : > { %9474 = vmatpush1.bf16.msra.mxu1 %v9473_v34 }
 0x3e9   : > { %v2571_v15 = vpop.permute.xlu0 %2570  ;;  %v2577_v10 = vpop.permute.xlu1 %2576 }
 0x3ea   : > { %v2599_v23 = vsel %vm979_vm4, %v2563_v38, %v2571_v15  ;;  %v2594_v33 = vsel %vm979_vm4, %v2569_v12, %v2577_v10  ;;  %v2719_v12 = vrot.slane %v9075_v53, %v10576_v35 }
 0x3eb   : > { %v2638_v13 = vmul.f32 %v2609_v30, %v2599_v23  ;;  %v2635_v18 = vmul.f32 %v12265_v55, %v2594_v33 }
 0x3ed   : > { %v2579_v44 = vpop.permute.xlu0 %2578  ;;  %v2585_v28 = vpop.permute.xlu1 %2584  ;;  %v9405_v52 = vpack.c.bf16 %v2638_v13, %v2634_v11 }
 0x3ee   : > { %v2595_v29 = vsel %vm979_vm4, %v2571_v15, %v2579_v44  ;;  %v2590_v25 = vsel %vm979_vm4, %v2577_v10, %v2585_v28  ;;  %v2602_v21 = vsel %vm979_vm4, %v2585_v28, %v2561_v3  ;;  %v2723_v15 = vrot.slane %v9075_v53, %v10588_v40 }
 0x3ef   : > { %v2639_v37 = vmul.f32 %v12265_v55, %v2595_v29  ;;  %v2636_v54 = vmul.f32 %v2617_v43, %v2590_v25  ;;  %v2637_v36 = vmul.f32 %v2621_v7, %v2602_v21 }
 0x3f1   : > { %v2587_v62 = vpop.permute.xlu0 %2586  ;;  %v9403_v45 = vpack.c.bf16 %v2639_v37, %v2635_v18  ;;  %v2659_v42 = vpop.permute.xlu1 %2658 }
 0x3f2   : > { %v2591_v19 = vsel %vm979_vm4, %v2579_v44, %v2587_v62  ;;  %v2603_v17 = vsel %vm979_vm4, %v2587_v62, %v2563_v38 }
 0x3f3   : > { %v2640_v55 = vmul.f32 %v2617_v43, %v2591_v19  ;;  %v2641_v30 = vmul.f32 %v2621_v7, %v2603_v17  ;;  %9404 = vmatprep.subr.bf16.mxu0 %v9403_v45  ;;  %v2715_v43 = vrot.slane %v9075_v53, %v10561_v27  ;;  %v2711_v7 = vrot.slane %v9075_v53, %v10586_v39 }
 0x3f4   : > { %9406 = vmatpush1.bf16.msra.mxu0 %v9405_v52 }
 0x3f5   : > { %v9477_v4 = vpack.c.bf16 %v2640_v55, %v2636_v54  ;;  %v2661_v6 = vpop.permute.xlu0 %2660  ;;  %v9475_v24 = vpack.c.bf16 %v2641_v30, %v2637_v36  ;;  %v2667_v60 = vpop.permute.xlu1 %2666 }
 0x3f6   : > { %v2698_v2 = vsel %vm1123_vm5, %v2659_v42, %v2667_v60 }
 0x3f7   : > { %9476 = vmatprep.subr.bf16.mxu1 %v9475_v24  ;;  %v2728_v10 = vmul.f32 %v2711_v7, %v2698_v2 }
 0x3f8   : > { %9478 = vmatpush1.bf16.msra.mxu1 %v9477_v4 }
 0x3f9   : > { %v2669_v14 = vpop.permute.xlu0 %2668  ;;  %v2675_v20 = vpop.permute.xlu1 %2674 }
 0x3fa   : > { %v2699_v41 = vsel %vm1123_vm5, %v2661_v6, %v2669_v14  ;;  %v2694_v3 = vsel %vm1123_vm5, %v2667_v60, %v2675_v20 }
 0x3fb   : > { %v2732_v51 = vmul.f32 %v2711_v7, %v2699_v41  ;;  %v2729_v38 = vmul.f32 %v2715_v43, %v2694_v3 }
 0x3fd   : > { %v2677_v46 = vpop.permute.xlu0 %2676  ;;  %v2683_v34 = vpop.permute.xlu1 %2682  ;;  %v9409_v13 = vpack.c.bf16 %v2732_v51, %v2728_v10 }
 0x3fe   : > { %v2695_v8 = vsel %vm1123_vm5, %v2669_v14, %v2677_v46  ;;  %v2690_v23 = vsel %vm1123_vm5, %v2675_v20, %v2683_v34  ;;  %v2702_v33 = vsel %vm1123_vm5, %v2683_v34, %v2659_v42 }
 0x3ff   : > { %v2733_v1 = vmul.f32 %v2715_v43, %v2695_v8  ;;  %v2730_v37 = vmul.f32 %v2719_v12, %v2690_v23  ;;  %v2731_v11 = vmul.f32 %v2723_v15, %v2702_v33 }
 0x401   : > { %v2685_v5 = vpop.permute.xlu0 %2684  ;;  %v9407_v44 = vpack.c.bf16 %v2733_v1, %v2729_v38  ;;  %v2663_v18 = vpop.permute.xlu1 %2662 }
 0x402   : > { %v2691_v29 = vsel %vm1123_vm5, %v2677_v46, %v2685_v5  ;;  %v2703_v28 = vsel %vm1123_vm5, %v2685_v5, %v2661_v6 }
 0x403   : > { %v2734_v25 = vmul.f32 %v2719_v12, %v2691_v29  ;;  %v2735_v21 = vmul.f32 %v2723_v15, %v2703_v28  ;;  %9408 = vmatprep.subr.bf16.mxu0 %v9407_v44  ;;  %v9076_v44 = vld [vmem:[%s18099_s1 + $0x7] ss:$8 sm:$0xf] }
 0x404   : > { %9410 = vmatpush1.bf16.msra.mxu0 %v9409_v13 }
 0x405   : > { %v9481_v62 = vpack.c.bf16 %v2734_v25, %v2730_v37  ;;  %v2665_v45 = vpop.permute.xlu0 %2664  ;;  %v9479_v52 = vpack.c.bf16 %v2735_v21, %v2731_v11  ;;  %v2671_v19 = vpop.permute.xlu1 %2670 }
 0x406   : > { %v2700_v55 = vsel %vm1123_vm5, %v2663_v18, %v2671_v19 }
 0x407   : > { %9480 = vmatprep.subr.bf16.mxu1 %v9479_v52  ;;  %v2736_v14 = vmul.f32 %v2711_v7, %v2700_v55 }
 0x408   : > { %9482 = vmatpush1.bf16.msra.mxu1 %v9481_v62 }
 0x409   : > { %v2673_v17 = vpop.permute.xlu0 %2672  ;;  %v2679_v42 = vpop.permute.xlu1 %2678 }
 0x40a   : > { %v2701_v54 = vsel %vm1123_vm5, %v2665_v45, %v2673_v17  ;;  %v2696_v36 = vsel %vm1123_vm5, %v2671_v19, %v2679_v42  ;;  %v2821_v19 = vrot.slane %v9076_v44, %v10576_v35 }
 0x40b   : > { %v2740_v4 = vmul.f32 %v2711_v7, %v2701_v54  ;;  %v2737_v60 = vmul.f32 %v2715_v43, %v2696_v36 }
 0x40d   : > { %v2681_v30 = vpop.permute.xlu0 %2680  ;;  %v9413_v46 = vpack.c.bf16 %v2740_v4, %v2736_v14 }
 0x40e   : > { %v2697_v6 = vsel %vm1123_vm5, %v2673_v17, %v2681_v30  ;;  %v2687_v24 = vpop.permute.xlu1 %2686  ;;  %v2825_v17 = vrot.slane %v9076_v44, %v10588_v40 }
 0x40f   : > { %v2741_v53 = vmul.f32 %v2715_v43, %v2697_v6  ;;  %v2692_v20 = vsel %vm1123_vm5, %v2679_v42, %v2687_v24  ;;  %v2704_v41 = vsel %vm1123_vm5, %v2687_v24, %v2663_v18 }
 0x410   : > { %v2738_v38 = vmul.f32 %v2719_v12, %v2692_v20  ;;  %v2739_v1 = vmul.f32 %v2723_v15, %v2704_v41 }
 0x411   : > { %v2689_v3 = vpop.permute.xlu0 %2688  ;;  %v9411_v2 = vpack.c.bf16 %v2741_v53, %v2737_v60 }
 0x412   : > { %v2693_v51 = vsel %vm1123_vm5, %v2681_v30, %v2689_v3  ;;  %v2705_v8 = vsel %vm1123_vm5, %v2689_v3, %v2665_v45  ;;  %v2761_v34 = vpop.permute.xlu1 %2760 }
 0x413   : > { %v2742_v43 = vmul.f32 %v2719_v12, %v2693_v51  ;;  %v2743_v7 = vmul.f32 %v2723_v15, %v2705_v8  ;;  %9412 = vmatprep.subr.bf16.mxu0 %v9411_v2  ;;  %v2817_v12 = vrot.slane %v9076_v44, %v10561_v27  ;;  %v2813_v15 = vrot.slane %v9076_v44, %v10586_v39 }
 0x414   : > { %9414 = vmatpush1.bf16.msra.mxu0 %v9413_v46 }
 0x415   : > { %v9485_v10 = vpack.c.bf16 %v2742_v43, %v2738_v38  ;;  %v2763_v23 = vpop.permute.xlu0 %2762  ;;  %v9483_v33 = vpack.c.bf16 %v2743_v7, %v2739_v1 }
 0x416   : > { %v2769_v5 = vpop.permute.xlu1 %2768 }
 0x417   : > { %9484 = vmatprep.subr.bf16.mxu1 %v9483_v33  ;;  %v2800_v37 = vsel %vm1267_vm7, %v2761_v34, %v2769_v5 }
 0x418   : > { %9486 = vmatpush1.bf16.msra.mxu1 %v9485_v10  ;;  %v2830_v42 = vmul.f32 %v2813_v15, %v2800_v37 }
 0x419   : > { %v2771_v13 = vpop.permute.xlu0 %2770 }
 0x41a   : > { %v2777_v29 = vpop.permute.xlu1 %2776  ;;  %v2801_v28 = vsel %vm1267_vm7, %v2763_v23, %v2771_v13 }
 0x41b   : > { %v2796_v18 = vsel %vm1267_vm7, %v2769_v5, %v2777_v29  ;;  %v2834_v25 = vmul.f32 %v2813_v15, %v2801_v28 }
 0x41c   : > { %v2831_v45 = vmul.f32 %v2817_v12, %v2796_v18 }
 0x41d   : > { %v2779_v11 = vpop.permute.xlu0 %2778  ;;  %v9417_v4 = vpack.c.bf16 %v2834_v25, %v2830_v42  ;;  %v3108_v42 = vld [vmem:[%s18102_s4] sm:$0xff] }
 0x41e   : > { %v2797_v21 = vsel %vm1267_vm7, %v2771_v13, %v2779_v11  ;;  %v2785_v62 = vpop.permute.xlu1 %2784 }
 0x41f   : > { %v2835_v52 = vmul.f32 %v2817_v12, %v2797_v21  ;;  %v2792_v54 = vsel %vm1267_vm7, %v2777_v29, %v2785_v62  ;;  %v2804_v36 = vsel %vm1267_vm7, %v2785_v62, %v2761_v34 }
 0x420   : > { %v2832_v53 = vmul.f32 %v2821_v19, %v2792_v54  ;;  %v2833_v14 = vmul.f32 %v2825_v17, %v2804_v36 }
 0x421   : > { %v2787_v55 = vpop.permute.xlu0 %2786  ;;  %v9415_v30 = vpack.c.bf16 %v2835_v52, %v2831_v45 }
 0x422   : > { %v2793_v6 = vsel %vm1267_vm7, %v2779_v11, %v2787_v55  ;;  %v2805_v24 = vsel %vm1267_vm7, %v2787_v55, %v2763_v23  ;;  %v2765_v60 = vpop.permute.xlu1 %2764 }
 0x423   : > { %v2836_v20 = vmul.f32 %v2821_v19, %v2793_v6  ;;  %v2837_v41 = vmul.f32 %v2825_v17, %v2805_v24  ;;  %9416 = vmatprep.subr.bf16.mxu0 %v9415_v30  ;;  %v3112_v30 = vld [vmem:[%s18102_s4 + $0x20] sm:$0xff]  ;;  %v3115_v24 = vld [vmem:[%s18102_s4 + $0x38] sm:$0xff] }
 0x424   : > { %9418 = vmatpush1.bf16.msra.mxu0 %v9417_v4 }
 0x425   : > { %v9489_v3 = vpack.c.bf16 %v2836_v20, %v2832_v53  ;;  %v2767_v2 = vpop.permute.xlu0 %2766  ;;  %v9487_v46 = vpack.c.bf16 %v2837_v41, %v2833_v14 }
 0x426   : > { %v2773_v51 = vpop.permute.xlu1 %2772 }
 0x427   : > { %9488 = vmatprep.subr.bf16.mxu1 %v9487_v46  ;;  %v2802_v43 = vsel %vm1267_vm7, %v2765_v60, %v2773_v51 }
 0x428   : > { %9490 = vmatpush1.bf16.msra.mxu1 %v9489_v3  ;;  %v2838_v13 = vmul.f32 %v2813_v15, %v2802_v43  ;;  %v3114_v3 = vld [vmem:[%s18102_s4 + $0x30] sm:$0xff] }
 0x429   : > { %v2775_v8 = vpop.permute.xlu0 %2774 }
 0x42a   : > { %v2781_v34 = vpop.permute.xlu1 %2780  ;;  %v2803_v38 = vsel %vm1267_vm7, %v2767_v2, %v2775_v8 }
 0x42b   : > { %v2798_v1 = vsel %vm1267_vm7, %v2773_v51, %v2781_v34  ;;  %v2842_v10 = vmul.f32 %v2813_v15, %v2803_v38  ;;  %v3118_v51 = vld [vmem:[%s18102_s4 + $0x50] sm:$0xff] }
 0x42c   : > { %v2839_v5 = vmul.f32 %v2817_v12, %v2798_v1 }
 0x42d   : > { %v2783_v7 = vpop.permute.xlu0 %2782  ;;  %v9421_v11 = vpack.c.bf16 %v2842_v10, %v2838_v13 }
 0x42e   : > { %v2799_v23 = vsel %vm1267_vm7, %v2775_v8, %v2783_v7  ;;  %v2789_v33 = vpop.permute.xlu1 %2788 }
 0x42f   : > { %v2843_v44 = vmul.f32 %v2817_v12, %v2799_v23  ;;  %v2794_v29 = vsel %vm1267_vm7, %v2781_v34, %v2789_v33  ;;  %v2806_v28 = vsel %vm1267_vm7, %v2789_v33, %v2765_v60 }
 0x430   : > { %v2840_v45 = vmul.f32 %v2821_v19, %v2794_v29  ;;  %v2841_v52 = vmul.f32 %v2825_v17, %v2806_v28 }
 0x431   : > { %v2791_v18 = vpop.permute.xlu0 %2790  ;;  %v9419_v37 = vpack.c.bf16 %v2843_v44, %v2839_v5  ;;  %v3117_v44 = vld [vmem:[%s18102_s4 + $0x48] sm:$0xff] }
 0x432   : > { %v2795_v25 = vsel %vm1267_vm7, %v2783_v7, %v2791_v18  ;;  %v2807_v21 = vsel %vm1267_vm7, %v2791_v18, %v2767_v2  ;;  %v2863_v62 = vpop.permute.xlu1 %2862 }
 0x433   : > { %v2844_v12 = vmul.f32 %v2821_v19, %v2795_v25  ;;  %v2845_v15 = vmul.f32 %v2825_v17, %v2807_v21  ;;  %9420 = vmatprep.subr.bf16.mxu0 %v9419_v37  ;;  %v3111_v19 = vld [vmem:[%s18102_s4 + $0x18] sm:$0xff] }
 0x434   : > { %9422 = vmatpush1.bf16.msra.mxu0 %v9421_v11  ;;  %v9077_v17 = vld [vmem:[%s18099_s1 + $0x20] ss:$8 sm:$0xf] }
 0x435   : > { %v9493_v54 = vpack.c.bf16 %v2844_v12, %v2840_v45  ;;  %v2865_v36 = vpop.permute.xlu0 %2864  ;;  %v9491_v55 = vpack.c.bf16 %v2845_v15, %v2841_v52  ;;  %v2919_v14 = vrot.slane %v9077_v17, %v10561_v27  ;;  %v2915_v20 = vrot.slane %v9077_v17, %v10586_v39 }
 0x436   : > { %v2871_v4 = vpop.permute.xlu1 %2870  ;;  %v2923_v38 = vrot.slane %v9077_v17, %v10576_v35  ;;  %v2927_v1 = vrot.slane %v9077_v17, %v10588_v40 }
 0x437   : > { %9492 = vmatprep.subr.bf16.mxu1 %v9491_v55  ;;  %3222 = vmatmul.mubr.f32.vlgmr.msra.gmra.mrb[8].mxu0 %v3108_v42  ;;  %v2902_v2 = vsel %vm1411_vm8, %v2863_v62, %v2871_v4 }
 0x438   : > { %9494 = vmatpush1.bf16.msra.mxu1 %v9493_v54  ;;  %3227 = vmatprep.mubr.f32.mxu0 %v3112_v30  ;;  %v2932_v33 = vmul.f32 %v2915_v20, %v2902_v2 }
 0x439   : > { %v2873_v6 = vpop.permute.xlu0 %2872 }
 0x43a   : > { %v2879_v60 = vpop.permute.xlu1 %2878  ;;  %v2903_v53 = vsel %vm1411_vm8, %v2865_v36, %v2873_v6 }
 0x43b   : > { %3400 = vmatmul.mubr.f32.vlgmr.msra.gmra.mrb[8].mxu1 %v3108_v42  ;;  %3228 = vmatmul.mubr.f32.gmra.mrb[10].mxu0 %v3111_v19  ;;  %v2898_v41 = vsel %vm1411_vm8, %v2871_v4, %v2879_v60  ;;  %v2936_v8 = vmul.f32 %v2915_v20, %v2903_v53  ;;  %v18107_v42 = vmov 0.0  }
 0x43c   : > { %3233 = vmatprep.mubr.f32.mxu0 %v3115_v24  ;;  %3405 = vmatprep.mubr.f32.mxu1 %v3112_v30  ;;  %v2933_v7 = vmul.f32 %v2919_v14, %v2898_v41 }
 0x43d   : > { %v2881_v46 = vpop.permute.xlu0 %2880  ;;  %v9425_v28 = vpack.c.bf16 %v2936_v8, %v2932_v33 }
 0x43e   : > { %v2899_v34 = vsel %vm1411_vm8, %v2873_v6, %v2881_v46  ;;  %v2887_v43 = vpop.permute.xlu1 %2886 }
 0x43f   : > { %v2937_v10 = vmul.f32 %v2919_v14, %v2899_v34  ;;  %v2894_v23 = vsel %vm1411_vm8, %v2879_v60, %v2887_v43  ;;  %3234 = vmatmul.mubr.f32.gmra.mrb[12].mxu0 %v3114_v3  ;;  %3406 = vmatmul.mubr.f32.gmra.mrb[10].mxu1 %v3111_v19  ;;  %v2906_v5 = vsel %vm1411_vm8, %v2887_v43, %v2863_v62 }
 0x440   : > { %3239 = vmatprep.mubr.f32.mxu0 %v3118_v51  ;;  %3411 = vmatprep.mubr.f32.mxu1 %v3115_v24  ;;  %v2934_v18 = vmul.f32 %v2923_v38, %v2894_v23  ;;  %v2935_v21 = vmul.f32 %v2927_v1, %v2906_v5 }
 0x441   : > { %v2889_v13 = vpop.permute.xlu0 %2888  ;;  %v9423_v29 = vpack.c.bf16 %v2937_v10, %v2933_v7 }
 0x442   : > { %v2895_v37 = vsel %vm1411_vm8, %v2881_v46, %v2889_v13  ;;  %v2907_v11 = vsel %vm1411_vm8, %v2889_v13, %v2865_v36  ;;  %v2867_v25 = vpop.permute.xlu1 %2866  ;;  %v3119_v13 = vld [vmem:[%s18102_s4 + $0x58] sm:$0xff] }
 0x443   : > { %v2938_v45 = vmul.f32 %v2923_v38, %v2895_v37  ;;  %v2939_v62 = vmul.f32 %v2927_v1, %v2907_v11  ;;  %9424 = vmatprep.subr.bf16.mxu0 %v9423_v29  ;;  %3240 = vmatmul.mubr.f32.gmra.mrb[14].mxu0 %v3117_v44 }
 0x444   : > { %9426 = vmatpush1.bf16.msra.mxu0 %v9425_v28  ;;  %3412 = vmatmul.mubr.f32.gmra.mrb[12].mxu1 %v3114_v3 }
 0x445   : > { %v9497_v52 = vpack.c.bf16 %v2938_v45, %v2934_v18  ;;  %v2869_v12 = vpop.permute.xlu0 %2868  ;;  %v9495_v15 = vpack.c.bf16 %v2939_v62, %v2935_v21  ;;  %3310 = vmatprep.mubr.f32.mxu0 %v18107_v42  ;;  %3417 = vmatprep.mubr.f32.mxu1 %v3118_v51 }
 0x446   : > { %v2875_v54 = vpop.permute.xlu1 %2874 }
 0x447   : > { %9496 = vmatprep.subr.bf16.mxu1 %v9495_v15  ;;  %v2904_v19 = vsel %vm1411_vm8, %v2867_v25, %v2875_v54 }
 0x448   : > { %9498 = vmatpush1.bf16.msra.mxu1 %v9497_v52  ;;  %v2940_v3 = vmul.f32 %v2915_v20, %v2904_v19 }
 0x449   : > { %v2877_v55 = vpop.permute.xlu0 %2876  ;;  %3418 = vmatmul.mubr.f32.gmra.mrb[14].mxu1 %v3117_v44 }
 0x44a   : > { %v2883_v36 = vpop.permute.xlu1 %2882  ;;  %3488 = vmatprep.mubr.f32.mxu1 %v18107_v42  ;;  %v2905_v30 = vsel %vm1411_vm8, %v2869_v12, %v2877_v55 }
 0x44b   : > { %v2900_v4 = vsel %vm1411_vm8, %v2875_v54, %v2883_v36  ;;  %v2944_v6 = vmul.f32 %v2915_v20, %v2905_v30  ;;  %v3110_v20 = vld [vmem:[%s18102_s4 + $0x10] sm:$0xff] }
 0x44c   : > { %v2941_v53 = vmul.f32 %v2919_v14, %v2900_v4 }
 0x44d   : > { %v2885_v17 = vpop.permute.xlu0 %2884  ;;  %v9429_v34 = vpack.c.bf16 %v2944_v6, %v2940_v3 }
 0x44e   : > { %v2901_v24 = vsel %vm1411_vm8, %v2877_v55, %v2885_v17  ;;  %v2891_v60 = vpop.permute.xlu1 %2890 }
 0x44f   : > { %v2945_v41 = vmul.f32 %v2919_v14, %v2901_v24  ;;  %v2896_v2 = vsel %vm1411_vm8, %v2883_v36, %v2891_v60  ;;  %v2908_v46 = vsel %vm1411_vm8, %v2891_v60, %v2867_v25 }
 0x450   : > { %v2942_v10 = vmul.f32 %v2923_v38, %v2896_v2  ;;  %v2943_v23 = vmul.f32 %v2927_v1, %v2908_v46 }
 0x451   : > { %v2893_v51 = vpop.permute.xlu0 %2892  ;;  %v9427_v8 = vpack.c.bf16 %v2945_v41, %v2941_v53 }
 0x452   : > { %v2897_v43 = vsel %vm1411_vm8, %v2885_v17, %v2893_v51  ;;  %v2909_v7 = vsel %vm1411_vm8, %v2893_v51, %v2869_v12 }
 0x453   : > { %v2946_v33 = vmul.f32 %v2923_v38, %v2897_v43  ;;  %v2947_v14 = vmul.f32 %v2927_v1, %v2909_v7  ;;  %9428 = vmatprep.subr.bf16.mxu0 %v9427_v8  ;;  %v3113_v38 = vld [vmem:[%s18102_s4 + $0x28] sm:$0xff]  ;;  %v3116_v1 = vld [vmem:[%s18102_s4 + $0x40] sm:$0xff] }
 0x454   : > { %9430 = vmatpush1.bf16.msra.mxu0 %v9429_v34 }
 0x455   : > { %v9501_v5 = vpack.c.bf16 %v2946_v33, %v2942_v10  ;;  %v9499_v44 = vpack.c.bf16 %v2947_v14, %v2943_v23 }
 0x457   : > { %9078 = vmatmul.mubr.msk.f32.vlgmr.msra.gmra.mrb[8].mxu0 %vm3144_vm9, %v3110_v20  ;;  %9500 = vmatprep.subr.bf16.mxu1 %v9499_v44 }
 0x458   : > { %9502 = vmatpush1.bf16.msra.mxu1 %v9501_v5  ;;  %3316 = vmatprep.mubr.f32.mxu0 %v18107_v42 }
 0x45b   : > { %9079 = vmatmul.mubr.msk.f32.gmra.mrb[10].mxu0 %vm3144_vm9, %v3113_v38  ;;  %9082 = vmatmul.mubr.msk.f32.vlgmr.msra.gmra.mrb[8].mxu1 %vm3144_vm9, %v3110_v20 }
 0x45c   : > { %3494 = vmatprep.mubr.f32.mxu1 %v18107_v42  ;;  %3322 = vmatprep.mubr.f32.mxu0 %v18107_v42 }
 0x45f   : > { %9080 = vmatmul.mubr.msk.f32.gmra.mrb[12].mxu0 %vm3144_vm9, %v3116_v1  ;;  %9083 = vmatmul.mubr.msk.f32.gmra.mrb[10].mxu1 %vm3144_vm9, %v3113_v38  ;;  %v3127_v29 = vpop.permute.xlu1 %3126 }
 0x460   : > { %3500 = vmatprep.mubr.f32.mxu1 %v18107_v42  ;;  %3328 = vmatprep.mubr.f32.mxu0 %v18107_v42 }
 0x462   : > { %v3132_v11 = vpop.permute.xlu0 %3131 }
 0x463   : > { %9081 = vmatmul.mubr.msk.f32.gmra.mrb[14].mxu0 %vm3144_vm9, %v3119_v13  ;;  %9084 = vmatmul.mubr.msk.f32.gmra.mrb[12].mxu1 %vm3144_vm9, %v3116_v1  ;;  %v12640_v14 = vpop.permute.xlu1 %3136 }
 0x464   : > { %3506 = vmatprep.mubr.f32.mxu1 %v18107_v42 }
 0x466   : > { %v12646_v20 = vpop.permute.xlu0 %3141 }
 0x467   : > { %9085 = vmatmul.mubr.msk.f32.gmra.mrb[14].mxu1 %vm3144_vm9, %v3119_v13 }
 0x52a   : > { %v3312_v28 = vpop.f32.mrb[8].mxu0 }
 0x52b   : > { %v10095_v18 = vadd.f32 %v3312_v28, %v3127_v29  ;;  %v3314_v37 = vpop.f32.mrb[9].mxu0 }
 0x52c   : > { %v10096_v51 = vadd.f32 %v3314_v37, %v3127_v29 }
 0x52d   : > { %v12496_v25 = vmax.f32 %v10095_v18, 0.0 }
 0x52e   : > { %v3318_v21 = vpop.f32.mrb[10].mxu0  ;;  %v3490_v45 = vpop.f32.mrb[8].mxu1  ;;  %v12580_v8 = vmax.f32 %v10096_v51, 0.0 }
 0x52f   : > { %18513 = vst [vmem:[#allocation22_spill] sm:$0xff] %v12496_v25  ;;  %v10097_v62 = vadd.f32 %v3318_v21, %v3132_v11  ;;  %v10103_v52 = vadd.f32 %v3490_v45, %v3127_v29  ;;  %v3320_v12 = vpop.f32.mrb[11].mxu0  ;;  %v3492_v15 = vpop.f32.mrb[9].mxu1  ;;  %3529 = vrot.lane.b32.xlu1 %v12496_v25, %s10300_s11 }
 0x530   : > { %18517 = vst [vmem:[#allocation26_spill] sm:$0xff] %v12580_v8  ;;  %v10098_v34 = vadd.f32 %v3320_v12, %v3132_v11  ;;  %v10104_v43 = vadd.f32 %v3492_v15, %v3127_v29 }
 0x531   : > { %v12500_v54 = vmax.f32 %v10097_v62, 0.0  ;;  %v12502_v55 = vmax.f32 %v10103_v52, 0.0 }
 0x532   : > { %v12504_v36 = vpop.f32.mrb[12].mxu0  ;;  %v3496_v30 = vpop.f32.mrb[10].mxu1  ;;  %v12586_v7 = vmax.f32 %v10098_v34, 0.0  ;;  %v12588_v10 = vmax.f32 %v10104_v43, 0.0 }
 0x533   : > { %18514 = vst [vmem:[#allocation23_spill] sm:$0xff] %v12500_v54  ;;  %18515 = vst [vmem:[#allocation24_spill] sm:$0xff] %v12502_v55  ;;  %v10105_v4 = vadd.f32 %v3496_v30, %v3132_v11  ;;  %v12506_v19 = vpop.f32.mrb[13].mxu0  ;;  %v3498_v17 = vpop.f32.mrb[11].mxu1  ;;  %3531 = vrot.lane.b32.xlu0 %v12500_v54, %s10300_s11  ;;  %3545 = vrot.lane.b32.xlu1 %v12502_v55, %s10300_s11  ;;  %v10099_v5 = vadd.f32 %v12504_v36, %v12640_v14 }
 0x534   : > { %18518 = vst [vmem:[#allocation27_spill] sm:$0xff] %v12586_v7  ;;  %18519 = vst [vmem:[#allocation28_spill] sm:$0xff] %v12588_v10  ;;  %v10106_v23 = vadd.f32 %v3498_v17, %v3132_v11  ;;  %v10100_v49 = vadd.f32 %v12506_v19, %v12640_v14 }
 0x535   : > { %v12514_v24 = vmax.f32 %v10105_v4, 0.0  ;;  %v12656_v38 = vmax.f32 %v10099_v5, 0.0 }
 0x536   : > { %v12516_v60 = vpop.f32.mrb[14].mxu0  ;;  %v12518_v53 = vpop.f32.mrb[12].mxu1  ;;  %v12594_v33 = vmax.f32 %v10106_v23, 0.0  ;;  %v12787_v59 = vmax.f32 %v10100_v49, 0.0 }
 0x537   : > { %18516 = vst [vmem:[#allocation25_spill] sm:$0xff] %v12514_v24  ;;  %v12520_v41 = vpop.f32.mrb[15].mxu0  ;;  %v12522_v3 = vpop.f32.mrb[13].mxu1  ;;  %3547 = vrot.lane.b32.xlu0 %v12514_v24, %s10300_s11  ;;  %3631 = vrot.lane.b32.xlu1 %v12496_v25, %s10301_s12  ;;  %18521 = vst [vmem:[#allocation30_spill] sm:$0xff] %v12656_v38  ;;  %v10101_v1 = vadd.f32 %v12516_v60, %v12646_v20  ;;  %v10107_v13 = vadd.f32 %v12518_v53, %v12640_v14 }
 0x538   : > { %18520 = vst [vmem:[#allocation29_spill] sm:$0xff] %v12594_v33  ;;  %18539 = vst [vmem:[#allocation48_spill] sm:$0xff] %v12787_v59  ;;  %v10102_v16 = vadd.f32 %v12520_v41, %v12646_v20  ;;  %v10108_v22 = vadd.f32 %v12522_v3, %v12640_v14 }
 0x539   : > { %v12670_v18 = vmax.f32 %v10101_v1, 0.0  ;;  %v12672_v37 = vmax.f32 %v10107_v13, 0.0 }
 0x53a   : > { %v12528_v2 = vpop.f32.mrb[14].mxu1  ;;  %v12805_v41 = vmax.f32 %v10102_v16, 0.0  ;;  %v12809_v14 = vmax.f32 %v10108_v22, 0.0  ;;  %v12820_v16 = vrot.slane %v3577_v9, %v10588_v40 }
 0x53b   : > { %v12530_v46 = vpop.f32.mrb[15].mxu1  ;;  %3633 = vrot.lane.b32.xlu0 %v12500_v54, %s10301_s12  ;;  %3647 = vrot.lane.b32.xlu1 %v12502_v55, %s10301_s12  ;;  %18522 = vst [vmem:[#allocation31_spill] sm:$0xff] %v12670_v18  ;;  %18523 = vst [vmem:[#allocation32_spill] sm:$0xff] %v12672_v37  ;;  %v10109_v11 = vadd.f32 %v12528_v2, %v12646_v20 }
 0x53c   : > { %18541 = vst [vmem:[#allocation50_spill] sm:$0xff] %v12805_v41  ;;  %v10110_v58 = vadd.f32 %v12530_v46, %v12646_v20  ;;  %18542 = vst [vmem:[#allocation51_spill] sm:$0xff] %v12809_v14 }
 0x53d   : > { %v12684_v62 = vmax.f32 %v10109_v11, 0.0 }
 0x53f   : > { %3649 = vrot.lane.b32.xlu0 %v12514_v24, %s10301_s12  ;;  %3733 = vrot.lane.b32.xlu1 %v12496_v25, %s10302_s13  ;;  %18524 = vst [vmem:[#allocation33_spill] sm:$0xff] %v12684_v62 }
 0x543   : > { %3735 = vrot.lane.b32.xlu0 %v12500_v54, %s10302_s13  ;;  %3749 = vrot.lane.b32.xlu1 %v12502_v55, %s10302_s13 }
 0x547   : > { %3751 = vrot.lane.b32.xlu0 %v12514_v24, %s10302_s13  ;;  %3835 = vrot.lane.b32.xlu1 %v12496_v25, %s10303_s16 }
 0x54b   : > { %3837 = vrot.lane.b32.xlu0 %v12500_v54, %s10303_s16  ;;  %3851 = vrot.lane.b32.xlu1 %v12502_v55, %s10303_s16 }
 0x54f   : > { %3853 = vrot.lane.b32.xlu0 %v12514_v24, %s10303_s16  ;;  %3953 = vrot.lane.b32.xlu1 %v12496_v25, %s10304_s19 }
 0x553   : > { %3955 = vrot.lane.b32.xlu0 %v12500_v54, %s10304_s19  ;;  %3969 = vrot.lane.b32.xlu1 %v12502_v55, %s10304_s19 }
 0x557   : > { %3971 = vrot.lane.b32.xlu0 %v12514_v24, %s10304_s19  ;;  %4055 = vrot.lane.b32.xlu1 %v12496_v25, %s10305_s24 }
 0x55b   : > { %4057 = vrot.lane.b32.xlu0 %v12500_v54, %s10305_s24  ;;  %4071 = vrot.lane.b32.xlu1 %v12502_v55, %s10305_s24 }
 0x55f   : > { %4073 = vrot.lane.b32.xlu0 %v12514_v24, %s10305_s24  ;;  %4157 = vrot.lane.b32.xlu1 %v12496_v25, %s10306_s29 }
 0x563   : > { %4159 = vrot.lane.b32.xlu0 %v12500_v54, %s10306_s29  ;;  %4173 = vrot.lane.b32.xlu1 %v12502_v55, %s10306_s29 }
 0x567   : > { %4175 = vrot.lane.b32.xlu0 %v12514_v24, %s10306_s29  ;;  %4259 = vrot.lane.b32.xlu1 %v12496_v25, %s10307_s15 }
 0x56b   : > { %4261 = vrot.lane.b32.xlu0 %v12500_v54, %s10307_s15  ;;  %3537 = vrot.lane.b32.xlu1 %v12580_v8, %s10300_s11 }
 0x56f   : > { %3539 = vrot.lane.b32.xlu0 %v12586_v7, %s10300_s11  ;;  %3553 = vrot.lane.b32.xlu1 %v12588_v10, %s10300_s11 }
 0x573   : > { %3555 = vrot.lane.b32.xlu0 %v12594_v33, %s10300_s11  ;;  %3639 = vrot.lane.b32.xlu1 %v12580_v8, %s10301_s12 }
 0x577   : > { %3641 = vrot.lane.b32.xlu0 %v12586_v7, %s10301_s12  ;;  %3655 = vrot.lane.b32.xlu1 %v12588_v10, %s10301_s12 }
 0x57b   : > { %3657 = vrot.lane.b32.xlu0 %v12594_v33, %s10301_s12  ;;  %3741 = vrot.lane.b32.xlu1 %v12580_v8, %s10302_s13 }
 0x57f   : > { %3743 = vrot.lane.b32.xlu0 %v12586_v7, %s10302_s13  ;;  %3757 = vrot.lane.b32.xlu1 %v12588_v10, %s10302_s13 }
 0x583   : > { %3759 = vrot.lane.b32.xlu0 %v12594_v33, %s10302_s13  ;;  %3843 = vrot.lane.b32.xlu1 %v12580_v8, %s10303_s16 }
 0x587   : > { %3845 = vrot.lane.b32.xlu0 %v12586_v7, %s10303_s16  ;;  %3859 = vrot.lane.b32.xlu1 %v12588_v10, %s10303_s16 }
 0x58b   : > { %3861 = vrot.lane.b32.xlu0 %v12594_v33, %s10303_s16  ;;  %3961 = vrot.lane.b32.xlu1 %v12580_v8, %s10304_s19 }
 0x58f   : > { %3963 = vrot.lane.b32.xlu0 %v12586_v7, %s10304_s19  ;;  %3977 = vrot.lane.b32.xlu1 %v12588_v10, %s10304_s19 }
 0x593   : > { %3979 = vrot.lane.b32.xlu0 %v12594_v33, %s10304_s19  ;;  %4063 = vrot.lane.b32.xlu1 %v12580_v8, %s10305_s24 }
 0x597   : > { %4065 = vrot.lane.b32.xlu0 %v12586_v7, %s10305_s24  ;;  %4079 = vrot.lane.b32.xlu1 %v12588_v10, %s10305_s24 }
 0x59b   : > { %4081 = vrot.lane.b32.xlu0 %v12594_v33, %s10305_s24  ;;  %4165 = vrot.lane.b32.xlu1 %v12580_v8, %s10306_s29 }
 0x59f   : > { %4167 = vrot.lane.b32.xlu0 %v12586_v7, %s10306_s29  ;;  %4181 = vrot.lane.b32.xlu1 %v12588_v10, %s10306_s29 }
 0x5a1   : > { %v12650_v44 = vpop.permute.xlu1 %3529 }
 0x5a3   : > { %4183 = vrot.lane.b32.xlu0 %v12594_v33, %s10306_s29  ;;  %4267 = vrot.lane.b32.xlu1 %v12580_v8, %s10307_s15 }
 0x5a5   : > { %v12662_v29 = vpop.permute.xlu0 %3531  ;;  %v12664_v28 = vpop.permute.xlu1 %3545 }
 0x5a7   : > { %4269 = vrot.lane.b32.xlu0 %v12586_v7, %s10307_s15  ;;  %3533 = vrot.lane.b32.xlu1 %v12656_v38, %s10300_s11 }
 0x5a9   : > { %v12676_v21 = vpop.permute.xlu0 %3547  ;;  %v12678_v45 = vpop.permute.xlu1 %3631 }
 0x5ab   : > { %3535 = vrot.lane.b32.xlu0 %v12670_v18, %s10300_s11  ;;  %3549 = vrot.lane.b32.xlu1 %v12672_v37, %s10300_s11 }
 0x5ad   : > { %v12686_v52 = vpop.permute.xlu0 %3633  ;;  %v12688_v12 = vpop.permute.xlu1 %3647 }
 0x5af   : > { %3551 = vrot.lane.b32.xlu0 %v12684_v62, %s10300_s11  ;;  %3635 = vrot.lane.b32.xlu1 %v12656_v38, %s10301_s12 }
 0x5b1   : > { %v12694_v15 = vpop.permute.xlu0 %3649  ;;  %v12696_v36 = vpop.permute.xlu1 %3733 }
 0x5b3   : > { %3637 = vrot.lane.b32.xlu0 %v12670_v18, %s10301_s12  ;;  %3651 = vrot.lane.b32.xlu1 %v12672_v37, %s10301_s12 }
 0x5b5   : > { %v12702_v30 = vpop.permute.xlu0 %3735  ;;  %v12704_v4 = vpop.permute.xlu1 %3749 }
 0x5b7   : > { %3653 = vrot.lane.b32.xlu0 %v12684_v62, %s10301_s12  ;;  %3737 = vrot.lane.b32.xlu1 %v12656_v38, %s10302_s13 }
 0x5b9   : > { %v12710_v17 = vpop.permute.xlu0 %3751  ;;  %v12712_v60 = vpop.permute.xlu1 %3835 }
 0x5bb   : > { %3739 = vrot.lane.b32.xlu0 %v12670_v18, %s10302_s13  ;;  %3753 = vrot.lane.b32.xlu1 %v12672_v37, %s10302_s13 }
 0x5bd   : > { %v12718_v53 = vpop.permute.xlu0 %3837  ;;  %v12720_v2 = vpop.permute.xlu1 %3851 }
 0x5bf   : > { %3755 = vrot.lane.b32.xlu0 %v12684_v62, %s10302_s13  ;;  %3839 = vrot.lane.b32.xlu1 %v12656_v38, %s10303_s16 }
 0x5c1   : > { %v12726_v51 = vpop.permute.xlu0 %3853  ;;  %v12728_v34 = vpop.permute.xlu1 %3953 }
 0x5c2   : > { %18525 = vst [vmem:[#allocation34_spill] sm:$0xff] %v12726_v51  ;;  %18526 = vst [vmem:[#allocation35_spill] sm:$0xff] %v12728_v34  ;;  %v4519_v34 = vld [vmem:[%s18103_s5 + $0x10] sm:$0xff] }
 0x5c3   : > { %3841 = vrot.lane.b32.xlu0 %v12670_v18, %s10303_s16  ;;  %3855 = vrot.lane.b32.xlu1 %v12672_v37, %s10303_s16 }
 0x5c5   : > { %v12734_v43 = vpop.permute.xlu0 %3955  ;;  %v12736_v23 = vpop.permute.xlu1 %3969 }
 0x5c6   : > { %18527 = vst [vmem:[#allocation36_spill] sm:$0xff] %v12734_v43  ;;  %18528 = vst [vmem:[#allocation37_spill] sm:$0xff] %v12736_v23  ;;  %v4517_v23 = vld [vmem:[%s18103_s5] sm:$0xff]  ;;  %v4518_v43 = vld [vmem:[%s18103_s5 + $0x8] sm:$0xff] }
 0x5c7   : > { %3857 = vrot.lane.b32.xlu0 %v12684_v62, %s10303_s16  ;;  %3957 = vrot.lane.b32.xlu1 %v12656_v38, %s10304_s19 }
 0x5c9   : > { %v12742_v5 = vpop.permute.xlu0 %3971  ;;  %v12744_v1 = vpop.permute.xlu1 %4055 }
 0x5ca   : > { %18529 = vst [vmem:[#allocation38_spill] sm:$0xff] %v12742_v5  ;;  %18530 = vst [vmem:[#allocation39_spill] sm:$0xff] %v12744_v1 }
 0x5cb   : > { %3959 = vrot.lane.b32.xlu0 %v12670_v18, %s10304_s19  ;;  %3973 = vrot.lane.b32.xlu1 %v12672_v37, %s10304_s19 }
 0x5cd   : > { %v12750_v13 = vpop.permute.xlu0 %4057  ;;  %v12752_v11 = vpop.permute.xlu1 %4071 }
 0x5ce   : > { %18531 = vst [vmem:[#allocation40_spill] sm:$0xff] %v12750_v13  ;;  %18532 = vst [vmem:[#allocation41_spill] sm:$0xff] %v12752_v11 }
 0x5cf   : > { %3975 = vrot.lane.b32.xlu0 %v12684_v62, %s10304_s19  ;;  %4059 = vrot.lane.b32.xlu1 %v12656_v38, %s10305_s24 }
 0x5d1   : > { %v12758_v42 = vpop.permute.xlu0 %4073  ;;  %v12760_v6 = vpop.permute.xlu1 %4157 }
 0x5d2   : > { %18533 = vst [vmem:[#allocation42_spill] sm:$0xff] %v12758_v42  ;;  %18534 = vst [vmem:[#allocation43_spill] sm:$0xff] %v12760_v6 }
 0x5d3   : > { %4061 = vrot.lane.b32.xlu0 %v12670_v18, %s10305_s24  ;;  %4075 = vrot.lane.b32.xlu1 %v12672_v37, %s10305_s24 }
 0x5d5   : > { %v12766_v61 = vpop.permute.xlu0 %4159  ;;  %v12768_v63 = vpop.permute.xlu1 %4173 }
 0x5d6   : > { %18535 = vst [vmem:[#allocation44_spill] sm:$0xff] %v12766_v61  ;;  %18536 = vst [vmem:[#allocation45_spill] sm:$0xff] %v12768_v63  ;;  %v12840_v61 = vrot.slane %v3577_v9, %v10576_v35 }
 0x5d7   : > { %4077 = vrot.lane.b32.xlu0 %v12684_v62, %s10305_s24  ;;  %4161 = vrot.lane.b32.xlu1 %v12656_v38, %s10306_s29 }
 0x5d9   : > { %v12776_v57 = vpop.permute.xlu0 %4175  ;;  %v12778_v48 = vpop.permute.xlu1 %4259 }
 0x5da   : > { %18537 = vst [vmem:[#allocation46_spill] sm:$0xff] %v12776_v57  ;;  %18538 = vst [vmem:[#allocation47_spill] sm:$0xff] %v12778_v48 }
 0x5db   : > { %4163 = vrot.lane.b32.xlu0 %v12670_v18, %s10306_s29  ;;  %4177 = vrot.lane.b32.xlu1 %v12672_v37, %s10306_s29 }
 0x5dd   : > { %v12791_v19 = vpop.permute.xlu0 %4261  ;;  %v3538_v56 = vpop.permute.xlu1 %3537 }
 0x5de   : > { %18540 = vst [vmem:[#allocation49_spill] sm:$0xff] %v12791_v19  ;;  %v3569_v49 = vsel %vm380_vm0, %v12650_v44, %v3538_v56  ;;  %v12817_v19 = vrot.slane %v3577_v9, %v10586_v39 }
 0x5df   : > { %4179 = vrot.lane.b32.xlu0 %v12684_v62, %s10306_s29  ;;  %3541 = vrot.lane.b32.xlu1 %v12787_v59, %s10300_s11  ;;  %v3600_v31 = vmul.f32 %v12796_v47, %v3569_v49 }
 0x5e1   : > { %v3540_v32 = vpop.permute.xlu0 %3539  ;;  %v3554_v3 = vpop.permute.xlu1 %3553 }
 0x5e2   : > { %v3570_v0 = vsel %vm380_vm0, %v12662_v29, %v3540_v32  ;;  %v3561_v22 = vsel %vm380_vm0, %v12664_v28, %v3554_v3  ;;  %v3573_v46 = vsel %vm380_vm0, %v3554_v3, %v12650_v44  ;;  %v3566_v20 = vsel %vm380_vm0, %v3540_v32, %v12676_v21 }
 0x5e3   : > { %v3604_v50 = vmul.f32 %v12796_v47, %v3570_v0  ;;  %3543 = vrot.lane.b32.xlu0 %v12805_v41, %s10300_s11  ;;  %3557 = vrot.lane.b32.xlu1 %v12809_v14, %s10300_s11  ;;  %v12832_v0 = vmax.f32 %v10110_v58, 0.0  ;;  %v3565_v44 = vsel %vm380_vm0, %v3538_v56, %v12664_v28  ;;  %v3599_v32 = vmul.f32 %v12817_v19, %v3573_v46 }
 0x5e4   : > { %v3602_v63 = vmul.f32 %v12820_v16, %v3561_v22  ;;  %v3605_v56 = vmul.f32 %v12840_v61, %v3566_v20  ;;  %v3601_v22 = vmul.f32 %v12840_v61, %v3565_v44 }
 0x5e5   : > { %18543 = vst [vmem:[#allocation52_spill] sm:$0xff] %v12832_v0  ;;  %v3556_v49 = vpop.permute.xlu0 %3555  ;;  %v12837_v48 = vpop.permute.xlu1 %3639  ;;  %v9503_v57 = vpack.c.bf16 %v3604_v50, %v3600_v31 }
 0x5e6   : > { %v3562_v58 = vsel %vm380_vm0, %v12676_v21, %v3556_v49  ;;  %v3574_v3 = vsel %vm380_vm0, %v3556_v49, %v12662_v29  ;;  %v9577_v46 = vpack.c.bf16 %v3605_v56, %v3601_v22 }
 0x5e7   : > { %v3603_v50 = vmul.f32 %v12817_v19, %v3574_v3  ;;  %v3606_v31 = vmul.f32 %v12820_v16, %v3562_v58  ;;  %3559 = vrot.lane.b32.xlu0 %v12832_v0, %s10300_s11  ;;  %3643 = vrot.lane.b32.xlu1 %v12787_v59, %s10301_s12 }
 0x5e8   : > { %9504 = vmatprep.subr.bf16.mxu0 %v9503_v57 }
 0x5e9   : > { %v9505_v9 = vpack.c.bf16 %v3603_v50, %v3599_v32  ;;  %v12860_v28 = vpop.permute.xlu0 %3641  ;;  %v12862_v29 = vpop.permute.xlu1 %3655  ;;  %v9575_v21 = vpack.c.bf16 %v3606_v31, %v3602_v63 }
 0x5eb   : > { %3645 = vrot.lane.b32.xlu0 %v12805_v41, %s10301_s12  ;;  %3659 = vrot.lane.b32.xlu1 %v12809_v14, %s10301_s12 }
 0x5ec   : > { %9506 = vmatpush1.bf16.msra.mxu0 %v9505_v9  ;;  %9576 = vmatprep.subr.bf16.mxu1 %v9575_v21 }
 0x5ed   : > { %v12869_v20 = vpop.permute.xlu0 %3657  ;;  %v12871_v57 = vpop.permute.xlu1 %3741  ;;  %9578 = vmatpush1.bf16.msra.mxu1 %v9577_v46 }
 0x5ef   : > { %3661 = vrot.lane.b32.xlu0 %v12832_v0, %s10301_s12  ;;  %3745 = vrot.lane.b32.xlu1 %v12787_v59, %s10302_s13 }
 0x5f1   : > { %v12877_v63 = vpop.permute.xlu0 %3743  ;;  %v12879_v49 = vpop.permute.xlu1 %3757 }
 0x5f3   : > { %3747 = vrot.lane.b32.xlu0 %v12805_v41, %s10302_s13  ;;  %3761 = vrot.lane.b32.xlu1 %v12809_v14, %s10302_s13 }
 0x5f5   : > { %v12885_v44 = vpop.permute.xlu0 %3759  ;;  %v12887_v58 = vpop.permute.xlu1 %3843 }
 0x5f7   : > { %3763 = vrot.lane.b32.xlu0 %v12832_v0, %s10302_s13  ;;  %3847 = vrot.lane.b32.xlu1 %v12787_v59, %s10303_s16 }
 0x5f9   : > { %v12893_v3 = vpop.permute.xlu0 %3845  ;;  %v12895_v32 = vpop.permute.xlu1 %3859 }
 0x5fa   : > { %18544 = vst [vmem:[#allocation53_spill] sm:$0xff] %v12895_v32 }
 0x5fb   : > { %3849 = vrot.lane.b32.xlu0 %v12805_v41, %s10303_s16  ;;  %3863 = vrot.lane.b32.xlu1 %v12809_v14, %s10303_s16 }
 0x5fd   : > { %v12901_v50 = vpop.permute.xlu0 %3861  ;;  %v12903_v31 = vpop.permute.xlu1 %3961 }
 0x5fe   : > { %18545 = vst [vmem:[#allocation54_spill] sm:$0xff] %v12901_v50  ;;  %18546 = vst [vmem:[#allocation55_spill] sm:$0xff] %v12903_v31  ;;  %v4520_v31 = vld [vmem:[%s18103_s5 + $0x18] sm:$0xff] }
 0x5ff   : > { %3865 = vrot.lane.b32.xlu0 %v12832_v0, %s10303_s16  ;;  %3965 = vrot.lane.b32.xlu1 %v12787_v59, %s10304_s19 }
 0x601   : > { %v12909_v56 = vpop.permute.xlu0 %3963  ;;  %v12911_v9 = vpop.permute.xlu1 %3977 }
 0x602   : > { %18547 = vst [vmem:[#allocation56_spill] sm:$0xff] %v12909_v56  ;;  %18548 = vst [vmem:[#allocation57_spill] sm:$0xff] %v12911_v9 }
 0x603   : > { %3967 = vrot.lane.b32.xlu0 %v12805_v41, %s10304_s19  ;;  %3981 = vrot.lane.b32.xlu1 %v12809_v14, %s10304_s19 }
 0x605   : > { %v12917_v21 = vpop.permute.xlu0 %3979  ;;  %v12919_v22 = vpop.permute.xlu1 %4063 }
 0x606   : > { %18549 = vst [vmem:[#allocation58_spill] sm:$0xff] %v12917_v21  ;;  %18550 = vst [vmem:[#allocation59_spill] sm:$0xff] %v12919_v22 }
 0x607   : > { %3983 = vrot.lane.b32.xlu0 %v12832_v0, %s10304_s19  ;;  %4067 = vrot.lane.b32.xlu1 %v12787_v59, %s10305_s24 }
 0x609   : > { %v12925_v46 = vpop.permute.xlu0 %4065  ;;  %v12927_v6 = vpop.permute.xlu1 %4079 }
 0x60a   : > { %18551 = vst [vmem:[#allocation60_spill] sm:$0xff] %v12925_v46  ;;  %18552 = vst [vmem:[#allocation61_spill] sm:$0xff] %v12927_v6 }
 0x60b   : > { %4069 = vrot.lane.b32.xlu0 %v12805_v41, %s10305_s24  ;;  %4083 = vrot.lane.b32.xlu1 %v12809_v14, %s10305_s24 }
 0x60d   : > { %v12933_v25 = vpop.permute.xlu0 %4081  ;;  %v12935_v54 = vpop.permute.xlu1 %4165 }
 0x60e   : > { %18553 = vst [vmem:[#allocation62_spill] sm:$0xff] %v12933_v25  ;;  %18554 = vst [vmem:[#allocation63_spill] sm:$0xff] %v12935_v54 }
 0x60f   : > { %4085 = vrot.lane.b32.xlu0 %v12832_v0, %s10305_s24  ;;  %4169 = vrot.lane.b32.xlu1 %v12787_v59, %s10306_s29 }
 0x611   : > { %v12941_v42 = vpop.permute.xlu0 %4167  ;;  %v12943_v13 = vpop.permute.xlu1 %4181 }
 0x612   : > { %18555 = vst [vmem:[#allocation64_spill] sm:$0xff] %v12941_v42  ;;  %18556 = vst [vmem:[#allocation65_spill] sm:$0xff] %v12943_v13  ;;  %v4506_v13 = vld [vmem:[%s18102_s4 + $0x8] sm:$0xff] }
 0x613   : > { %4171 = vrot.lane.b32.xlu0 %v12805_v41, %s10306_s29  ;;  %4185 = vrot.lane.b32.xlu1 %v12809_v14, %s10306_s29 }
 0x614   : > { %4617 = vmatprep.mubr.f32.mxu0 %v4506_v13  ;;  %4795 = vmatprep.mubr.f32.mxu1 %v4506_v13 }
 0x615   : > { %v12949_v6 = vpop.permute.xlu0 %4183  ;;  %v12951_v25 = vpop.permute.xlu1 %4267 }
 0x616   : > { %18557 = vst [vmem:[#allocation66_spill] sm:$0xff] %v12949_v6  ;;  %18558 = vst [vmem:[#allocation67_spill] sm:$0xff] %v12951_v25 }
 0x617   : > { %4187 = vrot.lane.b32.xlu0 %v12832_v0, %s10306_s29  ;;  %4275 = vrot.lane.b32.xlu1 %v12502_v55, %s10307_s15 }
 0x619   : > { %v12957_v54 = vpop.permute.xlu0 %4269  ;;  %v12959_v42 = vpop.permute.xlu1 %3533 }
 0x61a   : > { %18559 = vst [vmem:[#allocation68_spill] sm:$0xff] %v12957_v54 }
 0x61b   : > { %4277 = vrot.lane.b32.xlu0 %v12514_v24, %s10307_s15  ;;  %4283 = vrot.lane.b32.xlu1 %v12588_v10, %s10307_s15 }
 0x61d   : > { %v12968_v25 = vpop.permute.xlu0 %3535  ;;  %v12970_v6 = vpop.permute.xlu1 %3549 }
 0x61f   : > { %4285 = vrot.lane.b32.xlu0 %v12594_v33, %s10307_s15  ;;  %4263 = vrot.lane.b32.xlu1 %v12656_v38, %s10307_s15 }
 0x621   : > { %v12976_v54 = vpop.permute.xlu0 %3551  ;;  %v12978_v46 = vpop.permute.xlu1 %3635 }
 0x623   : > { %4265 = vrot.lane.b32.xlu0 %v12670_v18, %s10307_s15  ;;  %4271 = vrot.lane.b32.xlu1 %v12787_v59, %s10307_s15  ;;  %v3668_v59 = vsel %vm523_vm1, %v12860_v28, %v12694_v15 }
 0x625   : > { %v12984_v13 = vpop.permute.xlu0 %3637  ;;  %v12986_v11 = vpop.permute.xlu1 %3651 }
 0x627   : > { %4273 = vrot.lane.b32.xlu0 %v12805_v41, %s10307_s15  ;;  %4279 = vrot.lane.b32.xlu1 %v12672_v37, %s10307_s15 }
 0x629   : > { %v12992_v1 = vpop.permute.xlu0 %3653  ;;  %v12994_v22 = vpop.permute.xlu1 %3737 }
 0x62b   : > { %4281 = vrot.lane.b32.xlu0 %v12684_v62, %s10307_s15  ;;  %4287 = vrot.lane.b32.xlu1 %v12809_v14, %s10307_s15 }
 0x62d   : > { %v13000_v9 = vpop.permute.xlu0 %3739  ;;  %v13002_v21 = vpop.permute.xlu1 %3753 }
 0x62e   : > { %18560 = vst [vmem:[#allocation69_spill] sm:$0xff] %v13000_v9  ;;  %18561 = vst [vmem:[#allocation70_spill] sm:$0xff] %v13002_v21 }
 0x62f   : > { %4289 = vrot.lane.b32.xlu0 %v12832_v0, %s10307_s15  ;;  %4523 = vperm.xlu1 %10267, %v4517_v23  }
 0x631   : > { %v13012_v56 = vpop.permute.xlu0 %3755  ;;  %v13014_v5 = vpop.permute.xlu1 %3839 }
 0x632   : > { %18562 = vst [vmem:[#allocation71_spill] sm:$0xff] %v13012_v56  ;;  %18563 = vst [vmem:[#allocation72_spill] sm:$0xff] %v13014_v5 }
 0x633   : > { %4528 = vperm.xlu0 %10266, %v4518_v43   ;;  %4533 = vperm.xlu1 %10267, %v4519_v34  }
 0x635   : > { %v13022_v50 = vpop.permute.xlu0 %3841  ;;  %v13024_v23 = vpop.permute.xlu1 %3855 }
 0x636   : > { %18564 = vst [vmem:[#allocation73_spill] sm:$0xff] %v13024_v23 }
 0x637   : > { %4538 = vperm.xlu0 %10266, %v4520_v31   ;;  %v9086_v31 = vld [vmem:[%s18099_s1 + $0x1] ss:$8 sm:$0xf] }
 0x638   : > { %v13066_v8 = vrot.slane %v9086_v31, %v10561_v27  ;;  %v13069_v7 = vrot.slane %v9086_v31, %v10576_v35  ;;  %v13079_v23 = vrot.slane %v9086_v31, %v10586_v39 }
 0x639   : > { %v13026_v21 = vpop.permute.xlu0 %3857  ;;  %v13028_v56 = vpop.permute.xlu1 %3957 }
 0x63a   : > { %18565 = vst [vmem:[#allocation74_spill] sm:$0xff] %v13028_v56  ;;  %v9087_v56 = vld [vmem:[%s18099_s1 + $0x2] ss:$8 sm:$0xf] }
 0x63b   : > { %v13088_v38 = vrot.slane %v9087_v56, %v10576_v35  ;;  %v13091_v18 = vrot.slane %v9087_v56, %v10586_v39 }
 0x63d   : > { %v13030_v5 = vpop.permute.xlu0 %3959  ;;  %v13032_v9 = vpop.permute.xlu1 %3973 }
 0x63e   : > { %18566 = vst [vmem:[#allocation75_spill] sm:$0xff] %v13030_v5  ;;  %18567 = vst [vmem:[#allocation76_spill] sm:$0xff] %v13032_v9  ;;  %v9088_v9 = vld [vmem:[%s18099_s1 + $0x3] ss:$8 sm:$0xf]  ;;  %v13082_v5 = vrot.slane %v9086_v31, %v10588_v40 }
 0x63f   : > { %v13100_v37 = vrot.slane %v9088_v9, %v10576_v35  ;;  %v9090_v31 = vld [vmem:[%s18099_s1 + $0x6] ss:$8 sm:$0xf]  ;;  %v13106_v62 = vrot.slane %v9088_v9, %v10586_v39  ;;  %v13109_v14 = vrot.slane %v9088_v9, %v10588_v40 }
 0x640   : > { %v13143_v33 = vrot.slane %v9090_v31, %v10586_v39 }
 0x641   : > { %v13034_v32 = vpop.permute.xlu0 %3975  ;;  %v13036_v34 = vpop.permute.xlu1 %4059 }
 0x642   : > { %18568 = vst [vmem:[#allocation77_spill] sm:$0xff] %v13034_v32  ;;  %18569 = vst [vmem:[#allocation78_spill] sm:$0xff] %v13036_v34  ;;  %v13097_v32 = vrot.slane %v9088_v9, %v10561_v27  ;;  %v3672_v9 = vsel %vm523_vm1, %v12686_v52, %v12860_v28  ;;  %v13146_v28 = vrot.slane %v9090_v31, %v10561_v27 }
 0x643   : > { %18580 = vst [vmem:[#allocation89_spill] sm:$0xff] %v13143_v33  ;;  %v13170_v33 = vmul.f32 %v13069_v7, %v3668_v59  ;;  %v3773_v59 = vsel %vm667_vm2, %v12696_v36, %v12871_v57 }
 0x644   : > { %18581 = vst [vmem:[#allocation90_spill] sm:$0xff] %v13146_v28  ;;  %v13164_v28 = vrot.slane %v9090_v31, %v10588_v40 }
 0x645   : > { %v13038_v43 = vpop.permute.xlu0 %4061  ;;  %v13040_v51 = vpop.permute.xlu1 %4075 }
 0x646   : > { %18570 = vst [vmem:[#allocation79_spill] sm:$0xff] %v13038_v43  ;;  %18571 = vst [vmem:[#allocation80_spill] sm:$0xff] %v13040_v51  ;;  %v13094_v51 = vrot.slane %v9087_v56, %v10588_v40 }
 0x649   : > { %v13053_v34 = vpop.permute.xlu0 %4077  ;;  %v13055_v43 = vpop.permute.xlu1 %4161 }
 0x64a   : > { %18572 = vst [vmem:[#allocation81_spill] sm:$0xff] %v13053_v34  ;;  %18573 = vst [vmem:[#allocation82_spill] sm:$0xff] %v13055_v43  ;;  %v9089_v43 = vld [vmem:[%s18099_s1 + $0x5] ss:$8 sm:$0xf]  ;;  %v13085_v34 = vrot.slane %v9087_v56, %v10561_v27 }
 0x64b   : > { %v13112_v0 = vrot.slane %v9089_v43, %v10586_v39  ;;  %v13115_v56 = vrot.slane %v9089_v43, %v10561_v27  ;;  %v13130_v41 = vrot.slane %v9089_v43, %v10576_v35  ;;  %v13133_v10 = vrot.slane %v9089_v43, %v10588_v40 }
 0x64c   : > { %v3667_v43 = vsel %vm523_vm1, %v12837_v48, %v12688_v12 }
 0x64d   : > { %18574 = vst [vmem:[#allocation83_spill] sm:$0xff] %v13112_v0  ;;  %18575 = vst [vmem:[#allocation84_spill] sm:$0xff] %v13115_v56  ;;  %v13117_v55 = vpop.permute.xlu0 %4163  ;;  %v13119_v24 = vpop.permute.xlu1 %4177  ;;  %v3675_v56 = vsel %vm523_vm1, %v12862_v29, %v12678_v45 }
 0x64e   : > { %18576 = vst [vmem:[#allocation85_spill] sm:$0xff] %v13117_v55  ;;  %18577 = vst [vmem:[#allocation86_spill] sm:$0xff] %v13119_v24  ;;  %v9091_v55 = vld [vmem:[%s18099_s1 + $0x7] ss:$8 sm:$0xf]  ;;  %v3676_v24 = vsel %vm523_vm1, %v12869_v20, %v12686_v52  ;;  %v3664_v52 = vsel %vm523_vm1, %v12694_v15, %v12869_v20  ;;  %v3663_v20 = vsel %vm523_vm1, %v12688_v12, %v12862_v29 }
 0x64f   : > { %18578 = vst [vmem:[#allocation87_spill] sm:$0xff] %v13130_v41  ;;  %18579 = vst [vmem:[#allocation88_spill] sm:$0xff] %v13133_v10  ;;  %v13149_v41 = vrot.slane %v9090_v31, %v10576_v35  ;;  %v3671_v10 = vsel %vm523_vm1, %v12678_v45, %v12837_v48  ;;  %v13177_v48 = vrot.slane %v9091_v55, %v10586_v39 }
 0x650   : > { %v13186_v31 = vmul.f32 %v13079_v23, %v3676_v24  ;;  %v13193_v45 = vrot.slane %v9091_v55, %v10561_v27  ;;  %v3769_v24 = vsel %vm667_vm2, %v12871_v57, %v12704_v4  ;;  %v13209_v12 = vmul.f32 %v13079_v23, %v3675_v56 }
 0x651   : > { %18582 = vst [vmem:[#allocation91_spill] sm:$0xff] %v13149_v41  ;;  %v13167_v41 = vmul.f32 %v13066_v8, %v3672_v9  ;;  %18583 = vst [vmem:[#allocation92_spill] sm:$0xff] %v13177_v48  ;;  %v13179_v0 = vpop.permute.xlu0 %4179  ;;  %v3542_v15 = vpop.permute.xlu1 %3541  ;;  %v13196_v9 = vmul.f32 %v13066_v8, %v3671_v10  ;;  %v13202_v48 = vmul.f32 %v13082_v5, %v3664_v52 }
 0x652   : > { %18584 = vst [vmem:[#allocation93_spill] sm:$0xff] %v13179_v0  ;;  %18585 = vst [vmem:[#allocation94_spill] sm:$0xff] %v13193_v45  ;;  %v13199_v0 = vmul.f32 %v13069_v7, %v3667_v43  ;;  %v13212_v29 = vrot.slane %v9091_v55, %v10576_v35  ;;  %v13215_v10 = vrot.slane %v9091_v55, %v10588_v40 }
 0x653   : > { %v3571_v43 = vsel %vm380_vm0, %v12959_v42, %v3542_v15  ;;  %v13223_v45 = vmul.f32 %v13082_v5, %v3663_v20  ;;  %v13226_v57 = vmul.f32 %v13085_v34, %v3773_v59  ;;  %v9511_v35 = vpack.c.bf16 %v13167_v41, %v13196_v9 }
 0x654   : > { %18586 = vst [vmem:[#allocation95_spill] sm:$0xff] %v13212_v29  ;;  %18587 = vst [vmem:[#allocation96_spill] sm:$0xff] %v13215_v10  ;;  %v13233_v10 = vmul.f32 %v13088_v38, %v3769_v24  ;;  %v3770_v52 = vsel %vm667_vm2, %v12877_v63, %v12710_v17  ;;  %v3608_v29 = vmul.f32 %v12796_v47, %v3571_v43 }
 0x655   : > { %v3544_v56 = vpop.permute.xlu0 %3543  ;;  %v3558_v59 = vpop.permute.xlu1 %3557  ;;  %v9583_v24 = vpack.c.bf16 %v13202_v48, %v13223_v45  ;;  %v3774_v55 = vsel %vm667_vm2, %v12702_v30, %v12877_v63  ;;  %v3765_v40 = vsel %vm667_vm2, %v12704_v4, %v12879_v49  ;;  %v13264_v48 = vmul.f32 %v13088_v38, %v3770_v52 }
 0x656   : > { %v3572_v20 = vsel %vm380_vm0, %v12968_v25, %v3544_v56  ;;  %v3568_v41 = vsel %vm380_vm0, %v3544_v56, %v12976_v54  ;;  %v3563_v43 = vsel %vm380_vm0, %v12970_v6, %v3558_v59  ;;  %v3777_v63 = vsel %vm667_vm2, %v12879_v49, %v12696_v36 }
 0x657   : > { %v3612_v9 = vmul.f32 %v12796_v47, %v3572_v20  ;;  %v3575_v47 = vsel %vm380_vm0, %v3558_v59, %v12959_v42  ;;  %v3778_v4 = vsel %vm667_vm2, %v12885_v44, %v12702_v30  ;;  %v3567_v20 = vsel %vm380_vm0, %v3542_v15, %v12970_v6 }
 0x658   : > { %v3613_v42 = vmul.f32 %v12840_v61, %v3568_v41  ;;  %v3607_v59 = vmul.f32 %v12817_v19, %v3575_v47  ;;  %v3610_v30 = vmul.f32 %v12820_v16, %v3563_v43  ;;  %v13289_v6 = vmul.f32 %v13085_v34, %v3774_v55 }
 0x659   : > { %v3560_v45 = vpop.permute.xlu0 %3559  ;;  %v9507_v56 = vpack.c.bf16 %v3612_v9, %v3608_v29  ;;  %v3644_v49 = vpop.permute.xlu1 %3643  ;;  %v13292_v15 = vmul.f32 %v13091_v18, %v3777_v63  ;;  %v9593_v47 = vpack.c.bf16 %v13264_v48, %v13233_v10  ;;  %v3875_v63 = vsel %vm811_vm3, %v12712_v60, %v12887_v58 }
 0x65a   : > { %v3564_v52 = vsel %vm380_vm0, %v12976_v54, %v3560_v45  ;;  %v3576_v36 = vsel %vm380_vm0, %v3560_v45, %v12968_v25  ;;  %v13295_v54 = vmul.f32 %v13094_v51, %v3765_v40  ;;  %v3673_v25 = vsel %vm523_vm1, %v12978_v46, %v3644_v49 }
 0x65b   : > { %v3611_v29 = vmul.f32 %v12817_v19, %v3576_v36  ;;  %v3614_v9 = vmul.f32 %v12820_v16, %v3564_v52  ;;  %9508 = vmatprep.subr.bf16.mxu0 %v9507_v56  ;;  %v3766_v19 = vsel %vm667_vm2, %v12710_v17, %v12885_v44  ;;  %v3609_v16 = vmul.f32 %v12840_v61, %v3567_v20 }
 0x65c   : > { %v13308_v40 = vmul.f32 %v13091_v18, %v3778_v4  ;;  %v3710_v45 = vmul.f32 %v13066_v8, %v3673_v25  ;;  %v3810_v20 = vmul.f32 %v13094_v51, %v3766_v19 }
 0x65d   : > { %v9509_v41 = vpack.c.bf16 %v3611_v29, %v3607_v59  ;;  %v3646_v55 = vpop.permute.xlu0 %3645  ;;  %v9579_v43 = vpack.c.bf16 %v3614_v9, %v3610_v30  ;;  %v3660_v44 = vpop.permute.xlu1 %3659  ;;  %v9581_v61 = vpack.c.bf16 %v3613_v42, %v3609_v16  ;;  %v3871_v42 = vsel %vm811_vm3, %v12887_v58, %v12720_v2 }
 0x65e   : > { %v3674_v17 = vsel %vm523_vm1, %v12984_v13, %v3646_v55  ;;  %v3670_v56 = vsel %vm523_vm1, %v3646_v55, %v12992_v1  ;;  %v3665_v52 = vsel %vm523_vm1, %v12986_v11, %v3660_v44  ;;  %v3677_v36 = vsel %vm523_vm1, %v3660_v44, %v12978_v46  ;;  %v18590_v55 = vld [vmem:[#allocation34_spill] sm:$0xff] }
 0x65f   : > { %v3714_v4 = vmul.f32 %v13066_v8, %v3674_v17  ;;  %9510 = vmatpush1.bf16.msra.mxu0 %v9509_v41  ;;  %9580 = vmatprep.subr.bf16.mxu1 %v9579_v43  ;;  %v13334_v8 = vmul.f32 %v13097_v32, %v3875_v63  ;;  %v9519_v29 = vpack.c.bf16 %v13289_v6, %v13226_v57  ;;  %v18592_v63 = vld [vmem:[#allocation69_spill] sm:$0xff] }
 0x660   : > { %9512 = vmatprep.subr.bf16.mxu0 %v9511_v35  ;;  %9582 = vmatpush1.bf16.msra.mxu1 %v9581_v61  ;;  %v3669_v46 = vsel %vm523_vm1, %v3644_v49, %v12986_v11  ;;  %v3715_v35 = vmul.f32 %v13069_v7, %v3670_v56  ;;  %v3709_v19 = vmul.f32 %v13079_v23, %v3677_v36  ;;  %v18593_v61 = vld [vmem:[#allocation71_spill] sm:$0xff]  ;;  %v18594_v56 = vld [vmem:[#allocation70_spill] sm:$0xff] }
 0x661   : > { %v3662_v59 = vpop.permute.xlu0 %3661  ;;  %v9515_v30 = vpack.c.bf16 %v3714_v4, %v3710_v45  ;;  %9584 = vmatprep.subr.bf16.mxu1 %v9583_v24  ;;  %v3746_v25 = vpop.permute.xlu1 %3745  ;;  %v3712_v57 = vmul.f32 %v13082_v5, %v3665_v52  ;;  %v18588_v49 = vpack.c.bf16 %v13186_v31, %v13209_v12  ;;  %v13358_v16 = vmul.f32 %v13100_v37, %v3871_v42  ;;  %v18595_v52 = vld [vmem:[#allocation54_spill] sm:$0xff] }
 0x662   : > { %v3666_v9 = vsel %vm523_vm1, %v12992_v1, %v3662_v59  ;;  %v3678_v58 = vsel %vm523_vm1, %v3662_v59, %v12984_v13  ;;  %v9521_v1 = vpack.c.bf16 %v13308_v40, %v13292_v15  ;;  %v3775_v13 = vsel %vm667_vm2, %v12994_v22, %v3746_v25 }
 0x663   : > { %v3713_v6 = vmul.f32 %v13079_v23, %v3678_v58  ;;  %v3716_v11 = vmul.f32 %v13082_v5, %v3666_v9  ;;  %9514 = vmatpush1.bf16.msra.mxu0 %v18588_v49  ;;  %v9591_v24 = vpack.c.bf16 %v3810_v20, %v13295_v54  ;;  %v3876_v5 = vsel %vm811_vm3, %v12718_v53, %v12893_v3  ;;  %v18591_v54 = vld [vmem:[#allocation53_spill] sm:$0xff] }
 0x664   : > { %9516 = vmatprep.subr.bf16.mxu0 %v9515_v30  ;;  %v3711_v23 = vmul.f32 %v13069_v7, %v3669_v46  ;;  %v18589_v12 = vpack.c.bf16 %v13170_v33, %v13199_v0  ;;  %v3872_v43 = vsel %vm811_vm3, %v12893_v3, %v18590_v55  ;;  %v3867_v40 = vsel %vm811_vm3, %v12720_v2, %v18591_v54 }
 0x665   : > { %v9517_v31 = vpack.c.bf16 %v3713_v6, %v3709_v19  ;;  %v3748_v15 = vpop.permute.xlu0 %3747  ;;  %v9587_v41 = vpack.c.bf16 %v3716_v11, %v3712_v57  ;;  %v3879_v7 = vsel %vm811_vm3, %v18591_v54, %v12712_v60  ;;  %v3762_v0 = vpop.permute.xlu1 %3761  ;;  %v3812_v44 = vmul.f32 %v13085_v34, %v3775_v13  ;;  %v18596_v11 = vld [vmem:[#allocation72_spill] sm:$0xff] }
 0x666   : > { %9586 = vmatpush1.bf16.msra.mxu1 %v18589_v12  ;;  %v3776_v33 = vsel %vm667_vm2, %v18592_v63, %v3748_v15  ;;  %v9589_v17 = vpack.c.bf16 %v3715_v35, %v3711_v23  ;;  %v3772_v3 = vsel %vm667_vm2, %v3748_v15, %v18593_v61  ;;  %v3910_v2 = vmul.f32 %v13097_v32, %v3876_v5  ;;  %v18597_v23 = vld [vmem:[#allocation55_spill] sm:$0xff] }
 0x667   : > { %v3816_v45 = vmul.f32 %v13085_v34, %v3776_v33  ;;  %9518 = vmatpush1.bf16.msra.mxu0 %v9517_v31  ;;  %v3767_v60 = vsel %vm667_vm2, %v18594_v56, %v3762_v0  ;;  %v3779_v4 = vsel %vm667_vm2, %v3762_v0, %v12994_v22  ;;  %9588 = vmatprep.subr.bf16.mxu1 %v9587_v41  ;;  %v18598_v31 = vld [vmem:[#allocation35_spill] sm:$0xff] }
 0x668   : > { %9520 = vmatprep.subr.bf16.mxu0 %v9519_v29  ;;  %v13400_v20 = vmul.f32 %v13100_v37, %v3872_v43  ;;  %v3868_v34 = vsel %vm811_vm3, %v18590_v55, %v18595_v52  ;;  %v3880_v36 = vsel %vm811_vm3, %v18595_v52, %v12718_v53  ;;  %v3771_v22 = vsel %vm667_vm2, %v3746_v25, %v18594_v56 }
 0x669   : > { %v3764_v42 = vpop.permute.xlu0 %3763  ;;  %v9523_v59 = vpack.c.bf16 %v3816_v45, %v3812_v44  ;;  %v3817_v30 = vmul.f32 %v13088_v38, %v3772_v3  ;;  %v3848_v35 = vpop.permute.xlu1 %3847  ;;  %v3811_v53 = vmul.f32 %v13091_v18, %v3779_v4  ;;  %v3814_v9 = vmul.f32 %v13094_v51, %v3767_v60 }
 0x66a   : > { %9590 = vmatpush1.bf16.msra.mxu1 %v9589_v17  ;;  %v3768_v29 = vsel %vm667_vm2, %v18593_v61, %v3764_v42  ;;  %v3780_v46 = vsel %vm667_vm2, %v3764_v42, %v18592_v63  ;;  %v3905_v19 = vmul.f32 %v13106_v62, %v3879_v7  ;;  %v3908_v57 = vmul.f32 %v13109_v14, %v3867_v40  ;;  %v18600_v7 = vld [vmem:[#allocation38_spill] sm:$0xff]  ;;  %v18601_v63 = vld [vmem:[#allocation56_spill] sm:$0xff]  ;;  %v18604_v42 = vld [vmem:[#allocation83_spill] sm:$0xff] }
 0x66b   : > { %9592 = vmatprep.subr.bf16.mxu1 %v9591_v24  ;;  %v3815_v58 = vmul.f32 %v13091_v18, %v3780_v46  ;;  %v3818_v25 = vmul.f32 %v13094_v51, %v3768_v29  ;;  %9522 = vmatpush1.bf16.msra.mxu0 %v9521_v1  ;;  %v3912_v6 = vmul.f32 %v13109_v14, %v3868_v34  ;;  %v13467_v17 = vld [vmem:[%s18099_s1 + $0x20] ss:$8 sm:$0xf] }
 0x66c   : > { %v3877_v49 = vsel %vm811_vm3, %v18596_v11, %v3848_v35  ;;  %9524 = vmatprep.subr.bf16.mxu0 %v9523_v59  ;;  %v3909_v13 = vmul.f32 %v13106_v62, %v3880_v36  ;;  %v3813_v24 = vmul.f32 %v13088_v38, %v3771_v22  ;;  %v9601_v1 = vpack.c.bf16 %v13400_v20, %v13358_v16  ;;  %v18599_v16 = vld [vmem:[#allocation73_spill] sm:$0xff] }
 0x66d   : > { %v9525_v5 = vpack.c.bf16 %v3815_v58, %v3811_v53  ;;  %v3850_v18 = vpop.permute.xlu0 %3849  ;;  %v9595_v51 = vpack.c.bf16 %v3818_v25, %v3814_v9  ;;  %v3993_v12 = vsel %vm979_vm4, %v18598_v31, %v18597_v23  ;;  %v3864_v38 = vpop.permute.xlu1 %3863  ;;  %v9527_v41 = vpack.c.bf16 %v3910_v2, %v13334_v8  ;;  %v18603_v36 = vld [vmem:[#allocation37_spill] sm:$0xff]  ;;  %v18606_v9 = vld [vmem:[#allocation84_spill] sm:$0xff] }
 0x66e   : > { %9594 = vmatpush1.bf16.msra.mxu1 %v9593_v47  ;;  %v3878_v15 = vsel %vm811_vm3, %v13022_v50, %v3850_v18  ;;  %v9597_v55 = vpack.c.bf16 %v3817_v30, %v3813_v24  ;;  %v3914_v10 = vmul.f32 %v13097_v32, %v3877_v49  ;;  %v3874_v48 = vsel %vm811_vm3, %v3850_v18, %v13026_v21  ;;  %v18607_v25 = vld [vmem:[#allocation57_spill] sm:$0xff]  ;;  %v18610_v24 = vld [vmem:[#allocation39_spill] sm:$0xff] }
 0x66f   : > { %v3918_v47 = vmul.f32 %v13097_v32, %v3878_v15  ;;  %9526 = vmatpush1.bf16.msra.mxu0 %v9525_v5  ;;  %v3869_v43 = vsel %vm811_vm3, %v18599_v16, %v3864_v38  ;;  %v3881_v54 = vsel %vm811_vm3, %v3864_v38, %v18596_v11  ;;  %9596 = vmatprep.subr.bf16.mxu1 %v9595_v51  ;;  %v18602_v32 = vld [vmem:[#allocation36_spill] sm:$0xff]  ;;  %v18608_v11 = vld [vmem:[#allocation87_spill] sm:$0xff] }
 0x670   : > { %9528 = vmatprep.subr.bf16.mxu0 %v9527_v41  ;;  %v9599_v8 = vpack.c.bf16 %v3912_v6, %v3908_v57  ;;  %v9529_v40 = vpack.c.bf16 %v3909_v13, %v3905_v19  ;;  %v3990_v33 = vsel %vm979_vm4, %v18601_v63, %v18600_v7  ;;  %v3994_v0 = vsel %vm979_vm4, %v18602_v32, %v18601_v63  ;;  %v18609_v13 = vld [vmem:[#allocation59_spill] sm:$0xff]  ;;  %v18611_v51 = vld [vmem:[#allocation88_spill] sm:$0xff]  ;;  %v18620_v63 = vld [vmem:[#allocation89_spill] sm:$0xff] }
 0x671   : > { %v3866_v44 = vpop.permute.xlu0 %3865  ;;  %v9531_v61 = vpack.c.bf16 %v3918_v47, %v3914_v10  ;;  %v3873_v3 = vsel %vm811_vm3, %v3848_v35, %v18599_v16  ;;  %v3919_v45 = vmul.f32 %v13100_v37, %v3874_v48  ;;  %v13479_v60 = vpop.permute.xlu1 %3965  ;;  %v3913_v4 = vmul.f32 %v13106_v62, %v3881_v54  ;;  %v18614_v15 = vld [vmem:[#allocation40_spill] sm:$0xff]  ;;  %v18615_v41 = vld [vmem:[#allocation27_spill] sm:$0xff]  ;;  %v18618_v16 = vld [vmem:[#allocation42_spill] sm:$0xff] }
 0x672   : > { %9598 = vmatpush1.bf16.msra.mxu1 %v9597_v55  ;;  %v3870_v2 = vsel %vm811_vm3, %v13026_v21, %v3866_v44  ;;  %v3882_v56 = vsel %vm811_vm3, %v3866_v44, %v13022_v50  ;;  %v3916_v20 = vmul.f32 %v13109_v14, %v3869_v43  ;;  %v3989_v21 = vsel %vm979_vm4, %v18597_v23, %v18603_v36  ;;  %v18605_v50 = vld [vmem:[#allocation58_spill] sm:$0xff]  ;;  %v18612_v23 = vld [vmem:[#allocation41_spill] sm:$0xff]  ;;  %v18622_v44 = vld [vmem:[#allocation28_spill] sm:$0xff] }
 0x673   : > { %9600 = vmatprep.subr.bf16.mxu1 %v9599_v8  ;;  %v3917_v52 = vmul.f32 %v13106_v62, %v3882_v56  ;;  %v3920_v34 = vmul.f32 %v13109_v14, %v3870_v2  ;;  %9530 = vmatpush1.bf16.msra.mxu0 %v9529_v40  ;;  %v13490_v59 = vmul.f32 %v18604_v42, %v3993_v12  ;;  %v18613_v12 = vld [vmem:[#allocation60_spill] sm:$0xff]  ;;  %v18616_v55 = vld [vmem:[#allocation26_spill] sm:$0xff]  ;;  %v18619_v54 = vld [vmem:[#allocation61_spill] sm:$0xff] }
 0x674   : > { %v3986_v22 = vsel %vm979_vm4, %v18600_v7, %v18605_v50  ;;  %v13498_v30 = vrot.slane %v13467_v17, %v10586_v39  ;;  %9532 = vmatprep.subr.bf16.mxu0 %v9531_v61  ;;  %v3998_v62 = vsel %vm979_vm4, %v18605_v50, %v18602_v32  ;;  %v3915_v14 = vmul.f32 %v13100_v37, %v3873_v3  ;;  %v18624_v56 = vld [vmem:[#allocation90_spill] sm:$0xff] }
 0x675   : > { %v9533_v29 = vpack.c.bf16 %v3917_v52, %v3913_v4  ;;  %v3968_v46 = vpop.permute.xlu0 %3967  ;;  %v9603_v35 = vpack.c.bf16 %v3920_v34, %v3916_v20  ;;  %v13506_v53 = vmul.f32 %v18604_v42, %v3994_v0  ;;  %v4028_v58 = vmul.f32 %v18606_v9, %v3990_v33  ;;  %v13517_v37 = vpop.permute.xlu1 %3981  ;;  %v18621_v0 = vld [vmem:[#allocation29_spill] sm:$0xff] }
 0x676   : > { %9602 = vmatpush1.bf16.msra.mxu1 %v9601_v1  ;;  %v3985_v19 = vsel %vm979_vm4, %v18603_v36, %v18607_v25  ;;  %v3997_v57 = vsel %vm979_vm4, %v18607_v25, %v18598_v31  ;;  %v4024_v6 = vmul.f32 %v18606_v9, %v3989_v21  ;;  %v13521_v49 = vmul.f32 %v18608_v11, %v3986_v22  ;;  %v18625_v52 = vld [vmem:[#allocation77_spill] sm:$0xff]  ;;  %v18626_v36 = vld [vmem:[#allocation23_spill] sm:$0xff]  ;;  %v18627_v21 = vld [vmem:[#allocation22_spill] sm:$0xff] }
 0x677   : > { %v4095_v5 = vsel %vm1123_vm5, %v18610_v24, %v18609_v13  ;;  %v9605_v18 = vpack.c.bf16 %v3919_v45, %v3915_v14  ;;  %9534 = vmatpush1.bf16.msra.mxu0 %v9533_v29  ;;  %v4030_v1 = vmul.f32 %v18611_v51, %v3998_v62  ;;  %v4091_v31 = vsel %vm1123_vm5, %v18609_v13, %v18612_v23  ;;  %v18629_v22 = vld [vmem:[#allocation91_spill] sm:$0xff]  ;;  %v18630_v14 = vld [vmem:[#allocation62_spill] sm:$0xff] }
 0x678   : > { %v4096_v38 = vsel %vm1123_vm5, %v18614_v15, %v18613_v12  ;;  %9604 = vmatprep.subr.bf16.mxu1 %v9603_v35  ;;  %v18617_v10 = vpack.c.bf16 %v18615_v41, %v18616_v55  ;;  %v13540_v48 = vmul.f32 %v18608_v11, %v3985_v19  ;;  %v4026_v47 = vmul.f32 %v18611_v51, %v3997_v57  ;;  %v18631_v35 = vld [vmem:[#allocation50_spill] sm:$0xff]  ;;  %v18634_v57 = vld [vmem:[#allocation76_spill] sm:$0xff] }
 0x679   : > { %v4092_v43 = vsel %vm1123_vm5, %v18613_v12, %v18618_v16  ;;  %v4087_v8 = vsel %vm1123_vm5, %v18612_v23, %v18619_v54  ;;  %v3984_v40 = vpop.permute.xlu0 %3983  ;;  %v9545_v7 = vpack.c.bf16 %v13506_v53, %v13490_v59  ;;  %v13554_v33 = vmul.f32 %v18620_v63, %v4095_v5  ;;  %v13563_v3 = vpop.permute.xlu1 %4067  ;;  %v18632_v53 = vld [vmem:[#allocation48_spill] sm:$0xff]  ;;  %v18639_v12 = vld [vmem:[#allocation63_spill] sm:$0xff] }
 0x67a   : > { %9536 = vmatprep.subr.bf16.mxu0 %v18617_v10  ;;  %9606 = vmatpush1.bf16.msra.mxu1 %v9605_v18  ;;  %v4099_v32 = vsel %vm1123_vm5, %v18619_v54, %v18610_v24  ;;  %v18623_v61 = vpack.c.bf16 %v18621_v0, %v18622_v44  ;;  %v9543_v45 = vpack.c.bf16 %v4028_v58, %v4024_v6  ;;  %v18636_v24 = vld [vmem:[#allocation25_spill] sm:$0xff]  ;;  %v18637_v5 = vld [vmem:[#allocation24_spill] sm:$0xff]  ;;  %v18645_v0 = vld [vmem:[#allocation74_spill] sm:$0xff] }
 0x67b   : > { %v9617_v2 = vpack.c.bf16 %v13521_v49, %v13540_v48  ;;  %v13568_v4 = vmul.f32 %v18624_v56, %v4091_v31  ;;  %v13571_v20 = vmul.f32 %v18620_v63, %v4096_v38  ;;  %v3992_v34 = vsel %vm979_vm4, %v3968_v46, %v18625_v52  ;;  %v18635_v49 = vld [vmem:[#allocation75_spill] sm:$0xff]  ;;  %v18641_v10 = vld [vmem:[#allocation52_spill] sm:$0xff] }
 0x67c   : > { %9608 = vmatprep.subr.bf16.mxu1 %v18623_v61  ;;  %v18628_v59 = vpack.c.bf16 %v18626_v36, %v18627_v21  ;;  %v13580_v50 = vmul.f32 %v18624_v56, %v4092_v43  ;;  %v13583_v62 = vmul.f32 %v18629_v22, %v4087_v8  ;;  %v4100_v29 = vsel %vm1123_vm5, %v18630_v14, %v18614_v15  ;;  %v18640_v15 = vld [vmem:[#allocation43_spill] sm:$0xff]  ;;  %v18644_v8 = vld [vmem:[#allocation45_spill] sm:$0xff]  ;;  %v18647_v61 = vld [vmem:[#allocation30_spill] sm:$0xff] }
 0x67d   : > { %v18633_v58 = vpack.c.bf16 %v18631_v35, %v18632_v53  ;;  %v9615_v25 = vpack.c.bf16 %v4030_v1, %v4026_v47  ;;  %v13593_v19 = vmul.f32 %v13164_v28, %v4099_v32  ;;  %v3991_v6 = vsel %vm979_vm4, %v13479_v60, %v18634_v57  ;;  %v4070_v23 = vpop.permute.xlu0 %4069  ;;  %v18642_v48 = vld [vmem:[#allocation51_spill] sm:$0xff]  ;;  %v13624_v43 = vpop.permute.xlu1 %4083  ;;  %v18649_v35 = vld [vmem:[#allocation92_spill] sm:$0xff] }
 0x67e   : > { %9538 = vmatpush1.bf16.msra.mxu0 %v18628_v59  ;;  %v4000_v13 = vsel %vm979_vm4, %v3984_v40, %v18635_v49  ;;  %v18638_v18 = vpack.c.bf16 %v18636_v24, %v18637_v5  ;;  %v13607_v1 = vrot.slane %v13467_v17, %v10561_v27  ;;  %v4088_v31 = vsel %vm1123_vm5, %v18618_v16, %v18630_v14  ;;  %v18646_v44 = vld [vmem:[#allocation31_spill] sm:$0xff]  ;;  %v18651_v24 = vld [vmem:[#allocation32_spill] sm:$0xff] }
 0x67f   : > { %9540 = vmatprep.subr.bf16.mxu0 %v18633_v58  ;;  %v4197_v38 = vsel %vm1267_vm7, %v18640_v15, %v18639_v12  ;;  %v3996_v41 = vsel %vm979_vm4, %v18635_v49, %v3968_v46  ;;  %v4036_v55 = vmul.f32 %v18606_v9, %v3992_v34  ;;  %v18643_v47 = vpack.c.bf16 %v18641_v10, %v18642_v48  ;;  %v18650_v49 = vld [vmem:[#allocation33_spill] sm:$0xff] }
 0x680   : > { %9610 = vmatpush1.bf16.msra.mxu1 %v18638_v18  ;;  %v9553_v16 = vpack.c.bf16 %v13571_v20, %v13554_v33  ;;  %v4132_v54 = vmul.f32 %v13164_v28, %v4100_v29  ;;  %v4193_v32 = vsel %vm1267_vm7, %v18639_v12, %v18644_v8  ;;  %v3999_v46 = vsel %vm979_vm4, %v13517_v37, %v18645_v0  ;;  %v18655_v12 = vld [vmem:[#allocation44_spill] sm:$0xff] }
 0x681   : > { %9612 = vmatprep.subr.bf16.mxu1 %v18643_v47  ;;  %v18648_v34 = vpack.c.bf16 %v18646_v44, %v18647_v61  ;;  %v3995_v36 = vsel %vm979_vm4, %v18645_v0, %v13479_v60  ;;  %v4032_v21 = vmul.f32 %v18606_v9, %v3991_v6  ;;  %v3988_v59 = vsel %vm979_vm4, %v18625_v52, %v3984_v40  ;;  %v4086_v9 = vpop.permute.xlu0 %4085  ;;  %v18653_v40 = vld [vmem:[#allocation94_spill] sm:$0xff]  ;;  %v13669_v5 = vpop.permute.xlu1 %4169  ;;  %v18660_v0 = vld [vmem:[#allocation79_spill] sm:$0xff] }
 0x682   : > { %v4038_v14 = vmul.f32 %v18611_v51, %v4000_v13  ;;  %v13650_v29 = vmul.f32 %v18629_v22, %v4088_v31  ;;  %v13653_v53 = vmul.f32 %v18649_v35, %v4197_v38  ;;  %v4035_v58 = vmul.f32 %v18604_v42, %v3996_v41  ;;  %v18654_v31 = vld [vmem:[#allocation64_spill] sm:$0xff]  ;;  %v18656_v41 = vld [vmem:[#allocation81_spill] sm:$0xff] }
 0x683   : > { %9542 = vmatpush1.bf16.msra.mxu0 %v18648_v34  ;;  %v18652_v60 = vpack.c.bf16 %v18650_v49, %v18651_v24  ;;  %v9551_v6 = vpack.c.bf16 %v13580_v50, %v13568_v4  ;;  %v13662_v52 = vmul.f32 %v18653_v40, %v4193_v32  ;;  %v4034_v13 = vmul.f32 %v18611_v51, %v3999_v46  ;;  %v18659_v32 = vld [vmem:[#allocation80_spill] sm:$0xff] }
 0x684   : > { %9544 = vmatprep.subr.bf16.mxu0 %v9543_v45  ;;  %v3987_v45 = vsel %vm979_vm4, %v18634_v57, %v13517_v37  ;;  %v9547_v18 = vpack.c.bf16 %v4036_v55, %v4032_v21  ;;  %v4198_v38 = vsel %vm1267_vm7, %v18655_v12, %v18654_v31  ;;  %v4031_v4 = vmul.f32 %v18604_v42, %v3995_v36  ;;  %v18657_v37 = vld [vmem:[#allocation46_spill] sm:$0xff]  ;;  %v18658_v55 = vld [vmem:[#allocation5_spill] sm:$0xff] }
 0x685   : > { %9614 = vmatpush1.bf16.msra.mxu1 %v18652_v60  ;;  %v4037_v50 = vmul.f32 %v18608_v11, %v3988_v59  ;;  %v4094_v10 = vsel %vm1123_vm5, %v4070_v23, %v18656_v41  ;;  %v4194_v51 = vsel %vm1267_vm7, %v18654_v31, %v18657_v37  ;;  %v9623_v57 = vpack.c.bf16 %v4132_v54, %v13593_v19  ;;  %v4172_v44 = vpop.permute.xlu0 %4171  ;;  %v18661_v54 = vld [vmem:[#allocation65_spill] sm:$0xff]  ;;  %v4186_v36 = vpop.permute.xlu1 %4185 }
 0x686   : > { %9616 = vmatprep.subr.bf16.mxu1 %v9615_v25  ;;  %v9619_v25 = vpack.c.bf16 %v4038_v14, %v4034_v13  ;;  %v13687_v48 = vrot.slane %v13467_v17, %v18658_v55  ;;  %v9549_v42 = vpack.c.bf16 %v4035_v58, %v4031_v4  ;;  %v4033_v47 = vmul.f32 %v18608_v11, %v3987_v45  ;;  %v18663_v58 = vld [vmem:[#allocation78_spill] sm:$0xff] }
 0x687   : > { %9546 = vmatpush1.bf16.msra.mxu0 %v9545_v7  ;;  %v4093_v7 = vsel %vm1123_vm5, %v13563_v3, %v18659_v32  ;;  %v4102_v46 = vsel %vm1123_vm5, %v4086_v9, %v18660_v0  ;;  %v13698_v19 = vmul.f32 %v18649_v35, %v4198_v38  ;;  %v4189_v61 = vsel %vm1267_vm7, %v18644_v8, %v18661_v54 }
 0x688   : > { %9548 = vmatprep.subr.bf16.mxu0 %v9547_v18  ;;  %v4098_v11 = vsel %vm1123_vm5, %v18660_v0, %v4070_v23  ;;  %v4138_v34 = vmul.f32 %v18624_v56, %v4094_v10  ;;  %v4232_v21 = vmul.f32 %v18653_v40, %v4194_v51  ;;  %v9621_v14 = vpack.c.bf16 %v4037_v50, %v4033_v47  ;;  %v18664_v18 = vld [vmem:[#allocation95_spill] sm:$0xff]  ;;  %v18668_v47 = vld [vmem:[#allocation85_spill] sm:$0xff] }
 0x689   : > { %9618 = vmatpush1.bf16.msra.mxu1 %v9617_v2  ;;  %v18662_v2 = vld [vmem:[#allocation66_spill] sm:$0xff]  ;;  %v4101_v8 = vsel %vm1123_vm5, %v13624_v43, %v18663_v58  ;;  %v4097_v23 = vsel %vm1123_vm5, %v18663_v58, %v13563_v3  ;;  %v4134_v49 = vmul.f32 %v18624_v56, %v4093_v7  ;;  %v4090_v24 = vsel %vm1123_vm5, %v18656_v41, %v4086_v9  ;;  %v4188_v56 = vpop.permute.xlu0 %4187  ;;  %v18666_v41 = vld [vmem:[#allocation93_spill] sm:$0xff] }
 0x68a   : > { %9620 = vmatprep.subr.bf16.mxu1 %v9619_v25  ;;  %v4202_v59 = vsel %vm1267_vm7, %v18662_v2, %v18655_v12  ;;  %v4140_v60 = vmul.f32 %v13164_v28, %v4102_v46  ;;  %v9625_v45 = vpack.c.bf16 %v13650_v29, %v13583_v62  ;;  %v4201_v13 = vsel %vm1267_vm7, %v18661_v54, %v18640_v15  ;;  %v13745_v15 = vpop.permute.xlu1 %4275  ;;  %v18665_v12 = vld [vmem:[#allocation96_spill] sm:$0xff] }
 0x68b   : > { %9550 = vmatpush1.bf16.msra.mxu0 %v9549_v42  ;;  %v13733_v31 = vmul.f32 %v18664_v18, %v4189_v61  ;;  %v4137_v3 = vmul.f32 %v18620_v63, %v4098_v11  ;;  %v4190_v9 = vsel %vm1267_vm7, %v18657_v37, %v18662_v2  ;;  %v4089_v62 = vsel %vm1123_vm5, %v18659_v32, %v13624_v43  ;;  %v18670_v32 = vld [vmem:[#allocation47_spill] sm:$0xff]  ;;  %v18672_v61 = vld [vmem:[#allocation68_spill] sm:$0xff] }
 0x68c   : > { %9552 = vmatprep.subr.bf16.mxu0 %v9551_v6  ;;  %v4136_v29 = vmul.f32 %v13164_v28, %v4101_v8  ;;  %v9555_v6 = vpack.c.bf16 %v4138_v34, %v4134_v49  ;;  %v4234_v38 = vmul.f32 %v18665_v12, %v4202_v59  ;;  %v4133_v4 = vmul.f32 %v18620_v63, %v4097_v23 }
 0x68d   : > { %9622 = vmatpush1.bf16.msra.mxu1 %v9621_v14  ;;  %v4139_v50 = vmul.f32 %v18629_v22, %v4090_v24  ;;  %v4196_v10 = vsel %vm1267_vm7, %v4172_v44, %v18666_v41  ;;  %v9561_v28 = vpack.c.bf16 %v13698_v19, %v13653_v53  ;;  %v4230_v43 = vmul.f32 %v18665_v12, %v4201_v13  ;;  %v4278_v20 = vpop.permute.xlu0 %4277  ;;  %v18669_v53 = vld [vmem:[#allocation67_spill] sm:$0xff]  ;;  %v18671_v19 = vld [vmem:[#allocation82_spill] sm:$0xff]  ;;  %v18673_v14 = vld [vmem:[#allocation49_spill] sm:$0xff] }
 0x68e   : > { %9624 = vmatprep.subr.bf16.mxu1 %v9623_v57  ;;  %v9627_v37 = vpack.c.bf16 %v4140_v60, %v4136_v29  ;;  %v9559_v51 = vpack.c.bf16 %v4232_v21, %v13662_v52  ;;  %v9557_v63 = vpack.c.bf16 %v4137_v3, %v4133_v4  ;;  %v4135_v25 = vmul.f32 %v18629_v22, %v4089_v62  ;;  %v18667_v57 = vld [vmem:[#allocation86_spill] sm:$0xff]  ;;  %v4284_v0 = vpop.permute.xlu1 %4283  ;;  %v18674_v4 = vld [vmem:[#allocation3_spill] sm:$0xff] }
 0x68f   : > { %9554 = vmatpush1.bf16.msra.mxu0 %v9553_v16  ;;  %v4195_v42 = vsel %vm1267_vm7, %v13669_v5, %v18667_v57  ;;  %v4204_v33 = vsel %vm1267_vm7, %v4188_v56, %v18668_v47  ;;  %v4233_v16 = vmul.f32 %v18664_v18, %v4190_v9  ;;  %v4299_v52 = vsel %vm1411_vm8, %v18670_v32, %v18669_v53 }
 0x690   : > { %9556 = vmatprep.subr.bf16.mxu0 %v9555_v6  ;;  %v4200_v22 = vsel %vm1267_vm7, %v18668_v47, %v4172_v44  ;;  %v4240_v7 = vmul.f32 %v18653_v40, %v4196_v10  ;;  %v9629_v46 = vpack.c.bf16 %v4139_v50, %v4135_v25  ;;  %v4203_v54 = vsel %vm1267_vm7, %v4186_v36, %v18671_v19 }
 0x691   : > { %9626 = vmatpush1.bf16.msra.mxu1 %v9625_v45  ;;  %v4296_v11 = vsel %vm1411_vm8, %v18672_v61, %v4278_v20  ;;  %v9631_v34 = vpack.c.bf16 %v4234_v38, %v4230_v43  ;;  %v4199_v44 = vsel %vm1267_vm7, %v18671_v19, %v13669_v5  ;;  %v4236_v21 = vmul.f32 %v18653_v40, %v4195_v42  ;;  %v4286_v23 = vpop.permute.xlu0 %4285 }
 0x692   : > { %9628 = vmatprep.subr.bf16.mxu1 %v9627_v37  ;;  %v4192_v2 = vsel %vm1267_vm7, %v18666_v41, %v4188_v56  ;;  %v4242_v59 = vmul.f32 %v18665_v12, %v4204_v33  ;;  %v4300_v58 = vsel %vm1411_vm8, %v18673_v14, %v18672_v61  ;;  %v4239_v8 = vmul.f32 %v18649_v35, %v4200_v22  ;;  %v4264_v45 = vpop.permute.xlu1 %4263 }
 0x693   : > { %9558 = vmatpush1.bf16.msra.mxu0 %v9557_v63  ;;  %v4191_v5 = vsel %vm1267_vm7, %v18667_v57, %v4186_v36  ;;  %v4295_v40 = vsel %vm1411_vm8, %v18669_v53, %v13745_v15  ;;  %v4238_v49 = vmul.f32 %v18665_v12, %v4203_v54  ;;  %v4334_v24 = vmul.f32 %v13607_v1, %v4296_v11  ;;  %v4508_v53 = vld [vmem:[%s18102_s4 + $0x18] sm:$0xff] }
 0x694   : > { %9560 = vmatprep.subr.bf16.mxu0 %v9559_v51  ;;  %v4304_v60 = vsel %vm1411_vm8, %v4286_v23, %v18673_v14  ;;  %v9563_v13 = vpack.c.bf16 %v4240_v7, %v4236_v21  ;;  %v9633_v36 = vpack.c.bf16 %v4233_v16, %v13733_v31  ;;  %v4235_v3 = vmul.f32 %v18649_v35, %v4199_v44 }
 0x695   : > { %9630 = vmatpush1.bf16.msra.mxu1 %v9629_v46  ;;  %v4241_v56 = vmul.f32 %v18664_v18, %v4192_v2  ;;  %v4303_v9 = vsel %vm1411_vm8, %v4284_v0, %v18670_v32  ;;  %v4330_v62 = vmul.f32 %v13607_v1, %v4295_v40  ;;  %v4292_v29 = vsel %vm1411_vm8, %v4278_v20, %v4286_v23  ;;  %v4266_v41 = vpop.permute.xlu0 %4265  ;;  %v4515_v2 = vld [vmem:[%s18102_s4 + $0x50] sm:$0xff] }
 0x696   : > { %9632 = vmatprep.subr.bf16.mxu1 %v9631_v34  ;;  %v4336_v6 = vmul.f32 %v13687_v48, %v4304_v60  ;;  %v9635_v12 = vpack.c.bf16 %v4242_v59, %v4238_v49  ;;  %v4333_v31 = vmul.f32 %v13498_v30, %v4300_v58  ;;  %v9565_v38 = vpack.c.bf16 %v4239_v8, %v4235_v3  ;;  %v4272_v43 = vpop.permute.xlu1 %4271  ;;  %v4511_v34 = vld [vmem:[%s18102_s4 + $0x30] sm:$0xff]  ;;  %v4514_v49 = vld [vmem:[%s18102_s4 + $0x48] sm:$0xff]  ;;  %v4516_v3 = vld [vmem:[%s18102_s4 + $0x58] sm:$0xff] }
 0x697   : > { %9562 = vmatpush1.bf16.msra.mxu0 %v9561_v28  ;;  %v4237_v35 = vmul.f32 %v18664_v18, %v4191_v5  ;;  %v4320_v50 = vrot.slane %v13467_v17, %v18674_v4  ;;  %v4291_v10 = vsel %vm1411_vm8, %v13745_v15, %v4284_v0  ;;  %v4332_v28 = vmul.f32 %v13687_v48, %v4303_v9  ;;  %v4505_v17 = vld [vmem:[%s18102_s4] sm:$0xff] }
 0x698   : > { %9564 = vmatprep.subr.bf16.mxu0 %v9563_v13  ;;  %v9567_v37 = vpack.c.bf16 %v4334_v24, %v4330_v62  ;;  %v4329_v51 = vmul.f32 %v13498_v30, %v4299_v52  ;;  %v4509_v15 = vld [vmem:[%s18102_s4 + $0x20] sm:$0xff]  ;;  %v4512_v52 = vld [vmem:[%s18102_s4 + $0x38] sm:$0xff]  ;;  %v4301_v22 = vsel %vm1411_vm8, %v4264_v45, %v4272_v43  ;;  %v4507_v13 = vld [vmem:[%s18102_s4 + $0x10] sm:$0xff] }
 0x699   : > { %9634 = vmatpush1.bf16.msra.mxu1 %v9633_v36  ;;  %v9637_v63 = vpack.c.bf16 %v4241_v56, %v4237_v35  ;;  %v4335_v25 = vmul.f32 %v4320_v50, %v4292_v29  ;;  %v9639_v18 = vpack.c.bf16 %v4336_v6, %v4332_v28  ;;  %v4331_v42 = vmul.f32 %v4320_v50, %v4291_v10  ;;  %v4274_v47 = vpop.permute.xlu0 %4273  ;;  %v4513_v36 = vld [vmem:[%s18102_s4 + $0x40] sm:$0xff] }
 0x69a   : > { %9636 = vmatprep.subr.bf16.mxu1 %v9635_v12  ;;  %v9569_v57 = vpack.c.bf16 %v4333_v31, %v4329_v51  ;;  %v4280_v33 = vpop.permute.xlu1 %4279  ;;  %v4302_v16 = vsel %vm1411_vm8, %v4266_v41, %v4274_v47  ;;  %v4337_v44 = vmul.f32 %v13498_v30, %v4301_v22  ;;  %v18676_v12 = vld [vmem:[#allocation6_spill] sm:$0xff] }
 0x69b   : > { %9566 = vmatpush1.bf16.msra.mxu0 %v9565_v38  ;;  %v9641_v20 = vpack.c.bf16 %v4335_v25, %v4331_v42  ;;  %v4297_v32 = vsel %vm1411_vm8, %v4272_v43, %v4280_v33  ;;  %v4341_v0 = vmul.f32 %v13498_v30, %v4302_v16 }
 0x69c   : > { %9568 = vmatprep.subr.bf16.mxu0 %v9567_v37  ;;  %v4338_v54 = vmul.f32 %v13607_v1, %v4297_v32  ;;  %v18678_v37 = vld [vmem:[#allocation7_spill] sm:$0xff] }
 0x69d   : > { %9638 = vmatpush1.bf16.msra.mxu1 %v9637_v63  ;;  %v4282_v7 = vpop.permute.xlu0 %4281  ;;  %v9573_v14 = vpack.c.bf16 %v4341_v0, %v4337_v44  ;;  %v18680_v63 = vld [vmem:[#allocation8_spill] sm:$0xff] }
 0x69e   : > { %9640 = vmatprep.subr.bf16.mxu1 %v9639_v18  ;;  %4618 = vmatmul.mubr.f32.vlgmr.msra.gmra.mrb[16].mxu0 %v4505_v17  ;;  %v4298_v46 = vsel %vm1411_vm8, %v4274_v47, %v4282_v7  ;;  %v4288_v19 = vpop.permute.xlu1 %4287  ;;  %v18682_v47 = vld [vmem:[#allocation9_spill] sm:$0xff] }
 0x69f   : > { %9570 = vmatpush1.bf16.msra.mxu0 %v9569_v57  ;;  %4623 = vmatprep.mubr.f32.mxu0 %v4509_v15  ;;  %v4342_v61 = vmul.f32 %v13607_v1, %v4298_v46  ;;  %v4293_v11 = vsel %vm1411_vm8, %v4280_v33, %v4288_v19  ;;  %v4305_v21 = vsel %vm1411_vm8, %v4288_v19, %v4264_v45  ;;  %v18675_v45 = vmov 0.0  }
 0x6a0   : > { %4796 = vmatmul.mubr.f32.vlgmr.msra.gmra.mrb[16].mxu1 %v4505_v17  ;;  %v4339_v58 = vmul.f32 %v4320_v50, %v4293_v11  ;;  %v4340_v30 = vmul.f32 %v13687_v48, %v4305_v21  ;;  %v18688_v11 = vld [vmem:[#allocation11_spill] sm:$0xff]  ;;  %v18690_v21 = vld [vmem:[#allocation13_spill] sm:$0xff] }
 0x6a1   : > { %9642 = vmatpush1.bf16.msra.mxu1 %v9641_v20  ;;  %4801 = vmatprep.mubr.f32.mxu1 %v4509_v15  ;;  %v4290_v59 = vpop.permute.xlu0 %4289  ;;  %v9571_v1 = vpack.c.bf16 %v4342_v61, %v4338_v54  ;;  %v18686_v54 = vld [vmem:[#allocation12_spill] sm:$0xff] }
 0x6a2   : > { %4624 = vmatmul.mubr.f32.gmra.mrb[18].mxu0 %v4508_v53  ;;  %v4294_v8 = vsel %vm1411_vm8, %v4282_v7, %v4290_v59  ;;  %v4306_v5 = vsel %vm1411_vm8, %v4290_v59, %v4266_v41  ;;  %v18684_v7 = vld [vmem:[#allocation10_spill] sm:$0xff] }
 0x6a3   : > { %4629 = vmatprep.mubr.f32.mxu0 %v4512_v52  ;;  %v4343_v40 = vmul.f32 %v4320_v50, %v4294_v8  ;;  %v4344_v23 = vmul.f32 %v13687_v48, %v4306_v5  ;;  %9572 = vmatprep.subr.bf16.mxu0 %v9571_v1  ;;  %v4510_v48 = vld [vmem:[%s18102_s4 + $0x28] sm:$0xff]  ;;  %v18692_v8 = vld [vmem:[#allocation14_spill] sm:$0xff] }
 0x6a4   : > { %4802 = vmatmul.mubr.f32.gmra.mrb[18].mxu1 %v4508_v53  ;;  %9574 = vmatpush1.bf16.msra.mxu0 %v9573_v14 }
 0x6a5   : > { %4807 = vmatprep.mubr.f32.mxu1 %v4512_v52  ;;  %v9645_v24 = vpack.c.bf16 %v4343_v40, %v4339_v58  ;;  %v9643_v60 = vpack.c.bf16 %v4344_v23, %v4340_v30 }
 0x6a6   : > { %4630 = vmatmul.mubr.f32.gmra.mrb[20].mxu0 %v4511_v34 }
 0x6a7   : > { %4635 = vmatprep.mubr.f32.mxu0 %v4515_v2  ;;  %9644 = vmatprep.subr.bf16.mxu1 %v9643_v60 }
 0x6a8   : > { %4808 = vmatmul.mubr.f32.gmra.mrb[20].mxu1 %v4511_v34 }
 0x6a9   : > { %4813 = vmatprep.mubr.f32.mxu1 %v4515_v2  ;;  %9646 = vmatpush1.bf16.msra.mxu1 %v9645_v24  ;;  %v18694_v24 = vld [vmem:[#allocation16_spill] sm:$0xff] }
 0x6aa   : > { %4636 = vmatmul.mubr.f32.gmra.mrb[22].mxu0 %v4514_v49 }
 0x6ab   : > { %4706 = vmatprep.mubr.f32.mxu0 %v18675_v45 }
 0x6ac   : > { %4814 = vmatmul.mubr.f32.gmra.mrb[22].mxu1 %v4514_v49 }
 0x6ad   : > { %4884 = vmatprep.mubr.f32.mxu1 %v18675_v45 }
 0x6ae   : > { %9093 = vmatmul.mubr.msk.f32.vlgmr.msra.gmra.mrb[16].mxu0 %vm3144_vm9, %v4507_v13  ;;  %v4524_v56 = vpop.permute.xlu1 %4523 }
 0x6af   : > { %4712 = vmatprep.mubr.f32.mxu0 %v18675_v45 }
 0x6b0   : > { %9097 = vmatmul.mubr.msk.f32.vlgmr.msra.gmra.mrb[16].mxu1 %vm3144_vm9, %v4507_v13  ;;  %v18696_v13 = vld [vmem:[#allocation15_spill] sm:$0xff] }
 0x6b1   : > { %4890 = vmatprep.mubr.f32.mxu1 %v18675_v45 }
 0x6b2   : > { %9094 = vmatmul.mubr.msk.f32.gmra.mrb[18].mxu0 %vm3144_vm9, %v4510_v48  ;;  %v4529_v50 = vpop.permute.xlu0 %4528  ;;  %v14049_v59 = vpop.permute.xlu1 %4533 }
 0x6b3   : > { %4718 = vmatprep.mubr.f32.mxu0 %v18675_v45 }
 0x6b4   : > { %9098 = vmatmul.mubr.msk.f32.gmra.mrb[18].mxu1 %vm3144_vm9, %v4510_v48 }
 0x6b5   : > { %4896 = vmatprep.mubr.f32.mxu1 %v18675_v45 }
 0x6b6   : > { %9095 = vmatmul.mubr.msk.f32.gmra.mrb[20].mxu0 %vm3144_vm9, %v4513_v36  ;;  %v14055_v1 = vpop.permute.xlu0 %4538 }
 0x6b7   : > { %4724 = vmatprep.mubr.f32.mxu0 %v18675_v45 }
 0x6b8   : > { %9099 = vmatmul.mubr.msk.f32.gmra.mrb[20].mxu1 %vm3144_vm9, %v4513_v36 }
 0x6b9   : > { %4902 = vmatprep.mubr.f32.mxu1 %v18675_v45 }
 0x6ba   : > { %9096 = vmatmul.mubr.msk.f32.gmra.mrb[22].mxu0 %vm3144_vm9, %v4516_v3 }
 0x6bc   : > { %9100 = vmatmul.mubr.msk.f32.gmra.mrb[22].mxu1 %vm3144_vm9, %v4516_v3 }
 0x781   : > { %v4708_v9 = vpop.f32.mrb[16].mxu0 }
 0x782   : > { %v10111_v62 = vadd.f32 %v4708_v9, %v4524_v56  ;;  %v4710_v29 = vpop.f32.mrb[17].mxu0  ;;  %v18698_v9 = vld [vmem:[#allocation17_spill] sm:$0xff] }
 0x783   : > { %v4886_v6 = vpop.f32.mrb[16].mxu1  ;;  %v10112_v22 = vadd.f32 %v4710_v29, %v4524_v56 }
 0x784   : > { %v13900_v31 = vadd.f32 %v10111_v62, %v18676_v12  ;;  %v10119_v38 = vadd.f32 %v4886_v6, %v4524_v56  ;;  %v4888_v35 = vpop.f32.mrb[17].mxu1 }
 0x785   : > { %v4714_v41 = vpop.f32.mrb[18].mxu0  ;;  %v13986_v0 = vadd.f32 %v10112_v22, %v18684_v7  ;;  %v10120_v46 = vadd.f32 %v4888_v35, %v4524_v56 }
 0x786   : > { %18677 = vst [vmem:[#allocation34_spill] sm:$0xff] %v13900_v31  ;;  %v10113_v10 = vadd.f32 %v4714_v41, %v4529_v50  ;;  %v4716_v28 = vpop.f32.mrb[19].mxu0  ;;  %4925 = vrot.lane.b32.xlu1 %v13900_v31, %s10300_s11  ;;  %v13905_v51 = vadd.f32 %v10119_v38, %v18678_v37 }
 0x787   : > { %v4892_v43 = vpop.f32.mrb[18].mxu1  ;;  %18685 = vst [vmem:[#allocation70_spill] sm:$0xff] %v13986_v0  ;;  %v10114_v19 = vadd.f32 %v4716_v28, %v4529_v50  ;;  %v13993_v61 = vadd.f32 %v10120_v46, %v18686_v54 }
 0x788   : > { %18679 = vst [vmem:[#allocation53_spill] sm:$0xff] %v13905_v51  ;;  %v13908_v25 = vadd.f32 %v10113_v10, %v18680_v63  ;;  %v10121_v17 = vadd.f32 %v4892_v43, %v4529_v50  ;;  %v4894_v18 = vpop.f32.mrb[19].mxu1 }
 0x789   : > { %v13910_v15 = vpop.f32.mrb[20].mxu0  ;;  %18687 = vst [vmem:[#allocation54_spill] sm:$0xff] %v13993_v61  ;;  %v13996_v34 = vadd.f32 %v10114_v19, %v18688_v11  ;;  %v10122_v44 = vadd.f32 %v4894_v18, %v4529_v50 }
 0x78a   : > { %18681 = vst [vmem:[#allocation69_spill] sm:$0xff] %v13908_v25  ;;  %v13912_v57 = vpop.f32.mrb[21].mxu0  ;;  %4927 = vrot.lane.b32.xlu0 %v13908_v25, %s10300_s11  ;;  %4941 = vrot.lane.b32.xlu1 %v13905_v51, %s10300_s11  ;;  %v13921_v33 = vadd.f32 %v10121_v17, %v18682_v47  ;;  %v10115_v14 = vadd.f32 %v13910_v15, %v14049_v59 }
 0x78b   : > { %v13918_v42 = vpop.f32.mrb[20].mxu1  ;;  %18689 = vst [vmem:[#allocation72_spill] sm:$0xff] %v13996_v34  ;;  %v14003_v2 = vadd.f32 %v10122_v44, %v18690_v21  ;;  %v10116_v19 = vadd.f32 %v13912_v57, %v14049_v59  ;;  %v4973_v44 = vld [vmem:[%s18099_s1] ss:$8 sm:$0xf] }
 0x78c   : > { %18683 = vst [vmem:[#allocation71_spill] sm:$0xff] %v13921_v33  ;;  %v13923_v20 = vpop.f32.mrb[21].mxu1  ;;  %v14066_v5 = vadd.f32 %v10115_v14, %v18692_v8  ;;  %v10123_v30 = vadd.f32 %v13918_v42, %v14049_v59  ;;  %v18715_v21 = vld [vmem:[#allocation18_spill] sm:$0xff] }
 0x78d   : > { %v13925_v16 = vpop.f32.mrb[22].mxu0  ;;  %18691 = vst [vmem:[#allocation55_spill] sm:$0xff] %v14003_v2  ;;  %v14201_v14 = vadd.f32 %v10116_v19, %v18715_v21  ;;  %v18720_v19 = vld [vmem:[#allocation20_spill] sm:$0xff] }
 0x78e   : > { %v13927_v53 = vpop.f32.mrb[23].mxu0  ;;  %4943 = vrot.lane.b32.xlu0 %v13921_v33, %s10300_s11  ;;  %5027 = vrot.lane.b32.xlu1 %v13900_v31, %s10301_s12  ;;  %18693 = vst [vmem:[#allocation35_spill] sm:$0xff] %v14066_v5  ;;  %v10117_v40 = vadd.f32 %v13925_v16, %v14055_v1  ;;  %v14081_v60 = vadd.f32 %v10123_v30, %v18694_v24 }
 0x78f   : > { %v13933_v32 = vpop.f32.mrb[22].mxu1  ;;  %18716 = vst [vmem:[#allocation42_spill] sm:$0xff] %v14201_v14  ;;  %v10118_v57 = vadd.f32 %v13927_v53, %v14055_v1  ;;  %v14210_v24 = vrot.slane %v4973_v44, %v10561_v27  ;;  %v18718_v53 = vld [vmem:[#allocation19_spill] sm:$0xff] }
 0x790   : > { %v13935_v52 = vpop.f32.mrb[23].mxu1  ;;  %18695 = vst [vmem:[#allocation73_spill] sm:$0xff] %v14081_v60  ;;  %v14084_v48 = vadd.f32 %v10117_v40, %v18696_v13  ;;  %v10125_v36 = vadd.f32 %v13933_v32, %v14055_v1  ;;  %v10124_v40 = vadd.f32 %v13923_v20, %v14049_v59 }
 0x792   : > { %5029 = vrot.lane.b32.xlu0 %v13908_v25, %s10301_s12  ;;  %5043 = vrot.lane.b32.xlu1 %v13905_v51, %s10301_s12  ;;  %18697 = vst [vmem:[#allocation38_spill] sm:$0xff] %v14084_v48  ;;  %v14097_v62 = vadd.f32 %v10125_v36, %v18698_v9  ;;  %v14220_v36 = vadd.f32 %v10118_v57, %v18718_v53 }
 0x793   : > { %v10126_v9 = vadd.f32 %v13935_v52, %v14055_v1  ;;  %v14225_v21 = vadd.f32 %v10124_v40, %v18720_v19  ;;  %v14236_v57 = vrot.slane %v4973_v44, %v18658_v55 }
 0x794   : > { %18699 = vst [vmem:[#allocation56_spill] sm:$0xff] %v14097_v62  ;;  %18719 = vst [vmem:[#allocation89_spill] sm:$0xff] %v14220_v36 }
 0x795   : > { %18721 = vst [vmem:[#allocation29_spill] sm:$0xff] %v14225_v21 }
 0x796   : > { %5045 = vrot.lane.b32.xlu0 %v13921_v33, %s10301_s12  ;;  %5129 = vrot.lane.b32.xlu1 %v13900_v31, %s10302_s13 }
 0x79a   : > { %5131 = vrot.lane.b32.xlu0 %v13908_v25, %s10302_s13  ;;  %5145 = vrot.lane.b32.xlu1 %v13905_v51, %s10302_s13 }
 0x79e   : > { %5147 = vrot.lane.b32.xlu0 %v13921_v33, %s10302_s13  ;;  %5231 = vrot.lane.b32.xlu1 %v13900_v31, %s10303_s16 }
 0x7a2   : > { %5233 = vrot.lane.b32.xlu0 %v13908_v25, %s10303_s16  ;;  %5247 = vrot.lane.b32.xlu1 %v13905_v51, %s10303_s16 }
 0x7a6   : > { %5249 = vrot.lane.b32.xlu0 %v13921_v33, %s10303_s16  ;;  %5349 = vrot.lane.b32.xlu1 %v13900_v31, %s10304_s19 }
 0x7aa   : > { %5351 = vrot.lane.b32.xlu0 %v13908_v25, %s10304_s19  ;;  %5365 = vrot.lane.b32.xlu1 %v13905_v51, %s10304_s19 }
 0x7ae   : > { %5367 = vrot.lane.b32.xlu0 %v13921_v33, %s10304_s19  ;;  %5451 = vrot.lane.b32.xlu1 %v13900_v31, %s10305_s24 }
 0x7b2   : > { %5453 = vrot.lane.b32.xlu0 %v13908_v25, %s10305_s24  ;;  %5467 = vrot.lane.b32.xlu1 %v13905_v51, %s10305_s24 }
 0x7b6   : > { %5469 = vrot.lane.b32.xlu0 %v13921_v33, %s10305_s24  ;;  %5553 = vrot.lane.b32.xlu1 %v13900_v31, %s10306_s29 }
 0x7ba   : > { %5555 = vrot.lane.b32.xlu0 %v13908_v25, %s10306_s29  ;;  %5569 = vrot.lane.b32.xlu1 %v13905_v51, %s10306_s29 }
 0x7be   : > { %5571 = vrot.lane.b32.xlu0 %v13921_v33, %s10306_s29  ;;  %5655 = vrot.lane.b32.xlu1 %v13900_v31, %s10307_s15 }
 0x7c2   : > { %5657 = vrot.lane.b32.xlu0 %v13908_v25, %s10307_s15  ;;  %4933 = vrot.lane.b32.xlu1 %v13986_v0, %s10300_s11 }
 0x7c6   : > { %4935 = vrot.lane.b32.xlu0 %v13996_v34, %s10300_s11  ;;  %4949 = vrot.lane.b32.xlu1 %v13993_v61, %s10300_s11 }
 0x7ca   : > { %4951 = vrot.lane.b32.xlu0 %v14003_v2, %s10300_s11  ;;  %5035 = vrot.lane.b32.xlu1 %v13986_v0, %s10301_s12 }
 0x7ce   : > { %5037 = vrot.lane.b32.xlu0 %v13996_v34, %s10301_s12  ;;  %5051 = vrot.lane.b32.xlu1 %v13993_v61, %s10301_s12 }
 0x7d2   : > { %5053 = vrot.lane.b32.xlu0 %v14003_v2, %s10301_s12  ;;  %5137 = vrot.lane.b32.xlu1 %v13986_v0, %s10302_s13 }
 0x7d6   : > { %5139 = vrot.lane.b32.xlu0 %v13996_v34, %s10302_s13  ;;  %5153 = vrot.lane.b32.xlu1 %v13993_v61, %s10302_s13 }
 0x7da   : > { %5155 = vrot.lane.b32.xlu0 %v14003_v2, %s10302_s13  ;;  %5239 = vrot.lane.b32.xlu1 %v13986_v0, %s10303_s16 }
 0x7de   : > { %5241 = vrot.lane.b32.xlu0 %v13996_v34, %s10303_s16  ;;  %5255 = vrot.lane.b32.xlu1 %v13993_v61, %s10303_s16 }
 0x7e2   : > { %5257 = vrot.lane.b32.xlu0 %v14003_v2, %s10303_s16  ;;  %5357 = vrot.lane.b32.xlu1 %v13986_v0, %s10304_s19 }
 0x7e6   : > { %5359 = vrot.lane.b32.xlu0 %v13996_v34, %s10304_s19  ;;  %5373 = vrot.lane.b32.xlu1 %v13993_v61, %s10304_s19 }
 0x7ea   : > { %5375 = vrot.lane.b32.xlu0 %v14003_v2, %s10304_s19  ;;  %5459 = vrot.lane.b32.xlu1 %v13986_v0, %s10305_s24 }
 0x7ee   : > { %5461 = vrot.lane.b32.xlu0 %v13996_v34, %s10305_s24  ;;  %5475 = vrot.lane.b32.xlu1 %v13993_v61, %s10305_s24 }
 0x7f2   : > { %5477 = vrot.lane.b32.xlu0 %v14003_v2, %s10305_s24  ;;  %5561 = vrot.lane.b32.xlu1 %v13986_v0, %s10306_s29 }
 0x7f6   : > { %5563 = vrot.lane.b32.xlu0 %v13996_v34, %s10306_s29  ;;  %5577 = vrot.lane.b32.xlu1 %v13993_v61, %s10306_s29 }
 0x7f8   : > { %v14059_v58 = vpop.permute.xlu1 %4925 }
 0x7fa   : > { %5579 = vrot.lane.b32.xlu0 %v14003_v2, %s10306_s29  ;;  %5663 = vrot.lane.b32.xlu1 %v13986_v0, %s10307_s15 }
 0x7fc   : > { %v14072_v23 = vpop.permute.xlu0 %4927  ;;  %v14074_v49 = vpop.permute.xlu1 %4941 }
 0x7fe   : > { %5665 = vrot.lane.b32.xlu0 %v13996_v34, %s10307_s15  ;;  %4929 = vrot.lane.b32.xlu1 %v14066_v5, %s10300_s11 }
 0x800   : > { %v14088_v3 = vpop.permute.xlu0 %4943  ;;  %v14090_v56 = vpop.permute.xlu1 %5027 }
 0x802   : > { %4931 = vrot.lane.b32.xlu0 %v14084_v48, %s10300_s11  ;;  %4945 = vrot.lane.b32.xlu1 %v14081_v60, %s10300_s11 }
 0x804   : > { %v14099_v29 = vpop.permute.xlu0 %5029  ;;  %v14101_v6 = vpop.permute.xlu1 %5043 }
 0x806   : > { %4947 = vrot.lane.b32.xlu0 %v14097_v62, %s10300_s11  ;;  %5031 = vrot.lane.b32.xlu1 %v14066_v5, %s10301_s12 }
 0x808   : > { %v14107_v12 = vpop.permute.xlu0 %5045  ;;  %v14109_v38 = vpop.permute.xlu1 %5129 }
 0x80a   : > { %5033 = vrot.lane.b32.xlu0 %v14084_v48, %s10301_s12  ;;  %5047 = vrot.lane.b32.xlu1 %v14081_v60, %s10301_s12 }
 0x80c   : > { %v14115_v35 = vpop.permute.xlu0 %5131  ;;  %v14117_v50 = vpop.permute.xlu1 %5145 }
 0x80e   : > { %5049 = vrot.lane.b32.xlu0 %v14097_v62, %s10301_s12  ;;  %5133 = vrot.lane.b32.xlu1 %v14066_v5, %s10302_s13 }
 0x810   : > { %v14123_v41 = vpop.permute.xlu0 %5147  ;;  %v14125_v10 = vpop.permute.xlu1 %5231 }
 0x812   : > { %5135 = vrot.lane.b32.xlu0 %v14084_v48, %s10302_s13  ;;  %5149 = vrot.lane.b32.xlu1 %v14081_v60, %s10302_s13 }
 0x814   : > { %v14131_v28 = vpop.permute.xlu0 %5233  ;;  %v14133_v43 = vpop.permute.xlu1 %5247 }
 0x815   : > { %18700 = vst [vmem:[#allocation36_spill] sm:$0xff] %v14131_v28 }
 0x816   : > { %5151 = vrot.lane.b32.xlu0 %v14097_v62, %s10302_s13  ;;  %5235 = vrot.lane.b32.xlu1 %v14066_v5, %s10303_s16 }
 0x818   : > { %v14139_v37 = vpop.permute.xlu0 %5249  ;;  %v14141_v63 = vpop.permute.xlu1 %5349 }
 0x819   : > { %18701 = vst [vmem:[#allocation37_spill] sm:$0xff] %v14139_v37  ;;  %18702 = vst [vmem:[#allocation83_spill] sm:$0xff] %v14141_v63 }
 0x81a   : > { %5237 = vrot.lane.b32.xlu0 %v14084_v48, %s10303_s16  ;;  %5251 = vrot.lane.b32.xlu1 %v14081_v60, %s10303_s16 }
 0x81c   : > { %v14147_v17 = vpop.permute.xlu0 %5351  ;;  %v14149_v18 = vpop.permute.xlu1 %5365 }
 0x81d   : > { %18703 = vst [vmem:[#allocation58_spill] sm:$0xff] %v14147_v17  ;;  %18704 = vst [vmem:[#allocation84_spill] sm:$0xff] %v14149_v18 }
 0x81e   : > { %5253 = vrot.lane.b32.xlu0 %v14097_v62, %s10303_s16  ;;  %5353 = vrot.lane.b32.xlu1 %v14066_v5, %s10304_s19 }
 0x820   : > { %v14155_v15 = vpop.permute.xlu0 %5367  ;;  %v14157_v42 = vpop.permute.xlu1 %5451 }
 0x821   : > { %18705 = vst [vmem:[#allocation57_spill] sm:$0xff] %v14155_v15  ;;  %18706 = vst [vmem:[#allocation87_spill] sm:$0xff] %v14157_v42  ;;  %v5914_v15 = vld [vmem:[%s18103_s5 + $0x8] sm:$0xff] }
 0x822   : > { %5355 = vrot.lane.b32.xlu0 %v14084_v48, %s10304_s19  ;;  %5369 = vrot.lane.b32.xlu1 %v14081_v60, %s10304_s19 }
 0x824   : > { %v14163_v47 = vpop.permute.xlu0 %5453  ;;  %v14165_v16 = vpop.permute.xlu1 %5467 }
 0x825   : > { %18707 = vst [vmem:[#allocation59_spill] sm:$0xff] %v14163_v47  ;;  %18708 = vst [vmem:[#allocation39_spill] sm:$0xff] %v14165_v16 }
 0x826   : > { %5371 = vrot.lane.b32.xlu0 %v14097_v62, %s10304_s19  ;;  %5455 = vrot.lane.b32.xlu1 %v14066_v5, %s10305_s24 }
 0x828   : > { %v14171_v32 = vpop.permute.xlu0 %5469  ;;  %v14173_v22 = vpop.permute.xlu1 %5553 }
 0x829   : > { %18709 = vst [vmem:[#allocation88_spill] sm:$0xff] %v14171_v32  ;;  %18710 = vst [vmem:[#allocation41_spill] sm:$0xff] %v14173_v22 }
 0x82a   : > { %5457 = vrot.lane.b32.xlu0 %v14084_v48, %s10305_s24  ;;  %5471 = vrot.lane.b32.xlu1 %v14081_v60, %s10305_s24 }
 0x82c   : > { %v14179_v7 = vpop.permute.xlu0 %5555  ;;  %v14181_v46 = vpop.permute.xlu1 %5569 }
 0x82d   : > { %18711 = vst [vmem:[#allocation60_spill] sm:$0xff] %v14179_v7  ;;  %18712 = vst [vmem:[#allocation40_spill] sm:$0xff] %v14181_v46  ;;  %v14257_v46 = vrot.slane %v4973_v44, %v18674_v4 }
 0x82e   : > { %5473 = vrot.lane.b32.xlu0 %v14097_v62, %s10305_s24  ;;  %5557 = vrot.lane.b32.xlu1 %v14066_v5, %s10306_s29 }
 0x830   : > { %v14189_v54 = vpop.permute.xlu0 %5571  ;;  %v14191_v11 = vpop.permute.xlu1 %5655 }
 0x831   : > { %18713 = vst [vmem:[#allocation27_spill] sm:$0xff] %v14189_v54  ;;  %18714 = vst [vmem:[#allocation26_spill] sm:$0xff] %v14191_v11  ;;  %v14233_v54 = vrot.slane %v4973_v44, %v10586_v39 }
 0x832   : > { %5559 = vrot.lane.b32.xlu0 %v14084_v48, %s10306_s29  ;;  %5573 = vrot.lane.b32.xlu1 %v14081_v60, %s10306_s29 }
 0x834   : > { %v14205_v8 = vpop.permute.xlu0 %5657  ;;  %v4934_v30 = vpop.permute.xlu1 %4933 }
 0x835   : > { %18717 = vst [vmem:[#allocation61_spill] sm:$0xff] %v14205_v8  ;;  %v4965_v13 = vsel %vm380_vm0, %v14059_v58, %v4934_v30 }
 0x836   : > { %5575 = vrot.lane.b32.xlu0 %v14097_v62, %s10306_s29  ;;  %4937 = vrot.lane.b32.xlu1 %v14201_v14, %s10300_s11  ;;  %v4996_v11 = vmul.f32 %v14210_v24, %v4965_v13 }
 0x838   : > { %v4936_v20 = vpop.permute.xlu0 %4935  ;;  %v4950_v59 = vpop.permute.xlu1 %4949 }
 0x839   : > { %v4966_v45 = vsel %vm380_vm0, %v14072_v23, %v4936_v20  ;;  %v4957_v52 = vsel %vm380_vm0, %v14074_v49, %v4950_v59  ;;  %v4969_v1 = vsel %vm380_vm0, %v4950_v59, %v14059_v58  ;;  %v4962_v13 = vsel %vm380_vm0, %v4936_v20, %v14088_v3 }
 0x83a   : > { %v5000_v8 = vmul.f32 %v14210_v24, %v4966_v45  ;;  %4939 = vrot.lane.b32.xlu0 %v14220_v36, %s10300_s11  ;;  %4953 = vrot.lane.b32.xlu1 %v14225_v21, %s10300_s11  ;;  %v18722_v45 = vld [vmem:[#allocation21_spill] sm:$0xff]  ;;  %v4961_v58 = vsel %vm380_vm0, %v4934_v30, %v14074_v49  ;;  %v4995_v20 = vmul.f32 %v14233_v54, %v4969_v1 }
 0x83b   : > { %v14249_v40 = vadd.f32 %v10126_v9, %v18722_v45  ;;  %v4998_v45 = vmul.f32 %v14236_v57, %v4957_v52  ;;  %v5001_v49 = vmul.f32 %v14257_v46, %v4962_v13  ;;  %v4997_v52 = vmul.f32 %v14257_v46, %v4961_v58 }
 0x83c   : > { %v4952_v53 = vpop.permute.xlu0 %4951  ;;  %v14254_v19 = vpop.permute.xlu1 %5035  ;;  %v9647_v7 = vpack.c.bf16 %v5000_v8, %v4996_v11 }
 0x83d   : > { %18723 = vst [vmem:[#allocation28_spill] sm:$0xff] %v14249_v40  ;;  %v4958_v9 = vsel %vm380_vm0, %v14088_v3, %v4952_v53  ;;  %v4970_v59 = vsel %vm380_vm0, %v4952_v53, %v14072_v23  ;;  %v9721_v1 = vpack.c.bf16 %v5001_v49, %v4997_v52 }
 0x83e   : > { %v4999_v11 = vmul.f32 %v14233_v54, %v4970_v59  ;;  %v5002_v44 = vmul.f32 %v14236_v57, %v4958_v9  ;;  %4955 = vrot.lane.b32.xlu0 %v14249_v40, %s10300_s11  ;;  %5039 = vrot.lane.b32.xlu1 %v14201_v14, %s10301_s12 }
 0x83f   : > { %9648 = vmatprep.subr.bf16.mxu0 %v9647_v7 }
 0x840   : > { %v9649_v3 = vpack.c.bf16 %v4999_v11, %v4995_v20  ;;  %v14277_v8 = vpop.permute.xlu0 %5037  ;;  %v14279_v23 = vpop.permute.xlu1 %5051  ;;  %v9719_v30 = vpack.c.bf16 %v5002_v44, %v4998_v45 }
 0x842   : > { %5041 = vrot.lane.b32.xlu0 %v14220_v36, %s10301_s12  ;;  %5055 = vrot.lane.b32.xlu1 %v14225_v21, %s10301_s12 }
 0x843   : > { %9650 = vmatpush1.bf16.msra.mxu0 %v9649_v3  ;;  %9720 = vmatprep.subr.bf16.mxu1 %v9719_v30 }
 0x844   : > { %v14286_v13 = vpop.permute.xlu0 %5053  ;;  %v14288_v7 = vpop.permute.xlu1 %5137  ;;  %9722 = vmatpush1.bf16.msra.mxu1 %v9721_v1 }
 0x846   : > { %5057 = vrot.lane.b32.xlu0 %v14249_v40, %s10301_s12  ;;  %5141 = vrot.lane.b32.xlu1 %v14201_v14, %s10302_s13 }
 0x848   : > { %v14294_v53 = vpop.permute.xlu0 %5139  ;;  %v14296_v58 = vpop.permute.xlu1 %5153 }
 0x84a   : > { %5143 = vrot.lane.b32.xlu0 %v14220_v36, %s10302_s13  ;;  %5157 = vrot.lane.b32.xlu1 %v14225_v21, %s10302_s13 }
 0x84c   : > { %v14302_v9 = vpop.permute.xlu0 %5155  ;;  %v14304_v59 = vpop.permute.xlu1 %5239 }
 0x84e   : > { %5159 = vrot.lane.b32.xlu0 %v14249_v40, %s10302_s13  ;;  %5243 = vrot.lane.b32.xlu1 %v14201_v14, %s10303_s16 }
 0x850   : > { %v14310_v20 = vpop.permute.xlu0 %5241  ;;  %v14312_v45 = vpop.permute.xlu1 %5255 }
 0x851   : > { %18724 = vst [vmem:[#allocation90_spill] sm:$0xff] %v14310_v20  ;;  %18725 = vst [vmem:[#allocation77_spill] sm:$0xff] %v14312_v45 }
 0x852   : > { %5245 = vrot.lane.b32.xlu0 %v14220_v36, %s10303_s16  ;;  %5259 = vrot.lane.b32.xlu1 %v14225_v21, %s10303_s16 }
 0x854   : > { %v14318_v11 = vpop.permute.xlu0 %5257  ;;  %v14320_v44 = vpop.permute.xlu1 %5357 }
 0x855   : > { %18726 = vst [vmem:[#allocation23_spill] sm:$0xff] %v14318_v11  ;;  %18727 = vst [vmem:[#allocation22_spill] sm:$0xff] %v14320_v44  ;;  %v5915_v11 = vld [vmem:[%s18103_s5 + $0x10] sm:$0xff] }
 0x856   : > { %5261 = vrot.lane.b32.xlu0 %v14249_v40, %s10303_s16  ;;  %5671 = vrot.lane.b32.xlu1 %v13905_v51, %s10307_s15  ;;  %v5064_v51 = vsel %vm523_vm1, %v14277_v8, %v14107_v12 }
 0x858   : > { %v14326_v49 = vpop.permute.xlu0 %5359  ;;  %v14328_v3 = vpop.permute.xlu1 %5373 }
 0x859   : > { %18728 = vst [vmem:[#allocation91_spill] sm:$0xff] %v14326_v49  ;;  %18729 = vst [vmem:[#allocation62_spill] sm:$0xff] %v14328_v3  ;;  %v5913_v49 = vld [vmem:[%s18103_s5] sm:$0xff] }
 0x85a   : > { %5673 = vrot.lane.b32.xlu0 %v13921_v33, %s10307_s15  ;;  %5361 = vrot.lane.b32.xlu1 %v14201_v14, %s10304_s19 }
 0x85c   : > { %v14334_v30 = vpop.permute.xlu0 %5375  ;;  %v14336_v52 = vpop.permute.xlu1 %5459 }
 0x85d   : > { %18730 = vst [vmem:[#allocation50_spill] sm:$0xff] %v14334_v30  ;;  %18731 = vst [vmem:[#allocation48_spill] sm:$0xff] %v14336_v52 }
 0x85e   : > { %5681 = vrot.lane.b32.xlu0 %v14003_v2, %s10307_s15  ;;  %5377 = vrot.lane.b32.xlu1 %v14225_v21, %s10304_s19  ;;  %v5068_v2 = vsel %vm523_vm1, %v14099_v29, %v14277_v8 }
 0x860   : > { %v14342_v1 = vpop.permute.xlu0 %5461  ;;  %v14344_v22 = vpop.permute.xlu1 %5475 }
 0x861   : > { %18732 = vst [vmem:[#allocation76_spill] sm:$0xff] %v14342_v1  ;;  %18733 = vst [vmem:[#allocation75_spill] sm:$0xff] %v14344_v22 }
 0x862   : > { %5363 = vrot.lane.b32.xlu0 %v14220_v36, %s10304_s19  ;;  %5463 = vrot.lane.b32.xlu1 %v14201_v14, %s10305_s24 }
 0x864   : > { %v14350_v32 = vpop.permute.xlu0 %5477  ;;  %v14352_v42 = vpop.permute.xlu1 %5561 }
 0x865   : > { %18734 = vst [vmem:[#allocation25_spill] sm:$0xff] %v14350_v32  ;;  %18735 = vst [vmem:[#allocation24_spill] sm:$0xff] %v14352_v42 }
 0x866   : > { %5379 = vrot.lane.b32.xlu0 %v14249_v40, %s10304_s19  ;;  %5479 = vrot.lane.b32.xlu1 %v14225_v21, %s10305_s24 }
 0x868   : > { %v14358_v47 = vpop.permute.xlu0 %5563  ;;  %v14360_v1 = vpop.permute.xlu1 %5577 }
 0x869   : > { %18736 = vst [vmem:[#allocation63_spill] sm:$0xff] %v14358_v47  ;;  %18737 = vst [vmem:[#allocation43_spill] sm:$0xff] %v14360_v1  ;;  %v5902_v1 = vld [vmem:[%s18102_s4 + $0x8] sm:$0xff] }
 0x86a   : > { %5465 = vrot.lane.b32.xlu0 %v14220_v36, %s10305_s24  ;;  %5565 = vrot.lane.b32.xlu1 %v14201_v14, %s10306_s29 }
 0x86b   : > { %6013 = vmatprep.mubr.f32.mxu0 %v5902_v1  ;;  %6191 = vmatprep.mubr.f32.mxu1 %v5902_v1 }
 0x86c   : > { %v14366_v22 = vpop.permute.xlu0 %5579  ;;  %v14368_v32 = vpop.permute.xlu1 %5663 }
 0x86d   : > { %18738 = vst [vmem:[#allocation52_spill] sm:$0xff] %v14366_v22  ;;  %18739 = vst [vmem:[#allocation51_spill] sm:$0xff] %v14368_v32 }
 0x86e   : > { %5481 = vrot.lane.b32.xlu0 %v14249_v40, %s10305_s24  ;;  %5581 = vrot.lane.b32.xlu1 %v14225_v21, %s10306_s29 }
 0x870   : > { %v14374_v42 = vpop.permute.xlu0 %5665  ;;  %v14376_v47 = vpop.permute.xlu1 %4929 }
 0x871   : > { %18740 = vst [vmem:[#allocation45_spill] sm:$0xff] %v14374_v42 }
 0x872   : > { %5567 = vrot.lane.b32.xlu0 %v14220_v36, %s10306_s29  ;;  %5679 = vrot.lane.b32.xlu1 %v13993_v61, %s10307_s15 }
 0x874   : > { %v14385_v32 = vpop.permute.xlu0 %4931  ;;  %v14387_v22 = vpop.permute.xlu1 %4945 }
 0x876   : > { %5583 = vrot.lane.b32.xlu0 %v14249_v40, %s10306_s29  ;;  %5659 = vrot.lane.b32.xlu1 %v14066_v5, %s10307_s15 }
 0x878   : > { %v14393_v42 = vpop.permute.xlu0 %4947  ;;  %v14395_v52 = vpop.permute.xlu1 %5031 }
 0x87a   : > { %5661 = vrot.lane.b32.xlu0 %v14084_v48, %s10307_s15  ;;  %5667 = vrot.lane.b32.xlu1 %v14201_v14, %s10307_s15 }
 0x87c   : > { %v14401_v1 = vpop.permute.xlu0 %5033  ;;  %v14403_v16 = vpop.permute.xlu1 %5047 }
 0x87e   : > { %5677 = vrot.lane.b32.xlu0 %v14097_v62, %s10307_s15  ;;  %5675 = vrot.lane.b32.xlu1 %v14081_v60, %s10307_s15 }
 0x880   : > { %v14409_v3 = vpop.permute.xlu0 %5049  ;;  %v14411_v30 = vpop.permute.xlu1 %5133 }
 0x882   : > { %5669 = vrot.lane.b32.xlu0 %v14220_v36, %s10307_s15  ;;  %5683 = vrot.lane.b32.xlu1 %v14225_v21, %s10307_s15 }
 0x884   : > { %v14417_v18 = vpop.permute.xlu0 %5135  ;;  %v14419_v17 = vpop.permute.xlu1 %5149 }
 0x885   : > { %18741 = vst [vmem:[#allocation74_spill] sm:$0xff] %v14417_v18  ;;  %18742 = vst [vmem:[#allocation31_spill] sm:$0xff] %v14419_v17  ;;  %v5916_v17 = vld [vmem:[%s18103_s5 + $0x18] sm:$0xff] }
 0x886   : > { %5685 = vrot.lane.b32.xlu0 %v14249_v40, %s10307_s15  ;;  %5919 = vperm.xlu1 %10267, %v5913_v49  }
 0x888   : > { %v14429_v63 = vpop.permute.xlu0 %5151  ;;  %v14431_v44 = vpop.permute.xlu1 %5235 }
 0x889   : > { %18743 = vst [vmem:[#allocation30_spill] sm:$0xff] %v14429_v63  ;;  %18744 = vst [vmem:[#allocation92_spill] sm:$0xff] %v14431_v44 }
 0x88a   : > { %5924 = vperm.xlu0 %10266, %v5914_v15   ;;  %5929 = vperm.xlu1 %10267, %v5915_v11  }
 0x88c   : > { %v14439_v18 = vpop.permute.xlu0 %5237  ;;  %v14441_v49 = vpop.permute.xlu1 %5251 }
 0x88d   : > { %18745 = vst [vmem:[#allocation33_spill] sm:$0xff] %v14441_v49 }
 0x88e   : > { %5934 = vperm.xlu0 %10266, %v5916_v17   ;;  %v9101_v17 = vld [vmem:[%s18099_s1 + $0x1] ss:$8 sm:$0xf] }
 0x88f   : > { %v14479_v49 = vrot.slane %v9101_v17, %v10561_v27  ;;  %v14498_v5 = vrot.slane %v9101_v17, %v10586_v39  ;;  %v14501_v48 = vrot.slane %v9101_v17, %v18658_v55 }
 0x890   : > { %v14443_v45 = vpop.permute.xlu0 %5253  ;;  %v14445_v63 = vpop.permute.xlu1 %5353 }
 0x891   : > { %18746 = vst [vmem:[#allocation32_spill] sm:$0xff] %v14445_v63  ;;  %v9102_v63 = vld [vmem:[%s18099_s1 + $0x2] ss:$8 sm:$0xf] }
 0x894   : > { %v14447_v44 = vpop.permute.xlu0 %5355  ;;  %v14449_v37 = vpop.permute.xlu1 %5369 }
 0x895   : > { %18747 = vst [vmem:[#allocation94_spill] sm:$0xff] %v14447_v44  ;;  %18748 = vst [vmem:[#allocation64_spill] sm:$0xff] %v14449_v37  ;;  %v9104_v44 = vld [vmem:[%s18099_s1 + $0x5] ss:$8 sm:$0xf]  ;;  %v14513_v37 = vrot.slane %v9102_v63, %v18658_v55 }
 0x896   : > { %v14531_v40 = vrot.slane %v9104_v44, %v10586_v39  ;;  %v14541_v33 = vrot.slane %v9104_v44, %v10561_v27  ;;  %v14544_v14 = vrot.slane %v9104_v44, %v18674_v4 }
 0x898   : > { %v14451_v28 = vpop.permute.xlu0 %5371  ;;  %v14453_v15 = vpop.permute.xlu1 %5455  ;;  %18755 = vst [vmem:[#allocation65_spill] sm:$0xff] %v14541_v33  ;;  %18756 = vst [vmem:[#allocation66_spill] sm:$0xff] %v14544_v14 }
 0x899   : > { %18749 = vst [vmem:[#allocation44_spill] sm:$0xff] %v14451_v28  ;;  %18750 = vst [vmem:[#allocation81_spill] sm:$0xff] %v14453_v15  ;;  %v9103_v28 = vld [vmem:[%s18099_s1 + $0x3] ss:$8 sm:$0xf]  ;;  %v14495_v15 = vrot.slane %v9101_v17, %v18674_v4 }
 0x89a   : > { %v9105_v17 = vld [vmem:[%s18099_s1 + $0x6] ss:$8 sm:$0xf]  ;;  %v14522_v60 = vrot.slane %v9103_v28, %v18674_v4  ;;  %v14525_v62 = vrot.slane %v9103_v28, %v10586_v39  ;;  %v14528_v21 = vrot.slane %v9103_v28, %v18658_v55 }
 0x89b   : > { %v14558_v0 = vrot.slane %v9105_v17, %v10586_v39  ;;  %v14561_v34 = vrot.slane %v9105_v17, %v10561_v27  ;;  %v14564_v14 = vrot.slane %v9105_v17, %v18674_v4  ;;  %v14575_v8 = vrot.slane %v9105_v17, %v18658_v55  ;;  %v14597_v17 = vld [vmem:[%s18099_s1 + $0x20] ss:$8 sm:$0xf] }
 0x89c   : > { %v14455_v11 = vpop.permute.xlu0 %5457  ;;  %v14457_v20 = vpop.permute.xlu1 %5471 }
 0x89d   : > { %18751 = vst [vmem:[#allocation46_spill] sm:$0xff] %v14455_v11  ;;  %18752 = vst [vmem:[#allocation5_spill] sm:$0xff] %v14457_v20  ;;  %v14507_v11 = vrot.slane %v9102_v63, %v18674_v4  ;;  %v14510_v20 = vrot.slane %v9102_v63, %v10586_v39 }
 0x89e   : > { %18760 = vst [vmem:[#allocation93_spill] sm:$0xff] %v14558_v0  ;;  %18761 = vst [vmem:[#allocation86_spill] sm:$0xff] %v14561_v34  ;;  %v14585_v34 = vmul.f32 %v14495_v15, %v5064_v51  ;;  %v5060_v0 = vsel %vm523_vm1, %v14107_v12, %v14286_v13  ;;  %v5059_v51 = vsel %vm523_vm1, %v14101_v6, %v14279_v23 }
 0x89f   : > { %18762 = vst [vmem:[#allocation85_spill] sm:$0xff] %v14564_v14  ;;  %18763 = vst [vmem:[#allocation67_spill] sm:$0xff] %v14575_v8  ;;  %v5067_v14 = vsel %vm523_vm1, %v14090_v56, %v14254_v19  ;;  %v5071_v12 = vsel %vm523_vm1, %v14279_v23, %v14090_v56  ;;  %v5169_v56 = vsel %vm667_vm2, %v14109_v38, %v14288_v7 }
 0x8a0   : > { %v14484_v31 = vpop.permute.xlu0 %5473  ;;  %v14486_v25 = vpop.permute.xlu1 %5557  ;;  %v14630_v23 = vmul.f32 %v14479_v49, %v5067_v14 }
 0x8a1   : > { %18753 = vst [vmem:[#allocation80_spill] sm:$0xff] %v14484_v31  ;;  %18754 = vst [vmem:[#allocation79_spill] sm:$0xff] %v14486_v25  ;;  %v14504_v25 = vrot.slane %v9102_v63, %v10561_v27  ;;  %v14516_v31 = vrot.slane %v9103_v28, %v10561_v27  ;;  %v9106_v63 = vld [vmem:[%s18099_s1 + $0x7] ss:$8 sm:$0xf]  ;;  %v14547_v28 = vrot.slane %v9104_v44, %v18658_v55 }
 0x8a2   : > { %v5063_v44 = vsel %vm523_vm1, %v14254_v19, %v14101_v6  ;;  %v14611_v19 = vrot.slane %v9106_v63, %v18674_v4  ;;  %v5165_v6 = vsel %vm667_vm2, %v14288_v7, %v14117_v50  ;;  %v14648_v7 = vmul.f32 %v14501_v48, %v5059_v51 }
 0x8a3   : > { %18757 = vst [vmem:[#allocation78_spill] sm:$0xff] %v14547_v28  ;;  %v14616_v8 = vmul.f32 %v14495_v15, %v5063_v44  ;;  %v14636_v44 = vrot.slane %v9106_v63, %v18658_v55  ;;  %v14645_v28 = vmul.f32 %v14498_v5, %v5071_v12  ;;  %v14654_v14 = vmul.f32 %v14504_v25, %v5169_v56 }
 0x8a4   : > { %v14549_v36 = vpop.permute.xlu0 %5559  ;;  %v14551_v61 = vpop.permute.xlu1 %5573  ;;  %18766 = vst [vmem:[#allocation68_spill] sm:$0xff] %v14611_v19  ;;  %v5166_v19 = vsel %vm667_vm2, %v14294_v53, %v14123_v41  ;;  %v5170_v56 = vsel %vm667_vm2, %v14115_v35, %v14294_v53 }
 0x8a5   : > { %18758 = vst [vmem:[#allocation95_spill] sm:$0xff] %v14549_v36  ;;  %18759 = vst [vmem:[#allocation96_spill] sm:$0xff] %v14551_v61  ;;  %v5072_v36 = vsel %vm523_vm1, %v14286_v13, %v14099_v29  ;;  %v14578_v61 = vrot.slane %v9106_v63, %v10586_v39  ;;  %v14592_v29 = vrot.slane %v9106_v63, %v10561_v27 }
 0x8a6   : > { %18768 = vst [vmem:[#allocation3_spill] sm:$0xff] %v14636_v44  ;;  %v14657_v63 = vmul.f32 %v14507_v11, %v5165_v6  ;;  %v5173_v6 = vsel %vm667_vm2, %v14296_v58, %v14109_v38  ;;  %v14686_v33 = vmul.f32 %v14507_v11, %v5166_v19  ;;  %v5161_v38 = vsel %vm667_vm2, %v14117_v50, %v14296_v58 }
 0x8a7   : > { %18764 = vst [vmem:[#allocation47_spill] sm:$0xff] %v14578_v61  ;;  %18765 = vst [vmem:[#allocation82_spill] sm:$0xff] %v14592_v29  ;;  %v14600_v61 = vmul.f32 %v14479_v49, %v5068_v2  ;;  %v14619_v2 = vmul.f32 %v14498_v5, %v5072_v36  ;;  %v14640_v36 = vrot.slane %v14597_v17, %v10586_v39 }
 0x8a8   : > { %v14613_v13 = vpop.permute.xlu0 %5575  ;;  %v4938_v29 = vpop.permute.xlu1 %4937  ;;  %v5174_v19 = vsel %vm667_vm2, %v14302_v9, %v14115_v35 }
 0x8a9   : > { %18767 = vst [vmem:[#allocation49_spill] sm:$0xff] %v14613_v13  ;;  %v14633_v13 = vmul.f32 %v14501_v48, %v5060_v0  ;;  %18769 = vst [vmem:[#allocation6_spill] sm:$0xff] %v14640_v36  ;;  %v4967_v0 = vsel %vm380_vm0, %v14376_v47, %v4938_v29  ;;  %v9655_v51 = vpack.c.bf16 %v14600_v61, %v14630_v23 }
 0x8aa   : > { %v5004_v61 = vmul.f32 %v14210_v24, %v4967_v0 }
 0x8ab   : > { %v9727_v53 = vpack.c.bf16 %v14633_v13, %v14648_v7  ;;  %v14702_v13 = vmul.f32 %v14510_v20, %v5173_v6 }
 0x8ac   : > { %v4940_v12 = vpop.permute.xlu0 %4939  ;;  %v4954_v44 = vpop.permute.xlu1 %4953 }
 0x8ad   : > { %v4968_v36 = vsel %vm380_vm0, %v14385_v32, %v4940_v12  ;;  %v4964_v23 = vsel %vm380_vm0, %v4940_v12, %v14393_v42  ;;  %v4959_v0 = vsel %vm380_vm0, %v14387_v22, %v4954_v44  ;;  %v4971_v12 = vsel %vm380_vm0, %v4954_v44, %v14376_v47 }
 0x8ae   : > { %v5008_v39 = vmul.f32 %v14210_v24, %v4968_v36  ;;  %v14699_v24 = vmul.f32 %v14504_v25, %v5170_v56  ;;  %v4963_v36 = vsel %vm380_vm0, %v4938_v29, %v14387_v22  ;;  %v5009_v7 = vmul.f32 %v14257_v46, %v4964_v23 }
 0x8af   : > { %v5003_v6 = vmul.f32 %v14233_v54, %v4971_v12  ;;  %v5006_v35 = vmul.f32 %v14236_v57, %v4959_v0  ;;  %v9737_v22 = vpack.c.bf16 %v14686_v33, %v14657_v63  ;;  %v14725_v29 = vmul.f32 %v14513_v37, %v5161_v38 }
 0x8b0   : > { %v4956_v50 = vpop.permute.xlu0 %4955  ;;  %v9651_v58 = vpack.c.bf16 %v5008_v39, %v5004_v61  ;;  %v5040_v56 = vpop.permute.xlu1 %5039  ;;  %v14740_v38 = vmul.f32 %v14510_v20, %v5174_v19 }
 0x8b1   : > { %v4960_v47 = vsel %vm380_vm0, %v14393_v42, %v4956_v50  ;;  %v4972_v44 = vsel %vm380_vm0, %v4956_v50, %v14385_v32  ;;  %v5069_v42 = vsel %vm523_vm1, %v14395_v52, %v5040_v56  ;;  %v14732_v32 = vrot.slane %v14597_v17, %v10561_v27 }
 0x8b2   : > { %v5007_v39 = vmul.f32 %v14233_v54, %v4972_v44  ;;  %v5010_v61 = vmul.f32 %v14236_v57, %v4960_v47  ;;  %9652 = vmatprep.subr.bf16.mxu0 %v9651_v58  ;;  %v5162_v54 = vsel %vm667_vm2, %v14123_v41, %v14302_v9  ;;  %v5005_v57 = vmul.f32 %v14257_v46, %v4963_v36 }
 0x8b3   : > { %v5267_v50 = vsel %vm811_vm3, %v14304_v59, %v14133_v43  ;;  %v5271_v58 = vsel %vm811_vm3, %v14125_v10, %v14304_v59  ;;  %v5106_v36 = vmul.f32 %v14479_v49, %v5069_v42  ;;  %v5206_v44 = vmul.f32 %v14513_v37, %v5162_v54 }
 0x8b4   : > { %v9653_v23 = vpack.c.bf16 %v5007_v39, %v5003_v6  ;;  %v5042_v0 = vpop.permute.xlu0 %5041  ;;  %v9723_v12 = vpack.c.bf16 %v5010_v61, %v5006_v35  ;;  %v5056_v46 = vpop.permute.xlu1 %5055  ;;  %v9725_v9 = vpack.c.bf16 %v5009_v7, %v5005_v57  ;;  %v14766_v7 = vmul.f32 %v14516_v31, %v5271_v58  ;;  %v18774_v58 = vld [vmem:[#allocation37_spill] sm:$0xff] }
 0x8b5   : > { %v5070_v41 = vsel %vm523_vm1, %v14401_v1, %v5042_v0  ;;  %v5066_v19 = vsel %vm523_vm1, %v5042_v0, %v14409_v3  ;;  %v5061_v59 = vsel %vm523_vm1, %v14403_v16, %v5056_v46  ;;  %v5073_v6 = vsel %vm523_vm1, %v5056_v46, %v14395_v52 }
 0x8b6   : > { %v5110_v47 = vmul.f32 %v14479_v49, %v5070_v41  ;;  %9654 = vmatpush1.bf16.msra.mxu0 %v9653_v23  ;;  %9724 = vmatprep.subr.bf16.mxu1 %v9723_v12  ;;  %v14769_v35 = vmul.f32 %v14522_v60, %v5267_v50  ;;  %v9663_v61 = vpack.c.bf16 %v14699_v24, %v14654_v14  ;;  %v18775_v41 = vld [vmem:[#allocation77_spill] sm:$0xff] }
 0x8b7   : > { %9656 = vmatprep.subr.bf16.mxu0 %v9655_v51  ;;  %9726 = vmatpush1.bf16.msra.mxu1 %v9725_v9  ;;  %v5065_v42 = vsel %vm523_vm1, %v5040_v56, %v14403_v16  ;;  %v5111_v52 = vmul.f32 %v14495_v15, %v5066_v19  ;;  %v5105_v23 = vmul.f32 %v14498_v5, %v5073_v6  ;;  %v18776_v9 = vld [vmem:[#allocation74_spill] sm:$0xff]  ;;  %v18778_v6 = vld [vmem:[#allocation31_spill] sm:$0xff] }
 0x8b8   : > { %v5058_v49 = vpop.permute.xlu0 %5057  ;;  %v9659_v39 = vpack.c.bf16 %v5110_v47, %v5106_v36  ;;  %9728 = vmatprep.subr.bf16.mxu1 %v9727_v53  ;;  %v5142_v57 = vpop.permute.xlu1 %5141  ;;  %v5108_v14 = vmul.f32 %v14501_v48, %v5061_v59  ;;  %v18770_v56 = vpack.c.bf16 %v14619_v2, %v14645_v28  ;;  %v9735_v53 = vpack.c.bf16 %v5206_v44, %v14725_v29  ;;  %v18777_v47 = vld [vmem:[#allocation30_spill] sm:$0xff] }
 0x8b9   : > { %v5062_v51 = vsel %vm523_vm1, %v14409_v3, %v5058_v49  ;;  %v5074_v54 = vsel %vm523_vm1, %v5058_v49, %v14401_v1  ;;  %v9665_v3 = vpack.c.bf16 %v14740_v38, %v14702_v13  ;;  %v5171_v1 = vsel %vm667_vm2, %v14411_v30, %v5142_v57 }
 0x8ba   : > { %v5109_v24 = vmul.f32 %v14498_v5, %v5074_v54  ;;  %v5112_v16 = vmul.f32 %v14501_v48, %v5062_v51  ;;  %9658 = vmatpush1.bf16.msra.mxu0 %v18770_v56  ;;  %v14798_v0 = vrot.slane %v14597_v17, %v18674_v4  ;;  %v18771_v5 = vld [vmem:[#allocation90_spill] sm:$0xff]  ;;  %v18772_v48 = vld [vmem:[#allocation36_spill] sm:$0xff]  ;;  %v5107_v2 = vmul.f32 %v14495_v15, %v5065_v42  ;;  %v18779_v42 = vld [vmem:[#allocation23_spill] sm:$0xff] }
 0x8bb   : > { %9660 = vmatprep.subr.bf16.mxu0 %v9659_v39  ;;  %v5272_v28 = vsel %vm811_vm3, %v18772_v48, %v18771_v5  ;;  %v18773_v13 = vpack.c.bf16 %v14585_v34, %v14616_v8  ;;  %v5268_v29 = vsel %vm811_vm3, %v18771_v5, %v18774_v58  ;;  %v5263_v46 = vsel %vm811_vm3, %v14133_v43, %v18775_v41 }
 0x8bc   : > { %v9661_v12 = vpack.c.bf16 %v5109_v24, %v5105_v23  ;;  %v5144_v38 = vpop.permute.xlu0 %5143  ;;  %v9731_v50 = vpack.c.bf16 %v5112_v16, %v5108_v14  ;;  %v5275_v15 = vsel %vm811_vm3, %v18775_v41, %v14125_v10  ;;  %v5158_v8 = vpop.permute.xlu1 %5157  ;;  %v9733_v36 = vpack.c.bf16 %v5111_v52, %v5107_v2  ;;  %v18780_v2 = vld [vmem:[#allocation92_spill] sm:$0xff] }
 0x8bd   : > { %9730 = vmatpush1.bf16.msra.mxu1 %v18773_v13  ;;  %v5172_v34 = vsel %vm667_vm2, %v18776_v9, %v5144_v38  ;;  %v5208_v19 = vmul.f32 %v14504_v25, %v5171_v1  ;;  %v5168_v44 = vsel %vm667_vm2, %v5144_v38, %v18777_v47  ;;  %v5306_v43 = vmul.f32 %v14516_v31, %v5272_v28 }
 0x8be   : > { %v5212_v59 = vmul.f32 %v14504_v25, %v5172_v34  ;;  %9662 = vmatpush1.bf16.msra.mxu0 %v9661_v12  ;;  %v5163_v10 = vsel %vm667_vm2, %v18778_v6, %v5158_v8  ;;  %v5175_v49 = vsel %vm667_vm2, %v5158_v8, %v14411_v30  ;;  %9732 = vmatprep.subr.bf16.mxu1 %v9731_v50  ;;  %v18781_v50 = vld [vmem:[#allocation22_spill] sm:$0xff] }
 0x8bf   : > { %9664 = vmatprep.subr.bf16.mxu0 %v9663_v61  ;;  %v14836_v39 = vmul.f32 %v14522_v60, %v5268_v29  ;;  %v5264_v25 = vsel %vm811_vm3, %v18774_v58, %v18779_v42  ;;  %v5276_v52 = vsel %vm811_vm3, %v18779_v42, %v18772_v48  ;;  %v5167_v30 = vsel %vm667_vm2, %v5142_v57, %v18778_v6  ;;  %v18782_v58 = vld [vmem:[#allocation83_spill] sm:$0xff] }
 0x8c0   : > { %v5160_v51 = vpop.permute.xlu0 %5159  ;;  %v9667_v54 = vpack.c.bf16 %v5212_v59, %v5208_v19  ;;  %v5213_v61 = vmul.f32 %v14507_v11, %v5168_v44  ;;  %v5244_v24 = vpop.permute.xlu1 %5243  ;;  %v5207_v16 = vmul.f32 %v14510_v20, %v5175_v49  ;;  %v5210_v56 = vmul.f32 %v14513_v37, %v5163_v10  ;;  %v18785_v19 = vld [vmem:[#allocation91_spill] sm:$0xff] }
 0x8c1   : > { %9734 = vmatpush1.bf16.msra.mxu1 %v9733_v36  ;;  %v5164_v23 = vsel %vm667_vm2, %v18777_v47, %v5160_v51  ;;  %v5176_v14 = vsel %vm667_vm2, %v5160_v51, %v18776_v9  ;;  %v5301_v5 = vmul.f32 %v14525_v62, %v5275_v15  ;;  %v5304_v48 = vmul.f32 %v14528_v21, %v5263_v46  ;;  %v18784_v36 = vld [vmem:[#allocation57_spill] sm:$0xff] }
 0x8c2   : > { %9736 = vmatprep.subr.bf16.mxu1 %v9735_v53  ;;  %v5211_v1 = vmul.f32 %v14510_v20, %v5176_v14  ;;  %v5214_v57 = vmul.f32 %v14513_v37, %v5164_v23  ;;  %9666 = vmatpush1.bf16.msra.mxu0 %v9665_v3  ;;  %v5308_v28 = vmul.f32 %v14528_v21, %v5264_v25 }
 0x8c3   : > { %v5273_v53 = vsel %vm811_vm3, %v18780_v2, %v5244_v24  ;;  %9668 = vmatprep.subr.bf16.mxu0 %v9667_v54  ;;  %v5305_v12 = vmul.f32 %v14525_v62, %v5276_v52  ;;  %v5209_v13 = vmul.f32 %v14507_v11, %v5167_v30  ;;  %v9745_v3 = vpack.c.bf16 %v14836_v39, %v14769_v35  ;;  %v18783_v35 = vld [vmem:[#allocation33_spill] sm:$0xff]  ;;  %v18787_v30 = vld [vmem:[#allocation84_spill] sm:$0xff] }
 0x8c4   : > { %v9669_v38 = vpack.c.bf16 %v5211_v1, %v5207_v16  ;;  %v5246_v37 = vpop.permute.xlu0 %5245  ;;  %v9739_v20 = vpack.c.bf16 %v5214_v57, %v5210_v56  ;;  %v5389_v29 = vsel %vm979_vm4, %v18782_v58, %v18781_v50  ;;  %v5260_v11 = vpop.permute.xlu1 %5259  ;;  %v9671_v46 = vpack.c.bf16 %v5306_v43, %v14766_v7  ;;  %v18789_v57 = vld [vmem:[#allocation65_spill] sm:$0xff] }
 0x8c5   : > { %9738 = vmatpush1.bf16.msra.mxu1 %v9737_v22  ;;  %v5274_v41 = vsel %vm811_vm3, %v14439_v18, %v5246_v37  ;;  %v9741_v15 = vpack.c.bf16 %v5213_v61, %v5209_v13  ;;  %v5310_v33 = vmul.f32 %v14516_v31, %v5273_v53  ;;  %v5270_v63 = vsel %vm811_vm3, %v5246_v37, %v14443_v45  ;;  %v18792_v53 = vld [vmem:[#allocation48_spill] sm:$0xff] }
 0x8c6   : > { %v5314_v22 = vmul.f32 %v14516_v31, %v5274_v41  ;;  %9670 = vmatpush1.bf16.msra.mxu0 %v9669_v38  ;;  %v5265_v9 = vsel %vm811_vm3, %v18783_v35, %v5260_v11  ;;  %v5277_v34 = vsel %vm811_vm3, %v5260_v11, %v18780_v2  ;;  %9740 = vmatprep.subr.bf16.mxu1 %v9739_v20  ;;  %v18786_v31 = vld [vmem:[#allocation58_spill] sm:$0xff]  ;;  %v18791_v2 = vld [vmem:[#allocation39_spill] sm:$0xff]  ;;  %v18793_v13 = vld [vmem:[#allocation76_spill] sm:$0xff] }
 0x8c7   : > { %9672 = vmatprep.subr.bf16.mxu0 %v9671_v46  ;;  %v9743_v7 = vpack.c.bf16 %v5308_v28, %v5304_v48  ;;  %v9673_v8 = vpack.c.bf16 %v5305_v12, %v5301_v5  ;;  %v5386_v47 = vsel %vm979_vm4, %v18785_v19, %v18784_v36  ;;  %v5390_v44 = vsel %vm979_vm4, %v18786_v31, %v18785_v19  ;;  %v18790_v48 = vld [vmem:[#allocation62_spill] sm:$0xff]  ;;  %v18794_v38 = vld [vmem:[#allocation59_spill] sm:$0xff]  ;;  %v18798_v46 = vld [vmem:[#allocation88_spill] sm:$0xff] }
 0x8c8   : > { %v5262_v59 = vpop.permute.xlu0 %5261  ;;  %v9675_v43 = vpack.c.bf16 %v5314_v22, %v5310_v33  ;;  %v5269_v6 = vsel %vm811_vm3, %v5244_v24, %v18783_v35  ;;  %v5315_v10 = vmul.f32 %v14522_v60, %v5270_v63  ;;  %v14910_v42 = vpop.permute.xlu1 %5671  ;;  %v5309_v25 = vmul.f32 %v14525_v62, %v5277_v34  ;;  %v18799_v33 = vld [vmem:[#allocation72_spill] sm:$0xff]  ;;  %v18800_v63 = vld [vmem:[#allocation70_spill] sm:$0xff] }
 0x8c9   : > { %9742 = vmatpush1.bf16.msra.mxu1 %v9741_v15  ;;  %v5266_v49 = vsel %vm811_vm3, %v14443_v45, %v5262_v59  ;;  %v5278_v39 = vsel %vm811_vm3, %v5262_v59, %v14439_v18  ;;  %v5312_v52 = vmul.f32 %v14528_v21, %v5265_v9  ;;  %v5385_v45 = vsel %vm979_vm4, %v18781_v50, %v18787_v30  ;;  %v18788_v18 = vld [vmem:[#allocation50_spill] sm:$0xff]  ;;  %v18804_v59 = vld [vmem:[#allocation25_spill] sm:$0xff] }
 0x8ca   : > { %9744 = vmatprep.subr.bf16.mxu1 %v9743_v7  ;;  %v5313_v51 = vmul.f32 %v14525_v62, %v5278_v39  ;;  %v5316_v54 = vmul.f32 %v14528_v21, %v5266_v49  ;;  %9674 = vmatpush1.bf16.msra.mxu0 %v9673_v8  ;;  %v14921_v61 = vmul.f32 %v14531_v40, %v5389_v29  ;;  %v18796_v29 = vld [vmem:[#allocation78_spill] sm:$0xff]  ;;  %v18802_v7 = vld [vmem:[#allocation75_spill] sm:$0xff] }
 0x8cb   : > { %v5382_v23 = vsel %vm979_vm4, %v18784_v36, %v18788_v18  ;;  %9676 = vmatprep.subr.bf16.mxu0 %v9675_v43  ;;  %v14929_v62 = vrot.slane %v14597_v17, %v18658_v55  ;;  %v5394_v21 = vsel %vm979_vm4, %v18788_v18, %v18786_v31  ;;  %v5311_v14 = vmul.f32 %v14522_v60, %v5269_v6  ;;  %v18805_v6 = vld [vmem:[#allocation55_spill] sm:$0xff] }
 0x8cc   : > { %v9677_v24 = vpack.c.bf16 %v5313_v51, %v5309_v25  ;;  %v14936_v16 = vpop.permute.xlu0 %5673  ;;  %v9747_v56 = vpack.c.bf16 %v5316_v54, %v5312_v52  ;;  %v14939_v1 = vmul.f32 %v14531_v40, %v5390_v44  ;;  %v5424_v5 = vmul.f32 %v18789_v57, %v5386_v47  ;;  %v5362_v28 = vpop.permute.xlu1 %5361  ;;  %v18803_v47 = vld [vmem:[#allocation93_spill] sm:$0xff]  ;;  %v18808_v52 = vld [vmem:[#allocation86_spill] sm:$0xff] }
 0x8cd   : > { %9746 = vmatpush1.bf16.msra.mxu1 %v9745_v3  ;;  %v5381_v17 = vsel %vm979_vm4, %v18787_v30, %v18790_v48  ;;  %v5393_v60 = vsel %vm979_vm4, %v18790_v48, %v18782_v58  ;;  %v5487_v12 = vsel %vm1123_vm5, %v18792_v53, %v18791_v2  ;;  %v5492_v37 = vsel %vm1123_vm5, %v18794_v38, %v18793_v13  ;;  %v18795_v3 = vld [vmem:[#allocation66_spill] sm:$0xff]  ;;  %v18797_v58 = vld [vmem:[#allocation87_spill] sm:$0xff]  ;;  %v18809_v30 = vld [vmem:[#allocation69_spill] sm:$0xff] }
 0x8ce   : > { %v9749_v20 = vpack.c.bf16 %v5315_v10, %v5311_v14  ;;  %9678 = vmatpush1.bf16.msra.mxu0 %v9677_v24  ;;  %9748 = vmatprep.subr.bf16.mxu1 %v9747_v56  ;;  %v14959_v50 = vmul.f32 %v18795_v3, %v5382_v23  ;;  %v5426_v41 = vmul.f32 %v18796_v29, %v5394_v21  ;;  %v18806_v10 = vld [vmem:[#allocation54_spill] sm:$0xff]  ;;  %v18812_v21 = vld [vmem:[#allocation85_spill] sm:$0xff]  ;;  %v18813_v24 = vld [vmem:[#allocation64_spill] sm:$0xff] }
 0x8cf   : > { %v5491_v11 = vsel %vm1123_vm5, %v18797_v58, %v18792_v53  ;;  %v5488_v15 = vsel %vm1123_vm5, %v18793_v13, %v18798_v46  ;;  %v18801_v22 = vpack.c.bf16 %v18799_v33, %v18800_v63  ;;  %v5420_v35 = vmul.f32 %v18789_v57, %v5385_v45  ;;  %v18810_v45 = vld [vmem:[#allocation34_spill] sm:$0xff]  ;;  %v18818_v13 = vld [vmem:[#allocation24_spill] sm:$0xff] }
 0x8d0   : > { %v14975_v9 = vmul.f32 %v18795_v3, %v5381_v17  ;;  %v5422_v34 = vmul.f32 %v18796_v29, %v5393_v60  ;;  %v5483_v8 = vsel %vm1123_vm5, %v18791_v2, %v18802_v7  ;;  %v14982_v36 = vpop.permute.xlu0 %5681  ;;  %v9689_v19 = vpack.c.bf16 %v14939_v1, %v14921_v61  ;;  %v5378_v39 = vpop.permute.xlu1 %5377  ;;  %v18814_v1 = vld [vmem:[#allocation89_spill] sm:$0xff]  ;;  %v18815_v48 = vld [vmem:[#allocation42_spill] sm:$0xff]  ;;  %v18817_v2 = vld [vmem:[#allocation67_spill] sm:$0xff] }
 0x8d1   : > { %9680 = vmatprep.subr.bf16.mxu0 %v18801_v22  ;;  %9750 = vmatpush1.bf16.msra.mxu1 %v9749_v20  ;;  %v14987_v31 = vmul.f32 %v18803_v47, %v5492_v37  ;;  %v5495_v44 = vsel %vm1123_vm5, %v18802_v7, %v18797_v58  ;;  %v5484_v43 = vsel %vm1123_vm5, %v18798_v46, %v18804_v59  ;;  %v18819_v37 = vld [vmem:[#allocation41_spill] sm:$0xff]  ;;  %v18824_v22 = vld [vmem:[#allocation44_spill] sm:$0xff] }
 0x8d2   : > { %v18807_v49 = vpack.c.bf16 %v18805_v6, %v18806_v10  ;;  %v15001_v25 = vmul.f32 %v18803_v47, %v5491_v11  ;;  %v15004_v51 = vmul.f32 %v18808_v52, %v5487_v12  ;;  %v15007_v54 = vmul.f32 %v18808_v52, %v5488_v15  ;;  %v18821_v58 = vld [vmem:[#allocation53_spill] sm:$0xff]  ;;  %v18823_v15 = vld [vmem:[#allocation40_spill] sm:$0xff] }
 0x8d3   : > { %v18811_v61 = vpack.c.bf16 %v18809_v30, %v18810_v45  ;;  %v9687_v18 = vpack.c.bf16 %v5424_v5, %v5420_v35  ;;  %v9761_v23 = vpack.c.bf16 %v14959_v50, %v14975_v9  ;;  %v15015_v14 = vmul.f32 %v18812_v21, %v5483_v8  ;;  %v18820_v50 = vld [vmem:[#allocation71_spill] sm:$0xff]  ;;  %v18825_v9 = vld [vmem:[#allocation94_spill] sm:$0xff]  ;;  %v18826_v7 = vld [vmem:[#allocation28_spill] sm:$0xff] }
 0x8d4   : > { %9752 = vmatprep.subr.bf16.mxu1 %v18807_v49  ;;  %v5387_v56 = vsel %vm979_vm4, %v5362_v28, %v18813_v24  ;;  %v18816_v17 = vpack.c.bf16 %v18814_v1, %v18815_v48  ;;  %v9759_v60 = vpack.c.bf16 %v5426_v41, %v5422_v34  ;;  %v15024_v53 = vmul.f32 %v18817_v2, %v5495_v44  ;;  %v5364_v41 = vpop.permute.xlu0 %5363  ;;  %v18827_v8 = vld [vmem:[#allocation29_spill] sm:$0xff] }
 0x8d5   : > { %9682 = vmatpush1.bf16.msra.mxu0 %v18811_v61  ;;  %v5496_v5 = vsel %vm1123_vm5, %v18804_v59, %v18794_v38  ;;  %v15031_v12 = vmul.f32 %v18812_v21, %v5484_v43  ;;  %v5593_v20 = vsel %vm1267_vm7, %v18819_v37, %v18818_v13  ;;  %v18822_v11 = vpack.c.bf16 %v18820_v50, %v18821_v58  ;;  %v5464_v59 = vpop.permute.xlu1 %5463  ;;  %v18829_v43 = vld [vmem:[#allocation32_spill] sm:$0xff] }
 0x8d6   : > { %9684 = vmatprep.subr.bf16.mxu0 %v18816_v17  ;;  %v5589_v38 = vsel %vm1267_vm7, %v18818_v13, %v18823_v15  ;;  %v5388_v35 = vsel %vm979_vm4, %v5364_v41, %v18824_v22  ;;  %v5392_v34 = vsel %vm979_vm4, %v18825_v9, %v5364_v41  ;;  %v18828_v44 = vpack.c.bf16 %v18826_v7, %v18827_v8  ;;  %v18830_v13 = vld [vmem:[#allocation38_spill] sm:$0xff]  ;;  %v18833_v7 = vld [vmem:[#allocation47_spill] sm:$0xff] }
 0x8d7   : > { %9754 = vmatpush1.bf16.msra.mxu1 %v18822_v11  ;;  %v5391_v49 = vsel %vm979_vm4, %v18829_v43, %v5362_v28  ;;  %v5428_v61 = vmul.f32 %v18789_v57, %v5387_v56  ;;  %v5432_v17 = vmul.f32 %v18789_v57, %v5388_v35  ;;  %v18831_v11 = vld [vmem:[#allocation35_spill] sm:$0xff]  ;;  %v9695_v41 = vpack.c.bf16 %v15007_v54, %v15004_v51  ;;  %v18835_v54 = vld [vmem:[#allocation56_spill] sm:$0xff] }
 0x8d8   : > { %9756 = vmatprep.subr.bf16.mxu1 %v18828_v44  ;;  %v18832_v46 = vpack.c.bf16 %v18830_v13, %v18831_v11  ;;  %v5528_v1 = vmul.f32 %v18817_v2, %v5496_v5  ;;  %v15067_v44 = vmul.f32 %v18833_v7, %v5593_v20  ;;  %v5383_v28 = vsel %vm979_vm4, %v18813_v24, %v5378_v39  ;;  %v18836_v5 = vld [vmem:[#allocation73_spill] sm:$0xff]  ;;  %v5380_v8 = vpop.permute.xlu0 %5379  ;;  %v18838_v24 = vld [vmem:[#allocation63_spill] sm:$0xff]  ;;  %v18839_v13 = vld [vmem:[#allocation60_spill] sm:$0xff] }
 0x8d9   : > { %v5395_v57 = vsel %vm979_vm4, %v5378_v39, %v18829_v43  ;;  %v5431_v51 = vmul.f32 %v14531_v40, %v5392_v34  ;;  %v18837_v20 = vpack.c.bf16 %v18835_v54, %v18836_v5  ;;  %v9691_v48 = vpack.c.bf16 %v5432_v17, %v5428_v61  ;;  %v5480_v43 = vpop.permute.xlu1 %5479  ;;  %v6369_v54 = vld [vmem:[%s18099_s1] ss:$8 sm:$0xf] }
 0x8da   : > { %9686 = vmatpush1.bf16.msra.mxu0 %v18832_v46  ;;  %v18834_v46 = vld [vmem:[#allocation82_spill] sm:$0xff]  ;;  %v5594_v39 = vsel %vm1267_vm7, %v18839_v13, %v18838_v24  ;;  %v5396_v34 = vsel %vm979_vm4, %v5380_v8, %v18825_v9  ;;  %v5430_v61 = vmul.f32 %v18796_v29, %v5395_v57  ;;  %v18842_v9 = vld [vmem:[#allocation5_spill] sm:$0xff]  ;;  %v15618_v10 = vrot.slane %v6369_v54, %v10561_v27 }
 0x8db   : > { %9688 = vmatprep.subr.bf16.mxu0 %v9687_v18  ;;  %v15078_v35 = vmul.f32 %v18834_v46, %v5589_v38  ;;  %9758 = vmatpush1.bf16.msra.mxu1 %v18837_v20  ;;  %v5427_v18 = vmul.f32 %v14531_v40, %v5391_v49  ;;  %v5384_v38 = vsel %vm979_vm4, %v18824_v22, %v5380_v8  ;;  %v18840_v40 = vld [vmem:[#allocation27_spill] sm:$0xff] }
 0x8dc   : > { %9760 = vmatprep.subr.bf16.mxu1 %v9759_v60  ;;  %v5429_v20 = vmul.f32 %v18795_v3, %v5383_v28  ;;  %v5433_v17 = vmul.f32 %v18795_v3, %v5384_v38  ;;  %v5434_v56 = vmul.f32 %v18796_v29, %v5396_v34  ;;  %v5590_v22 = vsel %vm1267_vm7, %v18838_v24, %v18840_v40  ;;  %v18841_v49 = vld [vmem:[#allocation43_spill] sm:$0xff]  ;;  %v5466_v57 = vpop.permute.xlu0 %5465  ;;  %v18844_v34 = vld [vmem:[#allocation80_spill] sm:$0xff] }
 0x8dd   : > { %v5585_v60 = vsel %vm1267_vm7, %v18823_v15, %v18841_v49  ;;  %v5489_v8 = vsel %vm1123_vm5, %v5464_v59, %v18842_v9  ;;  %v9767_v3 = vpack.c.bf16 %v5528_v1, %v15024_v53  ;;  %v5597_v29 = vsel %vm1267_vm7, %v18841_v49, %v18819_v37  ;;  %v18843_v15 = vld [vmem:[#allocation52_spill] sm:$0xff]  ;;  %v18845_v53 = vld [vmem:[#allocation46_spill] sm:$0xff] }
 0x8de   : > { %9690 = vmatpush1.bf16.msra.mxu0 %v9689_v19  ;;  %v9693_v19 = vpack.c.bf16 %v5431_v51, %v5427_v18  ;;  %v9765_v28 = vpack.c.bf16 %v5433_v17, %v5429_v20  ;;  %v9763_v24 = vpack.c.bf16 %v5434_v56, %v5430_v61  ;;  %v15116_v38 = vmul.f32 %v18833_v7, %v5594_v39  ;;  %v5566_v51 = vpop.permute.xlu1 %5565  ;;  %v18846_v56 = vld [vmem:[#allocation81_spill] sm:$0xff] }
 0x8df   : > { %9692 = vmatprep.subr.bf16.mxu0 %v9691_v48  ;;  %9762 = vmatpush1.bf16.msra.mxu1 %v9761_v23  ;;  %v5586_v48 = vsel %vm1267_vm7, %v18840_v40, %v18843_v15  ;;  %v5490_v1 = vsel %vm1123_vm5, %v5466_v57, %v18844_v34  ;;  %v5494_v37 = vsel %vm1123_vm5, %v18845_v53, %v5466_v57 }
 0x8e0   : > { %v5598_v23 = vsel %vm1267_vm7, %v18843_v15, %v18839_v13  ;;  %v5493_v39 = vsel %vm1123_vm5, %v18846_v56, %v5464_v59  ;;  %v5530_v18 = vmul.f32 %v18808_v52, %v5489_v8  ;;  %v5534_v20 = vmul.f32 %v18808_v52, %v5490_v1  ;;  %9764 = vmatprep.subr.bf16.mxu1 %v9763_v24  ;;  %v18847_v13 = vld [vmem:[#allocation68_spill] sm:$0xff] }
 0x8e1   : > { %v5628_v61 = vmul.f32 %v18834_v46, %v5590_v22  ;;  %v5485_v17 = vsel %vm1123_vm5, %v18842_v9, %v5480_v43  ;;  %v5497_v40 = vsel %vm1123_vm5, %v5480_v43, %v18846_v56  ;;  %v15145_v49 = vmul.f32 %v18847_v13, %v5585_v60  ;;  %v5482_v22 = vpop.permute.xlu0 %5481  ;;  %v18853_v56 = vld [vmem:[#allocation49_spill] sm:$0xff] }
 0x8e2   : > { %9694 = vmatpush1.bf16.msra.mxu0 %v9693_v19  ;;  %v15148_v59 = vmul.f32 %v18847_v13, %v5586_v48  ;;  %v5533_v52 = vmul.f32 %v18803_v47, %v5494_v37  ;;  %v9699_v8 = vpack.c.bf16 %v5534_v20, %v5530_v18  ;;  %v18848_v19 = vld [vmem:[#allocation3_spill] sm:$0xff]  ;;  %v5529_v9 = vmul.f32 %v18803_v47, %v5493_v39  ;;  %v5582_v60 = vpop.permute.xlu1 %5581 }
 0x8e3   : > { %9696 = vmatprep.subr.bf16.mxu0 %v9695_v41  ;;  %9766 = vmatpush1.bf16.msra.mxu1 %v9765_v28  ;;  %v5630_v57 = vmul.f32 %v18848_v19, %v5598_v23  ;;  %v5486_v43 = vsel %vm1123_vm5, %v18844_v34, %v5482_v22  ;;  %v5498_v41 = vsel %vm1123_vm5, %v5482_v22, %v18845_v53  ;;  %v18850_v53 = vld [vmem:[#allocation96_spill] sm:$0xff]  ;;  %v18854_v39 = vld [vmem:[#allocation95_spill] sm:$0xff] }
 0x8e4   : > { %9768 = vmatprep.subr.bf16.mxu1 %v9767_v3  ;;  %v5531_v24 = vmul.f32 %v18812_v21, %v5485_v17  ;;  %v5532_v28 = vmul.f32 %v18817_v2, %v5497_v40  ;;  %v5535_v15 = vmul.f32 %v18812_v21, %v5486_v43  ;;  %v5536_v48 = vmul.f32 %v18817_v2, %v5498_v41  ;;  %v18856_v17 = vld [vmem:[#allocation79_spill] sm:$0xff] }
 0x8e5   : > { %v18849_v47 = vpack.c.bf16 %v14987_v31, %v15001_v25  ;;  %v9705_v34 = vpack.c.bf16 %v15116_v38, %v15067_v44  ;;  %v5626_v1 = vmul.f32 %v18848_v19, %v5597_v29  ;;  %v5591_v3 = vsel %vm1267_vm7, %v5566_v51, %v18850_v53  ;;  %v5568_v25 = vpop.permute.xlu0 %5567  ;;  %v18852_v29 = vld [vmem:[#allocation45_spill] sm:$0xff] }
 0x8e6   : > { %v9703_v37 = vpack.c.bf16 %v5628_v61, %v15078_v35  ;;  %v9777_v21 = vpack.c.bf16 %v15148_v59, %v15145_v49  ;;  %v9701_v2 = vpack.c.bf16 %v5533_v52, %v5529_v9  ;;  %v9773_v23 = vpack.c.bf16 %v5535_v15, %v5531_v24  ;;  %v5680_v20 = vpop.permute.xlu1 %5679  ;;  %v18857_v52 = vld [vmem:[#allocation51_spill] sm:$0xff]  ;;  %v18858_v9 = vld [vmem:[#allocation26_spill] sm:$0xff] }
 0x8e7   : > { %9698 = vmatpush1.bf16.msra.mxu0 %v18849_v47  ;;  %v18851_v31 = vpack.c.bf16 %v15031_v12, %v15015_v14  ;;  %v9771_v44 = vpack.c.bf16 %v5536_v48, %v5532_v28  ;;  %v5692_v38 = vsel %vm1411_vm8, %v18852_v29, %v14936_v16  ;;  %v5592_v35 = vsel %vm1267_vm7, %v5568_v25, %v18853_v56  ;;  %v18855_v14 = vld [vmem:[#allocation61_spill] sm:$0xff] }
 0x8e8   : > { %9700 = vmatprep.subr.bf16.mxu0 %v9699_v8  ;;  %v5596_v18 = vsel %vm1267_vm7, %v18854_v39, %v5568_v25  ;;  %v9775_v61 = vpack.c.bf16 %v5630_v57, %v5626_v1  ;;  %v5696_v12 = vsel %vm1411_vm8, %v18855_v14, %v18852_v29  ;;  %v5595_v40 = vsel %vm1267_vm7, %v18856_v17, %v5566_v51  ;;  %v18859_v25 = vld [vmem:[#allocation6_spill] sm:$0xff] }
 0x8e9   : > { %9770 = vmatpush1.bf16.msra.mxu1 %v18851_v31  ;;  %v5632_v49 = vmul.f32 %v18834_v46, %v5591_v3  ;;  %v5636_v59 = vmul.f32 %v18834_v46, %v5592_v35  ;;  %v5691_v22 = vsel %vm1411_vm8, %v18857_v52, %v14910_v42  ;;  %v5587_v8 = vsel %vm1267_vm7, %v18850_v53, %v5582_v60  ;;  %v5584_v41 = vpop.permute.xlu0 %5583 }
 0x8ea   : > { %v5599_v57 = vsel %vm1267_vm7, %v5582_v60, %v18856_v17  ;;  %9772 = vmatprep.subr.bf16.mxu1 %v9771_v44  ;;  %v5730_v51 = vmul.f32 %v14732_v32, %v5692_v38  ;;  %v5635_v46 = vmul.f32 %v18833_v7, %v5596_v18  ;;  %v5699_v43 = vsel %vm1411_vm8, %v5680_v20, %v18858_v9  ;;  %v5660_v47 = vpop.permute.xlu1 %5659 }
 0x8eb   : > { %9702 = vmatpush1.bf16.msra.mxu0 %v9701_v2  ;;  %v9707_v24 = vpack.c.bf16 %v5636_v59, %v5632_v49  ;;  %v5700_v28 = vsel %vm1411_vm8, %v14982_v36, %v18855_v14  ;;  %v5631_v60 = vmul.f32 %v18833_v7, %v5595_v40  ;;  %v5588_v15 = vsel %vm1267_vm7, %v18853_v56, %v5584_v41  ;;  %v5904_v49 = vld [vmem:[%s18102_s4 + $0x18] sm:$0xff] }
 0x8ec   : > { %9704 = vmatprep.subr.bf16.mxu0 %v9703_v37  ;;  %v5600_v48 = vsel %vm1267_vm7, %v5584_v41, %v18854_v39  ;;  %v5633_v1 = vmul.f32 %v18847_v13, %v5587_v8  ;;  %v5634_v53 = vmul.f32 %v18848_v19, %v5599_v57  ;;  %v5637_v3 = vmul.f32 %v18847_v13, %v5588_v15  ;;  %v5911_v15 = vld [vmem:[%s18102_s4 + $0x50] sm:$0xff] }
 0x8ed   : > { %9774 = vmatpush1.bf16.msra.mxu1 %v9773_v23  ;;  %v5638_v37 = vmul.f32 %v18848_v19, %v5600_v48  ;;  %v5695_v7 = vsel %vm1411_vm8, %v18858_v9, %v18857_v52  ;;  %v5726_v2 = vmul.f32 %v14732_v32, %v5691_v22  ;;  %v5687_v23 = vsel %vm1411_vm8, %v14910_v42, %v5680_v20  ;;  %v5662_v19 = vpop.permute.xlu0 %5661  ;;  %v5908_v52 = vld [vmem:[%s18102_s4 + $0x38] sm:$0xff] }
 0x8ee   : > { %9776 = vmatprep.subr.bf16.mxu1 %v9775_v61  ;;  %v5728_v31 = vmul.f32 %v14929_v62, %v5699_v43  ;;  %v5729_v44 = vmul.f32 %v18859_v25, %v5696_v12  ;;  %v9709_v13 = vpack.c.bf16 %v5635_v46, %v5631_v60  ;;  %v9781_v29 = vpack.c.bf16 %v5637_v3, %v5633_v1  ;;  %v5668_v35 = vpop.permute.xlu1 %5667 }
 0x8ef   : > { %9706 = vmatpush1.bf16.msra.mxu0 %v9705_v34  ;;  %v9779_v34 = vpack.c.bf16 %v5638_v37, %v5634_v53  ;;  %v5688_v38 = vsel %vm1411_vm8, %v14936_v16, %v14982_v36  ;;  %v5732_v56 = vmul.f32 %v14929_v62, %v5700_v28  ;;  %v9711_v39 = vpack.c.bf16 %v5730_v51, %v5726_v2  ;;  %v5905_v16 = vld [vmem:[%s18102_s4 + $0x20] sm:$0xff]  ;;  %v5907_v28 = vld [vmem:[%s18102_s4 + $0x30] sm:$0xff] }
 0x8f0   : > { %9708 = vmatprep.subr.bf16.mxu0 %v9707_v24  ;;  %v5725_v42 = vmul.f32 %v18859_v25, %v5695_v7  ;;  %v5727_v18 = vmul.f32 %v14798_v0, %v5687_v23  ;;  %v5731_v61 = vmul.f32 %v14798_v0, %v5688_v38  ;;  %v5697_v40 = vsel %vm1411_vm8, %v5660_v47, %v5668_v35  ;;  %v5910_v23 = vld [vmem:[%s18102_s4 + $0x48] sm:$0xff] }
 0x8f1   : > { %9778 = vmatpush1.bf16.msra.mxu1 %v9777_v21  ;;  %v5901_v21 = vld [vmem:[%s18102_s4] sm:$0xff]  ;;  %v9783_v20 = vpack.c.bf16 %v5732_v56, %v5728_v31  ;;  %v5678_v14 = vpop.permute.xlu0 %5677  ;;  %v5733_v8 = vmul.f32 %v18859_v25, %v5697_v40 }
 0x8f2   : > { %9780 = vmatprep.subr.bf16.mxu1 %v9779_v34  ;;  %v9713_v36 = vpack.c.bf16 %v5729_v44, %v5725_v42  ;;  %v5676_v12 = vpop.permute.xlu1 %5675  ;;  %v9785_v17 = vpack.c.bf16 %v5731_v61, %v5727_v18  ;;  %v18860_v44 = vmov 0.0  }
 0x8f3   : > { %9710 = vmatpush1.bf16.msra.mxu0 %v9709_v13  ;;  %v5693_v59 = vsel %vm1411_vm8, %v5668_v35, %v5676_v12  ;;  %v5909_v13 = vld [vmem:[%s18102_s4 + $0x40] sm:$0xff] }
 0x8f4   : > { %9712 = vmatprep.subr.bf16.mxu0 %v9711_v39  ;;  %v5734_v9 = vmul.f32 %v14732_v32, %v5693_v59 }
 0x8f5   : > { %9782 = vmatpush1.bf16.msra.mxu1 %v9781_v29  ;;  %v5670_v22 = vpop.permute.xlu0 %5669  ;;  %v5912_v29 = vld [vmem:[%s18102_s4 + $0x58] sm:$0xff] }
 0x8f6   : > { %9784 = vmatprep.subr.bf16.mxu1 %v9783_v20  ;;  %6014 = vmatmul.mubr.f32.vlgmr.msra.gmra.mrb[24].mxu0 %v5901_v21  ;;  %v5694_v57 = vsel %vm1411_vm8, %v5670_v22, %v5678_v14  ;;  %v5698_v51 = vsel %vm1411_vm8, %v5662_v19, %v5670_v22  ;;  %v5684_v46 = vpop.permute.xlu1 %5683 }
 0x8f7   : > { %9714 = vmatpush1.bf16.msra.mxu0 %v9713_v36  ;;  %6019 = vmatprep.mubr.f32.mxu0 %v5905_v16  ;;  %v5737_v43 = vmul.f32 %v18859_v25, %v5698_v51  ;;  %v5738_v41 = vmul.f32 %v14732_v32, %v5694_v57  ;;  %v5689_v24 = vsel %vm1411_vm8, %v5676_v12, %v5684_v46 }
 0x8f8   : > { %6192 = vmatmul.mubr.f32.vlgmr.msra.gmra.mrb[24].mxu1 %v5901_v21  ;;  %v5701_v60 = vsel %vm1411_vm8, %v5684_v46, %v5660_v47  ;;  %v5735_v53 = vmul.f32 %v14798_v0, %v5689_v24 }
 0x8f9   : > { %9786 = vmatpush1.bf16.msra.mxu1 %v9785_v17  ;;  %6197 = vmatprep.mubr.f32.mxu1 %v5905_v16  ;;  %v9717_v48 = vpack.c.bf16 %v5737_v43, %v5733_v8  ;;  %v5686_v1 = vpop.permute.xlu0 %5685  ;;  %v9715_v32 = vpack.c.bf16 %v5738_v41, %v5734_v9  ;;  %v5736_v47 = vmul.f32 %v14929_v62, %v5701_v60 }
 0x8fa   : > { %6020 = vmatmul.mubr.f32.gmra.mrb[26].mxu0 %v5904_v49  ;;  %v5690_v3 = vsel %vm1411_vm8, %v5678_v14, %v5686_v1  ;;  %v5702_v37 = vsel %vm1411_vm8, %v5686_v1, %v5662_v19 }
 0x8fb   : > { %6025 = vmatprep.mubr.f32.mxu0 %v5908_v52  ;;  %v5739_v7 = vmul.f32 %v14798_v0, %v5690_v3  ;;  %v5740_v2 = vmul.f32 %v14929_v62, %v5702_v37  ;;  %9716 = vmatprep.subr.bf16.mxu0 %v9715_v32  ;;  %v5903_v0 = vld [vmem:[%s18102_s4 + $0x10] sm:$0xff]  ;;  %v5906_v62 = vld [vmem:[%s18102_s4 + $0x28] sm:$0xff] }
 0x8fc   : > { %6198 = vmatmul.mubr.f32.gmra.mrb[26].mxu1 %v5904_v49  ;;  %9718 = vmatpush1.bf16.msra.mxu0 %v9717_v48 }
 0x8fd   : > { %6203 = vmatprep.mubr.f32.mxu1 %v5908_v52  ;;  %v9789_v31 = vpack.c.bf16 %v5739_v7, %v5735_v53  ;;  %v9787_v25 = vpack.c.bf16 %v5740_v2, %v5736_v47 }
 0x8fe   : > { %6026 = vmatmul.mubr.f32.gmra.mrb[28].mxu0 %v5907_v28 }
 0x8ff   : > { %6031 = vmatprep.mubr.f32.mxu0 %v5911_v15  ;;  %9788 = vmatprep.subr.bf16.mxu1 %v9787_v25 }
 0x900   : > { %6204 = vmatmul.mubr.f32.gmra.mrb[28].mxu1 %v5907_v28 }
 0x901   : > { %6209 = vmatprep.mubr.f32.mxu1 %v5911_v15  ;;  %9790 = vmatpush1.bf16.msra.mxu1 %v9789_v31 }
 0x902   : > { %6032 = vmatmul.mubr.f32.gmra.mrb[30].mxu0 %v5910_v23 }
 0x903   : > { %6102 = vmatprep.mubr.f32.mxu0 %v18860_v44 }
 0x904   : > { %6210 = vmatmul.mubr.f32.gmra.mrb[30].mxu1 %v5910_v23 }
 0x905   : > { %6280 = vmatprep.mubr.f32.mxu1 %v18860_v44  ;;  %v5920_v19 = vpop.permute.xlu1 %5919 }
 0x906   : > { %9108 = vmatmul.mubr.msk.f32.vlgmr.msra.gmra.mrb[24].mxu0 %vm3144_vm9, %v5903_v0 }
 0x907   : > { %6108 = vmatprep.mubr.f32.mxu0 %v18860_v44 }
 0x908   : > { %9112 = vmatmul.mubr.msk.f32.vlgmr.msra.gmra.mrb[24].mxu1 %vm3144_vm9, %v5903_v0 }
 0x909   : > { %6286 = vmatprep.mubr.f32.mxu1 %v18860_v44  ;;  %v5925_v21 = vpop.permute.xlu0 %5924  ;;  %v15462_v53 = vpop.permute.xlu1 %5929 }
 0x90a   : > { %9109 = vmatmul.mubr.msk.f32.gmra.mrb[26].mxu0 %vm3144_vm9, %v5906_v62 }
 0x90b   : > { %6114 = vmatprep.mubr.f32.mxu0 %v18860_v44 }
 0x90c   : > { %9113 = vmatmul.mubr.msk.f32.gmra.mrb[26].mxu1 %vm3144_vm9, %v5906_v62 }
 0x90d   : > { %6292 = vmatprep.mubr.f32.mxu1 %v18860_v44  ;;  %v15468_v3 = vpop.permute.xlu0 %5934 }
 0x90e   : > { %9110 = vmatmul.mubr.msk.f32.gmra.mrb[28].mxu0 %vm3144_vm9, %v5909_v13 }
 0x90f   : > { %6120 = vmatprep.mubr.f32.mxu0 %v18860_v44 }
 0x910   : > { %9114 = vmatmul.mubr.msk.f32.gmra.mrb[28].mxu1 %vm3144_vm9, %v5909_v13 }
 0x911   : > { %6298 = vmatprep.mubr.f32.mxu1 %v18860_v44  ;;  %v18891_v44 = vld [vmem:[#allocation4_spill] sm:$0xff] }
 0x912   : > { %9111 = vmatmul.mubr.msk.f32.gmra.mrb[30].mxu0 %vm3144_vm9, %v5912_v29 }
 0x914   : > { %9115 = vmatmul.mubr.msk.f32.gmra.mrb[30].mxu1 %vm3144_vm9, %v5912_v29 }
 0x9d9   : > { %v6104_v34 = vpop.f32.mrb[24].mxu0 }
 0x9da   : > { %v10127_v38 = vadd.f32 %v6104_v34, %v5920_v19  ;;  %v6106_v56 = vpop.f32.mrb[25].mxu0 }
 0x9db   : > { %v6282_v35 = vpop.f32.mrb[24].mxu1  ;;  %v10128_v41 = vadd.f32 %v6106_v56, %v5920_v19 }
 0x9dc   : > { %v15318_v39 = vmax.f32 %v10127_v38, 0.0  ;;  %v10135_v42 = vadd.f32 %v6282_v35, %v5920_v19  ;;  %v6284_v18 = vpop.f32.mrb[25].mxu1 }
 0x9dd   : > { %v6110_v20 = vpop.f32.mrb[26].mxu0  ;;  %v15402_v24 = vmax.f32 %v10128_v41, 0.0  ;;  %v10136_v28 = vadd.f32 %v6284_v18, %v5920_v19 }
 0x9de   : > { %18861 = vst [vmem:[#allocation7_spill] sm:$0xff] %v15318_v39  ;;  %v10129_v16 = vadd.f32 %v6110_v20, %v5925_v21  ;;  %v6112_v36 = vpop.f32.mrb[27].mxu0  ;;  %6321 = vrot.lane.b32.xlu1 %v15318_v39, %s10300_s11  ;;  %v15322_v14 = vmax.f32 %v10135_v42, 0.0 }
 0x9df   : > { %v6288_v61 = vpop.f32.mrb[26].mxu1  ;;  %18865 = vst [vmem:[#allocation12_spill] sm:$0xff] %v15402_v24  ;;  %v10130_v60 = vadd.f32 %v6112_v36, %v5925_v21  ;;  %v15408_v15 = vmax.f32 %v10136_v28, 0.0 }
 0x9e0   : > { %18862 = vst [vmem:[#allocation8_spill] sm:$0xff] %v15322_v14  ;;  %v15324_v12 = vmax.f32 %v10129_v16, 0.0  ;;  %v10137_v17 = vadd.f32 %v6288_v61, %v5925_v21  ;;  %v6290_v40 = vpop.f32.mrb[27].mxu1 }
 0x9e1   : > { %v15326_v49 = vpop.f32.mrb[28].mxu0  ;;  %18866 = vst [vmem:[#allocation11_spill] sm:$0xff] %v15408_v15  ;;  %v15410_v48 = vmax.f32 %v10130_v60, 0.0  ;;  %v10138_v1 = vadd.f32 %v6290_v40, %v5925_v21 }
 0x9e2   : > { %18863 = vst [vmem:[#allocation9_spill] sm:$0xff] %v15324_v12  ;;  %v15328_v59 = vpop.f32.mrb[29].mxu0  ;;  %6323 = vrot.lane.b32.xlu0 %v15324_v12, %s10300_s11  ;;  %6337 = vrot.lane.b32.xlu1 %v15322_v14, %s10300_s11  ;;  %v15338_v8 = vmax.f32 %v10137_v17, 0.0  ;;  %v10131_v37 = vadd.f32 %v15326_v49, %v15462_v53 }
 0x9e3   : > { %v15336_v22 = vpop.f32.mrb[28].mxu1  ;;  %18867 = vst [vmem:[#allocation13_spill] sm:$0xff] %v15410_v48  ;;  %v15416_v32 = vmax.f32 %v10138_v1, 0.0 }
 0x9e4   : > { %18864 = vst [vmem:[#allocation10_spill] sm:$0xff] %v15338_v8  ;;  %v15340_v57 = vpop.f32.mrb[29].mxu1  ;;  %v15478_v7 = vmax.f32 %v10131_v37, 0.0  ;;  %v10139_v2 = vadd.f32 %v15336_v22, %v15462_v53 }
 0x9e5   : > { %v15342_v51 = vpop.f32.mrb[30].mxu0  ;;  %18868 = vst [vmem:[#allocation14_spill] sm:$0xff] %v15416_v32  ;;  %v10140_v33 = vadd.f32 %v15340_v57, %v15462_v53 }
 0x9e6   : > { %v15344_v46 = vpop.f32.mrb[31].mxu0  ;;  %6339 = vrot.lane.b32.xlu0 %v15338_v8, %s10300_s11  ;;  %6423 = vrot.lane.b32.xlu1 %v15318_v39, %s10301_s12  ;;  %18869 = vst [vmem:[#allocation16_spill] sm:$0xff] %v15478_v7  ;;  %v10133_v23 = vadd.f32 %v15342_v51, %v15468_v3  ;;  %v15492_v0 = vmax.f32 %v10139_v2, 0.0 }
 0x9e7   : > { %v15350_v9 = vpop.f32.mrb[30].mxu1  ;;  %v10134_v11 = vadd.f32 %v15344_v46, %v15468_v3 }
 0x9e8   : > { %v15352_v43 = vpop.f32.mrb[31].mxu1  ;;  %18870 = vst [vmem:[#allocation15_spill] sm:$0xff] %v15492_v0  ;;  %v15494_v62 = vmax.f32 %v10133_v23, 0.0  ;;  %v10141_v13 = vadd.f32 %v15350_v9, %v15468_v3  ;;  %v10132_v23 = vadd.f32 %v15328_v59, %v15462_v53  ;;  %v15631_v53 = vmax.f32 %v10140_v33, 0.0 }
 0x9e9   : > { %v15627_v46 = vmax.f32 %v10134_v11, 0.0  ;;  %v10142_v63 = vadd.f32 %v15352_v43, %v15468_v3  ;;  %v15642_v11 = vrot.slane %v6369_v54, %v18658_v55 }
 0x9ea   : > { %6425 = vrot.lane.b32.xlu0 %v15324_v12, %s10301_s12  ;;  %6439 = vrot.lane.b32.xlu1 %v15322_v14, %s10301_s12  ;;  %18871 = vst [vmem:[#allocation17_spill] sm:$0xff] %v15494_v62  ;;  %v15506_v34 = vmax.f32 %v10141_v13, 0.0  ;;  %v15609_v5 = vmax.f32 %v10132_v23, 0.0  ;;  %18890 = vst [vmem:[#allocation58_spill] sm:$0xff] %v15631_v53 }
 0x9eb   : > { %18889 = vst [vmem:[#allocation91_spill] sm:$0xff] %v15627_v46 }
 0x9ec   : > { %18872 = vst [vmem:[#allocation18_spill] sm:$0xff] %v15506_v34  ;;  %18887 = vst [vmem:[#allocation33_spill] sm:$0xff] %v15609_v5 }
 0x9ee   : > { %6441 = vrot.lane.b32.xlu0 %v15338_v8, %s10301_s12  ;;  %6525 = vrot.lane.b32.xlu1 %v15318_v39, %s10302_s13 }
 0x9f2   : > { %6527 = vrot.lane.b32.xlu0 %v15324_v12, %s10302_s13  ;;  %6541 = vrot.lane.b32.xlu1 %v15322_v14, %s10302_s13 }
 0x9f6   : > { %6543 = vrot.lane.b32.xlu0 %v15338_v8, %s10302_s13  ;;  %6627 = vrot.lane.b32.xlu1 %v15318_v39, %s10303_s16 }
 0x9fa   : > { %6629 = vrot.lane.b32.xlu0 %v15324_v12, %s10303_s16  ;;  %6643 = vrot.lane.b32.xlu1 %v15322_v14, %s10303_s16 }
 0x9fe   : > { %6645 = vrot.lane.b32.xlu0 %v15338_v8, %s10303_s16  ;;  %6745 = vrot.lane.b32.xlu1 %v15318_v39, %s10304_s19 }
 0xa02   : > { %6747 = vrot.lane.b32.xlu0 %v15324_v12, %s10304_s19  ;;  %6761 = vrot.lane.b32.xlu1 %v15322_v14, %s10304_s19 }
 0xa06   : > { %6763 = vrot.lane.b32.xlu0 %v15338_v8, %s10304_s19  ;;  %6847 = vrot.lane.b32.xlu1 %v15318_v39, %s10305_s24 }
 0xa0a   : > { %6849 = vrot.lane.b32.xlu0 %v15324_v12, %s10305_s24  ;;  %6863 = vrot.lane.b32.xlu1 %v15322_v14, %s10305_s24 }
 0xa0e   : > { %6865 = vrot.lane.b32.xlu0 %v15338_v8, %s10305_s24  ;;  %6949 = vrot.lane.b32.xlu1 %v15318_v39, %s10306_s29 }
 0xa12   : > { %6951 = vrot.lane.b32.xlu0 %v15324_v12, %s10306_s29  ;;  %6965 = vrot.lane.b32.xlu1 %v15322_v14, %s10306_s29 }
 0xa16   : > { %6967 = vrot.lane.b32.xlu0 %v15338_v8, %s10306_s29  ;;  %7051 = vrot.lane.b32.xlu1 %v15318_v39, %s10307_s15 }
 0xa1a   : > { %7053 = vrot.lane.b32.xlu0 %v15324_v12, %s10307_s15  ;;  %6329 = vrot.lane.b32.xlu1 %v15402_v24, %s10300_s11 }
 0xa1e   : > { %6331 = vrot.lane.b32.xlu0 %v15410_v48, %s10300_s11  ;;  %6345 = vrot.lane.b32.xlu1 %v15408_v15, %s10300_s11 }
 0xa22   : > { %6347 = vrot.lane.b32.xlu0 %v15416_v32, %s10300_s11  ;;  %6431 = vrot.lane.b32.xlu1 %v15402_v24, %s10301_s12 }
 0xa26   : > { %6433 = vrot.lane.b32.xlu0 %v15410_v48, %s10301_s12  ;;  %6447 = vrot.lane.b32.xlu1 %v15408_v15, %s10301_s12 }
 0xa2a   : > { %6449 = vrot.lane.b32.xlu0 %v15416_v32, %s10301_s12  ;;  %6533 = vrot.lane.b32.xlu1 %v15402_v24, %s10302_s13 }
 0xa2e   : > { %6535 = vrot.lane.b32.xlu0 %v15410_v48, %s10302_s13  ;;  %6549 = vrot.lane.b32.xlu1 %v15408_v15, %s10302_s13 }
 0xa32   : > { %6551 = vrot.lane.b32.xlu0 %v15416_v32, %s10302_s13  ;;  %6635 = vrot.lane.b32.xlu1 %v15402_v24, %s10303_s16 }
 0xa36   : > { %6637 = vrot.lane.b32.xlu0 %v15410_v48, %s10303_s16  ;;  %6651 = vrot.lane.b32.xlu1 %v15408_v15, %s10303_s16 }
 0xa3a   : > { %6653 = vrot.lane.b32.xlu0 %v15416_v32, %s10303_s16  ;;  %6753 = vrot.lane.b32.xlu1 %v15402_v24, %s10304_s19 }
 0xa3e   : > { %6755 = vrot.lane.b32.xlu0 %v15410_v48, %s10304_s19  ;;  %6769 = vrot.lane.b32.xlu1 %v15408_v15, %s10304_s19 }
 0xa42   : > { %6771 = vrot.lane.b32.xlu0 %v15416_v32, %s10304_s19  ;;  %6855 = vrot.lane.b32.xlu1 %v15402_v24, %s10305_s24 }
 0xa46   : > { %6857 = vrot.lane.b32.xlu0 %v15410_v48, %s10305_s24  ;;  %6871 = vrot.lane.b32.xlu1 %v15408_v15, %s10305_s24 }
 0xa4a   : > { %6873 = vrot.lane.b32.xlu0 %v15416_v32, %s10305_s24  ;;  %6957 = vrot.lane.b32.xlu1 %v15402_v24, %s10306_s29 }
 0xa4e   : > { %6959 = vrot.lane.b32.xlu0 %v15410_v48, %s10306_s29  ;;  %6973 = vrot.lane.b32.xlu1 %v15408_v15, %s10306_s29 }
 0xa50   : > { %v15472_v47 = vpop.permute.xlu1 %6321 }
 0xa52   : > { %6975 = vrot.lane.b32.xlu0 %v15416_v32, %s10306_s29  ;;  %7059 = vrot.lane.b32.xlu1 %v15402_v24, %s10307_s15 }
 0xa54   : > { %v15484_v31 = vpop.permute.xlu0 %6323  ;;  %v15486_v25 = vpop.permute.xlu1 %6337 }
 0xa56   : > { %7061 = vrot.lane.b32.xlu0 %v15410_v48, %s10307_s15  ;;  %6325 = vrot.lane.b32.xlu1 %v15478_v7, %s10300_s11 }
 0xa58   : > { %v15498_v29 = vpop.permute.xlu0 %6339  ;;  %v15500_v19 = vpop.permute.xlu1 %6423 }
 0xa5a   : > { %6327 = vrot.lane.b32.xlu0 %v15494_v62, %s10300_s11  ;;  %6341 = vrot.lane.b32.xlu1 %v15492_v0, %s10300_s11 }
 0xa5c   : > { %v15508_v38 = vpop.permute.xlu0 %6425  ;;  %v15510_v56 = vpop.permute.xlu1 %6439 }
 0xa5e   : > { %6343 = vrot.lane.b32.xlu0 %v15506_v34, %s10300_s11  ;;  %6427 = vrot.lane.b32.xlu1 %v15478_v7, %s10301_s12 }
 0xa60   : > { %v15516_v35 = vpop.permute.xlu0 %6441  ;;  %v15518_v42 = vpop.permute.xlu1 %6525 }
 0xa62   : > { %6429 = vrot.lane.b32.xlu0 %v15494_v62, %s10301_s12  ;;  %6443 = vrot.lane.b32.xlu1 %v15492_v0, %s10301_s12 }
 0xa64   : > { %v15524_v18 = vpop.permute.xlu0 %6527  ;;  %v15526_v21 = vpop.permute.xlu1 %6541 }
 0xa66   : > { %6445 = vrot.lane.b32.xlu0 %v15506_v34, %s10301_s12  ;;  %6529 = vrot.lane.b32.xlu1 %v15478_v7, %s10302_s13 }
 0xa68   : > { %v15532_v20 = vpop.permute.xlu0 %6543  ;;  %v15534_v16 = vpop.permute.xlu1 %6627 }
 0xa6a   : > { %6531 = vrot.lane.b32.xlu0 %v15494_v62, %s10302_s13  ;;  %6545 = vrot.lane.b32.xlu1 %v15492_v0, %s10302_s13 }
 0xa6c   : > { %v15540_v36 = vpop.permute.xlu0 %6629  ;;  %v15542_v61 = vpop.permute.xlu1 %6643 }
 0xa6e   : > { %6547 = vrot.lane.b32.xlu0 %v15506_v34, %s10302_s13  ;;  %6631 = vrot.lane.b32.xlu1 %v15478_v7, %s10303_s16 }
 0xa70   : > { %v15548_v17 = vpop.permute.xlu0 %6645  ;;  %v15550_v40 = vpop.permute.xlu1 %6745 }
 0xa71   : > { %18873 = vst [vmem:[#allocation19_spill] sm:$0xff] %v15548_v17  ;;  %18874 = vst [vmem:[#allocation20_spill] sm:$0xff] %v15550_v40  ;;  %v7311_v40 = vld [vmem:[%s18103_s5 + $0x10] sm:$0xff] }
 0xa72   : > { %6633 = vrot.lane.b32.xlu0 %v15494_v62, %s10303_s16  ;;  %6647 = vrot.lane.b32.xlu1 %v15492_v0, %s10303_s16 }
 0xa74   : > { %v15556_v49 = vpop.permute.xlu0 %6747  ;;  %v15558_v22 = vpop.permute.xlu1 %6761 }
 0xa75   : > { %18875 = vst [vmem:[#allocation21_spill] sm:$0xff] %v15556_v49  ;;  %18876 = vst [vmem:[#allocation90_spill] sm:$0xff] %v15558_v22  ;;  %v7309_v22 = vld [vmem:[%s18103_s5] sm:$0xff]  ;;  %v7310_v49 = vld [vmem:[%s18103_s5 + $0x8] sm:$0xff] }
 0xa76   : > { %6649 = vrot.lane.b32.xlu0 %v15506_v34, %s10303_s16  ;;  %6749 = vrot.lane.b32.xlu1 %v15478_v7, %s10304_s19 }
 0xa78   : > { %v15564_v51 = vpop.permute.xlu0 %6763  ;;  %v15566_v9 = vpop.permute.xlu1 %6847 }
 0xa79   : > { %18877 = vst [vmem:[#allocation36_spill] sm:$0xff] %v15564_v51  ;;  %18878 = vst [vmem:[#allocation37_spill] sm:$0xff] %v15566_v9 }
 0xa7a   : > { %6751 = vrot.lane.b32.xlu0 %v15494_v62, %s10304_s19  ;;  %6765 = vrot.lane.b32.xlu1 %v15492_v0, %s10304_s19 }
 0xa7c   : > { %v15572_v41 = vpop.permute.xlu0 %6849  ;;  %v15574_v28 = vpop.permute.xlu1 %6863 }
 0xa7d   : > { %18879 = vst [vmem:[#allocation77_spill] sm:$0xff] %v15572_v41  ;;  %18880 = vst [vmem:[#allocation74_spill] sm:$0xff] %v15574_v28 }
 0xa7e   : > { %6767 = vrot.lane.b32.xlu0 %v15506_v34, %s10304_s19  ;;  %6851 = vrot.lane.b32.xlu1 %v15478_v7, %s10305_s24 }
 0xa80   : > { %v15580_v60 = vpop.permute.xlu0 %6865  ;;  %v15582_v1 = vpop.permute.xlu1 %6949 }
 0xa81   : > { %18881 = vst [vmem:[#allocation30_spill] sm:$0xff] %v15580_v60  ;;  %18882 = vst [vmem:[#allocation31_spill] sm:$0xff] %v15582_v1 }
 0xa82   : > { %6853 = vrot.lane.b32.xlu0 %v15494_v62, %s10305_s24  ;;  %6867 = vrot.lane.b32.xlu1 %v15492_v0, %s10305_s24 }
 0xa84   : > { %v15588_v37 = vpop.permute.xlu0 %6951  ;;  %v15590_v2 = vpop.permute.xlu1 %6965 }
 0xa85   : > { %18883 = vst [vmem:[#allocation23_spill] sm:$0xff] %v15588_v37  ;;  %18884 = vst [vmem:[#allocation92_spill] sm:$0xff] %v15590_v2  ;;  %v15662_v37 = vrot.slane %v6369_v54, %v18674_v4 }
 0xa86   : > { %6869 = vrot.lane.b32.xlu0 %v15506_v34, %s10305_s24  ;;  %6953 = vrot.lane.b32.xlu1 %v15478_v7, %s10306_s29 }
 0xa88   : > { %v15598_v13 = vpop.permute.xlu0 %6967  ;;  %v15600_v52 = vpop.permute.xlu1 %7051 }
 0xa89   : > { %18885 = vst [vmem:[#allocation22_spill] sm:$0xff] %v15598_v13  ;;  %18886 = vst [vmem:[#allocation83_spill] sm:$0xff] %v15600_v52  ;;  %v15639_v52 = vrot.slane %v6369_v54, %v18891_v44 }
 0xa8a   : > { %6955 = vrot.lane.b32.xlu0 %v15494_v62, %s10306_s29  ;;  %6969 = vrot.lane.b32.xlu1 %v15492_v0, %s10306_s29 }
 0xa8c   : > { %v15613_v59 = vpop.permute.xlu0 %7053  ;;  %v6330_v6 = vpop.permute.xlu1 %6329 }
 0xa8d   : > { %18888 = vst [vmem:[#allocation57_spill] sm:$0xff] %v15613_v59  ;;  %v6361_v23 = vsel %vm380_vm0, %v15472_v47, %v6330_v6 }
 0xa8e   : > { %6971 = vrot.lane.b32.xlu0 %v15506_v34, %s10306_s29  ;;  %6333 = vrot.lane.b32.xlu1 %v15609_v5, %s10300_s11  ;;  %v6392_v58 = vmul.f32 %v15618_v10, %v6361_v23 }
 0xa90   : > { %v6332_v50 = vpop.permute.xlu0 %6331  ;;  %v6346_v57 = vpop.permute.xlu1 %6345 }
 0xa91   : > { %v6362_v30 = vsel %vm380_vm0, %v15484_v31, %v6332_v50  ;;  %v6353_v33 = vsel %vm380_vm0, %v15486_v25, %v6346_v57  ;;  %v6365_v43 = vsel %vm380_vm0, %v6346_v57, %v15472_v47  ;;  %v6358_v3 = vsel %vm380_vm0, %v6332_v50, %v15498_v29 }
 0xa92   : > { %v6396_v45 = vmul.f32 %v15618_v10, %v6362_v30  ;;  %6335 = vrot.lane.b32.xlu0 %v15627_v46, %s10300_s11  ;;  %6349 = vrot.lane.b32.xlu1 %v15631_v53, %s10300_s11  ;;  %v15654_v30 = vmax.f32 %v10142_v63, 0.0  ;;  %v6357_v47 = vsel %vm380_vm0, %v6330_v6, %v15486_v25  ;;  %v6391_v50 = vmul.f32 %v15639_v52, %v6365_v43 }
 0xa93   : > { %v6394_v2 = vmul.f32 %v15642_v11, %v6353_v33  ;;  %v6397_v6 = vmul.f32 %v15662_v37, %v6358_v3  ;;  %v6393_v33 = vmul.f32 %v15662_v37, %v6357_v47 }
 0xa94   : > { %18892 = vst [vmem:[#allocation84_spill] sm:$0xff] %v15654_v30  ;;  %v6348_v23 = vpop.permute.xlu0 %6347  ;;  %v15659_v59 = vpop.permute.xlu1 %6431  ;;  %v9791_v13 = vpack.c.bf16 %v6396_v45, %v6392_v58 }
 0xa95   : > { %v6354_v63 = vsel %vm380_vm0, %v15498_v29, %v6348_v23  ;;  %v6366_v57 = vsel %vm380_vm0, %v6348_v23, %v15484_v31  ;;  %v9865_v43 = vpack.c.bf16 %v6397_v6, %v6393_v33 }
 0xa96   : > { %v6395_v45 = vmul.f32 %v15639_v52, %v6366_v57  ;;  %v6398_v58 = vmul.f32 %v15642_v11, %v6354_v63  ;;  %6351 = vrot.lane.b32.xlu0 %v15654_v30, %s10300_s11  ;;  %6435 = vrot.lane.b32.xlu1 %v15609_v5, %s10301_s12 }
 0xa97   : > { %9792 = vmatprep.subr.bf16.mxu0 %v9791_v13 }
 0xa98   : > { %v9793_v54 = vpack.c.bf16 %v6395_v45, %v6391_v50  ;;  %v15682_v25 = vpop.permute.xlu0 %6433  ;;  %v15684_v31 = vpop.permute.xlu1 %6447  ;;  %v9863_v29 = vpack.c.bf16 %v6398_v58, %v6394_v2 }
 0xa9a   : > { %6437 = vrot.lane.b32.xlu0 %v15627_v46, %s10301_s12  ;;  %6451 = vrot.lane.b32.xlu1 %v15631_v53, %s10301_s12 }
 0xa9b   : > { %9794 = vmatpush1.bf16.msra.mxu0 %v9793_v54  ;;  %9864 = vmatprep.subr.bf16.mxu1 %v9863_v29 }
 0xa9c   : > { %v15691_v3 = vpop.permute.xlu0 %6449  ;;  %v15693_v13 = vpop.permute.xlu1 %6533  ;;  %9866 = vmatpush1.bf16.msra.mxu1 %v9865_v43 }
 0xa9e   : > { %6453 = vrot.lane.b32.xlu0 %v15654_v30, %s10301_s12  ;;  %6537 = vrot.lane.b32.xlu1 %v15609_v5, %s10302_s13 }
 0xaa0   : > { %v15699_v2 = vpop.permute.xlu0 %6535  ;;  %v15701_v23 = vpop.permute.xlu1 %6549 }
 0xaa2   : > { %6539 = vrot.lane.b32.xlu0 %v15627_v46, %s10302_s13  ;;  %6553 = vrot.lane.b32.xlu1 %v15631_v53, %s10302_s13 }
 0xaa4   : > { %v15707_v47 = vpop.permute.xlu0 %6551  ;;  %v15709_v63 = vpop.permute.xlu1 %6635 }
 0xaa6   : > { %6555 = vrot.lane.b32.xlu0 %v15654_v30, %s10302_s13  ;;  %6639 = vrot.lane.b32.xlu1 %v15609_v5, %s10303_s16 }
 0xaa8   : > { %v15715_v57 = vpop.permute.xlu0 %6637  ;;  %v15717_v50 = vpop.permute.xlu1 %6651 }
 0xaa9   : > { %18893 = vst [vmem:[#allocation50_spill] sm:$0xff] %v15717_v50 }
 0xaaa   : > { %6641 = vrot.lane.b32.xlu0 %v15627_v46, %s10303_s16  ;;  %6655 = vrot.lane.b32.xlu1 %v15631_v53, %s10303_s16 }
 0xaac   : > { %v15723_v45 = vpop.permute.xlu0 %6653  ;;  %v15725_v58 = vpop.permute.xlu1 %6753 }
 0xaad   : > { %18894 = vst [vmem:[#allocation65_spill] sm:$0xff] %v15723_v45  ;;  %18895 = vst [vmem:[#allocation62_spill] sm:$0xff] %v15725_v58  ;;  %v7312_v58 = vld [vmem:[%s18103_s5 + $0x18] sm:$0xff] }
 0xaae   : > { %6657 = vrot.lane.b32.xlu0 %v15654_v30, %s10303_s16  ;;  %7067 = vrot.lane.b32.xlu1 %v15322_v14, %s10307_s15  ;;  %v6460_v14 = vsel %vm523_vm1, %v15682_v25, %v15516_v35 }
 0xab0   : > { %v15731_v6 = vpop.permute.xlu0 %6755  ;;  %v15733_v54 = vpop.permute.xlu1 %6769 }
 0xab1   : > { %18896 = vst [vmem:[#allocation39_spill] sm:$0xff] %v15731_v6  ;;  %18897 = vst [vmem:[#allocation48_spill] sm:$0xff] %v15733_v54 }
 0xab2   : > { %7069 = vrot.lane.b32.xlu0 %v15338_v8, %s10307_s15  ;;  %6757 = vrot.lane.b32.xlu1 %v15609_v5, %s10304_s19 }
 0xab4   : > { %v15739_v29 = vpop.permute.xlu0 %6771  ;;  %v15741_v33 = vpop.permute.xlu1 %6855 }
 0xab5   : > { %18898 = vst [vmem:[#allocation76_spill] sm:$0xff] %v15739_v29  ;;  %18899 = vst [vmem:[#allocation59_spill] sm:$0xff] %v15741_v33 }
 0xab6   : > { %7077 = vrot.lane.b32.xlu0 %v15416_v32, %s10307_s15  ;;  %6773 = vrot.lane.b32.xlu1 %v15631_v53, %s10304_s19  ;;  %v6464_v32 = vsel %vm523_vm1, %v15508_v38, %v15682_v25 }
 0xab8   : > { %v15747_v43 = vpop.permute.xlu0 %6857  ;;  %v15749_v1 = vpop.permute.xlu1 %6871 }
 0xab9   : > { %18900 = vst [vmem:[#allocation66_spill] sm:$0xff] %v15747_v43  ;;  %18901 = vst [vmem:[#allocation78_spill] sm:$0xff] %v15749_v1 }
 0xaba   : > { %6759 = vrot.lane.b32.xlu0 %v15627_v46, %s10304_s19  ;;  %6859 = vrot.lane.b32.xlu1 %v15609_v5, %s10305_s24 }
 0xabc   : > { %v15755_v39 = vpop.permute.xlu0 %6873  ;;  %v15757_v12 = vpop.permute.xlu1 %6957 }
 0xabd   : > { %18902 = vst [vmem:[#allocation87_spill] sm:$0xff] %v15755_v39  ;;  %18903 = vst [vmem:[#allocation88_spill] sm:$0xff] %v15757_v12 }
 0xabe   : > { %6775 = vrot.lane.b32.xlu0 %v15654_v30, %s10304_s19  ;;  %6875 = vrot.lane.b32.xlu1 %v15631_v53, %s10305_s24 }
 0xac0   : > { %v15763_v60 = vpop.permute.xlu0 %6959  ;;  %v15765_v9 = vpop.permute.xlu1 %6973 }
 0xac1   : > { %18904 = vst [vmem:[#allocation75_spill] sm:$0xff] %v15763_v60  ;;  %18905 = vst [vmem:[#allocation93_spill] sm:$0xff] %v15765_v9  ;;  %v7298_v9 = vld [vmem:[%s18102_s4 + $0x8] sm:$0xff] }
 0xac2   : > { %6861 = vrot.lane.b32.xlu0 %v15627_v46, %s10305_s24  ;;  %6961 = vrot.lane.b32.xlu1 %v15609_v5, %s10306_s29 }
 0xac3   : > { %7409 = vmatprep.mubr.f32.mxu0 %v7298_v9  ;;  %7587 = vmatprep.mubr.f32.mxu1 %v7298_v9 }
 0xac4   : > { %v15771_v1 = vpop.permute.xlu0 %6975  ;;  %v15773_v39 = vpop.permute.xlu1 %7059 }
 0xac5   : > { %18906 = vst [vmem:[#allocation25_spill] sm:$0xff] %v15771_v1  ;;  %18907 = vst [vmem:[#allocation86_spill] sm:$0xff] %v15773_v39 }
 0xac6   : > { %6877 = vrot.lane.b32.xlu0 %v15654_v30, %s10305_s24  ;;  %6977 = vrot.lane.b32.xlu1 %v15631_v53, %s10306_s29 }
 0xac8   : > { %v15779_v12 = vpop.permute.xlu0 %7061  ;;  %v15781_v60 = vpop.permute.xlu1 %6325 }
 0xac9   : > { %18908 = vst [vmem:[#allocation85_spill] sm:$0xff] %v15779_v12 }
 0xaca   : > { %6963 = vrot.lane.b32.xlu0 %v15627_v46, %s10306_s29  ;;  %7075 = vrot.lane.b32.xlu1 %v15408_v15, %s10307_s15 }
 0xacc   : > { %v15790_v39 = vpop.permute.xlu0 %6327  ;;  %v15792_v1 = vpop.permute.xlu1 %6341 }
 0xace   : > { %6979 = vrot.lane.b32.xlu0 %v15654_v30, %s10306_s29  ;;  %7055 = vrot.lane.b32.xlu1 %v15478_v7, %s10307_s15 }
 0xad0   : > { %v15798_v12 = vpop.permute.xlu0 %6343  ;;  %v15800_v41 = vpop.permute.xlu1 %6427 }
 0xad2   : > { %7057 = vrot.lane.b32.xlu0 %v15494_v62, %s10307_s15  ;;  %7063 = vrot.lane.b32.xlu1 %v15609_v5, %s10307_s15 }
 0xad4   : > { %v15806_v9 = vpop.permute.xlu0 %6429  ;;  %v15808_v43 = vpop.permute.xlu1 %6443 }
 0xad6   : > { %7073 = vrot.lane.b32.xlu0 %v15506_v34, %s10307_s15  ;;  %7071 = vrot.lane.b32.xlu1 %v15492_v0, %s10307_s15 }
 0xad8   : > { %v15814_v33 = vpop.permute.xlu0 %6445  ;;  %v15816_v28 = vpop.permute.xlu1 %6529 }
 0xada   : > { %7065 = vrot.lane.b32.xlu0 %v15627_v46, %s10307_s15  ;;  %7079 = vrot.lane.b32.xlu1 %v15631_v53, %s10307_s15 }
 0xadc   : > { %v15822_v54 = vpop.permute.xlu0 %6531  ;;  %v15824_v29 = vpop.permute.xlu1 %6545 }
 0xadd   : > { %18909 = vst [vmem:[#allocation64_spill] sm:$0xff] %v15822_v54  ;;  %18910 = vst [vmem:[#allocation67_spill] sm:$0xff] %v15824_v29 }
 0xade   : > { %7081 = vrot.lane.b32.xlu0 %v15654_v30, %s10307_s15  ;;  %7315 = vperm.xlu1 %10267, %v7309_v22  }
 0xae0   : > { %v15834_v6 = vpop.permute.xlu0 %6547  ;;  %v15836_v51 = vpop.permute.xlu1 %6631 }
 0xae1   : > { %18911 = vst [vmem:[#allocation24_spill] sm:$0xff] %v15834_v6  ;;  %18912 = vst [vmem:[#allocation41_spill] sm:$0xff] %v15836_v51 }
 0xae2   : > { %7320 = vperm.xlu0 %10266, %v7310_v49   ;;  %7325 = vperm.xlu1 %10267, %v7311_v40  }
 0xae4   : > { %v15844_v45 = vpop.permute.xlu0 %6633  ;;  %v15846_v22 = vpop.permute.xlu1 %6647 }
 0xae5   : > { %18913 = vst [vmem:[#allocation40_spill] sm:$0xff] %v15844_v45  ;;  %18914 = vst [vmem:[#allocation44_spill] sm:$0xff] %v15846_v22  ;;  %v9119_v22 = vld [vmem:[%s18099_s1 + $0x5] ss:$8 sm:$0xf] }
 0xae6   : > { %7330 = vperm.xlu0 %10266, %v7312_v58   ;;  %v9116_v58 = vld [vmem:[%s18099_s1 + $0x1] ss:$8 sm:$0xf]  ;;  %v15934_v30 = vrot.slane %v9119_v22, %v18891_v44  ;;  %v15944_v8 = vrot.slane %v9119_v22, %v10561_v27  ;;  %v15947_v5 = vrot.slane %v9119_v22, %v18674_v4 }
 0xae7   : > { %v15901_v7 = vrot.slane %v9116_v58, %v18891_v44  ;;  %v15904_v62 = vrot.slane %v9116_v58, %v18658_v55 }
 0xae8   : > { %v15848_v29 = vpop.permute.xlu0 %6649  ;;  %v15850_v6 = vpop.permute.xlu1 %6749  ;;  %18925 = vst [vmem:[#allocation80_spill] sm:$0xff] %v15944_v8  ;;  %18926 = vst [vmem:[#allocation46_spill] sm:$0xff] %v15947_v5 }
 0xae9   : > { %18915 = vst [vmem:[#allocation94_spill] sm:$0xff] %v15848_v29  ;;  %18916 = vst [vmem:[#allocation32_spill] sm:$0xff] %v15850_v6  ;;  %v9117_v6 = vld [vmem:[%s18099_s1 + $0x2] ss:$8 sm:$0xf] }
 0xaec   : > { %v15852_v51 = vpop.permute.xlu0 %6751  ;;  %v15854_v54 = vpop.permute.xlu1 %6765 }
 0xaed   : > { %18917 = vst [vmem:[#allocation47_spill] sm:$0xff] %v15852_v51  ;;  %18918 = vst [vmem:[#allocation82_spill] sm:$0xff] %v15854_v54  ;;  %v9118_v51 = vld [vmem:[%s18099_s1 + $0x3] ss:$8 sm:$0xf]  ;;  %v15882_v54 = vrot.slane %v9116_v58, %v10561_v27 }
 0xaee   : > { %v15925_v0 = vrot.slane %v9118_v51, %v18674_v4  ;;  %v15928_v34 = vrot.slane %v9118_v51, %v18891_v44  ;;  %v15931_v53 = vrot.slane %v9118_v51, %v18658_v55 }
 0xaf0   : > { %v15856_v50 = vpop.permute.xlu0 %6767  ;;  %v15858_v40 = vpop.permute.xlu1 %6851 }
 0xaf1   : > { %18919 = vst [vmem:[#allocation63_spill] sm:$0xff] %v15856_v50  ;;  %18920 = vst [vmem:[#allocation60_spill] sm:$0xff] %v15858_v40  ;;  %v15898_v50 = vrot.slane %v9116_v58, %v18674_v4  ;;  %v15910_v40 = vrot.slane %v9117_v6, %v18674_v4  ;;  %v9120_v58 = vld [vmem:[%s18099_s1 + $0x6] ss:$8 sm:$0xf] }
 0xaf2   : > { %v15961_v24 = vrot.slane %v9120_v58, %v18891_v44  ;;  %v15964_v48 = vrot.slane %v9120_v58, %v10561_v27  ;;  %v15967_v5 = vrot.slane %v9120_v58, %v18674_v4  ;;  %v15978_v25 = vrot.slane %v9120_v58, %v18658_v55  ;;  %v16000_v58 = vld [vmem:[%s18099_s1 + $0x20] ss:$8 sm:$0xf] }
 0xaf4   : > { %v15860_v49 = vpop.permute.xlu0 %6853  ;;  %v15862_v17 = vpop.permute.xlu1 %6867  ;;  %18930 = vst [vmem:[#allocation96_spill] sm:$0xff] %v15961_v24  ;;  %18931 = vst [vmem:[#allocation45_spill] sm:$0xff] %v15964_v48  ;;  %v15988_v48 = vmul.f32 %v15898_v50, %v6460_v14  ;;  %v6456_v24 = vsel %vm523_vm1, %v15516_v35, %v15691_v3  ;;  %v6455_v14 = vsel %vm523_vm1, %v15510_v56, %v15684_v31 }
 0xaf5   : > { %18921 = vst [vmem:[#allocation27_spill] sm:$0xff] %v15860_v49  ;;  %18922 = vst [vmem:[#allocation43_spill] sm:$0xff] %v15862_v17  ;;  %v15913_v49 = vrot.slane %v9117_v6, %v18891_v44  ;;  %v15916_v17 = vrot.slane %v9117_v6, %v18658_v55  ;;  %v6467_v35 = vsel %vm523_vm1, %v15684_v31, %v15500_v19 }
 0xaf6   : > { %18932 = vst [vmem:[#allocation49_spill] sm:$0xff] %v15967_v5  ;;  %18933 = vst [vmem:[#allocation95_spill] sm:$0xff] %v15978_v25  ;;  %v6463_v5 = vsel %vm523_vm1, %v15500_v19, %v15659_v59  ;;  %v6565_v19 = vsel %vm667_vm2, %v15518_v42, %v15693_v13 }
 0xaf7   : > { %v16033_v31 = vmul.f32 %v15882_v54, %v6463_v5 }
 0xaf8   : > { %v15887_v29 = vpop.permute.xlu0 %6869  ;;  %v15889_v45 = vpop.permute.xlu1 %6953 }
 0xaf9   : > { %18923 = vst [vmem:[#allocation5_spill] sm:$0xff] %v15887_v29  ;;  %18924 = vst [vmem:[#allocation52_spill] sm:$0xff] %v15889_v45  ;;  %v15907_v45 = vrot.slane %v9117_v6, %v10561_v27  ;;  %v15919_v29 = vrot.slane %v9118_v51, %v10561_v27  ;;  %v9121_v6 = vld [vmem:[%s18099_s1 + $0x7] ss:$8 sm:$0xf]  ;;  %v15950_v51 = vrot.slane %v9119_v22, %v18658_v55 }
 0xafa   : > { %v6459_v22 = vsel %vm523_vm1, %v15659_v59, %v15510_v56  ;;  %v16014_v59 = vrot.slane %v9121_v6, %v18674_v4  ;;  %v6561_v56 = vsel %vm667_vm2, %v15693_v13, %v15526_v21  ;;  %v16051_v13 = vmul.f32 %v15904_v62, %v6455_v14 }
 0xafb   : > { %18927 = vst [vmem:[#allocation81_spill] sm:$0xff] %v15950_v51  ;;  %v16019_v25 = vmul.f32 %v15898_v50, %v6459_v22  ;;  %v16039_v22 = vrot.slane %v9121_v6, %v18658_v55  ;;  %v16048_v51 = vmul.f32 %v15901_v7, %v6467_v35 }
 0xafc   : > { %v15952_v46 = vpop.permute.xlu0 %6955  ;;  %v15954_v15 = vpop.permute.xlu1 %6969  ;;  %18936 = vst [vmem:[#allocation51_spill] sm:$0xff] %v16014_v59  ;;  %v6562_v59 = vsel %vm667_vm2, %v15699_v2, %v15532_v20 }
 0xafd   : > { %18928 = vst [vmem:[#allocation68_spill] sm:$0xff] %v15952_v46  ;;  %18929 = vst [vmem:[#allocation3_spill] sm:$0xff] %v15954_v15  ;;  %v6468_v46 = vsel %vm523_vm1, %v15691_v3, %v15508_v38  ;;  %v15981_v15 = vrot.slane %v9121_v6, %v18891_v44  ;;  %v15995_v38 = vrot.slane %v9121_v6, %v10561_v27 }
 0xafe   : > { %18938 = vst [vmem:[#allocation6_spill] sm:$0xff] %v16039_v22  ;;  %v16060_v6 = vmul.f32 %v15910_v40, %v6561_v56  ;;  %v6569_v56 = vsel %vm667_vm2, %v15701_v23, %v15518_v42  ;;  %v16089_v8 = vmul.f32 %v15910_v40, %v6562_v59  ;;  %v6557_v42 = vsel %vm667_vm2, %v15526_v21, %v15701_v23 }
 0xaff   : > { %18934 = vst [vmem:[#allocation61_spill] sm:$0xff] %v15981_v15  ;;  %18935 = vst [vmem:[#allocation79_spill] sm:$0xff] %v15995_v38  ;;  %v16003_v15 = vmul.f32 %v15882_v54, %v6464_v32  ;;  %v16022_v32 = vmul.f32 %v15901_v7, %v6468_v46  ;;  %v16043_v46 = vrot.slane %v16000_v58, %v18891_v44 }
 0xb00   : > { %v16016_v3 = vpop.permute.xlu0 %6971  ;;  %v6334_v38 = vpop.permute.xlu1 %6333  ;;  %v6570_v59 = vsel %vm667_vm2, %v15707_v47, %v15524_v18 }
 0xb01   : > { %18937 = vst [vmem:[#allocation26_spill] sm:$0xff] %v16016_v3  ;;  %v16036_v3 = vmul.f32 %v15904_v62, %v6456_v24  ;;  %18939 = vst [vmem:[#allocation97_spill] sm:$0xff] %v16043_v46  ;;  %v6363_v5 = vsel %vm380_vm0, %v15781_v60, %v6334_v38  ;;  %v16057_v24 = vmul.f32 %v15907_v45, %v6565_v19 }
 0xb02   : > { %v9799_v14 = vpack.c.bf16 %v16003_v15, %v16033_v31  ;;  %v6566_v19 = vsel %vm667_vm2, %v15524_v18, %v15699_v2  ;;  %v6400_v15 = vmul.f32 %v15618_v10, %v6363_v5 }
 0xb03   : > { %v9871_v2 = vpack.c.bf16 %v16036_v3, %v16051_v13  ;;  %v16105_v3 = vmul.f32 %v15913_v49, %v6569_v56 }
 0xb04   : > { %v6336_v35 = vpop.permute.xlu0 %6335  ;;  %v6350_v22 = vpop.permute.xlu1 %6349 }
 0xb05   : > { %v6364_v46 = vsel %vm380_vm0, %v15790_v39, %v6336_v35  ;;  %v6360_v31 = vsel %vm380_vm0, %v6336_v35, %v15798_v12  ;;  %v6355_v5 = vsel %vm380_vm0, %v15792_v1, %v6350_v22  ;;  %v6367_v35 = vsel %vm380_vm0, %v6350_v22, %v15781_v60 }
 0xb06   : > { %v6404_v44 = vmul.f32 %v15618_v10, %v6364_v46  ;;  %v16102_v10 = vmul.f32 %v15907_v45, %v6566_v19  ;;  %v6359_v46 = vsel %vm380_vm0, %v6334_v38, %v15792_v1  ;;  %v6405_v13 = vmul.f32 %v15662_v37, %v6360_v31 }
 0xb07   : > { %v6399_v56 = vmul.f32 %v15639_v52, %v6367_v35  ;;  %v6402_v18 = vmul.f32 %v15642_v11, %v6355_v5  ;;  %v9881_v1 = vpack.c.bf16 %v16089_v8, %v16060_v6  ;;  %v16128_v38 = vmul.f32 %v15916_v17, %v6557_v42  ;;  %v18952_v6 = vld [vmem:[#allocation94_spill] sm:$0xff] }
 0xb08   : > { %v6352_v21 = vpop.permute.xlu0 %6351  ;;  %v9795_v23 = vpack.c.bf16 %v6404_v44, %v6400_v15  ;;  %v6436_v19 = vpop.permute.xlu1 %6435  ;;  %v16143_v42 = vmul.f32 %v15913_v49, %v6570_v59 }
 0xb09   : > { %v6356_v60 = vsel %vm380_vm0, %v15798_v12, %v6352_v21  ;;  %v6368_v22 = vsel %vm380_vm0, %v6352_v21, %v15790_v39  ;;  %v6465_v39 = vsel %vm523_vm1, %v15800_v41, %v6436_v19  ;;  %v16135_v12 = vrot.slane %v16000_v58, %v10561_v27 }
 0xb0a   : > { %v6403_v44 = vmul.f32 %v15639_v52, %v6368_v22  ;;  %v6406_v15 = vmul.f32 %v15642_v11, %v6356_v60  ;;  %9796 = vmatprep.subr.bf16.mxu0 %v9795_v23  ;;  %v6558_v52 = vsel %vm667_vm2, %v15532_v20, %v15707_v47  ;;  %v6401_v11 = vmul.f32 %v15662_v37, %v6359_v46 }
 0xb0b   : > { %v6663_v21 = vsel %vm811_vm3, %v15709_v63, %v15542_v61  ;;  %v6667_v23 = vsel %vm811_vm3, %v15534_v16, %v15709_v63  ;;  %v6502_v46 = vmul.f32 %v15882_v54, %v6465_v39  ;;  %v6602_v22 = vmul.f32 %v15916_v17, %v6558_v52 }
 0xb0c   : > { %v9797_v31 = vpack.c.bf16 %v6403_v44, %v6399_v56  ;;  %v6438_v5 = vpop.permute.xlu0 %6437  ;;  %v9867_v35 = vpack.c.bf16 %v6406_v15, %v6402_v18  ;;  %v6452_v37 = vpop.permute.xlu1 %6451  ;;  %v9869_v47 = vpack.c.bf16 %v6405_v13, %v6401_v11  ;;  %v16169_v13 = vmul.f32 %v15919_v29, %v6667_v23 }
 0xb0d   : > { %v6466_v20 = vsel %vm523_vm1, %v15806_v9, %v6438_v5  ;;  %v6462_v59 = vsel %vm523_vm1, %v6438_v5, %v15814_v33  ;;  %v6457_v63 = vsel %vm523_vm1, %v15808_v43, %v6452_v37  ;;  %v6469_v56 = vsel %vm523_vm1, %v6452_v37, %v15800_v41 }
 0xb0e   : > { %v6506_v60 = vmul.f32 %v15882_v54, %v6466_v20  ;;  %9798 = vmatpush1.bf16.msra.mxu0 %v9797_v31  ;;  %9868 = vmatprep.subr.bf16.mxu1 %v9867_v35  ;;  %v16172_v18 = vmul.f32 %v15925_v0, %v6663_v21  ;;  %v9807_v15 = vpack.c.bf16 %v16102_v10, %v16057_v24  ;;  %v18943_v21 = vld [vmem:[#allocation50_spill] sm:$0xff]  ;;  %v18944_v20 = vld [vmem:[#allocation64_spill] sm:$0xff] }
 0xb0f   : > { %9800 = vmatprep.subr.bf16.mxu0 %v9799_v14  ;;  %9870 = vmatpush1.bf16.msra.mxu1 %v9869_v47  ;;  %v6461_v39 = vsel %vm523_vm1, %v6436_v19, %v15808_v43  ;;  %v6507_v41 = vmul.f32 %v15898_v50, %v6462_v59  ;;  %v6501_v31 = vmul.f32 %v15901_v7, %v6469_v56  ;;  %v18947_v56 = vld [vmem:[#allocation65_spill] sm:$0xff] }
 0xb10   : > { %v6454_v54 = vpop.permute.xlu0 %6453  ;;  %v9803_v44 = vpack.c.bf16 %v6506_v60, %v6502_v46  ;;  %9872 = vmatprep.subr.bf16.mxu1 %v9871_v2  ;;  %v6538_v11 = vpop.permute.xlu1 %6537  ;;  %v6504_v24 = vmul.f32 %v15904_v62, %v6457_v63  ;;  %v18940_v19 = vpack.c.bf16 %v16022_v32, %v16048_v51  ;;  %v9879_v2 = vpack.c.bf16 %v6602_v22, %v16128_v38  ;;  %v18945_v46 = vld [vmem:[#allocation24_spill] sm:$0xff]  ;;  %v18946_v60 = vld [vmem:[#allocation67_spill] sm:$0xff] }
 0xb11   : > { %v6458_v14 = vsel %vm523_vm1, %v15814_v33, %v6454_v54  ;;  %v6470_v52 = vsel %vm523_vm1, %v6454_v54, %v15806_v9  ;;  %v9809_v33 = vpack.c.bf16 %v16143_v42, %v16105_v3  ;;  %v6567_v9 = vsel %vm667_vm2, %v15816_v28, %v6538_v11  ;;  %v18942_v42 = vld [vmem:[#allocation19_spill] sm:$0xff] }
 0xb12   : > { %v6505_v10 = vmul.f32 %v15901_v7, %v6470_v52  ;;  %v6508_v43 = vmul.f32 %v15904_v62, %v6458_v14  ;;  %9802 = vmatpush1.bf16.msra.mxu0 %v18940_v19  ;;  %v16201_v5 = vrot.slane %v16000_v58, %v18674_v4  ;;  %v6668_v7 = vsel %vm811_vm3, %v15540_v36, %v15715_v57 }
 0xb13   : > { %9804 = vmatprep.subr.bf16.mxu0 %v9803_v44  ;;  %v6503_v62 = vmul.f32 %v15898_v50, %v6461_v39  ;;  %v18941_v32 = vpack.c.bf16 %v15988_v48, %v16019_v25  ;;  %v6664_v38 = vsel %vm811_vm3, %v15715_v57, %v18942_v42  ;;  %v6659_v23 = vsel %vm811_vm3, %v15542_v61, %v18943_v21 }
 0xb14   : > { %v9805_v51 = vpack.c.bf16 %v6505_v10, %v6501_v31  ;;  %v6540_v3 = vpop.permute.xlu0 %6539  ;;  %v9875_v35 = vpack.c.bf16 %v6508_v43, %v6504_v24  ;;  %v6671_v50 = vsel %vm811_vm3, %v18943_v21, %v15534_v16  ;;  %v6554_v25 = vpop.permute.xlu1 %6553  ;;  %v6604_v47 = vmul.f32 %v15907_v45, %v6567_v9  ;;  %v18948_v9 = vld [vmem:[#allocation41_spill] sm:$0xff] }
 0xb15   : > { %9874 = vmatpush1.bf16.msra.mxu1 %v18941_v32  ;;  %v6568_v48 = vsel %vm667_vm2, %v18944_v20, %v6540_v3  ;;  %v9877_v37 = vpack.c.bf16 %v6507_v41, %v6503_v62  ;;  %v6564_v57 = vsel %vm667_vm2, %v6540_v3, %v18945_v46  ;;  %v6702_v61 = vmul.f32 %v15919_v29, %v6668_v7  ;;  %v18949_v32 = vld [vmem:[#allocation62_spill] sm:$0xff]  ;;  %v18950_v3 = vld [vmem:[#allocation20_spill] sm:$0xff] }
 0xb16   : > { %v6608_v59 = vmul.f32 %v15907_v45, %v6568_v48  ;;  %9806 = vmatpush1.bf16.msra.mxu0 %v9805_v51  ;;  %v6559_v16 = vsel %vm667_vm2, %v18946_v60, %v6554_v25  ;;  %v6571_v22 = vsel %vm667_vm2, %v6554_v25, %v15816_v28  ;;  %9876 = vmatprep.subr.bf16.mxu1 %v9875_v35 }
 0xb17   : > { %9808 = vmatprep.subr.bf16.mxu0 %v9807_v15  ;;  %v16239_v63 = vmul.f32 %v15925_v0, %v6664_v38  ;;  %v6660_v45 = vsel %vm811_vm3, %v18942_v42, %v18947_v56  ;;  %v6672_v54 = vsel %vm811_vm3, %v18947_v56, %v15540_v36  ;;  %v6563_v28 = vsel %vm667_vm2, %v6538_v11, %v18946_v60  ;;  %v18951_v42 = vld [vmem:[#allocation40_spill] sm:$0xff] }
 0xb18   : > { %v6556_v44 = vpop.permute.xlu0 %6555  ;;  %v9811_v39 = vpack.c.bf16 %v6608_v59, %v6604_v47  ;;  %v6609_v15 = vmul.f32 %v15910_v40, %v6564_v57  ;;  %v6640_v52 = vpop.permute.xlu1 %6639  ;;  %v6603_v36 = vmul.f32 %v15913_v49, %v6571_v22  ;;  %v6606_v31 = vmul.f32 %v15916_v17, %v6559_v16  ;;  %v18955_v47 = vld [vmem:[#allocation39_spill] sm:$0xff] }
 0xb19   : > { %9878 = vmatpush1.bf16.msra.mxu1 %v9877_v37  ;;  %v6560_v41 = vsel %vm667_vm2, %v18945_v46, %v6556_v44  ;;  %v6572_v14 = vsel %vm667_vm2, %v6556_v44, %v18944_v20  ;;  %v6697_v10 = vmul.f32 %v15928_v34, %v6671_v50  ;;  %v6700_v43 = vmul.f32 %v15931_v53, %v6659_v23  ;;  %v18953_v50 = vld [vmem:[#allocation44_spill] sm:$0xff] }
 0xb1a   : > { %9880 = vmatprep.subr.bf16.mxu1 %v9879_v2  ;;  %v6607_v24 = vmul.f32 %v15913_v49, %v6572_v14  ;;  %v6610_v11 = vmul.f32 %v15916_v17, %v6560_v41  ;;  %9810 = vmatpush1.bf16.msra.mxu0 %v9809_v33  ;;  %v6704_v19 = vmul.f32 %v15931_v53, %v6660_v45  ;;  %v18954_v37 = vld [vmem:[#allocation36_spill] sm:$0xff] }
 0xb1b   : > { %v6669_v2 = vsel %vm811_vm3, %v18948_v9, %v6640_v52  ;;  %9812 = vmatprep.subr.bf16.mxu0 %v9811_v39  ;;  %v6701_v7 = vmul.f32 %v15928_v34, %v6672_v54  ;;  %v6605_v62 = vmul.f32 %v15910_v40, %v6563_v28  ;;  %v9889_v33 = vpack.c.bf16 %v16239_v63, %v16172_v18  ;;  %v18957_v28 = vld [vmem:[#allocation90_spill] sm:$0xff]  ;;  %v18958_v14 = vld [vmem:[#allocation76_spill] sm:$0xff] }
 0xb1c   : > { %v9813_v51 = vpack.c.bf16 %v6607_v24, %v6603_v36  ;;  %v6642_v17 = vpop.permute.xlu0 %6641  ;;  %v9883_v49 = vpack.c.bf16 %v6610_v11, %v6606_v31  ;;  %v6785_v35 = vsel %vm979_vm4, %v18950_v3, %v18949_v32  ;;  %v6656_v40 = vpop.permute.xlu1 %6655  ;;  %v9815_v21 = vpack.c.bf16 %v6702_v61, %v16169_v13 }
 0xb1d   : > { %9882 = vmatpush1.bf16.msra.mxu1 %v9881_v1  ;;  %v6670_v38 = vsel %vm811_vm3, %v18951_v42, %v6642_v17  ;;  %v9885_v23 = vpack.c.bf16 %v6609_v15, %v6605_v62  ;;  %v6706_v8 = vmul.f32 %v15919_v29, %v6669_v2  ;;  %v6666_v1 = vsel %vm811_vm3, %v6642_v17, %v18952_v6  ;;  %v18962_v62 = vld [vmem:[#allocation59_spill] sm:$0xff]  ;;  %v18963_v17 = vld [vmem:[#allocation66_spill] sm:$0xff] }
 0xb1e   : > { %v6710_v18 = vmul.f32 %v15919_v29, %v6670_v38  ;;  %9814 = vmatpush1.bf16.msra.mxu0 %v9813_v51  ;;  %v6661_v20 = vsel %vm811_vm3, %v18953_v50, %v6656_v40  ;;  %v6673_v48 = vsel %vm811_vm3, %v6656_v40, %v18948_v9  ;;  %9884 = vmatprep.subr.bf16.mxu1 %v9883_v49  ;;  %v18956_v29 = vld [vmem:[#allocation21_spill] sm:$0xff]  ;;  %v18960_v9 = vld [vmem:[#allocation48_spill] sm:$0xff] }
 0xb1f   : > { %9816 = vmatprep.subr.bf16.mxu0 %v9815_v21  ;;  %v9887_v13 = vpack.c.bf16 %v6704_v19, %v6700_v43  ;;  %v9817_v25 = vpack.c.bf16 %v6701_v7, %v6697_v10  ;;  %v6782_v46 = vsel %vm979_vm4, %v18955_v47, %v18954_v37  ;;  %v6786_v57 = vsel %vm979_vm4, %v18956_v29, %v18955_v47  ;;  %v18959_v43 = vld [vmem:[#allocation80_spill] sm:$0xff]  ;;  %v18961_v7 = vld [vmem:[#allocation74_spill] sm:$0xff]  ;;  %v18964_v49 = vld [vmem:[#allocation77_spill] sm:$0xff] }
 0xb20   : > { %v6658_v59 = vpop.permute.xlu0 %6657  ;;  %v9819_v61 = vpack.c.bf16 %v6710_v18, %v6706_v8  ;;  %v6665_v60 = vsel %vm811_vm3, %v6640_v52, %v18953_v50  ;;  %v6711_v16 = vmul.f32 %v15925_v0, %v6666_v1  ;;  %v16313_v56 = vpop.permute.xlu1 %7067  ;;  %v6705_v45 = vmul.f32 %v15928_v34, %v6673_v48  ;;  %v18966_v38 = vld [vmem:[#allocation81_spill] sm:$0xff]  ;;  %v18970_v1 = vld [vmem:[#allocation12_spill] sm:$0xff] }
 0xb21   : > { %9886 = vmatpush1.bf16.msra.mxu1 %v9885_v23  ;;  %v6662_v22 = vsel %vm811_vm3, %v18952_v6, %v6658_v59  ;;  %v6674_v63 = vsel %vm811_vm3, %v6658_v59, %v18951_v42  ;;  %v6708_v54 = vmul.f32 %v15931_v53, %v6661_v20  ;;  %v6781_v15 = vsel %vm979_vm4, %v18949_v32, %v18957_v28  ;;  %v18968_v23 = vld [vmem:[#allocation30_spill] sm:$0xff]  ;;  %v18969_v6 = vld [vmem:[#allocation13_spill] sm:$0xff]  ;;  %v18974_v59 = vld [vmem:[#allocation87_spill] sm:$0xff] }
 0xb22   : > { %9888 = vmatprep.subr.bf16.mxu1 %v9887_v13  ;;  %v6709_v44 = vmul.f32 %v15928_v34, %v6674_v63  ;;  %v6712_v39 = vmul.f32 %v15931_v53, %v6662_v22  ;;  %9818 = vmatpush1.bf16.msra.mxu0 %v9817_v25  ;;  %v16324_v41 = vmul.f32 %v15934_v30, %v6785_v35  ;;  %v18965_v35 = vld [vmem:[#allocation46_spill] sm:$0xff] }
 0xb23   : > { %v6778_v52 = vsel %vm979_vm4, %v18954_v37, %v18958_v14  ;;  %9820 = vmatprep.subr.bf16.mxu0 %v9819_v61  ;;  %v16332_v34 = vrot.slane %v16000_v58, %v18658_v55  ;;  %v6790_v53 = vsel %vm979_vm4, %v18958_v14, %v18956_v29  ;;  %v6707_v36 = vmul.f32 %v15925_v0, %v6665_v60  ;;  %v18972_v13 = vld [vmem:[#allocation78_spill] sm:$0xff] }
 0xb24   : > { %v9821_v31 = vpack.c.bf16 %v6709_v44, %v6705_v45  ;;  %v16339_v24 = vpop.permute.xlu0 %7069  ;;  %v9891_v11 = vpack.c.bf16 %v6712_v39, %v6708_v54  ;;  %v16342_v10 = vmul.f32 %v15934_v30, %v6786_v57  ;;  %v6820_v19 = vmul.f32 %v18959_v43, %v6782_v46  ;;  %v6758_v2 = vpop.permute.xlu1 %6757  ;;  %v18973_v46 = vld [vmem:[#allocation96_spill] sm:$0xff]  ;;  %v18975_v60 = vld [vmem:[#allocation14_spill] sm:$0xff]  ;;  %v18978_v54 = vld [vmem:[#allocation45_spill] sm:$0xff] }
 0xb25   : > { %9890 = vmatpush1.bf16.msra.mxu1 %v9889_v33  ;;  %v6777_v58 = vsel %vm979_vm4, %v18957_v28, %v18960_v9  ;;  %v6789_v0 = vsel %vm979_vm4, %v18960_v9, %v18950_v3  ;;  %v6883_v51 = vsel %vm1123_vm5, %v18962_v62, %v18961_v7  ;;  %v6888_v33 = vsel %vm1123_vm5, %v18964_v49, %v18963_v17  ;;  %v18967_v3 = vld [vmem:[#allocation37_spill] sm:$0xff] }
 0xb26   : > { %v9893_v32 = vpack.c.bf16 %v6711_v16, %v6707_v36  ;;  %9822 = vmatpush1.bf16.msra.mxu0 %v9821_v31  ;;  %9892 = vmatprep.subr.bf16.mxu1 %v9891_v11  ;;  %v16362_v42 = vmul.f32 %v18965_v35, %v6778_v52  ;;  %v6822_v40 = vmul.f32 %v18966_v38, %v6790_v53  ;;  %v18976_v16 = vld [vmem:[#allocation11_spill] sm:$0xff]  ;;  %v18979_v28 = vld [vmem:[#allocation9_spill] sm:$0xff]  ;;  %v18983_v31 = vld [vmem:[#allocation82_spill] sm:$0xff] }
 0xb27   : > { %v6887_v21 = vsel %vm1123_vm5, %v18967_v3, %v18962_v62  ;;  %v6884_v8 = vsel %vm1123_vm5, %v18963_v17, %v18968_v23  ;;  %v18971_v18 = vpack.c.bf16 %v18969_v6, %v18970_v1  ;;  %v6816_v50 = vmul.f32 %v18959_v43, %v6781_v15  ;;  %v18980_v15 = vld [vmem:[#allocation7_spill] sm:$0xff]  ;;  %v18982_v53 = vld [vmem:[#allocation49_spill] sm:$0xff]  ;;  %v18988_v17 = vld [vmem:[#allocation88_spill] sm:$0xff] }
 0xb28   : > { %v16378_v20 = vmul.f32 %v18965_v35, %v6777_v58  ;;  %v6818_v48 = vmul.f32 %v18966_v38, %v6789_v0  ;;  %v6879_v25 = vsel %vm1123_vm5, %v18961_v7, %v18972_v13  ;;  %v16385_v37 = vpop.permute.xlu0 %7077  ;;  %v9833_v47 = vpack.c.bf16 %v16342_v10, %v16324_v41  ;;  %v6774_v63 = vpop.permute.xlu1 %6773  ;;  %v18984_v10 = vld [vmem:[#allocation91_spill] sm:$0xff]  ;;  %v18985_v9 = vld [vmem:[#allocation33_spill] sm:$0xff] }
 0xb29   : > { %9824 = vmatprep.subr.bf16.mxu0 %v18971_v18  ;;  %9894 = vmatpush1.bf16.msra.mxu1 %v9893_v32  ;;  %v16390_v29 = vmul.f32 %v18973_v46, %v6888_v33  ;;  %v6891_v57 = vsel %vm1123_vm5, %v18972_v13, %v18967_v3  ;;  %v6880_v61 = vsel %vm1123_vm5, %v18968_v23, %v18974_v59  ;;  %v18987_v7 = vld [vmem:[#allocation95_spill] sm:$0xff]  ;;  %v18991_v3 = vld [vmem:[#allocation8_spill] sm:$0xff] }
 0xb2a   : > { %v18977_v22 = vpack.c.bf16 %v18975_v60, %v18976_v16  ;;  %v16404_v45 = vmul.f32 %v18973_v46, %v6887_v21  ;;  %v16407_v44 = vmul.f32 %v18978_v54, %v6883_v51  ;;  %v16410_v39 = vmul.f32 %v18978_v54, %v6884_v8  ;;  %v18989_v33 = vld [vmem:[#allocation31_spill] sm:$0xff]  ;;  %v18993_v8 = vld [vmem:[#allocation92_spill] sm:$0xff]  ;;  %v19000_v16 = vld [vmem:[#allocation17_spill] sm:$0xff] }
 0xb2b   : > { %v18981_v41 = vpack.c.bf16 %v18979_v28, %v18980_v15  ;;  %v9831_v14 = vpack.c.bf16 %v6820_v19, %v6816_v50  ;;  %v9905_v52 = vpack.c.bf16 %v16362_v42, %v16378_v20  ;;  %v16418_v36 = vmul.f32 %v18982_v53, %v6879_v25  ;;  %v18990_v42 = vld [vmem:[#allocation10_spill] sm:$0xff]  ;;  %v18994_v6 = vld [vmem:[#allocation63_spill] sm:$0xff]  ;;  %v18996_v20 = vld [vmem:[#allocation84_spill] sm:$0xff] }
 0xb2c   : > { %9896 = vmatprep.subr.bf16.mxu1 %v18977_v22  ;;  %v6783_v11 = vsel %vm979_vm4, %v6758_v2, %v18983_v31  ;;  %v18986_v58 = vpack.c.bf16 %v18984_v10, %v18985_v9  ;;  %v9903_v0 = vpack.c.bf16 %v6822_v40, %v6818_v48  ;;  %v16427_v62 = vmul.f32 %v18987_v7, %v6891_v57  ;;  %v6760_v40 = vpop.permute.xlu0 %6759  ;;  %v18995_v18 = vld [vmem:[#allocation47_spill] sm:$0xff]  ;;  %v18997_v48 = vld [vmem:[#allocation58_spill] sm:$0xff]  ;;  %v6860_v25 = vpop.permute.xlu1 %6859  ;;  %v18999_v57 = vld [vmem:[#allocation32_spill] sm:$0xff] }
 0xb2d   : > { %9826 = vmatpush1.bf16.msra.mxu0 %v18981_v41  ;;  %v6892_v19 = vsel %vm1123_vm5, %v18974_v59, %v18964_v49  ;;  %v16434_v51 = vmul.f32 %v18982_v53, %v6880_v61  ;;  %v6989_v32 = vsel %vm1267_vm7, %v18989_v33, %v18988_v17  ;;  %v18992_v21 = vpack.c.bf16 %v18990_v42, %v18991_v3  ;;  %v19001_v22 = vld [vmem:[#allocation16_spill] sm:$0xff]  ;;  %v19003_v10 = vld [vmem:[#allocation61_spill] sm:$0xff] }
 0xb2e   : > { %9828 = vmatprep.subr.bf16.mxu0 %v18986_v58  ;;  %v9841_v23 = vpack.c.bf16 %v16390_v29, %v16404_v45  ;;  %v6985_v49 = vsel %vm1267_vm7, %v18988_v17, %v18993_v8  ;;  %v6784_v1 = vsel %vm979_vm4, %v6760_v40, %v18994_v6  ;;  %v6788_v50 = vsel %vm979_vm4, %v18995_v18, %v6760_v40  ;;  %v19004_v58 = vld [vmem:[#allocation79_spill] sm:$0xff] }
 0xb2f   : > { %9898 = vmatpush1.bf16.msra.mxu1 %v18992_v21  ;;  %v18998_v13 = vpack.c.bf16 %v18996_v20, %v18997_v48  ;;  %v6787_v59 = vsel %vm979_vm4, %v18999_v57, %v6758_v2  ;;  %v6824_v61 = vmul.f32 %v18959_v43, %v6783_v11  ;;  %v6828_v60 = vmul.f32 %v18959_v43, %v6784_v1  ;;  %v19009_v21 = vld [vmem:[#allocation23_spill] sm:$0xff] }
 0xb30   : > { %v19002_v28 = vpack.c.bf16 %v19000_v16, %v19001_v22  ;;  %v9839_v15 = vpack.c.bf16 %v16410_v39, %v16407_v44  ;;  %v6924_v41 = vmul.f32 %v18987_v7, %v6892_v19  ;;  %v16470_v9 = vmul.f32 %v19003_v10, %v6989_v32  ;;  %v19005_v39 = vld [vmem:[#allocation18_spill] sm:$0xff]  ;;  %v19006_v19 = vld [vmem:[#allocation15_spill] sm:$0xff]  ;;  %v6776_v42 = vpop.permute.xlu0 %6775  ;;  %v6876_v1 = vpop.permute.xlu1 %6875 }
 0xb31   : > { %9900 = vmatprep.subr.bf16.mxu1 %v18998_v13  ;;  %v6779_v2 = vsel %vm979_vm4, %v18983_v31, %v6774_v63  ;;  %v6791_v43 = vsel %vm979_vm4, %v6774_v63, %v18999_v57  ;;  %v9913_v11 = vpack.c.bf16 %v16434_v51, %v16418_v36  ;;  %v16481_v17 = vmul.f32 %v19004_v58, %v6985_v49  ;;  %v19008_v31 = vld [vmem:[#allocation75_spill] sm:$0xff]  ;;  %v19011_v57 = vld [vmem:[#allocation93_spill] sm:$0xff] }
 0xb32   : > { %9830 = vmatpush1.bf16.msra.mxu0 %v19002_v28  ;;  %v6827_v44 = vmul.f32 %v15934_v30, %v6788_v50  ;;  %v19007_v32 = vpack.c.bf16 %v19005_v39, %v19006_v19  ;;  %v9835_v3 = vpack.c.bf16 %v6828_v60, %v6824_v61  ;;  %v6990_v63 = vsel %vm1267_vm7, %v19009_v21, %v19008_v31  ;;  %v19023_v36 = vld [vmem:[#allocation57_spill] sm:$0xff] }
 0xb33   : > { %9832 = vmatprep.subr.bf16.mxu0 %v9831_v14  ;;  %v6823_v14 = vmul.f32 %v15934_v30, %v6787_v59  ;;  %v6780_v40 = vsel %vm979_vm4, %v18994_v6, %v6776_v42  ;;  %v6792_v49 = vsel %vm979_vm4, %v6776_v42, %v18995_v18  ;;  %v6825_v50 = vmul.f32 %v18965_v35, %v6779_v2  ;;  %v19010_v30 = vld [vmem:[#allocation22_spill] sm:$0xff]  ;;  %v19012_v18 = vld [vmem:[#allocation43_spill] sm:$0xff]  ;;  %v19014_v2 = vld [vmem:[#allocation5_spill] sm:$0xff] }
 0xb34   : > { %9902 = vmatpush1.bf16.msra.mxu1 %v19007_v32  ;;  %v6826_v20 = vmul.f32 %v18966_v38, %v6791_v43  ;;  %v6829_v48 = vmul.f32 %v18965_v35, %v6780_v40  ;;  %v6830_v13 = vmul.f32 %v18966_v38, %v6792_v49  ;;  %v6986_v6 = vsel %vm1267_vm7, %v19008_v31, %v19010_v30  ;;  %v6862_v60 = vpop.permute.xlu0 %6861  ;;  %v6962_v43 = vpop.permute.xlu1 %6961  ;;  %v19018_v49 = vld [vmem:[#allocation6_spill] sm:$0xff] }
 0xb35   : > { %9904 = vmatprep.subr.bf16.mxu1 %v9903_v0  ;;  %v6981_v0 = vsel %vm1267_vm7, %v18993_v8, %v19011_v57  ;;  %v6885_v59 = vsel %vm1123_vm5, %v6860_v25, %v19012_v18  ;;  %v9911_v35 = vpack.c.bf16 %v6924_v41, %v16427_v62  ;;  %v6993_v38 = vsel %vm1267_vm7, %v19011_v57, %v18989_v33  ;;  %v19013_v8 = vld [vmem:[#allocation25_spill] sm:$0xff]  ;;  %v19015_v41 = vld [vmem:[#allocation27_spill] sm:$0xff] }
 0xb36   : > { %9834 = vmatpush1.bf16.msra.mxu0 %v9833_v47  ;;  %v9837_v47 = vpack.c.bf16 %v6827_v44, %v6823_v14  ;;  %v9909_v61 = vpack.c.bf16 %v6829_v48, %v6825_v50  ;;  %v9907_v16 = vpack.c.bf16 %v6830_v13, %v6826_v20  ;;  %v16519_v22 = vmul.f32 %v19003_v10, %v6990_v63  ;;  %v19016_v44 = vld [vmem:[#allocation60_spill] sm:$0xff] }
 0xb37   : > { %9836 = vmatprep.subr.bf16.mxu0 %v9835_v3  ;;  %v6982_v28 = vsel %vm1267_vm7, %v19010_v30, %v19013_v8  ;;  %v6886_v62 = vsel %vm1123_vm5, %v6862_v60, %v19014_v2  ;;  %v6890_v33 = vsel %vm1123_vm5, %v19015_v41, %v6862_v60  ;;  %v6889_v39 = vsel %vm1123_vm5, %v19016_v44, %v6860_v25 }
 0xb38   : > { %9906 = vmatpush1.bf16.msra.mxu1 %v9905_v52  ;;  %v6994_v52 = vsel %vm1267_vm7, %v19013_v8, %v19009_v21  ;;  %v6926_v19 = vmul.f32 %v18978_v54, %v6885_v59  ;;  %v6930_v32 = vmul.f32 %v18978_v54, %v6886_v62  ;;  %v7024_v42 = vmul.f32 %v19004_v58, %v6986_v6  ;;  %v19017_v21 = vld [vmem:[#allocation51_spill] sm:$0xff]  ;;  %v6878_v14 = vpop.permute.xlu0 %6877  ;;  %v6978_v48 = vpop.permute.xlu1 %6977  ;;  %v19025_v62 = vld [vmem:[#allocation86_spill] sm:$0xff] }
 0xb39   : > { %v6881_v3 = vsel %vm1123_vm5, %v19012_v18, %v6876_v1  ;;  %v6893_v31 = vsel %vm1123_vm5, %v6876_v1, %v19016_v44  ;;  %9908 = vmatprep.subr.bf16.mxu1 %v9907_v16  ;;  %v16548_v63 = vmul.f32 %v19017_v21, %v6981_v0  ;;  %v16551_v25 = vmul.f32 %v19017_v21, %v6982_v28  ;;  %v19019_v18 = vld [vmem:[#allocation3_spill] sm:$0xff] }
 0xb3a   : > { %9838 = vmatpush1.bf16.msra.mxu0 %v9837_v47  ;;  %v6929_v54 = vmul.f32 %v18973_v46, %v6890_v33  ;;  %v9843_v40 = vpack.c.bf16 %v6930_v32, %v6926_v19  ;;  %v7026_v50 = vmul.f32 %v19018_v49, %v6994_v52  ;;  %v6925_v20 = vmul.f32 %v18973_v46, %v6889_v39  ;;  %v19026_v44 = vld [vmem:[#allocation83_spill] sm:$0xff] }
 0xb3b   : > { %9840 = vmatprep.subr.bf16.mxu0 %v9839_v15  ;;  %v6882_v1 = vsel %vm1123_vm5, %v19014_v2, %v6878_v14  ;;  %v6894_v15 = vsel %vm1123_vm5, %v6878_v14, %v19015_v41  ;;  %v6927_v13 = vmul.f32 %v18982_v53, %v6881_v3  ;;  %v6928_v30 = vmul.f32 %v18987_v7, %v6893_v31 }
 0xb3c   : > { %9910 = vmatpush1.bf16.msra.mxu1 %v9909_v61  ;;  %v6931_v6 = vmul.f32 %v18982_v53, %v6882_v1  ;;  %v6932_v57 = vmul.f32 %v18987_v7, %v6894_v15  ;;  %v9849_v46 = vpack.c.bf16 %v16519_v22, %v16470_v9  ;;  %v7022_v0 = vmul.f32 %v19018_v49, %v6993_v38  ;;  %v6964_v29 = vpop.permute.xlu0 %6963  ;;  %v19021_v38 = vld [vmem:[#allocation26_spill] sm:$0xff]  ;;  %v19022_v61 = vld [vmem:[#allocation68_spill] sm:$0xff]  ;;  %v7076_v16 = vpop.permute.xlu1 %7075 }
 0xb3d   : > { %9912 = vmatprep.subr.bf16.mxu1 %v9911_v35  ;;  %v6987_v59 = vsel %vm1267_vm7, %v6962_v43, %v19019_v18  ;;  %v9847_v35 = vpack.c.bf16 %v7024_v42, %v16481_v17  ;;  %v9921_v53 = vpack.c.bf16 %v16551_v25, %v16548_v63  ;;  %v9845_v7 = vpack.c.bf16 %v6929_v54, %v6925_v20 }
 0xb3e   : > { %9842 = vmatpush1.bf16.msra.mxu0 %v9841_v23  ;;  %v9917_v47 = vpack.c.bf16 %v6931_v6, %v6927_v13  ;;  %v9915_v45 = vpack.c.bf16 %v6932_v57, %v6928_v30  ;;  %v19020_v23 = vld [vmem:[#allocation85_spill] sm:$0xff]  ;;  %v6988_v17 = vsel %vm1267_vm7, %v6964_v29, %v19021_v38  ;;  %v6992_v60 = vsel %vm1267_vm7, %v19022_v61, %v6964_v29 }
 0xb3f   : > { %9844 = vmatprep.subr.bf16.mxu0 %v9843_v40  ;;  %v7088_v9 = vsel %vm1411_vm8, %v19020_v23, %v16339_v24  ;;  %v9919_v22 = vpack.c.bf16 %v7026_v50, %v7022_v0  ;;  %v7092_v51 = vsel %vm1411_vm8, %v19023_v36, %v19020_v23  ;;  %v7028_v28 = vmul.f32 %v19004_v58, %v6987_v59 }
 0xb40   : > { %9914 = vmatpush1.bf16.msra.mxu1 %v9913_v11  ;;  %v19024_v11 = vld [vmem:[#allocation52_spill] sm:$0xff]  ;;  %v7032_v2 = vmul.f32 %v19004_v58, %v6988_v17  ;;  %v7087_v41 = vsel %vm1411_vm8, %v19025_v62, %v16313_v56  ;;  %v6983_v33 = vsel %vm1267_vm7, %v19019_v18, %v6978_v48  ;;  %v7031_v58 = vmul.f32 %v19003_v10, %v6992_v60  ;;  %v6980_v19 = vpop.permute.xlu0 %6979  ;;  %v7056_v25 = vpop.permute.xlu1 %7055  ;;  %v7304_v17 = vld [vmem:[%s18102_s4 + $0x38] sm:$0xff] }
 0xb41   : > { %v6991_v8 = vsel %vm1267_vm7, %v19024_v11, %v6962_v43  ;;  %v6995_v52 = vsel %vm1267_vm7, %v6978_v48, %v19024_v11  ;;  %9916 = vmatprep.subr.bf16.mxu1 %v9915_v45  ;;  %v7126_v43 = vmul.f32 %v16135_v12, %v7088_v9  ;;  %v7095_v39 = vsel %vm1411_vm8, %v7076_v16, %v19026_v44  ;;  %v19027_v48 = vld [vmem:[#allocation97_spill] sm:$0xff]  ;;  %v7300_v9 = vld [vmem:[%s18102_s4 + $0x18] sm:$0xff] }
 0xb42   : > { %9846 = vmatpush1.bf16.msra.mxu0 %v9845_v7  ;;  %v9851_v32 = vpack.c.bf16 %v7032_v2, %v7028_v28  ;;  %v7096_v42 = vsel %vm1411_vm8, %v16385_v37, %v19023_v36  ;;  %v7027_v3 = vmul.f32 %v19003_v10, %v6991_v8  ;;  %v6984_v31 = vsel %vm1267_vm7, %v19021_v38, %v6980_v19  ;;  %v7303_v2 = vld [vmem:[%s18102_s4 + $0x30] sm:$0xff] }
 0xb43   : > { %9848 = vmatprep.subr.bf16.mxu0 %v9847_v35  ;;  %v6996_v63 = vsel %vm1267_vm7, %v6980_v19, %v19022_v61  ;;  %v7029_v54 = vmul.f32 %v19017_v21, %v6983_v33  ;;  %v7030_v14 = vmul.f32 %v19018_v49, %v6995_v52  ;;  %v7033_v40 = vmul.f32 %v19017_v21, %v6984_v31  ;;  %v7297_v35 = vld [vmem:[%s18102_s4] sm:$0xff] }
 0xb44   : > { %9918 = vmatpush1.bf16.msra.mxu1 %v9917_v47  ;;  %v7034_v50 = vmul.f32 %v19018_v49, %v6996_v63  ;;  %v7091_v10 = vsel %vm1411_vm8, %v19026_v44, %v19025_v62  ;;  %v7122_v20 = vmul.f32 %v16135_v12, %v7087_v41  ;;  %v7083_v1 = vsel %vm1411_vm8, %v16313_v56, %v7076_v16  ;;  %v7058_v49 = vpop.permute.xlu0 %7057  ;;  %v7064_v0 = vpop.permute.xlu1 %7063  ;;  %v7307_v41 = vld [vmem:[%s18102_s4 + $0x50] sm:$0xff] }
 0xb45   : > { %9920 = vmatprep.subr.bf16.mxu1 %v9919_v22  ;;  %v7124_v15 = vmul.f32 %v16332_v34, %v7095_v39  ;;  %v7125_v13 = vmul.f32 %v19027_v48, %v7092_v51  ;;  %v9853_v21 = vpack.c.bf16 %v7031_v58, %v7027_v3  ;;  %v9925_v30 = vpack.c.bf16 %v7033_v40, %v7029_v54  ;;  %v7308_v54 = vld [vmem:[%s18102_s4 + $0x58] sm:$0xff] }
 0xb46   : > { %9850 = vmatpush1.bf16.msra.mxu0 %v9849_v46  ;;  %v9923_v6 = vpack.c.bf16 %v7034_v50, %v7030_v14  ;;  %v7084_v57 = vsel %vm1411_vm8, %v16339_v24, %v16385_v37  ;;  %v7128_v46 = vmul.f32 %v16332_v34, %v7096_v42  ;;  %v9855_v18 = vpack.c.bf16 %v7126_v43, %v7122_v20  ;;  %v7301_v24 = vld [vmem:[%s18102_s4 + $0x20] sm:$0xff]  ;;  %v7306_v42 = vld [vmem:[%s18102_s4 + $0x48] sm:$0xff] }
 0xb47   : > { %9852 = vmatprep.subr.bf16.mxu0 %v9851_v32  ;;  %v7121_v56 = vmul.f32 %v19027_v48, %v7091_v10  ;;  %v7123_v59 = vmul.f32 %v16201_v5, %v7083_v1  ;;  %v7127_v7 = vmul.f32 %v16201_v5, %v7084_v57  ;;  %v7093_v23 = vsel %vm1411_vm8, %v7056_v25, %v7064_v0  ;;  %v19029_v1 = vld [vmem:[#allocation34_spill] sm:$0xff] }
 0xb48   : > { %9922 = vmatpush1.bf16.msra.mxu1 %v9921_v53  ;;  %v9927_v53 = vpack.c.bf16 %v7128_v46, %v7124_v15  ;;  %v7074_v47 = vpop.permute.xlu0 %7073  ;;  %v7072_v29 = vpop.permute.xlu1 %7071  ;;  %v7129_v60 = vmul.f32 %v19027_v48, %v7093_v23  ;;  %v19028_v63 = vmov 0.0   ;;  %v19031_v46 = vld [vmem:[#allocation53_spill] sm:$0xff] }
 0xb49   : > { %9924 = vmatprep.subr.bf16.mxu1 %v9923_v6  ;;  %v9857_v37 = vpack.c.bf16 %v7125_v13, %v7121_v56  ;;  %v9929_v45 = vpack.c.bf16 %v7127_v7, %v7123_v59  ;;  %v7089_v38 = vsel %vm1411_vm8, %v7064_v0, %v7072_v29 }
 0xb4a   : > { %9854 = vmatpush1.bf16.msra.mxu0 %v9853_v21  ;;  %v7130_v51 = vmul.f32 %v16135_v12, %v7089_v38 }
 0xb4b   : > { %9856 = vmatprep.subr.bf16.mxu0 %v9855_v18  ;;  %v19033_v18 = vld [vmem:[#allocation69_spill] sm:$0xff] }
 0xb4c   : > { %9926 = vmatpush1.bf16.msra.mxu1 %v9925_v30  ;;  %v7066_v61 = vpop.permute.xlu0 %7065  ;;  %v7080_v36 = vpop.permute.xlu1 %7079 }
 0xb4d   : > { %9928 = vmatprep.subr.bf16.mxu1 %v9927_v53  ;;  %7410 = vmatmul.mubr.f32.vlgmr.msra.gmra.mrb[32].mxu0 %v7297_v35  ;;  %v7090_v16 = vsel %vm1411_vm8, %v7066_v61, %v7074_v47  ;;  %v7094_v22 = vsel %vm1411_vm8, %v7058_v49, %v7066_v61  ;;  %v7085_v28 = vsel %vm1411_vm8, %v7072_v29, %v7080_v36 }
 0xb4e   : > { %9858 = vmatpush1.bf16.msra.mxu0 %v9857_v37  ;;  %7415 = vmatprep.mubr.f32.mxu0 %v7301_v24  ;;  %v7133_v11 = vmul.f32 %v19027_v48, %v7094_v22  ;;  %v7134_v8 = vmul.f32 %v16135_v12, %v7090_v16  ;;  %v7097_v62 = vsel %vm1411_vm8, %v7080_v36, %v7056_v25  ;;  %v7305_v25 = vld [vmem:[%s18102_s4 + $0x40] sm:$0xff]  ;;  %v19037_v16 = vld [vmem:[#allocation70_spill] sm:$0xff] }
 0xb4f   : > { %7588 = vmatmul.mubr.f32.vlgmr.msra.gmra.mrb[32].mxu1 %v7297_v35  ;;  %v7131_v43 = vmul.f32 %v16201_v5, %v7085_v28  ;;  %v7132_v39 = vmul.f32 %v16332_v34, %v7097_v62  ;;  %v19041_v28 = vld [vmem:[#allocation72_spill] sm:$0xff] }
 0xb50   : > { %9930 = vmatpush1.bf16.msra.mxu1 %v9929_v45  ;;  %7593 = vmatprep.mubr.f32.mxu1 %v7301_v24  ;;  %v9861_v33 = vpack.c.bf16 %v7133_v11, %v7129_v60  ;;  %v7082_v52 = vpop.permute.xlu0 %7081  ;;  %v9859_v12 = vpack.c.bf16 %v7134_v8, %v7130_v51  ;;  %v19035_v24 = vld [vmem:[#allocation71_spill] sm:$0xff]  ;;  %v19039_v11 = vld [vmem:[#allocation54_spill] sm:$0xff] }
 0xb51   : > { %7416 = vmatmul.mubr.f32.gmra.mrb[34].mxu0 %v7300_v9  ;;  %v7086_v58 = vsel %vm1411_vm8, %v7074_v47, %v7082_v52  ;;  %v7098_v44 = vsel %vm1411_vm8, %v7082_v52, %v7058_v49  ;;  %v19052_v47 = vld [vmem:[#allocation42_spill] sm:$0xff] }
 0xb52   : > { %7421 = vmatprep.mubr.f32.mxu0 %v7304_v17  ;;  %v7135_v19 = vmul.f32 %v16201_v5, %v7086_v58  ;;  %v7136_v32 = vmul.f32 %v16332_v34, %v7098_v44  ;;  %9860 = vmatprep.subr.bf16.mxu0 %v9859_v12  ;;  %v7299_v5 = vld [vmem:[%s18102_s4 + $0x10] sm:$0xff]  ;;  %v7302_v34 = vld [vmem:[%s18102_s4 + $0x28] sm:$0xff] }
 0xb53   : > { %7594 = vmatmul.mubr.f32.gmra.mrb[34].mxu1 %v7300_v9  ;;  %9862 = vmatpush1.bf16.msra.mxu0 %v9861_v33 }
 0xb54   : > { %7599 = vmatprep.mubr.f32.mxu1 %v7304_v17  ;;  %v9933_v3 = vpack.c.bf16 %v7135_v19, %v7131_v43  ;;  %v9931_v31 = vpack.c.bf16 %v7136_v32, %v7132_v39 }
 0xb55   : > { %7422 = vmatmul.mubr.f32.gmra.mrb[36].mxu0 %v7303_v2 }
 0xb56   : > { %7427 = vmatprep.mubr.f32.mxu0 %v7307_v41  ;;  %9932 = vmatprep.subr.bf16.mxu1 %v9931_v31 }
 0xb57   : > { %7600 = vmatmul.mubr.f32.gmra.mrb[36].mxu1 %v7303_v2 }
 0xb58   : > { %7605 = vmatprep.mubr.f32.mxu1 %v7307_v41  ;;  %9934 = vmatpush1.bf16.msra.mxu1 %v9933_v3  ;;  %v19043_v41 = vld [vmem:[#allocation55_spill] sm:$0xff] }
 0xb59   : > { %7428 = vmatmul.mubr.f32.gmra.mrb[38].mxu0 %v7306_v42 }
 0xb5a   : > { %7498 = vmatprep.mubr.f32.mxu0 %v19028_v63 }
 0xb5b   : > { %7606 = vmatmul.mubr.f32.gmra.mrb[38].mxu1 %v7306_v42  ;;  %v19045_v42 = vld [vmem:[#allocation35_spill] sm:$0xff] }
 0xb5c   : > { %7676 = vmatprep.mubr.f32.mxu1 %v19028_v63 }
 0xb5d   : > { %9123 = vmatmul.mubr.msk.f32.vlgmr.msra.gmra.mrb[32].mxu0 %vm3144_vm9, %v7299_v5  ;;  %v7316_v14 = vpop.permute.xlu1 %7315 }
 0xb5e   : > { %7504 = vmatprep.mubr.f32.mxu0 %v19028_v63 }
 0xb5f   : > { %9127 = vmatmul.mubr.msk.f32.vlgmr.msra.gmra.mrb[32].mxu1 %vm3144_vm9, %v7299_v5 }
 0xb60   : > { %7682 = vmatprep.mubr.f32.mxu1 %v19028_v63 }
 0xb61   : > { %9124 = vmatmul.mubr.msk.f32.gmra.mrb[34].mxu0 %vm3144_vm9, %v7302_v34  ;;  %v7321_v21 = vpop.permute.xlu0 %7320  ;;  %v16875_v52 = vpop.permute.xlu1 %7325 }
 0xb62   : > { %7510 = vmatprep.mubr.f32.mxu0 %v19028_v63 }
 0xb63   : > { %9128 = vmatmul.mubr.msk.f32.gmra.mrb[34].mxu1 %vm3144_vm9, %v7302_v34 }
 0xb64   : > { %7688 = vmatprep.mubr.f32.mxu1 %v19028_v63 }
 0xb65   : > { %9125 = vmatmul.mubr.msk.f32.gmra.mrb[36].mxu0 %vm3144_vm9, %v7305_v25  ;;  %v16881_v12 = vpop.permute.xlu0 %7330 }
 0xb66   : > { %7516 = vmatprep.mubr.f32.mxu0 %v19028_v63 }
 0xb67   : > { %9129 = vmatmul.mubr.msk.f32.gmra.mrb[36].mxu1 %vm3144_vm9, %v7305_v25 }
 0xb68   : > { %7694 = vmatprep.mubr.f32.mxu1 %v19028_v63 }
 0xb69   : > { %9126 = vmatmul.mubr.msk.f32.gmra.mrb[38].mxu0 %vm3144_vm9, %v7308_v54 }
 0xb6b   : > { %9130 = vmatmul.mubr.msk.f32.gmra.mrb[38].mxu1 %vm3144_vm9, %v7308_v54  ;;  %v19046_v54 = vld [vmem:[#allocation73_spill] sm:$0xff] }
 0xc30   : > { %v7500_v40 = vpop.f32.mrb[32].mxu0 }
 0xc31   : > { %v10143_v50 = vadd.f32 %v7500_v40, %v7316_v14  ;;  %v7502_v10 = vpop.f32.mrb[33].mxu0  ;;  %v19048_v40 = vld [vmem:[#allocation38_spill] sm:$0xff] }
 0xc32   : > { %v7678_v20 = vpop.f32.mrb[32].mxu1  ;;  %v10144_v60 = vadd.f32 %v7502_v10, %v7316_v14 }
 0xc33   : > { %v16722_v15 = vadd.f32 %v10143_v50, %v19029_v1  ;;  %v10151_v48 = vadd.f32 %v7678_v20, %v7316_v14  ;;  %v7680_v13 = vpop.f32.mrb[33].mxu1 }
 0xc34   : > { %v7506_v30 = vpop.f32.mrb[34].mxu0  ;;  %v16816_v22 = vadd.f32 %v10144_v60, %v19037_v16  ;;  %v10152_v36 = vadd.f32 %v7680_v13, %v7316_v14 }
 0xc35   : > { %19030 = vst [vmem:[#allocation19_spill] sm:$0xff] %v16722_v15  ;;  %v10145_v49 = vadd.f32 %v7506_v30, %v7321_v21  ;;  %v7508_v6 = vpop.f32.mrb[35].mxu0  ;;  %7717 = vrot.lane.b32.xlu1 %v16722_v15, %s10300_s11  ;;  %v16727_v0 = vadd.f32 %v10151_v48, %v19031_v46  ;;  %v19049_v48 = vld [vmem:[#allocation56_spill] sm:$0xff] }
 0xc36   : > { %v7684_v57 = vpop.f32.mrb[34].mxu1  ;;  %19038 = vst [vmem:[#allocation67_spill] sm:$0xff] %v16816_v22  ;;  %v10146_v51 = vadd.f32 %v7508_v6, %v7321_v21  ;;  %v16823_v8 = vadd.f32 %v10152_v36, %v19039_v11 }
 0xc37   : > { %19032 = vst [vmem:[#allocation50_spill] sm:$0xff] %v16727_v0  ;;  %v16730_v56 = vadd.f32 %v10145_v49, %v19033_v18  ;;  %v10153_v59 = vadd.f32 %v7684_v57, %v7321_v21  ;;  %v7686_v35 = vpop.f32.mrb[35].mxu1 }
 0xc38   : > { %v16732_v53 = vpop.f32.mrb[36].mxu0  ;;  %19040 = vst [vmem:[#allocation65_spill] sm:$0xff] %v16823_v8  ;;  %v16826_v2 = vadd.f32 %v10146_v51, %v19041_v28  ;;  %v10154_v62 = vadd.f32 %v7686_v35, %v7321_v21 }
 0xc39   : > { %19034 = vst [vmem:[#allocation64_spill] sm:$0xff] %v16730_v56  ;;  %v16735_v37 = vadd.f32 %v10153_v59, %v19035_v24  ;;  %v16737_v7 = vpop.f32.mrb[37].mxu0  ;;  %7719 = vrot.lane.b32.xlu0 %v16730_v56, %s10300_s11  ;;  %7733 = vrot.lane.b32.xlu1 %v16727_v0, %s10300_s11  ;;  %v10147_v39 = vadd.f32 %v16732_v53, %v16875_v52 }
 0xc3a   : > { %v16745_v29 = vpop.f32.mrb[36].mxu1  ;;  %19042 = vst [vmem:[#allocation41_spill] sm:$0xff] %v16826_v2  ;;  %v16833_v33 = vadd.f32 %v10154_v62, %v19043_v41 }
 0xc3b   : > { %19036 = vst [vmem:[#allocation24_spill] sm:$0xff] %v16735_v37  ;;  %v16747_v45 = vpop.f32.mrb[37].mxu1  ;;  %v16908_v3 = vadd.f32 %v10147_v39, %v19045_v42  ;;  %v10155_v31 = vadd.f32 %v16745_v29, %v16875_v52  ;;  %v7765_v39 = vld [vmem:[%s18099_s1] ss:$8 sm:$0xf] }
 0xc3c   : > { %v16751_v9 = vpop.f32.mrb[38].mxu0  ;;  %19044 = vst [vmem:[#allocation62_spill] sm:$0xff] %v16833_v33 }
 0xc3d   : > { %v16753_v38 = vpop.f32.mrb[39].mxu0  ;;  %7735 = vrot.lane.b32.xlu0 %v16735_v37, %s10300_s11  ;;  %7819 = vrot.lane.b32.xlu1 %v16722_v15, %s10301_s12  ;;  %v10149_v5 = vadd.f32 %v16751_v9, %v16881_v12  ;;  %v16923_v14 = vadd.f32 %v10155_v31, %v19046_v54  ;;  %v10156_v54 = vadd.f32 %v16747_v45, %v16875_v52 }
 0xc3e   : > { %v16759_v17 = vpop.f32.mrb[38].mxu1 }
 0xc3f   : > { %v16761_v61 = vpop.f32.mrb[39].mxu1  ;;  %19047 = vst [vmem:[#allocation20_spill] sm:$0xff] %v16923_v14  ;;  %v16926_v50 = vadd.f32 %v10149_v5, %v19048_v40  ;;  %v10157_v10 = vadd.f32 %v16759_v17, %v16881_v12  ;;  %v10148_v5 = vadd.f32 %v16737_v7, %v16875_v52  ;;  %v17039_v40 = vrot.slane %v7765_v39, %v10561_v27  ;;  %v19053_v52 = vld [vmem:[#allocation29_spill] sm:$0xff] }
 0xc40   : > { %v17054_v63 = vadd.f32 %v10156_v54, %v19053_v52  ;;  %v10158_v52 = vadd.f32 %v16761_v61, %v16881_v12 }
 0xc41   : > { %7821 = vrot.lane.b32.xlu0 %v16730_v56, %s10301_s12  ;;  %7835 = vrot.lane.b32.xlu1 %v16727_v0, %s10301_s12  ;;  %v16939_v13 = vadd.f32 %v10157_v10, %v19049_v48  ;;  %19051 = vst [vmem:[#allocation94_spill] sm:$0xff] %v17039_v40  ;;  %v10150_v10 = vadd.f32 %v16753_v38, %v16881_v12  ;;  %v9131_v38 = vld [vmem:[%s18099_s1 + $0x1] ss:$8 sm:$0xf] }
 0xc42   : > { %v17051_v45 = vadd.f32 %v10148_v5, %v19052_v47  ;;  %v17068_v47 = vrot.slane %v7765_v39, %v18658_v55  ;;  %v19056_v5 = vld [vmem:[#allocation89_spill] sm:$0xff]  ;;  %v17092_v61 = vrot.slane %v9131_v38, %v10561_v27 }
 0xc43   : > { %19050 = vst [vmem:[#allocation40_spill] sm:$0xff] %v16939_v13  ;;  %v17073_v54 = vadd.f32 %v10150_v10, %v19056_v5 }
 0xc44   : > { %19055 = vst [vmem:[#allocation44_spill] sm:$0xff] %v17068_v47 }
 0xc45   : > { %7837 = vrot.lane.b32.xlu0 %v16735_v37, %s10301_s12  ;;  %7921 = vrot.lane.b32.xlu1 %v16722_v15, %s10302_s13 }
 0xc49   : > { %7923 = vrot.lane.b32.xlu0 %v16730_v56, %s10302_s13  ;;  %7937 = vrot.lane.b32.xlu1 %v16727_v0, %s10302_s13 }
 0xc4d   : > { %7939 = vrot.lane.b32.xlu0 %v16735_v37, %s10302_s13  ;;  %8023 = vrot.lane.b32.xlu1 %v16722_v15, %s10303_s16 }
 0xc51   : > { %8025 = vrot.lane.b32.xlu0 %v16730_v56, %s10303_s16  ;;  %8039 = vrot.lane.b32.xlu1 %v16727_v0, %s10303_s16 }
 0xc55   : > { %8041 = vrot.lane.b32.xlu0 %v16735_v37, %s10303_s16  ;;  %8141 = vrot.lane.b32.xlu1 %v16722_v15, %s10304_s19 }
 0xc59   : > { %8143 = vrot.lane.b32.xlu0 %v16730_v56, %s10304_s19  ;;  %8157 = vrot.lane.b32.xlu1 %v16727_v0, %s10304_s19 }
 0xc5d   : > { %8159 = vrot.lane.b32.xlu0 %v16735_v37, %s10304_s19  ;;  %8243 = vrot.lane.b32.xlu1 %v16722_v15, %s10305_s24 }
 0xc61   : > { %8245 = vrot.lane.b32.xlu0 %v16730_v56, %s10305_s24  ;;  %8259 = vrot.lane.b32.xlu1 %v16727_v0, %s10305_s24 }
 0xc65   : > { %8261 = vrot.lane.b32.xlu0 %v16735_v37, %s10305_s24  ;;  %8345 = vrot.lane.b32.xlu1 %v16722_v15, %s10306_s29 }
 0xc69   : > { %8347 = vrot.lane.b32.xlu0 %v16730_v56, %s10306_s29  ;;  %8361 = vrot.lane.b32.xlu1 %v16727_v0, %s10306_s29 }
 0xc6d   : > { %8363 = vrot.lane.b32.xlu0 %v16735_v37, %s10306_s29  ;;  %8447 = vrot.lane.b32.xlu1 %v16722_v15, %s10307_s15 }
 0xc71   : > { %8449 = vrot.lane.b32.xlu0 %v16730_v56, %s10307_s15  ;;  %8463 = vrot.lane.b32.xlu1 %v16727_v0, %s10307_s15  ;;  %v19054_v56 = vld [vmem:[#allocation4_spill] sm:$0xff] }
 0xc75   : > { %8465 = vrot.lane.b32.xlu0 %v16735_v37, %s10307_s15  ;;  %7725 = vrot.lane.b32.xlu1 %v16816_v22, %s10300_s11 }
 0xc79   : > { %7727 = vrot.lane.b32.xlu0 %v16826_v2, %s10300_s11  ;;  %7741 = vrot.lane.b32.xlu1 %v16823_v8, %s10300_s11 }
 0xc7d   : > { %7743 = vrot.lane.b32.xlu0 %v16833_v33, %s10300_s11  ;;  %7827 = vrot.lane.b32.xlu1 %v16816_v22, %s10301_s12 }
 0xc81   : > { %7829 = vrot.lane.b32.xlu0 %v16826_v2, %s10301_s12  ;;  %7843 = vrot.lane.b32.xlu1 %v16823_v8, %s10301_s12 }
 0xc85   : > { %7845 = vrot.lane.b32.xlu0 %v16833_v33, %s10301_s12  ;;  %7929 = vrot.lane.b32.xlu1 %v16816_v22, %s10302_s13 }
 0xc89   : > { %7931 = vrot.lane.b32.xlu0 %v16826_v2, %s10302_s13  ;;  %7945 = vrot.lane.b32.xlu1 %v16823_v8, %s10302_s13 }
 0xc8d   : > { %7947 = vrot.lane.b32.xlu0 %v16833_v33, %s10302_s13  ;;  %8031 = vrot.lane.b32.xlu1 %v16816_v22, %s10303_s16 }
 0xc91   : > { %8033 = vrot.lane.b32.xlu0 %v16826_v2, %s10303_s16  ;;  %8047 = vrot.lane.b32.xlu1 %v16823_v8, %s10303_s16 }
 0xc95   : > { %8049 = vrot.lane.b32.xlu0 %v16833_v33, %s10303_s16  ;;  %8149 = vrot.lane.b32.xlu1 %v16816_v22, %s10304_s19 }
 0xc99   : > { %8151 = vrot.lane.b32.xlu0 %v16826_v2, %s10304_s19  ;;  %8165 = vrot.lane.b32.xlu1 %v16823_v8, %s10304_s19 }
 0xc9d   : > { %8167 = vrot.lane.b32.xlu0 %v16833_v33, %s10304_s19  ;;  %8251 = vrot.lane.b32.xlu1 %v16816_v22, %s10305_s24 }
 0xca1   : > { %8253 = vrot.lane.b32.xlu0 %v16826_v2, %s10305_s24  ;;  %8267 = vrot.lane.b32.xlu1 %v16823_v8, %s10305_s24 }
 0xca5   : > { %8269 = vrot.lane.b32.xlu0 %v16833_v33, %s10305_s24  ;;  %8353 = vrot.lane.b32.xlu1 %v16816_v22, %s10306_s29 }
 0xca7   : > { %v16883_v43 = vpop.permute.xlu1 %7717 }
 0xca9   : > { %8355 = vrot.lane.b32.xlu0 %v16826_v2, %s10306_s29  ;;  %8369 = vrot.lane.b32.xlu1 %v16823_v8, %s10306_s29 }
 0xcab   : > { %v16889_v58 = vpop.permute.xlu0 %7719  ;;  %v16891_v44 = vpop.permute.xlu1 %7733 }
 0xcad   : > { %8371 = vrot.lane.b32.xlu0 %v16833_v33, %s10306_s29  ;;  %8455 = vrot.lane.b32.xlu1 %v16816_v22, %s10307_s15 }
 0xcaf   : > { %v16899_v19 = vpop.permute.xlu0 %7735  ;;  %v16901_v32 = vpop.permute.xlu1 %7819 }
 0xcb1   : > { %8457 = vrot.lane.b32.xlu0 %v16826_v2, %s10307_s15  ;;  %8471 = vrot.lane.b32.xlu1 %v16823_v8, %s10307_s15  ;;  %v17086_v8 = vrot.slane %v7765_v39, %v18674_v4 }
 0xcb3   : > { %v16914_v34 = vpop.permute.xlu0 %7821  ;;  %v16916_v25 = vpop.permute.xlu1 %7835 }
 0xcb5   : > { %8473 = vrot.lane.b32.xlu0 %v16833_v33, %s10307_s15  ;;  %7721 = vrot.lane.b32.xlu1 %v16908_v3, %s10300_s11  ;;  %v17065_v33 = vrot.slane %v7765_v39, %v19054_v56 }
 0xcb7   : > { %v16930_v20 = vpop.permute.xlu0 %7837  ;;  %v16932_v1 = vpop.permute.xlu1 %7921 }
 0xcb9   : > { %7723 = vrot.lane.b32.xlu0 %v16926_v50, %s10300_s11  ;;  %7737 = vrot.lane.b32.xlu1 %v16923_v14, %s10300_s11 }
 0xcbb   : > { %v16941_v21 = vpop.permute.xlu0 %7923  ;;  %v16943_v30 = vpop.permute.xlu1 %7937 }
 0xcbd   : > { %7739 = vrot.lane.b32.xlu0 %v16939_v13, %s10300_s11  ;;  %7823 = vrot.lane.b32.xlu1 %v16908_v3, %s10301_s12 }
 0xcbf   : > { %v16949_v49 = vpop.permute.xlu0 %7939  ;;  %v16951_v6 = vpop.permute.xlu1 %8023 }
 0xcc1   : > { %7825 = vrot.lane.b32.xlu0 %v16926_v50, %s10301_s12  ;;  %7839 = vrot.lane.b32.xlu1 %v16923_v14, %s10301_s12 }
 0xcc3   : > { %v16957_v57 = vpop.permute.xlu0 %8025  ;;  %v16959_v46 = vpop.permute.xlu1 %8039 }
 0xcc5   : > { %7841 = vrot.lane.b32.xlu0 %v16939_v13, %s10301_s12  ;;  %7925 = vrot.lane.b32.xlu1 %v16908_v3, %s10302_s13 }
 0xcc7   : > { %v16965_v18 = vpop.permute.xlu0 %8041  ;;  %v16967_v59 = vpop.permute.xlu1 %8141 }
 0xcc9   : > { %7927 = vrot.lane.b32.xlu0 %v16926_v50, %s10302_s13  ;;  %7941 = vrot.lane.b32.xlu1 %v16923_v14, %s10302_s13 }
 0xccb   : > { %v16973_v35 = vpop.permute.xlu0 %8143  ;;  %v16975_v53 = vpop.permute.xlu1 %8157 }
 0xccd   : > { %7943 = vrot.lane.b32.xlu0 %v16939_v13, %s10302_s13  ;;  %8027 = vrot.lane.b32.xlu1 %v16908_v3, %s10303_s16 }
 0xccf   : > { %v16981_v24 = vpop.permute.xlu0 %8159  ;;  %v16983_v29 = vpop.permute.xlu1 %8243 }
 0xcd1   : > { %8029 = vrot.lane.b32.xlu0 %v16926_v50, %s10303_s16  ;;  %8043 = vrot.lane.b32.xlu1 %v16923_v14, %s10303_s16 }
 0xcd3   : > { %v16989_v9 = vpop.permute.xlu0 %8245  ;;  %v16991_v17 = vpop.permute.xlu1 %8259 }
 0xcd5   : > { %8045 = vrot.lane.b32.xlu0 %v16939_v13, %s10303_s16  ;;  %8145 = vrot.lane.b32.xlu1 %v16908_v3, %s10304_s19 }
 0xcd7   : > { %v16997_v60 = vpop.permute.xlu0 %8261  ;;  %v16999_v16 = vpop.permute.xlu1 %8345 }
 0xcd9   : > { %8147 = vrot.lane.b32.xlu0 %v16926_v50, %s10304_s19  ;;  %8161 = vrot.lane.b32.xlu1 %v16923_v14, %s10304_s19 }
 0xcdb   : > { %v17005_v36 = vpop.permute.xlu0 %8347  ;;  %v17007_v51 = vpop.permute.xlu1 %8361 }
 0xcdd   : > { %8163 = vrot.lane.b32.xlu0 %v16939_v13, %s10304_s19  ;;  %8247 = vrot.lane.b32.xlu1 %v16908_v3, %s10305_s24 }
 0xcdf   : > { %v17013_v11 = vpop.permute.xlu0 %8363  ;;  %v17015_v28 = vpop.permute.xlu1 %8447 }
 0xce1   : > { %8249 = vrot.lane.b32.xlu0 %v16926_v50, %s10305_s24  ;;  %8263 = vrot.lane.b32.xlu1 %v16923_v14, %s10305_s24 }
 0xce3   : > { %v17021_v62 = vpop.permute.xlu0 %8449  ;;  %v17023_v41 = vpop.permute.xlu1 %8463 }
 0xce5   : > { %8265 = vrot.lane.b32.xlu0 %v16939_v13, %s10305_s24  ;;  %8349 = vrot.lane.b32.xlu1 %v16908_v3, %s10306_s29 }
 0xce7   : > { %v17032_v42 = vpop.permute.xlu0 %8465  ;;  %v7726_v31 = vpop.permute.xlu1 %7725 }
 0xce8   : > { %v7757_v48 = vsel %vm380_vm0, %v16883_v43, %v7726_v31 }
 0xce9   : > { %8351 = vrot.lane.b32.xlu0 %v16926_v50, %s10306_s29  ;;  %8365 = vrot.lane.b32.xlu1 %v16923_v14, %s10306_s29  ;;  %v7788_v37 = vmul.f32 %v17039_v40, %v7757_v48 }
 0xceb   : > { %v7728_v7 = vpop.permute.xlu0 %7727  ;;  %v7742_v23 = vpop.permute.xlu1 %7741 }
 0xcec   : > { %v7758_v0 = vsel %vm380_vm0, %v16889_v58, %v7728_v7  ;;  %v7749_v48 = vsel %vm380_vm0, %v16891_v44, %v7742_v23  ;;  %v7754_v10 = vsel %vm380_vm0, %v7728_v7, %v16899_v19  ;;  %v17104_v7 = vrot.slane %v9131_v38, %v18674_v4 }
 0xced   : > { %v7792_v15 = vmul.f32 %v17039_v40, %v7758_v0  ;;  %8367 = vrot.lane.b32.xlu0 %v16939_v13, %s10306_s29  ;;  %v7761_v0 = vsel %vm380_vm0, %v7742_v23, %v16883_v43  ;;  %7729 = vrot.lane.b32.xlu1 %v17051_v45, %s10300_s11  ;;  %v7753_v23 = vsel %vm380_vm0, %v7726_v31, %v16891_v44  ;;  %v19057_v31 = vld [vmem:[#allocation28_spill] sm:$0xff] }
 0xcee   : > { %v7787_v22 = vmul.f32 %v17065_v33, %v7761_v0  ;;  %v7790_v40 = vmul.f32 %v17068_v47, %v7749_v48  ;;  %v7793_v44 = vmul.f32 %v17086_v8, %v7754_v10  ;;  %v17122_v48 = vadd.f32 %v10158_v52, %v19057_v31 }
 0xcef   : > { %v7744_v5 = vpop.permute.xlu0 %7743  ;;  %v7828_v12 = vpop.permute.xlu1 %7827  ;;  %v9935_v2 = vpack.c.bf16 %v7792_v15, %v7788_v37  ;;  %v17135_v52 = vrot.slane %v9131_v38, %v18658_v55 }
 0xcf0   : > { %v7750_v43 = vsel %vm380_vm0, %v16899_v19, %v7744_v5  ;;  %v7762_v39 = vsel %vm380_vm0, %v7744_v5, %v16889_v58  ;;  %v7855_v58 = vsel %vm523_vm1, %v7828_v12, %v16916_v25  ;;  %v7859_v19 = vsel %vm523_vm1, %v16901_v32, %v7828_v12 }
 0xcf1   : > { %v7791_v15 = vmul.f32 %v17065_v33, %v7762_v39  ;;  %v7794_v37 = vmul.f32 %v17068_v47, %v7750_v43  ;;  %7731 = vrot.lane.b32.xlu0 %v17073_v54, %s10300_s11  ;;  %7745 = vrot.lane.b32.xlu1 %v17054_v63, %s10300_s11  ;;  %v17125_v43 = vrot.slane %v9131_v38, %v19054_v56  ;;  %v9132_v38 = vld [vmem:[%s18099_s1 + $0x2] ss:$8 sm:$0xf] }
 0xcf2   : > { %9936 = vmatprep.subr.bf16.mxu0 %v9935_v2  ;;  %v7789_v47 = vmul.f32 %v17086_v8, %v7753_v23 }
 0xcf3   : > { %v9937_v0 = vpack.c.bf16 %v7791_v15, %v7787_v22  ;;  %v7830_v5 = vpop.permute.xlu0 %7829  ;;  %v7844_v10 = vpop.permute.xlu1 %7843  ;;  %v10007_v39 = vpack.c.bf16 %v7794_v37, %v7790_v40  ;;  %v17138_v22 = vmul.f32 %v17092_v61, %v7859_v19  ;;  %v17141_v15 = vmul.f32 %v17104_v7, %v7855_v58 }
 0xcf4   : > { %v7856_v12 = vsel %vm523_vm1, %v7830_v5, %v16930_v20  ;;  %v7860_v2 = vsel %vm523_vm1, %v16914_v34, %v7830_v5  ;;  %v10009_v37 = vpack.c.bf16 %v7793_v44, %v7789_v47  ;;  %v7851_v19 = vsel %vm523_vm1, %v16916_v25, %v7844_v10 }
 0xcf5   : > { %19058 = vst [vmem:[#allocation36_spill] sm:$0xff] %v17141_v15  ;;  %v17144_v40 = vmul.f32 %v17092_v61, %v7860_v2  ;;  %v17147_v23 = vmul.f32 %v17104_v7, %v7856_v12  ;;  %7747 = vrot.lane.b32.xlu0 %v17122_v48, %s10300_s11  ;;  %v7863_v58 = vsel %vm523_vm1, %v7844_v10, %v16901_v32 }
 0xcf6   : > { %7831 = vrot.lane.b32.xlu1 %v17051_v45, %s10301_s12  ;;  %9938 = vmatpush1.bf16.msra.mxu0 %v9937_v0  ;;  %v17173_v44 = vrot.slane %v9132_v38, %v10561_v27  ;;  %v17176_v0 = vrot.slane %v9132_v38, %v18674_v4  ;;  %v17179_v10 = vmul.f32 %v17125_v43, %v7863_v58 }
 0xcf7   : > { %19059 = vst [vmem:[#allocation39_spill] sm:$0xff] %v17147_v23  ;;  %10008 = vmatprep.subr.bf16.mxu1 %v10007_v39  ;;  %v7846_v5 = vpop.permute.xlu0 %7845  ;;  %v7930_v12 = vpop.permute.xlu1 %7929  ;;  %v17182_v39 = vmul.f32 %v17135_v52, %v7851_v19  ;;  %v17214_v47 = vrot.slane %v9132_v38, %v18658_v55 }
 0xcf8   : > { %10010 = vmatpush1.bf16.msra.mxu1 %v10009_v37  ;;  %v7852_v25 = vsel %vm523_vm1, %v16930_v20, %v7846_v5  ;;  %v7864_v32 = vsel %vm523_vm1, %v7846_v5, %v16914_v34  ;;  %19060 = vst [vmem:[#allocation21_spill] sm:$0xff] %v17173_v44  ;;  %19061 = vst [vmem:[#allocation90_spill] sm:$0xff] %v17176_v0  ;;  %v7957_v34 = vsel %vm667_vm2, %v7930_v12, %v16943_v30 }
 0xcf9   : > { %v17185_v2 = vmul.f32 %v17125_v43, %v7864_v32  ;;  %v17188_v20 = vmul.f32 %v17135_v52, %v7852_v25  ;;  %7833 = vrot.lane.b32.xlu0 %v17073_v54, %s10301_s12  ;;  %v7961_v37 = vsel %vm667_vm2, %v16932_v1, %v7930_v12  ;;  %v17211_v12 = vrot.slane %v9132_v38, %v19054_v56  ;;  %v9133_v38 = vld [vmem:[%s18099_s1 + $0x3] ss:$8 sm:$0xf] }
 0xcfa   : > { %7847 = vrot.lane.b32.xlu1 %v17054_v63, %s10301_s12  ;;  %19063 = vst [vmem:[#allocation80_spill] sm:$0xff] %v17214_v47  ;;  %v17217_v19 = vmul.f32 %v17173_v44, %v7961_v37  ;;  %v17220_v15 = vmul.f32 %v17176_v0, %v7957_v34 }
 0xcfb   : > { %v7932_v58 = vpop.permute.xlu0 %7931  ;;  %v7946_v5 = vpop.permute.xlu1 %7945  ;;  %19062 = vst [vmem:[#allocation76_spill] sm:$0xff] %v17211_v12 }
 0xcfc   : > { %v7958_v32 = vsel %vm667_vm2, %v7932_v58, %v16949_v49  ;;  %v7962_v31 = vsel %vm667_vm2, %v16941_v21, %v7932_v58  ;;  %19064 = vst [vmem:[#allocation48_spill] sm:$0xff] %v17220_v15  ;;  %v7953_v37 = vsel %vm667_vm2, %v16943_v30, %v7946_v5  ;;  %v7965_v34 = vsel %vm667_vm2, %v7946_v5, %v16932_v1 }
 0xcfd   : > { %v17223_v25 = vmul.f32 %v17173_v44, %v7962_v31  ;;  %v17226_v23 = vmul.f32 %v17176_v0, %v7958_v32  ;;  %7849 = vrot.lane.b32.xlu0 %v17122_v48, %s10301_s12  ;;  %v17252_v1 = vrot.slane %v9133_v38, %v10561_v27  ;;  %v17255_v5 = vrot.slane %v9133_v38, %v18674_v4 }
 0xcfe   : > { %7933 = vrot.lane.b32.xlu1 %v17051_v45, %s10302_s13  ;;  %v17258_v31 = vmul.f32 %v17211_v12, %v7965_v34  ;;  %v17261_v15 = vmul.f32 %v17214_v47, %v7953_v37 }
 0xcff   : > { %19065 = vst [vmem:[#allocation74_spill] sm:$0xff] %v17226_v23  ;;  %v7948_v58 = vpop.permute.xlu0 %7947  ;;  %v8032_v32 = vpop.permute.xlu1 %8031  ;;  %19066 = vst [vmem:[#allocation59_spill] sm:$0xff] %v17252_v1 }
 0xd00   : > { %v7954_v44 = vsel %vm667_vm2, %v16949_v49, %v7948_v58  ;;  %v7966_v30 = vsel %vm667_vm2, %v7948_v58, %v16941_v21  ;;  %19067 = vst [vmem:[#allocation66_spill] sm:$0xff] %v17255_v5  ;;  %19068 = vst [vmem:[#allocation77_spill] sm:$0xff] %v17258_v31  ;;  %v8059_v21 = vsel %vm811_vm3, %v8032_v32, %v16959_v46 }
 0xd01   : > { %v17264_v0 = vmul.f32 %v17211_v12, %v7966_v30  ;;  %v17267_v49 = vmul.f32 %v17214_v47, %v7954_v44  ;;  %7935 = vrot.lane.b32.xlu0 %v17073_v54, %s10302_s13  ;;  %v8063_v34 = vsel %vm811_vm3, %v16951_v6, %v8032_v32  ;;  %v17290_v32 = vrot.slane %v9133_v38, %v19054_v56 }
 0xd02   : > { %7949 = vrot.lane.b32.xlu1 %v17054_v63, %s10302_s13  ;;  %v17293_v12 = vrot.slane %v9133_v38, %v18658_v55  ;;  %v17296_v37 = vmul.f32 %v17252_v1, %v8063_v34  ;;  %v17299_v31 = vmul.f32 %v17255_v5, %v8059_v21  ;;  %v9134_v38 = vld [vmem:[%s18099_s1 + $0x5] ss:$8 sm:$0xf] }
 0xd03   : > { %19069 = vst [vmem:[#allocation46_spill] sm:$0xff] %v17264_v0  ;;  %v8034_v58 = vpop.permute.xlu0 %8033  ;;  %v8048_v44 = vpop.permute.xlu1 %8047  ;;  %19070 = vst [vmem:[#allocation81_spill] sm:$0xff] %v17290_v32 }
 0xd04   : > { %v8060_v23 = vsel %vm811_vm3, %v8034_v58, %v16965_v18  ;;  %v8064_v47 = vsel %vm811_vm3, %v16957_v57, %v8034_v58  ;;  %19071 = vst [vmem:[#allocation37_spill] sm:$0xff] %v17293_v12  ;;  %19072 = vst [vmem:[#allocation30_spill] sm:$0xff] %v17299_v31  ;;  %v8055_v34 = vsel %vm811_vm3, %v16959_v46, %v8048_v44 }
 0xd05   : > { %v17302_v30 = vmul.f32 %v17252_v1, %v8064_v47  ;;  %v17305_v0 = vmul.f32 %v17255_v5, %v8060_v23  ;;  %7951 = vrot.lane.b32.xlu0 %v17122_v48, %s10302_s13  ;;  %v8067_v21 = vsel %vm811_vm3, %v8048_v44, %v16951_v6  ;;  %v17331_v6 = vrot.slane %v9134_v38, %v19054_v56 }
 0xd06   : > { %8035 = vrot.lane.b32.xlu1 %v17051_v45, %s10303_s16  ;;  %v17334_v44 = vrot.slane %v9134_v38, %v10561_v27  ;;  %v17337_v23 = vmul.f32 %v17290_v32, %v8067_v21  ;;  %v17340_v31 = vmul.f32 %v17293_v12, %v8055_v34 }
 0xd07   : > { %19073 = vst [vmem:[#allocation13_spill] sm:$0xff] %v17305_v0  ;;  %v8050_v47 = vpop.permute.xlu0 %8049  ;;  %v8150_v58 = vpop.permute.xlu1 %8149  ;;  %19074 = vst [vmem:[#allocation12_spill] sm:$0xff] %v17331_v6 }
 0xd08   : > { %v8056_v1 = vsel %vm811_vm3, %v16965_v18, %v8050_v47  ;;  %v8068_v46 = vsel %vm811_vm3, %v8050_v47, %v16957_v57  ;;  %19075 = vst [vmem:[#allocation78_spill] sm:$0xff] %v17334_v44  ;;  %19076 = vst [vmem:[#allocation96_spill] sm:$0xff] %v17337_v23  ;;  %v8177_v57 = vsel %vm979_vm4, %v8150_v58, %v16975_v53 }
 0xd09   : > { %v17343_v5 = vmul.f32 %v17290_v32, %v8068_v46  ;;  %v17346_v18 = vmul.f32 %v17293_v12, %v8056_v1  ;;  %8037 = vrot.lane.b32.xlu0 %v17073_v54, %s10303_s16  ;;  %v8181_v21 = vsel %vm979_vm4, %v16967_v59, %v8150_v58  ;;  %v17369_v58 = vrot.slane %v9134_v38, %v18674_v4 }
 0xd0a   : > { %8051 = vrot.lane.b32.xlu1 %v17054_v63, %s10303_s16  ;;  %v17372_v32 = vrot.slane %v9134_v38, %v18658_v55  ;;  %v17375_v34 = vmul.f32 %v17331_v6, %v8181_v21  ;;  %v17378_v23 = vmul.f32 %v17334_v44, %v8177_v57  ;;  %v9135_v38 = vld [vmem:[%s18099_s1 + $0x6] ss:$8 sm:$0xf] }
 0xd0b   : > { %19077 = vst [vmem:[#allocation87_spill] sm:$0xff] %v17343_v5  ;;  %v8152_v47 = vpop.permute.xlu0 %8151  ;;  %v8166_v1 = vpop.permute.xlu1 %8165  ;;  %19078 = vst [vmem:[#allocation14_spill] sm:$0xff] %v17369_v58 }
 0xd0c   : > { %v8178_v0 = vsel %vm979_vm4, %v8152_v47, %v16981_v24  ;;  %v8182_v12 = vsel %vm979_vm4, %v16973_v35, %v8152_v47  ;;  %19079 = vst [vmem:[#allocation11_spill] sm:$0xff] %v17372_v32  ;;  %19080 = vst [vmem:[#allocation45_spill] sm:$0xff] %v17375_v34  ;;  %v8173_v21 = vsel %vm979_vm4, %v16975_v53, %v8166_v1 }
 0xd0d   : > { %19081 = vst [vmem:[#allocation9_spill] sm:$0xff] %v17378_v23  ;;  %v17381_v46 = vmul.f32 %v17331_v6, %v8182_v12  ;;  %v17384_v5 = vmul.f32 %v17334_v44, %v8178_v0  ;;  %8053 = vrot.lane.b32.xlu0 %v17122_v48, %s10303_s16  ;;  %v8185_v57 = vsel %vm979_vm4, %v8166_v1, %v16967_v59 }
 0xd0e   : > { %8451 = vrot.lane.b32.xlu1 %v16908_v3, %s10307_s15  ;;  %v17410_v59 = vrot.slane %v9135_v38, %v19054_v56  ;;  %v17413_v1 = vrot.slane %v9135_v38, %v10561_v27  ;;  %v17416_v0 = vmul.f32 %v17369_v58, %v8173_v21  ;;  %v17419_v34 = vmul.f32 %v17372_v32, %v8185_v57 }
 0xd0f   : > { %19082 = vst [vmem:[#allocation7_spill] sm:$0xff] %v17381_v46  ;;  %19083 = vst [vmem:[#allocation49_spill] sm:$0xff] %v17384_v5  ;;  %v8168_v12 = vpop.permute.xlu0 %8167  ;;  %v8252_v47 = vpop.permute.xlu1 %8251 }
 0xd10   : > { %v8174_v44 = vsel %vm979_vm4, %v16981_v24, %v8168_v12  ;;  %v8186_v53 = vsel %vm979_vm4, %v8168_v12, %v16973_v35  ;;  %19084 = vst [vmem:[#allocation82_spill] sm:$0xff] %v17410_v59  ;;  %19085 = vst [vmem:[#allocation91_spill] sm:$0xff] %v17413_v1  ;;  %v8279_v35 = vsel %vm1123_vm5, %v8252_v47, %v16991_v17 }
 0xd11   : > { %19086 = vst [vmem:[#allocation33_spill] sm:$0xff] %v17416_v0  ;;  %19087 = vst [vmem:[#allocation95_spill] sm:$0xff] %v17419_v34  ;;  %v17422_v6 = vmul.f32 %v17369_v58, %v8174_v44  ;;  %v17425_v24 = vmul.f32 %v17372_v32, %v8186_v53  ;;  %8453 = vrot.lane.b32.xlu0 %v16926_v50, %s10307_s15  ;;  %v8283_v21 = vsel %vm1123_vm5, %v16983_v29, %v8252_v47 }
 0xd12   : > { %8153 = vrot.lane.b32.xlu1 %v17051_v45, %s10304_s19  ;;  %v17448_v47 = vrot.slane %v9135_v38, %v18674_v4  ;;  %v17451_v58 = vrot.slane %v9135_v38, %v18658_v55  ;;  %v17454_v44 = vmul.f32 %v17410_v59, %v8283_v21  ;;  %v17457_v0 = vmul.f32 %v17413_v1, %v8279_v35  ;;  %v9136_v38 = vld [vmem:[%s18099_s1 + $0x7] ss:$8 sm:$0xf] }
 0xd13   : > { %19088 = vst [vmem:[#allocation88_spill] sm:$0xff] %v17422_v6  ;;  %19089 = vst [vmem:[#allocation31_spill] sm:$0xff] %v17425_v24  ;;  %v8254_v57 = vpop.permute.xlu0 %8253  ;;  %v8268_v12 = vpop.permute.xlu1 %8267 }
 0xd14   : > { %v8280_v46 = vsel %vm1123_vm5, %v8254_v57, %v16997_v60  ;;  %v8284_v32 = vsel %vm1123_vm5, %v16989_v9, %v8254_v57  ;;  %19090 = vst [vmem:[#allocation10_spill] sm:$0xff] %v17448_v47  ;;  %19091 = vst [vmem:[#allocation8_spill] sm:$0xff] %v17451_v58  ;;  %v8275_v21 = vsel %vm1123_vm5, %v16991_v17, %v8268_v12 }
 0xd15   : > { %19092 = vst [vmem:[#allocation92_spill] sm:$0xff] %v17454_v44  ;;  %19093 = vst [vmem:[#allocation63_spill] sm:$0xff] %v17457_v0  ;;  %v17460_v53 = vmul.f32 %v17410_v59, %v8284_v32  ;;  %v17463_v6 = vmul.f32 %v17413_v1, %v8280_v46  ;;  %8469 = vrot.lane.b32.xlu0 %v16939_v13, %s10307_s15  ;;  %v8287_v35 = vsel %vm1123_vm5, %v8268_v12, %v16983_v29  ;;  %v19133_v13 = vld [vmem:[#allocation44_spill] sm:$0xff] }
 0xd16   : > { %8169 = vrot.lane.b32.xlu1 %v17054_v63, %s10304_s19  ;;  %v17489_v29 = vrot.slane %v9136_v38, %v19054_v56  ;;  %v17492_v12 = vrot.slane %v9136_v38, %v10561_v27  ;;  %v17495_v32 = vmul.f32 %v17448_v47, %v8275_v21  ;;  %v17498_v44 = vmul.f32 %v17451_v58, %v8287_v35 }
 0xd17   : > { %19094 = vst [vmem:[#allocation47_spill] sm:$0xff] %v17460_v53  ;;  %19095 = vst [vmem:[#allocation84_spill] sm:$0xff] %v17463_v6  ;;  %v8270_v46 = vpop.permute.xlu0 %8269  ;;  %v8354_v57 = vpop.permute.xlu1 %8353 }
 0xd18   : > { %v8276_v1 = vsel %vm1123_vm5, %v16997_v60, %v8270_v46  ;;  %v8288_v17 = vsel %vm1123_vm5, %v8270_v46, %v16989_v9  ;;  %19096 = vst [vmem:[#allocation58_spill] sm:$0xff] %v17489_v29  ;;  %19097 = vst [vmem:[#allocation32_spill] sm:$0xff] %v17492_v12  ;;  %v8381_v9 = vsel %vm1267_vm7, %v8354_v57, %v17007_v51 }
 0xd19   : > { %19098 = vst [vmem:[#allocation17_spill] sm:$0xff] %v17495_v32  ;;  %19099 = vst [vmem:[#allocation16_spill] sm:$0xff] %v17498_v44  ;;  %v17501_v59 = vmul.f32 %v17448_v47, %v8276_v1  ;;  %v17504_v60 = vmul.f32 %v17451_v58, %v8288_v17  ;;  %8155 = vrot.lane.b32.xlu0 %v17073_v54, %s10304_s19  ;;  %v8385_v21 = vsel %vm1267_vm7, %v16999_v16, %v8354_v57 }
 0xd1a   : > { %8255 = vrot.lane.b32.xlu1 %v17051_v45, %s10305_s24  ;;  %v17527_v57 = vrot.slane %v9136_v38, %v18674_v4  ;;  %v17530_v47 = vrot.slane %v9136_v38, %v18658_v55  ;;  %v17533_v1 = vmul.f32 %v17489_v29, %v8385_v21  ;;  %v17536_v32 = vmul.f32 %v17492_v12, %v8381_v9  ;;  %v9137_v38 = vld [vmem:[%s18099_s1 + $0x20] ss:$8 sm:$0xf] }
 0xd1b   : > { %19100 = vst [vmem:[#allocation61_spill] sm:$0xff] %v17501_v59  ;;  %19101 = vst [vmem:[#allocation79_spill] sm:$0xff] %v17504_v60  ;;  %v8356_v35 = vpop.permute.xlu0 %8355  ;;  %v8370_v46 = vpop.permute.xlu1 %8369 }
 0xd1c   : > { %v8382_v53 = vsel %vm1267_vm7, %v8356_v35, %v17013_v11  ;;  %v8386_v58 = vsel %vm1267_vm7, %v17005_v36, %v8356_v35  ;;  %19102 = vst [vmem:[#allocation18_spill] sm:$0xff] %v17527_v57  ;;  %19103 = vst [vmem:[#allocation15_spill] sm:$0xff] %v17530_v47  ;;  %v8377_v21 = vsel %vm1267_vm7, %v17007_v51, %v8370_v46 }
 0xd1d   : > { %19104 = vst [vmem:[#allocation75_spill] sm:$0xff] %v17533_v1  ;;  %19105 = vst [vmem:[#allocation23_spill] sm:$0xff] %v17536_v32  ;;  %v17539_v17 = vmul.f32 %v17489_v29, %v8386_v58  ;;  %v17542_v59 = vmul.f32 %v17492_v12, %v8382_v53  ;;  %8171 = vrot.lane.b32.xlu0 %v17122_v48, %s10304_s19  ;;  %v8389_v9 = vsel %vm1267_vm7, %v8370_v46, %v16999_v16 }
 0xd1e   : > { %8271 = vrot.lane.b32.xlu1 %v17054_v63, %s10305_s24  ;;  %v17568_v16 = vrot.slane %v9137_v38, %v19054_v56  ;;  %v17571_v46 = vrot.slane %v9137_v38, %v10561_v27  ;;  %v17574_v58 = vmul.f32 %v17527_v57, %v8377_v21  ;;  %v17577_v1 = vmul.f32 %v17530_v47, %v8389_v9 }
 0xd1f   : > { %19106 = vst [vmem:[#allocation22_spill] sm:$0xff] %v17539_v17  ;;  %19107 = vst [vmem:[#allocation93_spill] sm:$0xff] %v17542_v59  ;;  %v8372_v53 = vpop.permute.xlu0 %8371  ;;  %v8456_v35 = vpop.permute.xlu1 %8455  ;;  %v17609_v17 = vrot.slane %v9137_v38, %v18658_v55 }
 0xd20   : > { %v8378_v12 = vsel %vm1267_vm7, %v17013_v11, %v8372_v53  ;;  %v8390_v51 = vsel %vm1267_vm7, %v8372_v53, %v17005_v36  ;;  %19108 = vst [vmem:[#allocation43_spill] sm:$0xff] %v17568_v16  ;;  %19109 = vst [vmem:[#allocation25_spill] sm:$0xff] %v17571_v46  ;;  %v8483_v27 = vsel %vm1411_vm8, %v8456_v35, %v17023_v41 }
 0xd21   : > { %19110 = vst [vmem:[#allocation5_spill] sm:$0xff] %v17574_v58  ;;  %19111 = vst [vmem:[#allocation27_spill] sm:$0xff] %v17577_v1  ;;  %v17580_v29 = vmul.f32 %v17527_v57, %v8378_v12  ;;  %v17583_v11 = vmul.f32 %v17530_v47, %v8390_v51  ;;  %8257 = vrot.lane.b32.xlu0 %v17073_v54, %s10305_s24  ;;  %v8487_v56 = vsel %vm1411_vm8, %v17015_v28, %v8456_v35 }
 0xd22   : > { %8357 = vrot.lane.b32.xlu1 %v17051_v45, %s10306_s29  ;;  %v17606_v35 = vrot.slane %v9137_v38, %v18674_v4  ;;  %19115 = vst [vmem:[#allocation3_spill] sm:$0xff] %v17609_v17  ;;  %v17612_v36 = vmul.f32 %v17568_v16, %v8487_v56  ;;  %v17615_v58 = vmul.f32 %v17571_v46, %v8483_v27 }
 0xd23   : > { %19112 = vst [vmem:[#allocation60_spill] sm:$0xff] %v17580_v29  ;;  %19113 = vst [vmem:[#allocation51_spill] sm:$0xff] %v17583_v11  ;;  %v8458_v12 = vpop.permute.xlu0 %8457  ;;  %v8472_v21 = vpop.permute.xlu1 %8471 }
 0xd24   : > { %v8484_v53 = vsel %vm1411_vm8, %v8458_v12, %v17032_v42  ;;  %v8488_v51 = vsel %vm1411_vm8, %v17021_v62, %v8458_v12  ;;  %19114 = vst [vmem:[#allocation6_spill] sm:$0xff] %v17606_v35  ;;  %19116 = vst [vmem:[#allocation85_spill] sm:$0xff] %v17612_v36  ;;  %v8479_v55 = vsel %vm1411_vm8, %v17023_v41, %v8472_v21 }
 0xd25   : > { %19117 = vst [vmem:[#allocation26_spill] sm:$0xff] %v17615_v58  ;;  %v17618_v9 = vmul.f32 %v17568_v16, %v8488_v51  ;;  %v17621_v29 = vmul.f32 %v17571_v46, %v8484_v53  ;;  %8273 = vrot.lane.b32.xlu0 %v17122_v48, %s10305_s24  ;;  %v8491_v4 = vsel %vm1411_vm8, %v8472_v21, %v17015_v28  ;;  %v8694_v53 = vld [vmem:[%s18104_s6 + $0x8] sm:$0xff] }
 0xd26   : > { %8373 = vrot.lane.b32.xlu1 %v17054_v63, %s10306_s29  ;;  %8769 = vmatprep.mubr.f32.mxu0 %v8694_v53  ;;  %v17647_v21 = vmul.f32 %v17606_v35, %v8479_v55  ;;  %v17650_v51 = vmul.f32 %v17609_v17, %v8491_v4 }
 0xd27   : > { %19118 = vst [vmem:[#allocation68_spill] sm:$0xff] %v17618_v9  ;;  %19119 = vst [vmem:[#allocation57_spill] sm:$0xff] %v17621_v29  ;;  %v8474_v27 = vpop.permute.xlu0 %8473  ;;  %v7722_v56 = vpop.permute.xlu1 %7721  ;;  %8911 = vmatprep.mubr.f32.mxu1 %v8694_v53 }
 0xd28   : > { %v8480_v41 = vsel %vm1411_vm8, %v17032_v42, %v8474_v27  ;;  %v8492_v28 = vsel %vm1411_vm8, %v8474_v27, %v17021_v62  ;;  %19120 = vst [vmem:[#allocation52_spill] sm:$0xff] %v17647_v21  ;;  %19121 = vst [vmem:[#allocation86_spill] sm:$0xff] %v17650_v51  ;;  %v8696_v62 = vld [vmem:[%s18105_s7] sm:$0xff] }
 0xd29   : > { %v17653_v38 = vmul.f32 %v17606_v35, %v8480_v41  ;;  %v17656_v12 = vmul.f32 %v17609_v17, %v8492_v28  ;;  %8359 = vrot.lane.b32.xlu0 %v17073_v54, %s10306_s29 }
 0xd2a   : > { %8459 = vrot.lane.b32.xlu1 %v17051_v45, %s10307_s15 }
 0xd2b   : > { %19122 = vst [vmem:[#allocation83_spill] sm:$0xff] %v17653_v38  ;;  %19123 = vst [vmem:[#allocation97_spill] sm:$0xff] %v17656_v12  ;;  %v7724_v42 = vpop.permute.xlu0 %7723  ;;  %v7738_v55 = vpop.permute.xlu1 %7737 }
 0xd2d   : > { %8375 = vrot.lane.b32.xlu0 %v17122_v48, %s10306_s29 }
 0xd2e   : > { %8467 = vrot.lane.b32.xlu1 %v16923_v14, %s10307_s15 }
 0xd2f   : > { %v7740_v27 = vpop.permute.xlu0 %7739  ;;  %v17670_v53 = vpop.permute.xlu1 %7823 }
 0xd31   : > { %8461 = vrot.lane.b32.xlu0 %v17073_v54, %s10307_s15 }
 0xd32   : > { %8475 = vrot.lane.b32.xlu1 %v17054_v63, %s10307_s15 }
 0xd33   : > { %v17676_v41 = vpop.permute.xlu0 %7825  ;;  %v17678_v28 = vpop.permute.xlu1 %7839 }
 0xd35   : > { %8477 = vrot.lane.b32.xlu0 %v17122_v48, %s10307_s15 }
 0xd36   : > { %8699 = vperm.xlu1 %10267, %v8696_v62  }
 0xd37   : > { %v17685_v4 = vpop.permute.xlu0 %7841  ;;  %v17687_v21 = vpop.permute.xlu1 %7925 }
 0xd3b   : > { %v17689_v38 = vpop.permute.xlu0 %7927  ;;  %v17691_v36 = vpop.permute.xlu1 %7941 }
 0xd3f   : > { %v17693_v9 = vpop.permute.xlu0 %7943  ;;  %v17695_v17 = vpop.permute.xlu1 %8027 }
 0xd43   : > { %v17697_v51 = vpop.permute.xlu0 %8029  ;;  %v17699_v12 = vpop.permute.xlu1 %8043 }
 0xd47   : > { %v17701_v35 = vpop.permute.xlu0 %8045  ;;  %v17703_v16 = vpop.permute.xlu1 %8145 }
 0xd4b   : > { %v17705_v62 = vpop.permute.xlu0 %8147  ;;  %v17707_v58 = vpop.permute.xlu1 %8161 }
 0xd4f   : > { %v17709_v29 = vpop.permute.xlu0 %8163  ;;  %v17711_v46 = vpop.permute.xlu1 %8247 }
 0xd50   : > { %19124 = vst [vmem:[#allocation34_spill] sm:$0xff] %v17711_v46 }
 0xd53   : > { %v17713_v47 = vpop.permute.xlu0 %8249  ;;  %v17715_v57 = vpop.permute.xlu1 %8263 }
 0xd54   : > { %19125 = vst [vmem:[#allocation53_spill] sm:$0xff] %v17713_v47  ;;  %19126 = vst [vmem:[#allocation69_spill] sm:$0xff] %v17715_v57  ;;  %v19132_v57 = vld [vmem:[#allocation94_spill] sm:$0xff] }
 0xd57   : > { %v17717_v1 = vpop.permute.xlu0 %8265  ;;  %v17719_v11 = vpop.permute.xlu1 %8349 }
 0xd58   : > { %19127 = vst [vmem:[#allocation71_spill] sm:$0xff] %v17717_v1  ;;  %19128 = vst [vmem:[#allocation70_spill] sm:$0xff] %v17719_v11 }
 0xd5b   : > { %v17721_v32 = vpop.permute.xlu0 %8351  ;;  %v17723_v59 = vpop.permute.xlu1 %8365 }
 0xd5c   : > { %19129 = vst [vmem:[#allocation54_spill] sm:$0xff] %v17721_v32  ;;  %19130 = vst [vmem:[#allocation72_spill] sm:$0xff] %v17723_v59 }
 0xd5f   : > { %v17725_v44 = vpop.permute.xlu0 %8367  ;;  %v7730_v60 = vpop.permute.xlu1 %7729 }
 0xd60   : > { %19131 = vst [vmem:[#allocation55_spill] sm:$0xff] %v17725_v44  ;;  %v7759_v0 = vsel %vm380_vm0, %v7722_v56, %v7730_v60  ;;  %v7755_v23 = vsel %vm380_vm0, %v7730_v60, %v7738_v55 }
 0xd61   : > { %v7796_v34 = vmul.f32 %v19132_v57, %v7759_v0  ;;  %v7797_v60 = vmul.f32 %v17086_v8, %v7755_v23 }
 0xd63   : > { %v7732_v6 = vpop.permute.xlu0 %7731  ;;  %v7746_v47 = vpop.permute.xlu1 %7745 }
 0xd64   : > { %v7760_v46 = vsel %vm380_vm0, %v7724_v42, %v7732_v6  ;;  %v7756_v11 = vsel %vm380_vm0, %v7732_v6, %v7740_v27  ;;  %v7751_v59 = vsel %vm380_vm0, %v7738_v55, %v7746_v47  ;;  %v7763_v44 = vsel %vm380_vm0, %v7746_v47, %v7722_v56 }
 0xd65   : > { %v7800_v32 = vmul.f32 %v19132_v57, %v7760_v46  ;;  %v7801_v5 = vmul.f32 %v17086_v8, %v7756_v11  ;;  %v7795_v46 = vmul.f32 %v17065_v33, %v7763_v44  ;;  %v7798_v14 = vmul.f32 %v19133_v13, %v7751_v59 }
 0xd67   : > { %v7748_v1 = vpop.permute.xlu0 %7747  ;;  %v9939_v24 = vpack.c.bf16 %v7800_v32, %v7796_v34  ;;  %v10013_v59 = vpack.c.bf16 %v7801_v5, %v7797_v60  ;;  %v19134_v5 = vpack.c.bf16 %v17144_v40, %v17138_v22  ;;  %v19135_v22 = vpack.c.bf16 %v17188_v20, %v17182_v39 }
 0xd68   : > { %v7752_v0 = vsel %vm380_vm0, %v7740_v27, %v7748_v1  ;;  %v7764_v6 = vsel %vm380_vm0, %v7748_v1, %v7724_v42  ;;  %v7832_v57 = vpop.permute.xlu1 %7831 }
 0xd69   : > { %v7799_v47 = vmul.f32 %v17065_v33, %v7764_v6  ;;  %v7802_v34 = vmul.f32 %v19133_v13, %v7752_v0  ;;  %9940 = vmatprep.subr.bf16.mxu0 %v9939_v24  ;;  %v7861_v32 = vsel %vm523_vm1, %v17670_v53, %v7832_v57 }
 0xd6a   : > { %v7898_v33 = vmul.f32 %v17092_v61, %v7861_v32 }
 0xd6b   : > { %v9941_v11 = vpack.c.bf16 %v7799_v47, %v7795_v46  ;;  %v7834_v56 = vpop.permute.xlu0 %7833  ;;  %v10011_v55 = vpack.c.bf16 %v7802_v34, %v7798_v14  ;;  %v19137_v47 = vld [vmem:[#allocation39_spill] sm:$0xff]  ;;  %v19138_v34 = vld [vmem:[#allocation36_spill] sm:$0xff] }
 0xd6c   : > { %v7862_v44 = vsel %vm523_vm1, %v17676_v41, %v7834_v56  ;;  %v7848_v1 = vpop.permute.xlu1 %7847  ;;  %v7858_v13 = vsel %vm523_vm1, %v7834_v56, %v17685_v4  ;;  %v19139_v32 = vpack.c.bf16 %v19137_v47, %v19138_v34 }
 0xd6d   : > { %v7902_v24 = vmul.f32 %v17092_v61, %v7862_v44  ;;  %9942 = vmatpush1.bf16.msra.mxu0 %v9941_v11  ;;  %v7853_v8 = vsel %vm523_vm1, %v17678_v28, %v7848_v1  ;;  %v7865_v14 = vsel %vm523_vm1, %v7848_v1, %v17670_v53  ;;  %10012 = vmatprep.subr.bf16.mxu1 %v10011_v55  ;;  %v19140_v11 = vld [vmem:[#allocation21_spill] sm:$0xff] }
 0xd6e   : > { %9944 = vmatprep.subr.bf16.mxu0 %v19134_v5  ;;  %10014 = vmatpush1.bf16.msra.mxu1 %v10013_v59  ;;  %v7857_v61 = vsel %vm523_vm1, %v7832_v57, %v17678_v28  ;;  %v7903_v27 = vmul.f32 %v17104_v7, %v7858_v13  ;;  %v7897_v6 = vmul.f32 %v17125_v43, %v7865_v14 }
 0xd6f   : > { %v7850_v23 = vpop.permute.xlu0 %7849  ;;  %v9947_v42 = vpack.c.bf16 %v7902_v24, %v7898_v33  ;;  %10016 = vmatprep.subr.bf16.mxu1 %v19135_v22  ;;  %v7900_v46 = vmul.f32 %v17135_v52, %v7853_v8  ;;  %v7899_v39 = vmul.f32 %v17104_v7, %v7857_v61  ;;  %v19141_v59 = vpack.c.bf16 %v17223_v25, %v17217_v19  ;;  %v19142_v8 = vld [vmem:[#allocation90_spill] sm:$0xff]  ;;  %v19145_v61 = vld [vmem:[#allocation80_spill] sm:$0xff]  ;;  %v19147_v22 = vld [vmem:[#allocation77_spill] sm:$0xff] }
 0xd70   : > { %v7854_v0 = vsel %vm523_vm1, %v17685_v4, %v7850_v23  ;;  %v7866_v53 = vsel %vm523_vm1, %v7850_v23, %v17676_v41  ;;  %v7934_v40 = vpop.permute.xlu1 %7933  ;;  %v19136_v4 = vpack.c.bf16 %v17185_v2, %v17179_v10  ;;  %v19143_v19 = vpack.c.bf16 %v17267_v49, %v17261_v15  ;;  %v19144_v23 = vld [vmem:[#allocation76_spill] sm:$0xff] }
 0xd71   : > { %v7901_v28 = vmul.f32 %v17125_v43, %v7866_v53  ;;  %v7904_v57 = vmul.f32 %v17135_v52, %v7854_v0  ;;  %v7963_v41 = vsel %vm667_vm2, %v17687_v21, %v7934_v40  ;;  %v10021_v2 = vpack.c.bf16 %v7903_v27, %v7899_v39  ;;  %v19146_v53 = vld [vmem:[#allocation46_spill] sm:$0xff] }
 0xd72   : > { %9946 = vmatpush1.bf16.msra.mxu0 %v19136_v4  ;;  %10018 = vmatpush1.bf16.msra.mxu1 %v19139_v32  ;;  %v8000_v56 = vmul.f32 %v19140_v11, %v7963_v41  ;;  %v7959_v24 = vsel %vm667_vm2, %v7934_v40, %v17691_v36  ;;  %v19149_v40 = vld [vmem:[#allocation74_spill] sm:$0xff] }
 0xd73   : > { %9948 = vmatprep.subr.bf16.mxu0 %v9947_v42  ;;  %v9949_v20 = vpack.c.bf16 %v7901_v28, %v7897_v6  ;;  %v7936_v60 = vpop.permute.xlu0 %7935  ;;  %v10019_v43 = vpack.c.bf16 %v7904_v57, %v7900_v46  ;;  %v8001_v15 = vmul.f32 %v19142_v8, %v7959_v24  ;;  %v19150_v6 = vld [vmem:[#allocation48_spill] sm:$0xff]  ;;  %v19158_v24 = vld [vmem:[#allocation87_spill] sm:$0xff] }
 0xd74   : > { %v7964_v52 = vsel %vm667_vm2, %v17689_v38, %v7936_v60  ;;  %v7950_v10 = vpop.permute.xlu1 %7949  ;;  %v7960_v55 = vsel %vm667_vm2, %v7936_v60, %v17693_v9  ;;  %v19151_v46 = vpack.c.bf16 %v19149_v40, %v19150_v6 }
 0xd75   : > { %v8004_v7 = vmul.f32 %v19140_v11, %v7964_v52  ;;  %v7955_v44 = vsel %vm667_vm2, %v17691_v36, %v7950_v10  ;;  %v7967_v1 = vsel %vm667_vm2, %v7950_v10, %v17687_v21  ;;  %10020 = vmatprep.subr.bf16.mxu1 %v10019_v43  ;;  %v8005_v14 = vmul.f32 %v19142_v8, %v7960_v55 }
 0xd76   : > { %9950 = vmatpush1.bf16.msra.mxu0 %v9949_v20  ;;  %10022 = vmatpush1.bf16.msra.mxu1 %v10021_v2  ;;  %v7999_v42 = vmul.f32 %v19144_v23, %v7967_v1  ;;  %v8002_v27 = vmul.f32 %v19145_v61, %v7955_v44  ;;  %v19152_v20 = vld [vmem:[#allocation59_spill] sm:$0xff]  ;;  %v19153_v52 = vpack.c.bf16 %v17302_v30, %v17296_v37  ;;  %v19156_v44 = vld [vmem:[#allocation81_spill] sm:$0xff] }
 0xd77   : > { %9952 = vmatprep.subr.bf16.mxu0 %v19141_v59  ;;  %v7952_v33 = vpop.permute.xlu0 %7951  ;;  %v9955_v13 = vpack.c.bf16 %v8004_v7, %v8000_v56  ;;  %10024 = vmatprep.subr.bf16.mxu1 %v19143_v19  ;;  %v10029_v39 = vpack.c.bf16 %v8005_v14, %v8001_v15  ;;  %v19154_v56 = vld [vmem:[#allocation66_spill] sm:$0xff]  ;;  %v19155_v37 = vpack.c.bf16 %v17346_v18, %v17340_v31  ;;  %v19157_v59 = vld [vmem:[#allocation37_spill] sm:$0xff]  ;;  %v19168_v15 = vld [vmem:[#allocation64_spill] sm:$0xff] }
 0xd78   : > { %v7956_v5 = vsel %vm667_vm2, %v17693_v9, %v7952_v33  ;;  %v7968_v21 = vsel %vm667_vm2, %v7952_v33, %v17689_v38  ;;  %v8036_v25 = vpop.permute.xlu1 %8035  ;;  %v19148_v9 = vpack.c.bf16 %v19146_v53, %v19147_v22  ;;  %v19161_v31 = vld [vmem:[#allocation13_spill] sm:$0xff]  ;;  %v19162_v18 = vld [vmem:[#allocation30_spill] sm:$0xff] }
 0xd79   : > { %v8003_v36 = vmul.f32 %v19144_v23, %v7968_v21  ;;  %v8006_v0 = vmul.f32 %v19145_v61, %v7956_v5  ;;  %v8065_v38 = vsel %vm811_vm3, %v17695_v17, %v8036_v25  ;;  %v8061_v11 = vsel %vm811_vm3, %v8036_v25, %v17699_v12  ;;  %v19164_v23 = vld [vmem:[#allocation67_spill] sm:$0xff] }
 0xd7a   : > { %9954 = vmatpush1.bf16.msra.mxu0 %v19148_v9  ;;  %10026 = vmatpush1.bf16.msra.mxu1 %v19151_v46  ;;  %v8102_v47 = vmul.f32 %v19152_v20, %v8065_v38  ;;  %v19163_v5 = vpack.c.bf16 %v19161_v31, %v19162_v18  ;;  %v9971_v38 = vpack.c.bf16 %v17073_v54, %v17051_v45  ;;  %v19189_v31 = vld [vmem:[#allocation69_spill] sm:$0xff] }
 0xd7b   : > { %9956 = vmatprep.subr.bf16.mxu0 %v9955_v13  ;;  %v9957_v49 = vpack.c.bf16 %v8003_v36, %v7999_v42  ;;  %v8038_v28 = vpop.permute.xlu0 %8037  ;;  %v10027_v57 = vpack.c.bf16 %v8006_v0, %v8002_v27  ;;  %v19165_v42 = vld [vmem:[#allocation41_spill] sm:$0xff]  ;;  %v19167_v0 = vld [vmem:[#allocation62_spill] sm:$0xff]  ;;  %v10043_v46 = vpack.c.bf16 %v17122_v48, %v17054_v63  ;;  %v9973_v45 = vpack.c.bf16 %v16926_v50, %v16908_v3  ;;  %v19175_v3 = vld [vmem:[#allocation20_spill] sm:$0xff] }
 0xd7c   : > { %v8066_v4 = vsel %vm811_vm3, %v17697_v51, %v8038_v28  ;;  %v8052_v41 = vpop.permute.xlu1 %8051  ;;  %v8062_v34 = vsel %vm811_vm3, %v8038_v28, %v17701_v35  ;;  %v9967_v61 = vpack.c.bf16 %v19165_v42, %v19164_v23  ;;  %v19166_v36 = vld [vmem:[#allocation65_spill] sm:$0xff]  ;;  %v19171_v28 = vld [vmem:[#allocation24_spill] sm:$0xff]  ;;  %v19174_v48 = vld [vmem:[#allocation78_spill] sm:$0xff] }
 0xd7d   : > { %v8106_v32 = vmul.f32 %v19152_v20, %v8066_v4  ;;  %v8057_v60 = vsel %vm811_vm3, %v17699_v12, %v8052_v41  ;;  %v8069_v43 = vsel %vm811_vm3, %v8052_v41, %v17695_v17  ;;  %10028 = vmatprep.subr.bf16.mxu1 %v10027_v57  ;;  %v8107_v55 = vmul.f32 %v19154_v56, %v8062_v34  ;;  %v19172_v57 = vld [vmem:[#allocation50_spill] sm:$0xff]  ;;  %v19176_v50 = vld [vmem:[#allocation40_spill] sm:$0xff] }
 0xd7e   : > { %9958 = vmatpush1.bf16.msra.mxu0 %v9957_v49  ;;  %10030 = vmatpush1.bf16.msra.mxu1 %v10029_v39  ;;  %v8101_v1 = vmul.f32 %v19156_v44, %v8069_v43  ;;  %v8104_v12 = vmul.f32 %v19157_v59, %v8057_v60  ;;  %v10039_v53 = vpack.c.bf16 %v19167_v0, %v19166_v36  ;;  %v19169_v49 = vld [vmem:[#allocation19_spill] sm:$0xff]  ;;  %v19194_v0 = vld [vmem:[#allocation53_spill] sm:$0xff] }
 0xd7f   : > { %9960 = vmatprep.subr.bf16.mxu0 %v19153_v52  ;;  %v8054_v10 = vpop.permute.xlu0 %8053  ;;  %v9963_v2 = vpack.c.bf16 %v8106_v32, %v8102_v47  ;;  %10032 = vmatprep.subr.bf16.mxu1 %v19155_v37  ;;  %v19170_v40 = vpack.c.bf16 %v19168_v15, %v19169_v49  ;;  %v19173_v4 = vpack.c.bf16 %v19171_v28, %v19172_v57  ;;  %v19177_v52 = vld [vmem:[#allocation49_spill] sm:$0xff]  ;;  %v19196_v49 = vld [vmem:[#allocation91_spill] sm:$0xff]  ;;  %v19197_v57 = vld [vmem:[#allocation84_spill] sm:$0xff] }
 0xd80   : > { %v8058_v7 = vsel %vm811_vm3, %v17701_v35, %v8054_v10  ;;  %v8070_v17 = vsel %vm811_vm3, %v8054_v10, %v17697_v51  ;;  %v17872_v30 = vpop.permute.xlu1 %8451  ;;  %v19159_v35 = vld [vmem:[#allocation96_spill] sm:$0xff]  ;;  %v8103_v51 = vmul.f32 %v19154_v56, %v8061_v11  ;;  %v10045_v32 = vpack.c.bf16 %v19176_v50, %v19175_v3  ;;  %v19178_v10 = vld [vmem:[#allocation9_spill] sm:$0xff] }
 0xd81   : > { %v8105_v33 = vmul.f32 %v19156_v44, %v8070_v17  ;;  %v8108_v13 = vmul.f32 %v19157_v59, %v8058_v7  ;;  %v19160_v8 = vpack.c.bf16 %v19158_v24, %v19159_v35  ;;  %v19180_v11 = vld [vmem:[#allocation12_spill] sm:$0xff]  ;;  %v19182_v44 = vld [vmem:[#allocation95_spill] sm:$0xff] }
 0xd82   : > { %10034 = vmatpush1.bf16.msra.mxu1 %v19163_v5  ;;  %v10037_v27 = vpack.c.bf16 %v8107_v55, %v8103_v51  ;;  %v19186_v51 = vld [vmem:[#allocation7_spill] sm:$0xff]  ;;  %v19202_v3 = vld [vmem:[#allocation16_spill] sm:$0xff] }
 0xd83   : > { %9962 = vmatpush1.bf16.msra.mxu0 %v19160_v8  ;;  %v9965_v14 = vpack.c.bf16 %v8105_v33, %v8101_v1  ;;  %v17885_v21 = vpop.permute.xlu0 %8453  ;;  %v10035_v19 = vpack.c.bf16 %v8108_v13, %v8104_v12  ;;  %v19184_v12 = vld [vmem:[#allocation14_spill] sm:$0xff]  ;;  %v19185_v13 = vld [vmem:[#allocation11_spill] sm:$0xff] }
 0xd84   : > { %9964 = vmatprep.subr.bf16.mxu0 %v9963_v2  ;;  %v8154_v25 = vpop.permute.xlu1 %8153  ;;  %v19179_v2 = vpack.c.bf16 %v19177_v52, %v19178_v10  ;;  %v19205_v52 = vld [vmem:[#allocation8_spill] sm:$0xff] }
 0xd85   : > { %10036 = vmatprep.subr.bf16.mxu1 %v10035_v19  ;;  %v8179_v6 = vsel %vm979_vm4, %v8154_v25, %v17707_v58  ;;  %v8183_v63 = vsel %vm979_vm4, %v17703_v16, %v8154_v25  ;;  %v19190_v19 = vld [vmem:[#allocation88_spill] sm:$0xff]  ;;  %v19191_v25 = vld [vmem:[#allocation33_spill] sm:$0xff] }
 0xd86   : > { %10038 = vmatpush1.bf16.msra.mxu1 %v10037_v27  ;;  %v8220_v47 = vmul.f32 %v19174_v48, %v8179_v6  ;;  %v8219_v17 = vmul.f32 %v19180_v11, %v8183_v63  ;;  %v19192_v23 = vpack.c.bf16 %v19190_v19, %v19191_v25  ;;  %v19193_v27 = vld [vmem:[#allocation71_spill] sm:$0xff]  ;;  %v19217_v25 = vld [vmem:[#allocation93_spill] sm:$0xff] }
 0xd87   : > { %9966 = vmatpush1.bf16.msra.mxu0 %v9965_v14  ;;  %v17891_v22 = vpop.permute.xlu0 %8469  ;;  %10040 = vmatprep.subr.bf16.mxu1 %v10039_v53  ;;  %v19187_v14 = vld [vmem:[#allocation45_spill] sm:$0xff] }
 0xd88   : > { %9968 = vmatprep.subr.bf16.mxu0 %v9967_v61  ;;  %v8170_v9 = vpop.permute.xlu1 %8169 }
 0xd89   : > { %v8175_v60 = vsel %vm979_vm4, %v17707_v58, %v8170_v9  ;;  %v8187_v43 = vsel %vm979_vm4, %v8170_v9, %v17703_v16  ;;  %v19181_v16 = vld [vmem:[#allocation31_spill] sm:$0xff] }
 0xd8a   : > { %10042 = vmatpush1.bf16.msra.mxu1 %v19173_v4  ;;  %v19183_v1 = vpack.c.bf16 %v19181_v16, %v19182_v44  ;;  %v8221_v33 = vmul.f32 %v19184_v12, %v8175_v60  ;;  %v8222_v24 = vmul.f32 %v19185_v13, %v8187_v43  ;;  %v19198_v4 = vld [vmem:[#allocation63_spill] sm:$0xff]  ;;  %v19204_v60 = vld [vmem:[#allocation10_spill] sm:$0xff]  ;;  %v19210_v44 = vld [vmem:[#allocation61_spill] sm:$0xff] }
 0xd8b   : > { %9970 = vmatpush1.bf16.msra.mxu0 %v19170_v40  ;;  %v8156_v41 = vpop.permute.xlu0 %8155  ;;  %10044 = vmatprep.subr.bf16.mxu1 %v10043_v46 }
 0xd8c   : > { %9972 = vmatprep.subr.bf16.mxu0 %v9971_v38  ;;  %v8180_v54 = vsel %vm979_vm4, %v8156_v41, %v17709_v29  ;;  %v8184_v39 = vsel %vm979_vm4, %v17705_v62, %v8156_v41  ;;  %v8256_v20 = vpop.permute.xlu1 %8255  ;;  %v19195_v38 = vld [vmem:[#allocation34_spill] sm:$0xff]  ;;  %v19199_v41 = vpack.c.bf16 %v19197_v57, %v19198_v4  ;;  %v19225_v57 = vld [vmem:[#allocation15_spill] sm:$0xff] }
 0xd8d   : > { %v8224_v34 = vmul.f32 %v19174_v48, %v8180_v54  ;;  %v8223_v56 = vmul.f32 %v19180_v11, %v8184_v39  ;;  %v8285_v15 = vsel %vm1123_vm5, %v19195_v38, %v8256_v20 }
 0xd8e   : > { %10046 = vmatpush1.bf16.msra.mxu1 %v10045_v32 }
 0xd8f   : > { %9974 = vmatpush1.bf16.msra.mxu0 %v9973_v45  ;;  %v8172_v55 = vpop.permute.xlu0 %8171  ;;  %v9979_v7 = vpack.c.bf16 %v8224_v34, %v8220_v47  ;;  %10048 = vmatprep.subr.bf16.mxu1 %v19183_v1  ;;  %v9981_v18 = vpack.c.bf16 %v8223_v56, %v8219_v17  ;;  %v19200_v45 = vld [vmem:[#allocation82_spill] sm:$0xff]  ;;  %v19201_v34 = vld [vmem:[#allocation79_spill] sm:$0xff]  ;;  %v19209_v17 = vld [vmem:[#allocation72_spill] sm:$0xff] }
 0xd90   : > { %9976 = vmatprep.subr.bf16.mxu0 %v19179_v2  ;;  %v8176_v37 = vsel %vm979_vm4, %v17709_v29, %v8172_v55  ;;  %v8188_v58 = vsel %vm979_vm4, %v8172_v55, %v17705_v62  ;;  %v8272_v59 = vpop.permute.xlu1 %8271  ;;  %v19188_v29 = vpack.c.bf16 %v19186_v51, %v19187_v14  ;;  %v8281_v62 = vsel %vm1123_vm5, %v8256_v20, %v19189_v31  ;;  %v19206_v56 = vld [vmem:[#allocation47_spill] sm:$0xff]  ;;  %v19207_v55 = vld [vmem:[#allocation92_spill] sm:$0xff]  ;;  %v19211_v1 = vld [vmem:[#allocation17_spill] sm:$0xff] }
 0xd91   : > { %v8225_v35 = vmul.f32 %v19184_v12, %v8176_v37  ;;  %v8226_v8 = vmul.f32 %v19185_v13, %v8188_v58  ;;  %v8322_v40 = vmul.f32 %v19196_v49, %v8281_v62  ;;  %v8277_v46 = vsel %vm1123_vm5, %v19189_v31, %v8272_v59  ;;  %v19213_v13 = vld [vmem:[#allocation55_spill] sm:$0xff]  ;;  %v19215_v14 = vld [vmem:[#allocation70_spill] sm:$0xff]  ;;  %v19216_v31 = vld [vmem:[#allocation32_spill] sm:$0xff] }
 0xd92   : > { %10050 = vmatpush1.bf16.msra.mxu1 %v19192_v23  ;;  %v8289_v28 = vsel %vm1123_vm5, %v8272_v59, %v19195_v38  ;;  %v8321_v63 = vmul.f32 %v19200_v45, %v8285_v15  ;;  %v19203_v50 = vpack.c.bf16 %v19201_v34, %v19202_v3  ;;  %v8323_v43 = vmul.f32 %v19204_v60, %v8277_v46  ;;  %v19218_v23 = vld [vmem:[#allocation23_spill] sm:$0xff]  ;;  %v19224_v46 = vld [vmem:[#allocation18_spill] sm:$0xff]  ;;  %v19229_v34 = vld [vmem:[#allocation60_spill] sm:$0xff] }
 0xd93   : > { %9978 = vmatpush1.bf16.msra.mxu0 %v19188_v29  ;;  %v10053_v5 = vpack.c.bf16 %v8225_v35, %v8221_v33  ;;  %v8258_v42 = vpop.permute.xlu0 %8257  ;;  %v10051_v61 = vpack.c.bf16 %v8226_v8, %v8222_v24  ;;  %v8324_v10 = vmul.f32 %v19205_v52, %v8289_v28  ;;  %v19212_v59 = vpack.c.bf16 %v19210_v44, %v19211_v1  ;;  %v19214_v35 = vld [vmem:[#allocation54_spill] sm:$0xff]  ;;  %v19221_v15 = vld [vmem:[#allocation51_spill] sm:$0xff]  ;;  %v19230_v3 = vld [vmem:[#allocation5_spill] sm:$0xff] }
 0xd94   : > { %9980 = vmatprep.subr.bf16.mxu0 %v9979_v7  ;;  %v8282_v36 = vsel %vm1123_vm5, %v8258_v42, %v19193_v27  ;;  %v8286_v53 = vsel %vm1123_vm5, %v19194_v0, %v8258_v42  ;;  %v8358_v9 = vpop.permute.xlu1 %8357  ;;  %v19208_v7 = vpack.c.bf16 %v19206_v56, %v19207_v55  ;;  %v19219_v42 = vpack.c.bf16 %v19217_v25, %v19218_v23  ;;  %v19236_v1 = vld [vmem:[#allocation43_spill] sm:$0xff]  ;;  %v19243_v25 = vld [vmem:[#allocation85_spill] sm:$0xff] }
 0xd95   : > { %v8326_v6 = vmul.f32 %v19196_v49, %v8282_v36  ;;  %10052 = vmatprep.subr.bf16.mxu1 %v10051_v61  ;;  %v8325_v54 = vmul.f32 %v19200_v45, %v8286_v53  ;;  %v8383_v37 = vsel %vm1267_vm7, %v8358_v9, %v19209_v17  ;;  %v8387_v29 = vsel %vm1267_vm7, %v19215_v14, %v8358_v9  ;;  %v19220_v61 = vld [vmem:[#allocation58_spill] sm:$0xff]  ;;  %v19222_v49 = vld [vmem:[#allocation27_spill] sm:$0xff] }
 0xd96   : > { %10054 = vmatpush1.bf16.msra.mxu1 %v10053_v5  ;;  %v8424_v62 = vmul.f32 %v19216_v31, %v8383_v37  ;;  %v8423_v53 = vmul.f32 %v19220_v61, %v8387_v29 }
 0xd97   : > { %9982 = vmatpush1.bf16.msra.mxu0 %v9981_v18  ;;  %v8274_v39 = vpop.permute.xlu0 %8273  ;;  %v9987_v20 = vpack.c.bf16 %v8326_v6, %v8322_v40  ;;  %10056 = vmatprep.subr.bf16.mxu1 %v19203_v50  ;;  %v9989_v58 = vpack.c.bf16 %v8325_v54, %v8321_v63  ;;  %v19223_v40 = vpack.c.bf16 %v19221_v15, %v19222_v49  ;;  %v19226_v54 = vld [vmem:[#allocation22_spill] sm:$0xff] }
 0xd98   : > { %9984 = vmatprep.subr.bf16.mxu0 %v19199_v41  ;;  %v8278_v48 = vsel %vm1123_vm5, %v19193_v27, %v8274_v39  ;;  %v8290_v47 = vsel %vm1123_vm5, %v8274_v39, %v19194_v0  ;;  %v8374_v32 = vpop.permute.xlu1 %8373  ;;  %v19227_v39 = vld [vmem:[#allocation75_spill] sm:$0xff]  ;;  %v19231_v50 = vpack.c.bf16 %v19229_v34, %v19230_v3 }
 0xd99   : > { %v8327_v2 = vmul.f32 %v19204_v60, %v8278_v48  ;;  %v8328_v11 = vmul.f32 %v19205_v52, %v8290_v47  ;;  %v8379_v5 = vsel %vm1267_vm7, %v19209_v17, %v8374_v32  ;;  %v8391_v19 = vsel %vm1267_vm7, %v8374_v32, %v19215_v14  ;;  %v8693_v17 = vld [vmem:[%s18104_s6] sm:$0xff]  ;;  %v19239_v14 = vld [vmem:[#allocation86_spill] sm:$0xff] }
 0xd9a   : > { %10058 = vmatpush1.bf16.msra.mxu1 %v19212_v59  ;;  %v8425_v28 = vmul.f32 %v19224_v46, %v8379_v5  ;;  %v8426_v4 = vmul.f32 %v19225_v57, %v8391_v19  ;;  %v19242_v19 = vld [vmem:[#allocation68_spill] sm:$0xff] }
 0xd9b   : > { %9986 = vmatpush1.bf16.msra.mxu0 %v19208_v7  ;;  %v10061_v16 = vpack.c.bf16 %v8327_v2, %v8323_v43  ;;  %v8360_v12 = vpop.permute.xlu0 %8359  ;;  %v10059_v33 = vpack.c.bf16 %v8328_v11, %v8324_v10  ;;  %v19232_v11 = vld [vmem:[#allocation25_spill] sm:$0xff]  ;;  %v19244_v23 = vpack.c.bf16 %v19242_v19, %v19243_v25 }
 0xd9c   : > { %9988 = vmatprep.subr.bf16.mxu0 %v9987_v20  ;;  %v8384_v24 = vsel %vm1267_vm7, %v8360_v12, %v19213_v13  ;;  %v8388_v8 = vsel %vm1267_vm7, %v19214_v35, %v8360_v12  ;;  %v8460_v51 = vpop.permute.xlu1 %8459  ;;  %v19228_v20 = vpack.c.bf16 %v19226_v54, %v19227_v39 }
 0xd9d   : > { %v8428_v18 = vmul.f32 %v19216_v31, %v8384_v24  ;;  %10060 = vmatprep.subr.bf16.mxu1 %v10059_v33  ;;  %v8427_v27 = vmul.f32 %v19220_v61, %v8388_v8  ;;  %v8489_v43 = vsel %vm1411_vm8, %v17872_v30, %v8460_v51  ;;  %v19237_v24 = vld [vmem:[#allocation6_spill] sm:$0xff]  ;;  %v19241_v31 = vld [vmem:[#allocation3_spill] sm:$0xff]  ;;  %v19247_v61 = vld [vmem:[#allocation52_spill] sm:$0xff] }
 0xd9e   : > { %10062 = vmatpush1.bf16.msra.mxu1 %v10061_v16  ;;  %v19234_v16 = vld [vmem:[#allocation26_spill] sm:$0xff]  ;;  %v8525_v59 = vmul.f32 %v19236_v1, %v8489_v43 }
 0xd9f   : > { %9990 = vmatpush1.bf16.msra.mxu0 %v9989_v58  ;;  %v8376_v36 = vpop.permute.xlu0 %8375  ;;  %v9995_v0 = vpack.c.bf16 %v8428_v18, %v8424_v62  ;;  %10064 = vmatprep.subr.bf16.mxu1 %v19223_v40  ;;  %v9997_v48 = vpack.c.bf16 %v8427_v27, %v8423_v53  ;;  %v19233_v58 = vld [vmem:[#allocation57_spill] sm:$0xff] }
 0xda0   : > { %9992 = vmatprep.subr.bf16.mxu0 %v19219_v42  ;;  %v8380_v9 = vsel %vm1267_vm7, %v19213_v13, %v8376_v36  ;;  %v8392_v38 = vsel %vm1267_vm7, %v8376_v36, %v19214_v35  ;;  %v8468_v6 = vpop.permute.xlu1 %8467  ;;  %v19235_v44 = vpack.c.bf16 %v19233_v58, %v19234_v16  ;;  %v19246_v42 = vld [vmem:[#allocation83_spill] sm:$0xff] }
 0xda1   : > { %v8429_v41 = vmul.f32 %v19224_v46, %v8380_v9  ;;  %v8430_v45 = vmul.f32 %v19225_v57, %v8392_v38  ;;  %v8485_v63 = vsel %vm1411_vm8, %v8460_v51, %v8468_v6  ;;  %v19238_v51 = vld [vmem:[#allocation97_spill] sm:$0xff]  ;;  %v19248_v27 = vpack.c.bf16 %v19246_v42, %v19247_v61 }
 0xda2   : > { %10066 = vmatpush1.bf16.msra.mxu1 %v19231_v50  ;;  %v8526_v56 = vmul.f32 %v19232_v11, %v8485_v63  ;;  %v19240_v29 = vpack.c.bf16 %v19238_v51, %v19239_v14 }
 0xda3   : > { %9994 = vmatpush1.bf16.msra.mxu0 %v19228_v20  ;;  %v10069_v47 = vpack.c.bf16 %v8429_v41, %v8425_v28  ;;  %v8462_v32 = vpop.permute.xlu0 %8461  ;;  %v10067_v60 = vpack.c.bf16 %v8430_v45, %v8426_v4 }
 0xda4   : > { %9996 = vmatprep.subr.bf16.mxu0 %v9995_v0  ;;  %v8486_v52 = vsel %vm1411_vm8, %v8462_v32, %v17891_v22  ;;  %v8490_v10 = vsel %vm1411_vm8, %v17885_v21, %v8462_v32  ;;  %v8476_v2 = vpop.permute.xlu1 %8475  ;;  %v8695_v0 = vld [vmem:[%s18104_s6 + $0x10] sm:$0xff] }
 0xda5   : > { %v8530_v55 = vmul.f32 %v19232_v11, %v8486_v52  ;;  %v8481_v7 = vsel %vm1411_vm8, %v8468_v6, %v8476_v2  ;;  %v8493_v37 = vsel %vm1411_vm8, %v8476_v2, %v17872_v30  ;;  %10068 = vmatprep.subr.bf16.mxu1 %v10067_v60  ;;  %v8529_v12 = vmul.f32 %v19236_v1, %v8490_v10 }
 0xda6   : > { %10070 = vmatpush1.bf16.msra.mxu1 %v10069_v47  ;;  %v8527_v35 = vmul.f32 %v19237_v24, %v8481_v7  ;;  %v8528_v62 = vmul.f32 %v19241_v31, %v8493_v37 }
 0xda7   : > { %9998 = vmatpush1.bf16.msra.mxu0 %v9997_v48  ;;  %v8478_v33 = vpop.permute.xlu0 %8477  ;;  %v10003_v13 = vpack.c.bf16 %v8530_v55, %v8526_v56  ;;  %10072 = vmatprep.subr.bf16.mxu1 %v19240_v29  ;;  %v10005_v26 = vpack.c.bf16 %v8529_v12, %v8525_v59 }
 0xda8   : > { %10000 = vmatprep.subr.bf16.mxu0 %v19235_v44  ;;  %v8482_v8 = vsel %vm1411_vm8, %v17891_v22, %v8478_v33  ;;  %v8494_v30 = vsel %vm1411_vm8, %v8478_v33, %v17885_v21  ;;  %v19245_v22 = vmov 0.0  }
 0xda9   : > { %v8531_v18 = vmul.f32 %v19237_v24, %v8482_v8  ;;  %v8532_v5 = vmul.f32 %v19241_v31, %v8494_v30  ;;  %8912 = vmatmul.mubr.f32.vlgmr.msra.gmra.mrb[40].mxu1 %v8693_v17 }
 0xdaa   : > { %8770 = vmatmul.mubr.f32.vlgmr.msra.gmra.mrb[40].mxu0 %v8693_v17  ;;  %10074 = vmatpush1.bf16.msra.mxu1 %v19248_v27 }
 0xdab   : > { %10002 = vmatpush1.bf16.msra.mxu0 %v19244_v23  ;;  %8840 = vmatprep.mubr.f32.mxu0 %v19245_v22  ;;  %v10077_v21 = vpack.c.bf16 %v8531_v18, %v8527_v35  ;;  %v10075_v36 = vpack.c.bf16 %v8532_v5, %v8528_v62 }
 0xdac   : > { %10004 = vmatprep.subr.bf16.mxu0 %v10003_v13  ;;  %8982 = vmatprep.mubr.f32.mxu1 %v19245_v22 }
 0xdad   : > { %10076 = vmatprep.subr.bf16.mxu1 %v10075_v36 }
 0xdae   : > { %10078 = vmatpush1.bf16.msra.mxu1 %v10077_v21 }
 0xdaf   : > { %10006 = vmatpush1.bf16.msra.mxu0 %v10005_v26 }
 0xdb1   : > { %9139 = vmatmul.mubr.msk.f32.vlgmr.msra.gmra.mrb[40].mxu1 %vm3144_vm9, %v8695_v0 }
 0xdb2   : > { %9138 = vmatmul.mubr.msk.f32.vlgmr.msra.gmra.mrb[40].mxu0 %vm3144_vm9, %v8695_v0 }
 0xdb5   : > { %v8700_v53 = vpop.permute.xlu1 %8699 }
 0xe84   : > { %v8984_v40 = vpop.f32.mrb[40].mxu1 }
 0xe85   : > { %v8842_v9 = vpop.f32.mrb[40].mxu0  ;;  %v10161_v6 = vadd.f32 %v8984_v40, %v8700_v53  ;;  %v8986_v46 = vpop.f32.mrb[41].mxu1 }
 0xe86   : > { %v10159_v38 = vadd.f32 %v8842_v9, %v8700_v53  ;;  %v8844_v15 = vpop.f32.mrb[41].mxu0  ;;  %v10162_v28 = vadd.f32 %v8986_v46, %v8700_v53 }
 0xe87   : > { %v10160_v49 = vadd.f32 %v8844_v15, %v8700_v53  ;;  %8991 = vst [vmem:[%s305_s17 + $0x10] sm:$0xff] %v10161_v6 }
 0xe88   : > { %8989 = vst [vmem:[%s305_s17] sm:$0xff] %v10159_v38  ;;  %8992 = vst [vmem:[%s305_s17 + $0x18] sm:$0xff] %v10162_v28 }
 0xe89   : > { %8990 = vst [vmem:[%s305_s17 + $0x8] sm:$0xff] %v10160_v49 }
 0xe8a PF: > { %s18_s27 = sadd.s32 1, %s10298_s27  }
 0xe8b   : > { %p15_p4 = scmp.ge.s32.totalorder %s18_s27, 4  }
 0xe8d   :  { %17 = sbr.rel (!%p15_p4) target bundleno = 1 (0x1), region = 89 }

</bundles_post_ra>
